<compile_context>
chip_gen: v7x
topology: tpu7x:2x2x1
jax: 0.10.0
libtpu: 0.0.40
codegen_flags: <defaults>
</compile_context>

<pallas_src>
import math

import jax
import jax.numpy as jnp
from jax.experimental import pallas as pl
from jax.experimental.pallas import tpu as pltpu

FEATURE_SIZE = 46088           # feature_size in the PyTorch module
REDUCED_FEATURE_SIZE = 900     # reduced_feature_size2 in the PyTorch module

TILE_F = 2048                  # tile along the 46k feature dim (enc K / dec N)


def _round_up(x, m):
    return int(math.ceil(x / m) * m)


# ----------------------------------------------------------------------------
# Encoder kernel:  h = x @ w1_t + b1     (K-reduction grid, f32 accumulator)
# ----------------------------------------------------------------------------
def _encoder_kernel(x_ref, w_ref, b_ref, o_ref, acc_ref):
    k = pl.program_id(0)

    @pl.when(k == 0)
    def _():
        acc_ref[...] = jnp.zeros_like(acc_ref)

    acc_ref[...] += jnp.dot(
        x_ref[...].astype(jnp.bfloat16),      # activations -> bf16 on the fly
        w_ref[...],                           # weights already bf16 in HBM
        preferred_element_type=jnp.float32,   # f32 MXU accumulation
    )

    @pl.when(k == pl.num_programs(0) - 1)
    def _():
        o_ref[...] = (acc_ref[...] + b_ref[...]).astype(o_ref.dtype)


def encoder_pallas(x, w1_t, b1):
    """x: [M, Kp] f32, w1_t: [Kp, Hp] bf16, b1: [1, Hp] f32  ->  [M, Hp] f32."""
    M, Kp = x.shape
    Kp2, Hp = w1_t.shape
    assert Kp == Kp2 and Kp % TILE_F == 0 and M % 8 == 0 and Hp % 8 == 0

    return pl.pallas_call(
        _encoder_kernel,
        out_shape=jax.ShapeDtypeStruct((M, Hp), jnp.float32),
        grid_spec=pltpu.PrefetchScalarGridSpec(
            num_scalar_prefetch=0,
            grid=(Kp // TILE_F,),
            in_specs=[
                pl.BlockSpec((M, TILE_F), lambda k: (0, k)),    # x K-tile
                pl.BlockSpec((TILE_F, Hp), lambda k: (k, 0)),   # w1 K-tile (bf16)
                pl.BlockSpec((1, Hp), lambda k: (0, 0)),        # bias (full)
            ],
            out_specs=pl.BlockSpec((M, Hp), lambda k: (0, 0)),  # resident output
            scratch_shapes=[pltpu.VMEM((M, Hp), jnp.float32)],
        ),
        compiler_params=pltpu.CompilerParams(
            dimension_semantics=("arbitrary",),                 # K is a reduction
        ),
    )(x, w1_t, b1)


# ----------------------------------------------------------------------------
# Decoder kernel:  y = tanh(h @ w2_t + b2)   (single K step -> no accumulator)
# ----------------------------------------------------------------------------
def _decoder_kernel(h_ref, w_ref, b_ref, o_ref):
    y = jnp.dot(
        h_ref[...].astype(jnp.bfloat16),
        w_ref[...],
        preferred_element_type=jnp.float32,
    )
    o_ref[...] = jnp.tanh(y + b_ref[...]).astype(o_ref.dtype)


def decoder_pallas(h, w2_t, b2):
    """h: [M, Hp] f32, w2_t: [Hp, Fp] bf16, b2: [1, Fp] f32  ->  [M, Fp] f32."""
    M, Hp = h.shape
    Hp2, Fp = w2_t.shape
    assert Hp == Hp2 and Fp % TILE_F == 0 and M % 8 == 0 and Hp % 8 == 0

    return pl.pallas_call(
        _decoder_kernel,
        out_shape=jax.ShapeDtypeStruct((M, Fp), jnp.float32),
        grid_spec=pltpu.PrefetchScalarGridSpec(
            num_scalar_prefetch=0,
            grid=(Fp // TILE_F,),
            in_specs=[
                pl.BlockSpec((M, Hp), lambda j: (0, 0)),        # h (revisited -> no re-DMA)
                pl.BlockSpec((Hp, TILE_F), lambda j: (0, j)),   # w2 N-tile (bf16)
                pl.BlockSpec((1, TILE_F), lambda j: (0, j)),    # bias N-tile
            ],
            out_specs=pl.BlockSpec((M, TILE_F), lambda j: (0, j)),  # lane-dense stores
        ),
        compiler_params=pltpu.CompilerParams(
            dimension_semantics=("parallel",),
        ),
    )(h, w2_t, b2)


# ----------------------------------------------------------------------------
# Parameter preparation (one-time): pad + transpose + cast weights to bf16
# ----------------------------------------------------------------------------
def prepare_params(params):
    """PyTorch-layout params -> padded, pre-transposed, bf16-weight params."""
    w1, b1, w2, b2 = params            # w1: [H, F], w2: [F, H] (PyTorch layout)
    H, F = w1.shape
    Fp = _round_up(F, TILE_F)          # 46088 -> 47104
    Hp = _round_up(H, 8)               # 900   -> 904 (full-dim blocks, %8 ok)

    w1_t = jnp.zeros((Fp, Hp), jnp.bfloat16).at[:F, :H].set(
        w1.T.astype(jnp.bfloat16))
    b1p = jnp.zeros((1, Hp), jnp.float32).at[0, :H].set(b1.astype(jnp.float32))
    w2_t = jnp.zeros((Hp, Fp), jnp.bfloat16).at[:H, :F].set(
        w2.T.astype(jnp.bfloat16))
    b2p = jnp.zeros((1, Fp), jnp.float32).at[0, :F].set(b2.astype(jnp.float32))
    return (w1_t, b1p, w2_t, b2p)


# ----------------------------------------------------------------------------
# Autoencoder forward (only the small input x is padded per call)
# ----------------------------------------------------------------------------
def autoencoder_forward(x, padded_params):
    """x: [B, FEATURE_SIZE] f32 -> [B, FEATURE_SIZE] f32."""
    w1_t, b1p, w2_t, b2p = padded_params
    B, F = x.shape
    Fp, Hp = w1_t.shape

    Bp = _round_up(max(B, 8), 8)
    xp = jnp.zeros((Bp, Fp), jnp.float32).at[:B, :F].set(x.astype(jnp.float32))

    h = encoder_pallas(xp, w1_t, b1p)      # [Bp, Hp]
    y = decoder_pallas(h, w2_t, b2p)       # [Bp, Fp]
    return y[:B, :F]


def init_params(key, feature_size, hidden_size, dtype=jnp.float32):
    """PyTorch nn.Linear default init: U(-1/sqrt(fan_in), +1/sqrt(fan_in))."""
    k1, k2, k3, k4 = jax.random.split(key, 4)
    s1 = 1.0 / math.sqrt(feature_size)
    s2 = 1.0 / math.sqrt(hidden_size)
    w1 = jax.random.uniform(k1, (hidden_size, feature_size), dtype, -s1, s1)
    b1 = jax.random.uniform(k2, (hidden_size,), dtype, -s1, s1)
    w2 = jax.random.uniform(k3, (feature_size, hidden_size), dtype, -s2, s2)
    b2 = jax.random.uniform(k4, (feature_size,), dtype, -s2, s2)
    return (w1, b1, w2, b2)


if __name__ == "__main__":
    key = jax.random.PRNGKey(0)
    kx, kp = jax.random.split(key)

    B = 2  # small batch
    x = jax.random.normal(kx, (B, FEATURE_SIZE), jnp.float32)
    params = init_params(kp, FEATURE_SIZE, REDUCED_FEATURE_SIZE)

    # One-time prep: pad / transpose / bf16-cast weights outside the hot path.
    padded_params = jax.block_until_ready(prepare_params(params))

    fwd = jax.jit(autoencoder_forward)
    out = jax.block_until_ready(fwd(x, padded_params))
    assert out.shape == (B, FEATURE_SIZE) and out.dtype == jnp.float32

    # Correctness check against a pure-JAX f32 reference (tolerance absorbs
    # the bf16 weight/activation quantization).
    w1, b1, w2, b2 = params
    ref = jnp.tanh((x @ w1.T + b1) @ w2.T + b2)
    assert jnp.allclose(out, ref, atol=2e-2, rtol=2e-2), float(
        jnp.max(jnp.abs(out - ref)))

    print("KERNEL_OK")
</pallas_src>

<mosaic_0001>
module attributes {stable_mosaic.version = 11 : i64} {
  func.func @_decoder_kernel(%arg0: i32, %arg1: memref<8x904xf32, #tpu.memory_space<vmem>>, %arg2: memref<904x2048xbf16, #tpu.memory_space<vmem>>, %arg3: memref<1x2048xf32, #tpu.memory_space<vmem>>, %arg4: memref<8x2048xf32, #tpu.memory_space<vmem>>) attributes {dimension_semantics = [#tpu.dimension_semantics<parallel>], iteration_bounds = array<i64: 23>, scalar_prefetch = 0 : i64, scratch_operands = 0 : i64, tpu.core_type = #tpu.core_type<tc>, window_params = [{pipeline_mode = #tpu.pipeline_mode<synchronous>, transform_indices = @transform_0, window_bounds = array<i64: 8, 904>}, {transform_indices = @transform_1, window_bounds = array<i64: 904, 2048>}, {transform_indices = @transform_2, window_bounds = array<i64: 1, 2048>}, {transform_indices = @transform_3, window_bounds = array<i64: 8, 2048>}]} {
    %c0 = arith.constant 0 : index
    %c0_0 = arith.constant 0 : index
    %0 = vector.load %arg1[%c0, %c0_0] : memref<8x904xf32, #tpu.memory_space<vmem>>, vector<8x904xf32>
    %1 = arith.truncf %0 : vector<8x904xf32> to vector<8x904xbf16>
    %c0_1 = arith.constant 0 : index
    %c0_2 = arith.constant 0 : index
    %2 = vector.load %arg2[%c0_1, %c0_2] : memref<904x2048xbf16, #tpu.memory_space<vmem>>, vector<904x2048xbf16>
    %cst = arith.constant dense<0.000000e+00> : vector<8x2048xf32>
    %3 = tpu.matmul %1, %2, %cst {dimension_numbers = #tpu.dot_dimension_numbers<[1], [0], [0], [1], [0, 0, 1, 1], [], []>} : vector<8x904xbf16>, vector<904x2048xbf16>, vector<8x2048xf32> -> vector<8x2048xf32>
    %c0_3 = arith.constant 0 : index
    %c0_4 = arith.constant 0 : index
    %4 = vector.load %arg3[%c0_3, %c0_4] : memref<1x2048xf32, #tpu.memory_space<vmem>>, vector<1x2048xf32>
    %5 = vector.broadcast %4 : vector<1x2048xf32> to vector<8x2048xf32>
    %6 = arith.addf %3, %5 : vector<8x2048xf32>
    %7 = math.tanh %6 : vector<8x2048xf32>
    %c0_5 = arith.constant 0 : index
    %c0_6 = arith.constant 0 : index
    %8 = vector.load %arg4[%c0_5, %c0_6] : memref<8x2048xf32, #tpu.memory_space<vmem>>, vector<8x2048xf32>
    tpu.vector_store %arg4[%c0_5, %c0_6], %7 {strides = array<i32>} : memref<8x2048xf32, #tpu.memory_space<vmem>>, vector<8x2048xf32>,
    return
  }
  func.func @transform_0(%arg0: i32) -> (i32, i32) {
    %c0_i32 = arith.constant 0 : i32
    %c0_i32_0 = arith.constant 0 : i32
    %c0_i32_1 = arith.constant 0 : i32
    return %c0_i32, %c0_i32_0 : i32, i32
  }
  func.func @transform_1(%arg0: i32) -> (i32, i32) {
    %c0_i32 = arith.constant 0 : i32
    %c0_i32_0 = arith.constant 0 : i32
    return %c0_i32, %arg0 : i32, i32
  }
  func.func @transform_2(%arg0: i32) -> (i32, i32) {
    %c0_i32 = arith.constant 0 : i32
    %c0_i32_0 = arith.constant 0 : i32
    return %c0_i32, %arg0 : i32, i32
  }
  func.func @transform_3(%arg0: i32) -> (i32, i32) {
    %c0_i32 = arith.constant 0 : i32
    %c0_i32_0 = arith.constant 0 : i32
    return %c0_i32, %arg0 : i32, i32
  }
}

module attributes {stable_mosaic.version = 11 : i64} {
  func.func @_encoder_kernel(%arg0: i32, %arg1: memref<8x2048xf32, #tpu.memory_space<vmem>>, %arg2: memref<2048x904xbf16, #tpu.memory_space<vmem>>, %arg3: memref<1x904xf32, #tpu.memory_space<vmem>>, %arg4: memref<8x904xf32, #tpu.memory_space<vmem>>, %arg5: memref<8x904xf32, #tpu.memory_space<vmem>>) attributes {dimension_semantics = [#tpu.dimension_semantics<arbitrary>], iteration_bounds = array<i64: 23>, scalar_prefetch = 0 : i64, scratch_operands = 1 : i64, tpu.core_type = #tpu.core_type<tc>, window_params = [{transform_indices = @transform_0, window_bounds = array<i64: 8, 2048>}, {transform_indices = @transform_1, window_bounds = array<i64: 2048, 904>}, {pipeline_mode = #tpu.pipeline_mode<synchronous>, transform_indices = @transform_2, window_bounds = array<i64: 1, 904>}, {pipeline_mode = #tpu.pipeline_mode<synchronous>, transform_indices = @transform_3, window_bounds = array<i64: 8, 904>}]} {
    %c0_i32 = arith.constant 0 : i32
    %0 = arith.cmpi eq, %arg0, %c0_i32 : i32
    %1 = arith.extui %0 : i1 to i32
    %c0_i32_0 = arith.constant 0 : i32
    %2 = arith.cmpi ne, %1, %c0_i32_0 : i32
    scf.if %2 {
      %cst_9 = arith.constant 0.000000e+00 : f32
      %13 = vector.broadcast %cst_9 : f32 to vector<8x904xf32>
      %c0_10 = arith.constant 0 : index
      %c0_11 = arith.constant 0 : index
      %14 = vector.load %arg5[%c0_10, %c0_11] : memref<8x904xf32, #tpu.memory_space<vmem>>, vector<8x904xf32>
      tpu.vector_store %arg5[%c0_10, %c0_11], %13 {strides = array<i32>} : memref<8x904xf32, #tpu.memory_space<vmem>>, vector<8x904xf32>,
    } else {
    }
    %c0 = arith.constant 0 : index
    %c0_1 = arith.constant 0 : index
    %3 = vector.load %arg5[%c0, %c0_1] : memref<8x904xf32, #tpu.memory_space<vmem>>, vector<8x904xf32>
    %c0_2 = arith.constant 0 : index
    %c0_3 = arith.constant 0 : index
    %4 = vector.load %arg1[%c0_2, %c0_3] : memref<8x2048xf32, #tpu.memory_space<vmem>>, vector<8x2048xf32>
    %5 = arith.truncf %4 : vector<8x2048xf32> to vector<8x2048xbf16>
    %c0_4 = arith.constant 0 : index
    %c0_5 = arith.constant 0 : index
    %6 = vector.load %arg2[%c0_4, %c0_5] : memref<2048x904xbf16, #tpu.memory_space<vmem>>, vector<2048x904xbf16>
    %cst = arith.constant dense<0.000000e+00> : vector<8x904xf32>
    %7 = tpu.matmul %5, %6, %cst {dimension_numbers = #tpu.dot_dimension_numbers<[1], [0], [0], [1], [0, 0, 1, 1], [], []>} : vector<8x2048xbf16>, vector<2048x904xbf16>, vector<8x904xf32> -> vector<8x904xf32>
    %8 = arith.addf %3, %7 : vector<8x904xf32>
    %c0_6 = arith.constant 0 : index
    %c0_7 = arith.constant 0 : index
    %9 = vector.load %arg5[%c0_6, %c0_7] : memref<8x904xf32, #tpu.memory_space<vmem>>, vector<8x904xf32>
    tpu.vector_store %arg5[%c0_6, %c0_7], %8 {strides = array<i32>} : memref<8x904xf32, #tpu.memory_space<vmem>>, vector<8x904xf32>,
    %c22_i32 = arith.constant 22 : i32
    %10 = arith.cmpi eq, %arg0, %c22_i32 : i32
    %11 = arith.extui %10 : i1 to i32
    %c0_i32_8 = arith.constant 0 : i32
    %12 = arith.cmpi ne, %11, %c0_i32_8 : i32
    scf.if %12 {
      %c0_9 = arith.constant 0 : index
      %c0_10 = arith.constant 0 : index
      %13 = vector.load %arg5[%c0_9, %c0_10] : memref<8x904xf32, #tpu.memory_space<vmem>>, vector<8x904xf32>
      %c0_11 = arith.constant 0 : index
      %c0_12 = arith.constant 0 : index
      %14 = vector.load %arg3[%c0_11, %c0_12] : memref<1x904xf32, #tpu.memory_space<vmem>>, vector<1x904xf32>
      %15 = vector.broadcast %14 : vector<1x904xf32> to vector<8x904xf32>
      %16 = arith.addf %13, %15 : vector<8x904xf32>
      %c0_13 = arith.constant 0 : index
      %c0_14 = arith.constant 0 : index
      %17 = vector.load %arg4[%c0_13, %c0_14] : memref<8x904xf32, #tpu.memory_space<vmem>>, vector<8x904xf32>
      tpu.vector_store %arg4[%c0_13, %c0_14], %16 {strides = array<i32>} : memref<8x904xf32, #tpu.memory_space<vmem>>, vector<8x904xf32>,
    } else {
    }
    return
  }
  func.func @transform_0(%arg0: i32) -> (i32, i32) {
    %c0_i32 = arith.constant 0 : i32
    %c0_i32_0 = arith.constant 0 : i32
    return %c0_i32, %arg0 : i32, i32
  }
  func.func @transform_1(%arg0: i32) -> (i32, i32) {
    %c0_i32 = arith.constant 0 : i32
    %c0_i32_0 = arith.constant 0 : i32
    return %arg0, %c0_i32 : i32, i32
  }
  func.func @transform_2(%arg0: i32) -> (i32, i32) {
    %c0_i32 = arith.constant 0 : i32
    %c0_i32_0 = arith.constant 0 : i32
    %c0_i32_1 = arith.constant 0 : i32
    return %c0_i32, %c0_i32_0 : i32, i32
  }
  func.func @transform_3(%arg0: i32) -> (i32, i32) {
    %c0_i32 = arith.constant 0 : i32
    %c0_i32_0 = arith.constant 0 : i32
    %c0_i32_1 = arith.constant 0 : i32
    return %c0_i32, %c0_i32_0 : i32, i32
  }
}

</mosaic_0001>

<bundles_post_ra>
// kernel: autoencoder_forward.3
= control target key start
LH: loop header
LB: loop body
LE: loop exit
PB: predicated region body
PF: predicated region fallthrough
CT: control target
= control target key end

     0   :  { %8 = vsyncpa [#allocation3], 0  ;;  %s9668_s0 = inlined_call_operand.vmem [shape: f32[8,904], index: 0, kind: input, shape index: {}]   ;;  %s9669_s1 = inlined_call_operand.hbm [shape: bf16[904,47104], index: 1, kind: input, shape index: {}]   ;;  %s9670_s2 = inlined_call_operand.vmem [shape: f32[1,47104], index: 2, kind: input, shape index: {}]   ;;  %s9671_s3 = inlined_call_operand.vmem [shape: f32[8,47104], index: 3, kind: output, shape index: {}]  }
   0x1   :  { %10 = vsyncpa [#allocation3 + $0x1], 0  ;;  %s8446_s12 = smov 0   ;;  %s8448_s13 = smov 0  }
   0x2   :  { %s8450_s14 = smov 0   ;;  %s8452_s15 = smov 0  }
   0x3 LB: > { %s7210_s16 = sadd.s32 4294967295, %s8420_s15   ;;  %s8466_s17 = sadd.s32 1, %s8420_s15   ;;  %s8420_s15 = sphi %s8452_s15, %s9677_s15   ;;  %s8416_s14 = sphi %s8450_s14, %s9676_s14   ;;  %s8412_s13 = sphi %s8448_s13, %s9675_s13   ;;  %s8408_s12 = sphi %s8446_s12, %s9674_s12  }
   0x4   : > { %s41_s18 = ssub.s32 %s8420_s15, %s8466_s17  ;;  %s44_s19 = sadd.s32 1, %s8416_s14 }
   0x5   : > { %p42_p0 = scmp.eq.s32.totalorder %s41_s18, 0  ;;  %p51_p1 = scmp.ne.s32.totalorder %s8416_s14, %s8412_s13 }
   0x6   : > { %p52_p2 = scmp.eq.s32.totalorder %s8420_s15, 0  ;;  %p57_p3 = scmp.ne.s32.totalorder %s8412_s13, %s8408_s12 }
   0x7   : > { %s8476_s20 = scalar_select %p42_p0, %s8416_s14, %s44_s19  }
   0x8   : > { %p53_p4 = por %p52_p2, %p51_p1  ;;  %p58_p5 = scmp.eq.s32.totalorder %s7210_s16, 0 }
   0x9   : > { %p8271_p6 = scmp.lt.s32.totalorder %s8420_s15, 23  ;;  %s136_s22 = sand.u32 1, %s8416_s14  }
   0xa   : > { %p8481_p7 = por %p58_p5, %p57_p3  ;;  %s8263_s23 = smul.u32 7232, %s136_s22 }
   0xb   : > { %s8150_s24 = sshll.u32 %s8420_s15, 10  ;;  %p8487_p8 = pnand %p8271_p6, %p53_p4 }
   0xc   : > { %s8494_s28 = scalar_lea.hbm %s9669_s1, %s8150_s24  ;;  %s140_s29 = scalar_lea.vmem [#allocation2], %s8263_s23 }
   0xd   : > { %s147_s30 = sshll.u32 %s140_s29, 4  ;;  %s8498_s4 = scalar_lea.sflag [#allocation3], %s136_s22  ;;  %s8496_s30 = int_to_ptr.vmem [resolvable:$true] %s147_s30 }
   0xe   : > { %s8356_s5 = scalar_lea.hbm %s8494_s28, 115712  ;;  %p8358_p10 = pneg %p8487_p8 }
   0xf   : > { %p8357_p9 = scmp.ne.s32.totalorder %s8494_s28, %s8356_s5  ;;  %s8361_s8 = scalar_lea.hbm %s9669_s1, 2661376 }
  0x10   : > { %p8362_p13 = scmp.lt.u32.totalorder %s8494_s28, %s9669_s1  ;;  %p8363_p0 = scmp.lt.u32.totalorder %s8361_s8, %s8356_s5 }
  0x11   : > { %p8359_p11 = pnand %p8358_p10, %p8357_p9  ;;  %p8365_p2 = scmp.lt.u32.totalorder %s8356_s5, %s8494_s28 }
  0x12   : > { %p8364_p1 = por %p8363_p0, %p8362_p13 }
  0x13   : > { %p8360_p12 = pneg %p8359_p11 }
  0x14   : > { %p8366_p3 = por %p8365_p2, %p8364_p1 }
  0x16   : > { %p8367_p4 = pnand %p8366_p3, %p8360_p12 }
  0x18   : > { %8370 = shalt.err (!%p8367_p4)
}
  0x19   : > { %s8371_s11 = scalar_lea.vmem %s8496_s30, 115712  ;;  %s8422_s12 = smov [#allocation2]  }
  0x1a   : > { %p8372_p5 = scmp.ne.s32.totalorder %s8496_s30, %s8371_s11  ;;  %s8376_s18 = sshll.u32 %s8422_s12, 4  ;;  %s8377_s18 = int_to_ptr.vmem [resolvable:$false] %s8376_s18 }
  0x1b   : > { %s8378_s19 = scalar_lea.vmem %s8377_s18, 231424  ;;  %p8379_p11 = scmp.lt.s32.totalorder %s8496_s30, %s8377_s18 }
  0x1c   : > { %p8374_p6 = pnand %p8372_p5, %p8358_p10  ;;  %p8380_p13 = scmp.lt.s32.totalorder %s8378_s19, %s8371_s11 }
  0x1e   : > { %p8375_p9 = pneg %p8374_p6  ;;  %p8381_p0 = por %p8380_p13, %p8379_p11 }
  0x20   : > { %p8382_p1 = pnand %p8381_p0, %p8375_p9 }
  0x22   : > { %8385 = shalt.err (!%p8382_p1)
}
  0x23   : > { %s8423_s22 = smov 23552   ;;  %s8424_s23 = smov 1024  }
  0x24   : > { %s8425_s24 = smov 64   ;;  %p7216_p10 = scmp.ge.s32.totalorder %s8420_s15, 1 }
  0x25   : > { %8270 = dma.hbm_to_vmem [thread:$0]  (!%p8487_p8), %s8494_s28, 115712, %s8496_s30, %s8498_s4, %s8423_s22, %s8424_s23, %s8425_s24  }
  0x26   : > { %p163_p12 = scmp.lt.s32.totalorder %s8420_s15, 24 }
  0x28   : > { %p164_p2 = pnand %p7216_p10, %p163_p12 }
  0x29   : > { %s169_s26 = sand.u32 (!%p164_p2), 1, %s8412_s13  }
  0x2a   : > { %167 = sbr.rel (%p164_p2) target bundleno = 1195 (0x4ab), region = 32  ;;  %s170_s29 = scalar_lea.sflag (!%p164_p2), [#allocation3], %s169_s26 }
  0x2b   : > { %s8264_s27 = smul.u32 (!%p164_p2), 7232, %s169_s26 }
  0x2d   : > { %s8529_s5 = scalar_lea.vmem (!%p164_p2), [#allocation2], %s8264_s27 }
  0x31   : > { %8403 = dma.done.wait (%p8481_p7), %s170_s29, 115712  }
  0x32   : > { %8405 = vsyncadd (%p8481_p7), %s170_s29, 4294851584  ;;  %v229_v0 = vld [vmem:[%s8529_s5] sm:$0xff]  ;;  %v230_v2 = vld [vmem:[%s8529_s5 + $0x8] sm:$0xff]  ;;  %vm5737_vm0 = vcmask 64512   ;;  %vm5741_vm1 = vcmask 1043456   ;;  %s7217_s24 = sshll.u32 %s7210_s16, 4 }
  0x33   : > { %v237_v1 = vld [vmem:[%s8529_s5 + $0x40] sm:$0xff]  ;;  %v238_v4 = vld [vmem:[%s8529_s5 + $0x48] sm:$0xff]  ;;  %p202_p7 = scmp.lt.s32.totalorder %s7217_s24, 367 }
  0x34   : > { %v7221_v3 = vcombine.high %v229_v0, %v237_v1  ;;  %v7220_v5 = vcombine.low %v229_v0, %v237_v1  ;;  %v245_v6 = vld [vmem:[%s8529_s5 + $0x80] sm:$0xff]  ;;  %v7223_v8 = vcombine.high %v230_v2, %v238_v4  ;;  %v7222_v9 = vcombine.low %v230_v2, %v238_v4  ;;  %v246_v11 = vld [vmem:[%s8529_s5 + $0x88] sm:$0xff] }
  0x35   : > { %v253_v7 = vld [vmem:[%s8529_s5 + $0xc0] sm:$0xff]  ;;  %v254_v12 = vld [vmem:[%s8529_s5 + $0xc8] sm:$0xff]  ;;  %s9679_s24 = smov (!%p202_p7, %s7217_s24), 367 }
  0x36   : > { %v7237_v10 = vcombine.high %v245_v6, %v253_v7  ;;  %v261_v13 = vld [vmem:[%s8529_s5 + $0x100] sm:$0xff]  ;;  %5790 = vmatprep.subr.bf16.mxu0 %v7221_v3  ;;  %v7239_v14 = vcombine.high %v246_v11, %v254_v12  ;;  %v262_v16 = vld [vmem:[%s8529_s5 + $0x108] sm:$0xff]  ;;  %5954 = vmatprep.subr.bf16.mxu1 %v7223_v8  ;;  %v7236_v18 = vcombine.low %v245_v6, %v253_v7  ;;  %s9062_s26 = scalar_lea.vmem %s9670_s2, %s9679_s24  ;;  %s7219_s27 = sshll.u32 %s9679_s24, 3 }
  0x37   : > { %v269_v15 = vld [vmem:[%s8529_s5 + $0x140] sm:$0xff]  ;;  %v270_v17 = vld [vmem:[%s8529_s5 + $0x148] sm:$0xff]  ;;  %5791 = vmatpush1.bf16.msra.mxu0 %v7220_v5  ;;  %5955 = vmatpush1.bf16.msra.mxu1 %v7222_v9  ;;  %v7238_v19 = vcombine.low %v246_v11, %v254_v12  ;;  %s9099_s25 = scalar_lea.vmem %s9671_s3, %s7219_s27 }
  0x38   : > { %5792 = vmatprep.subr.bf16.mxu0 %v7237_v10  ;;  %v7253_v20 = vcombine.high %v261_v13, %v269_v15  ;;  %5956 = vmatprep.subr.bf16.mxu1 %v7239_v14  ;;  %v7255_v21 = vcombine.high %v262_v16, %v270_v17  ;;  %v277_v22 = vld [vmem:[%s8529_s5 + $0x180] sm:$0xff]  ;;  %v278_v24 = vld [vmem:[%s8529_s5 + $0x188] sm:$0xff]  ;;  %v7252_v26 = vcombine.low %v261_v13, %v269_v15 }
  0x39   : > { %v285_v23 = vld [vmem:[%s8529_s5 + $0x1c0] sm:$0xff]  ;;  %v286_v25 = vld [vmem:[%s8529_s5 + $0x1c8] sm:$0xff]  ;;  %v7254_v27 = vcombine.low %v262_v16, %v270_v17 }
  0x3a   : > { %v7269_v28 = vcombine.high %v277_v22, %v285_v23  ;;  %v7271_v29 = vcombine.high %v278_v24, %v286_v25  ;;  %v293_v30 = vld [vmem:[%s8529_s5 + $0x200] sm:$0xff]  ;;  %v294_v32 = vld [vmem:[%s8529_s5 + $0x208] sm:$0xff]  ;;  %v7268_v34 = vcombine.low %v277_v22, %v285_v23  ;;  %v7270_v35 = vcombine.low %v278_v24, %v286_v25 }
  0x3b   : > { %5793 = vmatpush1.bf16.msra.mxu0 %v7236_v18  ;;  %5957 = vmatpush1.bf16.msra.mxu1 %v7238_v19  ;;  %v301_v31 = vld [vmem:[%s8529_s5 + $0x240] sm:$0xff]  ;;  %v302_v33 = vld [vmem:[%s8529_s5 + $0x248] sm:$0xff] }
  0x3c   : > { %5794 = vmatprep.subr.bf16.mxu0 %v7253_v20  ;;  %5958 = vmatprep.subr.bf16.mxu1 %v7255_v21  ;;  %v7285_v36 = vcombine.high %v293_v30, %v301_v31  ;;  %v7287_v37 = vcombine.high %v294_v32, %v302_v33  ;;  %v309_v38 = vld [vmem:[%s8529_s5 + $0x280] sm:$0xff]  ;;  %v310_v40 = vld [vmem:[%s8529_s5 + $0x288] sm:$0xff]  ;;  %v7284_v42 = vcombine.low %v293_v30, %v301_v31 }
  0x3d   : > { %v317_v39 = vld [vmem:[%s8529_s5 + $0x2c0] sm:$0xff]  ;;  %v318_v41 = vld [vmem:[%s8529_s5 + $0x2c8] sm:$0xff]  ;;  %v7286_v43 = vcombine.low %v294_v32, %v302_v33 }
  0x3e   : > { %v7301_v44 = vcombine.high %v309_v38, %v317_v39  ;;  %v7303_v45 = vcombine.high %v310_v40, %v318_v41  ;;  %v325_v46 = vld [vmem:[%s8529_s5 + $0x300] sm:$0xff]  ;;  %v326_v48 = vld [vmem:[%s8529_s5 + $0x308] sm:$0xff]  ;;  %v7300_v50 = vcombine.low %v309_v38, %v317_v39  ;;  %v7302_v51 = vcombine.low %v310_v40, %v318_v41 }
  0x3f   : > { %5795 = vmatpush1.bf16.msra.mxu0 %v7252_v26  ;;  %5959 = vmatpush1.bf16.msra.mxu1 %v7254_v27  ;;  %v333_v47 = vld [vmem:[%s8529_s5 + $0x340] sm:$0xff]  ;;  %v334_v49 = vld [vmem:[%s8529_s5 + $0x348] sm:$0xff] }
  0x40   : > { %5796 = vmatprep.subr.bf16.mxu0 %v7269_v28  ;;  %5960 = vmatprep.subr.bf16.mxu1 %v7271_v29  ;;  %v7317_v52 = vcombine.high %v325_v46, %v333_v47  ;;  %v214_v53 = vld [vmem:[%s9668_s0 + $0x8] sm:$0xff]  ;;  %v7319_v54 = vcombine.high %v326_v48, %v334_v49  ;;  %v341_v55 = vld [vmem:[%s8529_s5 + $0x380] sm:$0xff]  ;;  %v7316_v60 = vcombine.low %v325_v46, %v333_v47 }
  0x41   : > { %v349_v56 = vld [vmem:[%s8529_s5 + $0x3c0] sm:$0xff]  ;;  %v8568_v57 = vpack.c.bf16 %v214_v53, %v214_v53  ;;  %v342_v58 = vld [vmem:[%s8529_s5 + $0x388] sm:$0xff]  ;;  %v7318_v61 = vcombine.low %v326_v48, %v334_v49 }
  0x42   : > { %v350_v59 = vld [vmem:[%s8529_s5 + $0x3c8] sm:$0xff]  ;;  %v7333_v62 = vcombine.high %v341_v55, %v349_v56  ;;  %v357_v0 = vld [vmem:[%s8529_s5 + $0x400] sm:$0xff]  ;;  %v7332_v4 = vcombine.low %v341_v55, %v349_v56 }
  0x43   : > { %5797 = vmatpush1.bf16.msra.mxu0 %v7268_v34  ;;  %5961 = vmatpush1.bf16.msra.mxu1 %v7270_v35  ;;  %v7335_v63 = vcombine.high %v342_v58, %v350_v59  ;;  %v365_v1 = vld [vmem:[%s8529_s5 + $0x440] sm:$0xff]  ;;  %v358_v2 = vld [vmem:[%s8529_s5 + $0x408] sm:$0xff]  ;;  %v7334_v5 = vcombine.low %v342_v58, %v350_v59 }
  0x44   : > { %5798 = vmatprep.subr.bf16.mxu0 %v7285_v36  ;;  %5962 = vmatprep.subr.bf16.mxu1 %v7287_v37  ;;  %v366_v3 = vld [vmem:[%s8529_s5 + $0x448] sm:$0xff]  ;;  %v7349_v6 = vcombine.high %v357_v0, %v365_v1  ;;  %v373_v8 = vld [vmem:[%s8529_s5 + $0x480] sm:$0xff]  ;;  %v7348_v12 = vcombine.low %v357_v0, %v365_v1 }
  0x45   : > { %5822 = vmatprep.mubr.bf16.mxu0 %v8568_v57  ;;  %5986 = vmatprep.mubr.bf16.mxu1 %v8568_v57  ;;  %v7351_v7 = vcombine.high %v358_v2, %v366_v3  ;;  %v381_v9 = vld [vmem:[%s8529_s5 + $0x4c0] sm:$0xff]  ;;  %v374_v10 = vld [vmem:[%s8529_s5 + $0x488] sm:$0xff]  ;;  %v7350_v13 = vcombine.low %v358_v2, %v366_v3 }
  0x46   : > { %v382_v11 = vld [vmem:[%s8529_s5 + $0x4c8] sm:$0xff]  ;;  %v7365_v14 = vcombine.high %v373_v8, %v381_v9  ;;  %v389_v16 = vld [vmem:[%s8529_s5 + $0x500] sm:$0xff]  ;;  %v7364_v20 = vcombine.low %v373_v8, %v381_v9 }
  0x47   : > { %5799 = vmatpush1.bf16.msra.mxu0 %v7284_v42  ;;  %5963 = vmatpush1.bf16.msra.mxu1 %v7286_v43  ;;  %v7367_v15 = vcombine.high %v374_v10, %v382_v11  ;;  %v397_v17 = vld [vmem:[%s8529_s5 + $0x540] sm:$0xff]  ;;  %v390_v18 = vld [vmem:[%s8529_s5 + $0x508] sm:$0xff]  ;;  %v7366_v21 = vcombine.low %v374_v10, %v382_v11 }
  0x48   : > { %5800 = vmatprep.subr.bf16.mxu0 %v7301_v44  ;;  %5964 = vmatprep.subr.bf16.mxu1 %v7303_v45  ;;  %v398_v19 = vld [vmem:[%s8529_s5 + $0x548] sm:$0xff]  ;;  %v7381_v22 = vcombine.high %v389_v16, %v397_v17  ;;  %v405_v24 = vld [vmem:[%s8529_s5 + $0x580] sm:$0xff]  ;;  %v7380_v28 = vcombine.low %v389_v16, %v397_v17 }
  0x49   : > { %v7383_v23 = vcombine.high %v390_v18, %v398_v19  ;;  %v413_v25 = vld [vmem:[%s8529_s5 + $0x5c0] sm:$0xff]  ;;  %v406_v26 = vld [vmem:[%s8529_s5 + $0x588] sm:$0xff]  ;;  %v7382_v29 = vcombine.low %v390_v18, %v398_v19 }
  0x4a   : > { %v414_v27 = vld [vmem:[%s8529_s5 + $0x5c8] sm:$0xff]  ;;  %v7397_v30 = vcombine.high %v405_v24, %v413_v25  ;;  %v421_v32 = vld [vmem:[%s8529_s5 + $0x600] sm:$0xff]  ;;  %v7396_v36 = vcombine.low %v405_v24, %v413_v25 }
  0x4b   : > { %5801 = vmatpush1.bf16.msra.mxu0 %v7300_v50  ;;  %5965 = vmatpush1.bf16.msra.mxu1 %v7302_v51  ;;  %v7399_v31 = vcombine.high %v406_v26, %v414_v27  ;;  %v429_v33 = vld [vmem:[%s8529_s5 + $0x640] sm:$0xff]  ;;  %v422_v34 = vld [vmem:[%s8529_s5 + $0x608] sm:$0xff]  ;;  %v7398_v37 = vcombine.low %v406_v26, %v414_v27 }
  0x4c   : > { %5802 = vmatprep.subr.bf16.mxu0 %v7317_v52  ;;  %5966 = vmatprep.subr.bf16.mxu1 %v7319_v54  ;;  %v430_v35 = vld [vmem:[%s8529_s5 + $0x648] sm:$0xff]  ;;  %v7413_v38 = vcombine.high %v421_v32, %v429_v33  ;;  %v437_v40 = vld [vmem:[%s8529_s5 + $0x680] sm:$0xff]  ;;  %v7412_v44 = vcombine.low %v421_v32, %v429_v33 }
  0x4d   : > { %v7415_v39 = vcombine.high %v422_v34, %v430_v35  ;;  %v445_v41 = vld [vmem:[%s8529_s5 + $0x6c0] sm:$0xff]  ;;  %v438_v42 = vld [vmem:[%s8529_s5 + $0x688] sm:$0xff]  ;;  %v7414_v45 = vcombine.low %v422_v34, %v430_v35 }
  0x4e   : > { %v446_v43 = vld [vmem:[%s8529_s5 + $0x6c8] sm:$0xff]  ;;  %v7429_v46 = vcombine.high %v437_v40, %v445_v41  ;;  %v453_v48 = vld [vmem:[%s8529_s5 + $0x700] sm:$0xff]  ;;  %v7428_v52 = vcombine.low %v437_v40, %v445_v41 }
  0x4f   : > { %5803 = vmatpush1.bf16.msra.mxu0 %v7316_v60  ;;  %5967 = vmatpush1.bf16.msra.mxu1 %v7318_v61  ;;  %v7431_v47 = vcombine.high %v438_v42, %v446_v43  ;;  %v461_v49 = vld [vmem:[%s8529_s5 + $0x740] sm:$0xff]  ;;  %v454_v50 = vld [vmem:[%s8529_s5 + $0x708] sm:$0xff]  ;;  %v7430_v53 = vcombine.low %v438_v42, %v446_v43 }
  0x50   : > { %5804 = vmatprep.subr.bf16.mxu0 %v7333_v62  ;;  %5968 = vmatprep.subr.bf16.mxu1 %v7335_v63  ;;  %v462_v51 = vld [vmem:[%s8529_s5 + $0x748] sm:$0xff]  ;;  %v7445_v54 = vcombine.high %v453_v48, %v461_v49  ;;  %v469_v56 = vld [vmem:[%s8529_s5 + $0x780] sm:$0xff]  ;;  %v7444_v61 = vcombine.low %v453_v48, %v461_v49 }
  0x51   : > { %v7447_v55 = vcombine.high %v454_v50, %v462_v51  ;;  %v477_v58 = vld [vmem:[%s8529_s5 + $0x7c0] sm:$0xff]  ;;  %v470_v59 = vld [vmem:[%s8529_s5 + $0x788] sm:$0xff]  ;;  %v7446_v62 = vcombine.low %v454_v50, %v462_v51 }
  0x52   : > { %v478_v60 = vld [vmem:[%s8529_s5 + $0x7c8] sm:$0xff]  ;;  %v7461_v63 = vcombine.high %v469_v56, %v477_v58  ;;  %v485_v1 = vld [vmem:[%s8529_s5 + $0x800] sm:$0xff] }
  0x53   : > { %5805 = vmatpush1.bf16.msra.mxu0 %v7332_v4  ;;  %5969 = vmatpush1.bf16.msra.mxu1 %v7334_v5  ;;  %v7463_v0 = vcombine.high %v470_v59, %v478_v60  ;;  %v493_v2 = vld [vmem:[%s8529_s5 + $0x840] sm:$0xff]  ;;  %v486_v3 = vld [vmem:[%s8529_s5 + $0x808] sm:$0xff]  ;;  %v7460_v5 = vcombine.low %v469_v56, %v477_v58 }
  0x54   : > { %5806 = vmatprep.subr.bf16.mxu0 %v7349_v6  ;;  %5970 = vmatprep.subr.bf16.mxu1 %v7351_v7  ;;  %v494_v4 = vld [vmem:[%s8529_s5 + $0x848] sm:$0xff]  ;;  %v213_v6 = vld [vmem:[%s9668_s0] sm:$0xff]  ;;  %v7462_v7 = vcombine.low %v470_v59, %v478_v60  ;;  %v7477_v8 = vcombine.high %v485_v1, %v493_v2  ;;  %v7476_v16 = vcombine.low %v485_v1, %v493_v2 }
  0x55   : > { %v7479_v9 = vcombine.high %v486_v3, %v494_v4  ;;  %v501_v10 = vld [vmem:[%s8529_s5 + $0x880] sm:$0xff]  ;;  %v7478_v17 = vcombine.low %v486_v3, %v494_v4  ;;  %v526_v24 = vld [vmem:[%s8529_s5 + $0x948] sm:$0xff] }
  0x56   : > { %v509_v11 = vld [vmem:[%s8529_s5 + $0x8c0] sm:$0xff]  ;;  %v542_v32 = vld [vmem:[%s8529_s5 + $0x9c8] sm:$0xff] }
  0x57   : > { %5807 = vmatpush1.bf16.msra.mxu0 %v7348_v12  ;;  %5971 = vmatpush1.bf16.msra.mxu1 %v7350_v13  ;;  %v8615_v12 = vpack.c.bf16 %v213_v6, %v213_v6  ;;  %v502_v13 = vld [vmem:[%s8529_s5 + $0x888] sm:$0xff]  ;;  %v7493_v18 = vcombine.high %v501_v10, %v509_v11  ;;  %v7492_v25 = vcombine.low %v501_v10, %v509_v11  ;;  %v613_v6 = vld [vmem:[%s8529_s5 + $0xc00] sm:$0xff] }
  0x58   : > { %5808 = vmatprep.subr.bf16.mxu0 %v7365_v14  ;;  %5972 = vmatprep.subr.bf16.mxu1 %v7367_v15  ;;  %v510_v14 = vld [vmem:[%s8529_s5 + $0x8c8] sm:$0xff]  ;;  %v216_v15 = vld [vmem:[%s9668_s0 + $0x18] sm:$0xff] }
  0x59   : > { %v7495_v19 = vcombine.high %v502_v13, %v510_v14  ;;  %v7494_v26 = vcombine.low %v502_v13, %v510_v14  ;;  %v558_v40 = vld [vmem:[%s8529_s5 + $0xa48] sm:$0xff] }
  0x5a   : > { %v574_v48 = vld [vmem:[%s8529_s5 + $0xac8] sm:$0xff] }
  0x5b   : > { %5809 = vmatpush1.bf16.msra.mxu0 %v7364_v20  ;;  %5973 = vmatpush1.bf16.msra.mxu1 %v7366_v21  ;;  %v517_v20 = vld [vmem:[%s8529_s5 + $0x900] sm:$0xff]  ;;  %v590_v56 = vld [vmem:[%s8529_s5 + $0xb48] sm:$0xff] }
  0x5c   : > { %5810 = vmatprep.subr.bf16.mxu0 %v7381_v22  ;;  %5974 = vmatprep.subr.bf16.mxu1 %v7383_v23  ;;  %v525_v21 = vld [vmem:[%s8529_s5 + $0x940] sm:$0xff]  ;;  %v8624_v22 = vpack.c.bf16 %v216_v15, %v216_v15  ;;  %v518_v23 = vld [vmem:[%s8529_s5 + $0x908] sm:$0xff] }
  0x5d   : > { %v7509_v27 = vcombine.high %v517_v20, %v525_v21  ;;  %v7508_v33 = vcombine.low %v517_v20, %v525_v21  ;;  %v7510_v34 = vcombine.low %v518_v23, %v526_v24  ;;  %v606_v1 = vld [vmem:[%s8529_s5 + $0xbc8] sm:$0xff]  ;;  %v629_v15 = vld [vmem:[%s8529_s5 + $0xc80] sm:$0xff] }
  0x5f   : > { %5811 = vmatpush1.bf16.msra.mxu0 %v7380_v28  ;;  %5975 = vmatpush1.bf16.msra.mxu1 %v7382_v29  ;;  %v7511_v28 = vcombine.high %v518_v23, %v526_v24  ;;  %v533_v29 = vld [vmem:[%s8529_s5 + $0x980] sm:$0xff] }
  0x60   : > { %5812 = vmatprep.subr.bf16.mxu0 %v7397_v30  ;;  %5976 = vmatprep.subr.bf16.mxu1 %v7399_v31  ;;  %v541_v30 = vld [vmem:[%s8529_s5 + $0x9c0] sm:$0xff]  ;;  %v534_v31 = vld [vmem:[%s8529_s5 + $0x988] sm:$0xff] }
  0x61   : > { %v7525_v35 = vcombine.high %v533_v29, %v541_v30  ;;  %v7524_v41 = vcombine.low %v533_v29, %v541_v30  ;;  %v7526_v42 = vcombine.low %v534_v31, %v542_v32  ;;  %v645_v24 = vld [vmem:[%s8529_s5 + $0xd00] sm:$0xff] }
  0x63   : > { %5813 = vmatpush1.bf16.msra.mxu0 %v7396_v36  ;;  %5977 = vmatpush1.bf16.msra.mxu1 %v7398_v37  ;;  %v7527_v36 = vcombine.high %v534_v31, %v542_v32  ;;  %v549_v37 = vld [vmem:[%s8529_s5 + $0xa00] sm:$0xff] }
  0x64   : > { %5814 = vmatprep.subr.bf16.mxu0 %v7413_v38  ;;  %5978 = vmatprep.subr.bf16.mxu1 %v7415_v39  ;;  %v557_v38 = vld [vmem:[%s8529_s5 + $0xa40] sm:$0xff]  ;;  %v550_v39 = vld [vmem:[%s8529_s5 + $0xa08] sm:$0xff] }
  0x65   : > { %v7541_v43 = vcombine.high %v549_v37, %v557_v38  ;;  %v7540_v49 = vcombine.low %v549_v37, %v557_v38  ;;  %v7542_v50 = vcombine.low %v550_v39, %v558_v40  ;;  %v661_v32 = vld [vmem:[%s8529_s5 + $0xd80] sm:$0xff] }
  0x67   : > { %5815 = vmatpush1.bf16.msra.mxu0 %v7412_v44  ;;  %5979 = vmatpush1.bf16.msra.mxu1 %v7414_v45  ;;  %v7543_v44 = vcombine.high %v550_v39, %v558_v40  ;;  %v565_v45 = vld [vmem:[%s8529_s5 + $0xa80] sm:$0xff] }
  0x68   : > { %5816 = vmatprep.subr.bf16.mxu0 %v7429_v46  ;;  %5980 = vmatprep.subr.bf16.mxu1 %v7431_v47  ;;  %v573_v46 = vld [vmem:[%s8529_s5 + $0xac0] sm:$0xff]  ;;  %v566_v47 = vld [vmem:[%s8529_s5 + $0xa88] sm:$0xff] }
  0x69   : > { %v7557_v51 = vcombine.high %v565_v45, %v573_v46  ;;  %v7556_v58 = vcombine.low %v565_v45, %v573_v46  ;;  %v7558_v59 = vcombine.low %v566_v47, %v574_v48  ;;  %v677_v40 = vld [vmem:[%s8529_s5 + $0xe00] sm:$0xff] }
  0x6b   : > { %5817 = vmatpush1.bf16.msra.mxu0 %v7428_v52  ;;  %5981 = vmatpush1.bf16.msra.mxu1 %v7430_v53  ;;  %v7559_v52 = vcombine.high %v566_v47, %v574_v48  ;;  %v581_v53 = vld [vmem:[%s8529_s5 + $0xb00] sm:$0xff] }
  0x6c   : > { %5818 = vmatprep.subr.bf16.mxu0 %v7445_v54  ;;  %5982 = vmatprep.subr.bf16.mxu1 %v7447_v55  ;;  %v589_v54 = vld [vmem:[%s8529_s5 + $0xb40] sm:$0xff]  ;;  %v582_v55 = vld [vmem:[%s8529_s5 + $0xb08] sm:$0xff] }
  0x6d   : > { %v7573_v60 = vcombine.high %v581_v53, %v589_v54  ;;  %v7572_v2 = vcombine.low %v581_v53, %v589_v54  ;;  %v7574_v3 = vcombine.low %v582_v55, %v590_v56  ;;  %v693_v48 = vld [vmem:[%s8529_s5 + $0xe80] sm:$0xff] }
  0x6f   : > { %5819 = vmatpush1.bf16.msra.mxu0 %v7444_v61  ;;  %5983 = vmatpush1.bf16.msra.mxu1 %v7446_v62  ;;  %v7575_v61 = vcombine.high %v582_v55, %v590_v56  ;;  %v597_v62 = vld [vmem:[%s8529_s5 + $0xb80] sm:$0xff] }
  0x70   : > { %5820 = vmatprep.subr.bf16.mxu0 %v7461_v63  ;;  %5984 = vmatprep.subr.bf16.mxu1 %v7463_v0  ;;  %v605_v63 = vld [vmem:[%s8529_s5 + $0xbc0] sm:$0xff]  ;;  %v598_v0 = vld [vmem:[%s8529_s5 + $0xb88] sm:$0xff] }
  0x71   : > { %v7589_v4 = vcombine.high %v597_v62, %v605_v63  ;;  %v7588_v10 = vcombine.low %v597_v62, %v605_v63  ;;  %v7590_v11 = vcombine.low %v598_v0, %v606_v1  ;;  %v709_v56 = vld [vmem:[%s8529_s5 + $0xf00] sm:$0xff] }
  0x73   : > { %5821 = vmatpush1.bf16.msra.mxu0 %v7460_v5  ;;  %5985 = vmatpush1.bf16.msra.mxu1 %v7462_v7  ;;  %v7591_v5 = vcombine.high %v598_v0, %v606_v1  ;;  %v621_v7 = vld [vmem:[%s8529_s5 + $0xc40] sm:$0xff] }
  0x74   : > { %5831 = vmatprep.subr.bf16.mxu0 %v7477_v8  ;;  %5995 = vmatprep.subr.bf16.mxu1 %v7479_v9  ;;  %v614_v8 = vld [vmem:[%s8529_s5 + $0xc08] sm:$0xff]  ;;  %v7605_v13 = vcombine.high %v613_v6, %v621_v7  ;;  %v725_v1 = vld [vmem:[%s8529_s5 + $0xf80] sm:$0xff] }
  0x75   : > { %v622_v9 = vld [vmem:[%s8529_s5 + $0xc48] sm:$0xff] }
  0x76   : > { %5823 = vmatmul.mubr.bf16.vlgmr.msra.gmra.mrb[0].mxu0 %v8615_v12  ;;  %5987 = vmatmul.mubr.bf16.vlgmr.msra.gmra.mrb[0].mxu1 %v8615_v12  ;;  %v7607_v14 = vcombine.high %v614_v8, %v622_v9  ;;  %v7606_v20 = vcombine.low %v614_v8, %v622_v9  ;;  %v741_v9 = vld [vmem:[%s8529_s5 + $0x1000] sm:$0xff] }
  0x77   : > { %5832 = vmatpush1.bf16.msra.mxu0 %v7476_v16  ;;  %5996 = vmatpush1.bf16.msra.mxu1 %v7478_v17  ;;  %v637_v16 = vld [vmem:[%s8529_s5 + $0xcc0] sm:$0xff]  ;;  %v630_v17 = vld [vmem:[%s8529_s5 + $0xc88] sm:$0xff] }
  0x78   : > { %5833 = vmatprep.subr.bf16.mxu0 %v7493_v18  ;;  %5997 = vmatprep.subr.bf16.mxu1 %v7495_v19  ;;  %v638_v18 = vld [vmem:[%s8529_s5 + $0xcc8] sm:$0xff]  ;;  %v7604_v19 = vcombine.low %v613_v6, %v621_v7  ;;  %v7621_v21 = vcombine.high %v629_v15, %v637_v16 }
  0x79   : > { %5863 = vmatprep.mubr.bf16.mxu0 %v8624_v22  ;;  %6027 = vmatprep.mubr.bf16.mxu1 %v8624_v22  ;;  %v7623_v23 = vcombine.high %v630_v17, %v638_v18  ;;  %v7622_v29 = vcombine.low %v630_v17, %v638_v18 }
  0x7b   : > { %5834 = vmatpush1.bf16.msra.mxu0 %v7492_v25  ;;  %5998 = vmatpush1.bf16.msra.mxu1 %v7494_v26  ;;  %v653_v25 = vld [vmem:[%s8529_s5 + $0xd40] sm:$0xff]  ;;  %v646_v26 = vld [vmem:[%s8529_s5 + $0xd08] sm:$0xff] }
  0x7c   : > { %5835 = vmatprep.subr.bf16.mxu0 %v7509_v27  ;;  %5999 = vmatprep.subr.bf16.mxu1 %v7511_v28  ;;  %v654_v27 = vld [vmem:[%s8529_s5 + $0xd48] sm:$0xff]  ;;  %v7620_v28 = vcombine.low %v629_v15, %v637_v16  ;;  %v7637_v30 = vcombine.high %v645_v24, %v653_v25  ;;  %v215_v15 = vld [vmem:[%s9668_s0 + $0x10] sm:$0xff] }
  0x7d   : > { %v7639_v31 = vcombine.high %v646_v26, %v654_v27  ;;  %v7638_v37 = vcombine.low %v646_v26, %v654_v27 }
  0x7f   : > { %5836 = vmatpush1.bf16.msra.mxu0 %v7508_v33  ;;  %6000 = vmatpush1.bf16.msra.mxu1 %v7510_v34  ;;  %v669_v33 = vld [vmem:[%s8529_s5 + $0xdc0] sm:$0xff]  ;;  %v662_v34 = vld [vmem:[%s8529_s5 + $0xd88] sm:$0xff] }
  0x80   : > { %5837 = vmatprep.subr.bf16.mxu0 %v7525_v35  ;;  %6001 = vmatprep.subr.bf16.mxu1 %v7527_v36  ;;  %v670_v35 = vld [vmem:[%s8529_s5 + $0xdc8] sm:$0xff]  ;;  %v7636_v36 = vcombine.low %v645_v24, %v653_v25  ;;  %v7653_v38 = vcombine.high %v661_v32, %v669_v33 }
  0x81   : > { %v7655_v39 = vcombine.high %v662_v34, %v670_v35  ;;  %v7654_v45 = vcombine.low %v662_v34, %v670_v35  ;;  %v766_v24 = vld [vmem:[%s8529_s5 + $0x10c8] sm:$0xff] }
  0x82   : > { %v218_v25 = vld [vmem:[%s9668_s0 + $0x28] sm:$0xff] }
  0x83   : > { %5838 = vmatpush1.bf16.msra.mxu0 %v7524_v41  ;;  %6002 = vmatpush1.bf16.msra.mxu1 %v7526_v42  ;;  %v685_v41 = vld [vmem:[%s8529_s5 + $0xe40] sm:$0xff]  ;;  %v678_v42 = vld [vmem:[%s8529_s5 + $0xe08] sm:$0xff] }
  0x84   : > { %5839 = vmatprep.subr.bf16.mxu0 %v7541_v43  ;;  %6003 = vmatprep.subr.bf16.mxu1 %v7543_v44  ;;  %v686_v43 = vld [vmem:[%s8529_s5 + $0xe48] sm:$0xff]  ;;  %v7652_v44 = vcombine.low %v661_v32, %v669_v33  ;;  %v7669_v46 = vcombine.high %v677_v40, %v685_v41  ;;  %v8702_v32 = vpack.c.bf16 %v218_v25, %v218_v25 }
  0x85   : > { %v7671_v47 = vcombine.high %v678_v42, %v686_v43  ;;  %v7670_v53 = vcombine.low %v678_v42, %v686_v43  ;;  %v774_v33 = vld [vmem:[%s8529_s5 + $0x1108] sm:$0xff] }
  0x86   : > { %v782_v34 = vld [vmem:[%s8529_s5 + $0x1148] sm:$0xff] }
  0x87   : > { %5840 = vmatpush1.bf16.msra.mxu0 %v7540_v49  ;;  %6004 = vmatpush1.bf16.msra.mxu1 %v7542_v50  ;;  %v701_v49 = vld [vmem:[%s8529_s5 + $0xec0] sm:$0xff]  ;;  %v694_v50 = vld [vmem:[%s8529_s5 + $0xe88] sm:$0xff] }
  0x88   : > { %5841 = vmatprep.subr.bf16.mxu0 %v7557_v51  ;;  %6005 = vmatprep.subr.bf16.mxu1 %v7559_v52  ;;  %v702_v51 = vld [vmem:[%s8529_s5 + $0xec8] sm:$0xff]  ;;  %v7668_v52 = vcombine.low %v677_v40, %v685_v41  ;;  %v7685_v54 = vcombine.high %v693_v48, %v701_v49  ;;  %v797_v40 = vld [vmem:[%s8529_s5 + $0x11c0] sm:$0xff] }
  0x89   : > { %v7687_v55 = vcombine.high %v694_v50, %v702_v51  ;;  %v7686_v62 = vcombine.low %v694_v50, %v702_v51  ;;  %v790_v41 = vld [vmem:[%s8529_s5 + $0x1188] sm:$0xff] }
  0x8a   : > { %v798_v42 = vld [vmem:[%s8529_s5 + $0x11c8] sm:$0xff] }
  0x8b   : > { %5842 = vmatpush1.bf16.msra.mxu0 %v7556_v58  ;;  %6006 = vmatpush1.bf16.msra.mxu1 %v7558_v59  ;;  %v717_v58 = vld [vmem:[%s8529_s5 + $0xf40] sm:$0xff]  ;;  %v710_v59 = vld [vmem:[%s8529_s5 + $0xf08] sm:$0xff] }
  0x8c   : > { %5843 = vmatprep.subr.bf16.mxu0 %v7573_v60  ;;  %6007 = vmatprep.subr.bf16.mxu1 %v7575_v61  ;;  %v718_v60 = vld [vmem:[%s8529_s5 + $0xf48] sm:$0xff]  ;;  %v7684_v61 = vcombine.low %v693_v48, %v701_v49  ;;  %v7701_v63 = vcombine.high %v709_v56, %v717_v58  ;;  %v813_v48 = vld [vmem:[%s8529_s5 + $0x1240] sm:$0xff] }
  0x8d   : > { %v7703_v0 = vcombine.high %v710_v59, %v718_v60  ;;  %v7702_v6 = vcombine.low %v710_v59, %v718_v60  ;;  %v806_v49 = vld [vmem:[%s8529_s5 + $0x1208] sm:$0xff] }
  0x8e   : > { %v814_v50 = vld [vmem:[%s8529_s5 + $0x1248] sm:$0xff] }
  0x8f   : > { %5844 = vmatpush1.bf16.msra.mxu0 %v7572_v2  ;;  %6008 = vmatpush1.bf16.msra.mxu1 %v7574_v3  ;;  %v733_v2 = vld [vmem:[%s8529_s5 + $0xfc0] sm:$0xff]  ;;  %v726_v3 = vld [vmem:[%s8529_s5 + $0xf88] sm:$0xff] }
  0x90   : > { %5845 = vmatprep.subr.bf16.mxu0 %v7589_v4  ;;  %6009 = vmatprep.subr.bf16.mxu1 %v7591_v5  ;;  %v734_v4 = vld [vmem:[%s8529_s5 + $0xfc8] sm:$0xff]  ;;  %v7700_v5 = vcombine.low %v709_v56, %v717_v58  ;;  %v7717_v7 = vcombine.high %v725_v1, %v733_v2  ;;  %v829_v56 = vld [vmem:[%s8529_s5 + $0x12c0] sm:$0xff] }
  0x91   : > { %v7719_v8 = vcombine.high %v726_v3, %v734_v4  ;;  %v7718_v16 = vcombine.low %v726_v3, %v734_v4  ;;  %v822_v58 = vld [vmem:[%s8529_s5 + $0x1288] sm:$0xff] }
  0x92   : > { %v830_v59 = vld [vmem:[%s8529_s5 + $0x12c8] sm:$0xff] }
  0x93   : > { %5846 = vmatpush1.bf16.msra.mxu0 %v7588_v10  ;;  %6010 = vmatpush1.bf16.msra.mxu1 %v7590_v11  ;;  %v749_v10 = vld [vmem:[%s8529_s5 + $0x1040] sm:$0xff]  ;;  %v742_v11 = vld [vmem:[%s8529_s5 + $0x1008] sm:$0xff] }
  0x94   : > { %5847 = vmatprep.subr.bf16.mxu0 %v7605_v13  ;;  %6011 = vmatprep.subr.bf16.mxu1 %v7607_v14  ;;  %v750_v13 = vld [vmem:[%s8529_s5 + $0x1048] sm:$0xff]  ;;  %v7716_v14 = vcombine.low %v725_v1, %v733_v2  ;;  %v7733_v17 = vcombine.high %v741_v9, %v749_v10  ;;  %v7732_v26 = vcombine.low %v741_v9, %v749_v10  ;;  %v845_v1 = vld [vmem:[%s8529_s5 + $0x1340] sm:$0xff] }
  0x95   : > { %v7735_v18 = vcombine.high %v742_v11, %v750_v13  ;;  %v7734_v27 = vcombine.low %v742_v11, %v750_v13  ;;  %v838_v2 = vld [vmem:[%s8529_s5 + $0x1308] sm:$0xff]  ;;  %v861_v9 = vld [vmem:[%s8529_s5 + $0x13c0] sm:$0xff] }
  0x96   : > { %v846_v3 = vld [vmem:[%s8529_s5 + $0x1348] sm:$0xff] }
  0x97   : > { %5848 = vmatpush1.bf16.msra.mxu0 %v7604_v19  ;;  %6012 = vmatpush1.bf16.msra.mxu1 %v7606_v20  ;;  %v757_v19 = vld [vmem:[%s8529_s5 + $0x1080] sm:$0xff]  ;;  %v854_v10 = vld [vmem:[%s8529_s5 + $0x1388] sm:$0xff] }
  0x98   : > { %5849 = vmatprep.subr.bf16.mxu0 %v7621_v21  ;;  %6013 = vmatprep.subr.bf16.mxu1 %v7623_v23  ;;  %v765_v20 = vld [vmem:[%s8529_s5 + $0x10c0] sm:$0xff]  ;;  %v8693_v21 = vpack.c.bf16 %v215_v15, %v215_v15  ;;  %v758_v23 = vld [vmem:[%s8529_s5 + $0x1088] sm:$0xff] }
  0x99   : > { %v7748_v35 = vcombine.low %v757_v19, %v765_v20  ;;  %v862_v11 = vld [vmem:[%s8529_s5 + $0x13c8] sm:$0xff] }
  0x9b   : > { %5850 = vmatpush1.bf16.msra.mxu0 %v7620_v28  ;;  %6014 = vmatpush1.bf16.msra.mxu1 %v7622_v29  ;;  %v7749_v28 = vcombine.high %v757_v19, %v765_v20  ;;  %v7751_v29 = vcombine.high %v758_v23, %v766_v24  ;;  %v870_v19 = vld [vmem:[%s8529_s5 + $0x1408] sm:$0xff] }
  0x9c   : > { %5851 = vmatprep.subr.bf16.mxu0 %v7637_v30  ;;  %6015 = vmatprep.subr.bf16.mxu1 %v7639_v31  ;;  %v773_v30 = vld [vmem:[%s8529_s5 + $0x1100] sm:$0xff]  ;;  %v878_v20 = vld [vmem:[%s8529_s5 + $0x1448] sm:$0xff] }
  0x9d   : > { %v781_v31 = vld [vmem:[%s8529_s5 + $0x1140] sm:$0xff] }
  0x9e   : > { %v7764_v43 = vcombine.low %v773_v30, %v781_v31 }
  0x9f   : > { %5852 = vmatpush1.bf16.msra.mxu0 %v7636_v36  ;;  %6016 = vmatpush1.bf16.msra.mxu1 %v7638_v37  ;;  %v7750_v36 = vcombine.low %v758_v23, %v766_v24  ;;  %v7765_v37 = vcombine.high %v773_v30, %v781_v31  ;;  %v7846_v24 = vcombine.low %v854_v10, %v862_v11  ;;  %v894_v30 = vld [vmem:[%s8529_s5 + $0x14c8] sm:$0xff] }
  0xa0   : > { %5853 = vmatprep.subr.bf16.mxu0 %v7653_v38  ;;  %6017 = vmatprep.subr.bf16.mxu1 %v7655_v39  ;;  %v7767_v38 = vcombine.high %v774_v33, %v782_v34  ;;  %v789_v39 = vld [vmem:[%s8529_s5 + $0x1180] sm:$0xff] }
  0xa1   : > { %v7780_v51 = vcombine.low %v789_v39, %v797_v40 }
  0xa3   : > { %5854 = vmatpush1.bf16.msra.mxu0 %v7652_v44  ;;  %6018 = vmatpush1.bf16.msra.mxu1 %v7654_v45  ;;  %v7766_v44 = vcombine.low %v774_v33, %v782_v34  ;;  %v7781_v45 = vcombine.high %v789_v39, %v797_v40  ;;  %v7862_v33 = vcombine.low %v870_v19, %v878_v20  ;;  %v910_v39 = vld [vmem:[%s8529_s5 + $0x1548] sm:$0xff] }
  0xa4   : > { %5855 = vmatprep.subr.bf16.mxu0 %v7669_v46  ;;  %6019 = vmatprep.subr.bf16.mxu1 %v7671_v47  ;;  %v7783_v46 = vcombine.high %v790_v41, %v798_v42  ;;  %v805_v47 = vld [vmem:[%s8529_s5 + $0x1200] sm:$0xff] }
  0xa5   : > { %v7796_v60 = vcombine.low %v805_v47, %v813_v48 }
  0xa7   : > { %5856 = vmatpush1.bf16.msra.mxu0 %v7668_v52  ;;  %6020 = vmatpush1.bf16.msra.mxu1 %v7670_v53  ;;  %v7782_v52 = vcombine.low %v790_v41, %v798_v42  ;;  %v7797_v53 = vcombine.high %v805_v47, %v813_v48  ;;  %v926_v47 = vld [vmem:[%s8529_s5 + $0x15c8] sm:$0xff] }
  0xa8   : > { %5857 = vmatprep.subr.bf16.mxu0 %v7685_v54  ;;  %6021 = vmatprep.subr.bf16.mxu1 %v7687_v55  ;;  %v7799_v54 = vcombine.high %v806_v49, %v814_v50  ;;  %v821_v55 = vld [vmem:[%s8529_s5 + $0x1280] sm:$0xff] }
  0xa9   : > { %v7812_v4 = vcombine.low %v821_v55, %v829_v56 }
  0xab   : > { %5858 = vmatpush1.bf16.msra.mxu0 %v7684_v61  ;;  %6022 = vmatpush1.bf16.msra.mxu1 %v7686_v62  ;;  %v7798_v61 = vcombine.low %v806_v49, %v814_v50  ;;  %v7813_v62 = vcombine.high %v821_v55, %v829_v56  ;;  %v942_v55 = vld [vmem:[%s8529_s5 + $0x1648] sm:$0xff] }
  0xac   : > { %5859 = vmatprep.subr.bf16.mxu0 %v7701_v63  ;;  %6023 = vmatprep.subr.bf16.mxu1 %v7703_v0  ;;  %v7815_v63 = vcombine.high %v822_v58, %v830_v59  ;;  %v837_v0 = vld [vmem:[%s8529_s5 + $0x1300] sm:$0xff] }
  0xad   : > { %v7828_v13 = vcombine.low %v837_v0, %v845_v1 }
  0xaf   : > { %5860 = vmatpush1.bf16.msra.mxu0 %v7700_v5  ;;  %6024 = vmatpush1.bf16.msra.mxu1 %v7702_v6  ;;  %v7814_v5 = vcombine.low %v822_v58, %v830_v59  ;;  %v7829_v6 = vcombine.high %v837_v0, %v845_v1  ;;  %v958_v0 = vld [vmem:[%s8529_s5 + $0x16c8] sm:$0xff] }
  0xb0   : > { %5861 = vmatprep.subr.bf16.mxu0 %v7717_v7  ;;  %6025 = vmatprep.subr.bf16.mxu1 %v7719_v8  ;;  %v7831_v7 = vcombine.high %v838_v2, %v846_v3  ;;  %v853_v8 = vld [vmem:[%s8529_s5 + $0x1380] sm:$0xff] }
  0xb1   : > { %v7845_v15 = vcombine.high %v853_v8, %v861_v9  ;;  %v7844_v23 = vcombine.low %v853_v8, %v861_v9  ;;  %v974_v8 = vld [vmem:[%s8529_s5 + $0x1748] sm:$0xff] }
  0xb3   : > { %5862 = vmatpush1.bf16.msra.mxu0 %v7716_v14  ;;  %6026 = vmatpush1.bf16.msra.mxu1 %v7718_v16  ;;  %v7830_v14 = vcombine.low %v838_v2, %v846_v3  ;;  %v7847_v16 = vcombine.high %v854_v10, %v862_v11 }
  0xb4   : > { %5872 = vmatprep.subr.bf16.mxu0 %v7733_v17  ;;  %6036 = vmatprep.subr.bf16.mxu1 %v7735_v18  ;;  %v869_v17 = vld [vmem:[%s8529_s5 + $0x1400] sm:$0xff] }
  0xb5   : > { %v877_v18 = vld [vmem:[%s8529_s5 + $0x1440] sm:$0xff] }
  0xb6   : > { %5864 = vmatmul.mubr.bf16.vlgmr.msra.gmra.mrb[0].mxu0 %v8693_v21  ;;  %6028 = vmatmul.mubr.bf16.vlgmr.msra.gmra.mrb[0].mxu1 %v8693_v21  ;;  %v7861_v25 = vcombine.high %v869_v17, %v877_v18  ;;  %v7860_v31 = vcombine.low %v869_v17, %v877_v18  ;;  %v990_v17 = vld [vmem:[%s8529_s5 + $0x17c8] sm:$0xff] }
  0xb7   : > { %5873 = vmatpush1.bf16.msra.mxu0 %v7732_v26  ;;  %6037 = vmatpush1.bf16.msra.mxu1 %v7734_v27  ;;  %v7863_v26 = vcombine.high %v870_v19, %v878_v20  ;;  %v885_v27 = vld [vmem:[%s8529_s5 + $0x1480] sm:$0xff] }
  0xb8   : > { %5874 = vmatprep.subr.bf16.mxu0 %v7749_v28  ;;  %6038 = vmatprep.subr.bf16.mxu1 %v7751_v29  ;;  %v893_v28 = vld [vmem:[%s8529_s5 + $0x14c0] sm:$0xff]  ;;  %v886_v29 = vld [vmem:[%s8529_s5 + $0x1488] sm:$0xff] }
  0xb9   : > { %5904 = vmatprep.mubr.bf16.mxu0 %v8702_v32  ;;  %6068 = vmatprep.mubr.bf16.mxu1 %v8702_v32  ;;  %v7877_v34 = vcombine.high %v885_v27, %v893_v28  ;;  %v7876_v40 = vcombine.low %v885_v27, %v893_v28  ;;  %v7878_v41 = vcombine.low %v886_v29, %v894_v30  ;;  %v1006_v27 = vld [vmem:[%s8529_s5 + $0x1848] sm:$0xff] }
  0xbb   : > { %5875 = vmatpush1.bf16.msra.mxu0 %v7748_v35  ;;  %6039 = vmatpush1.bf16.msra.mxu1 %v7750_v36  ;;  %v7879_v35 = vcombine.high %v886_v29, %v894_v30  ;;  %v901_v36 = vld [vmem:[%s8529_s5 + $0x1500] sm:$0xff] }
  0xbc   : > { %5876 = vmatprep.subr.bf16.mxu0 %v7765_v37  ;;  %6040 = vmatprep.subr.bf16.mxu1 %v7767_v38  ;;  %v909_v37 = vld [vmem:[%s8529_s5 + $0x1540] sm:$0xff]  ;;  %v902_v38 = vld [vmem:[%s8529_s5 + $0x1508] sm:$0xff] }
  0xbd   : > { %v7893_v42 = vcombine.high %v901_v36, %v909_v37  ;;  %v7892_v48 = vcombine.low %v901_v36, %v909_v37  ;;  %v7894_v49 = vcombine.low %v902_v38, %v910_v39  ;;  %v217_v29 = vld [vmem:[%s9668_s0 + $0x20] sm:$0xff]  ;;  %v1014_v37 = vld [vmem:[%s8529_s5 + $0x1888] sm:$0xff] }
  0xbe   : > { %v8771_v36 = vpack.c.bf16 %v217_v29, %v217_v29 }
  0xbf   : > { %5877 = vmatpush1.bf16.msra.mxu0 %v7764_v43  ;;  %6041 = vmatpush1.bf16.msra.mxu1 %v7766_v44  ;;  %v7895_v43 = vcombine.high %v902_v38, %v910_v39  ;;  %v917_v44 = vld [vmem:[%s8529_s5 + $0x1580] sm:$0xff]  ;;  %v1022_v38 = vld [vmem:[%s8529_s5 + $0x18c8] sm:$0xff]  ;;  %v220_v39 = vld [vmem:[%s9668_s0 + $0x38] sm:$0xff] }
  0xc0   : > { %5878 = vmatprep.subr.bf16.mxu0 %v7781_v45  ;;  %6042 = vmatprep.subr.bf16.mxu1 %v7783_v46  ;;  %v925_v45 = vld [vmem:[%s8529_s5 + $0x15c0] sm:$0xff]  ;;  %v918_v46 = vld [vmem:[%s8529_s5 + $0x1588] sm:$0xff] }
  0xc1   : > { %v7909_v50 = vcombine.high %v917_v44, %v925_v45  ;;  %v7908_v56 = vcombine.low %v917_v44, %v925_v45  ;;  %v7910_v58 = vcombine.low %v918_v46, %v926_v47  ;;  %v1029_v44 = vld [vmem:[%s8529_s5 + $0x1900] sm:$0xff] }
  0xc2   : > { %v1037_v45 = vld [vmem:[%s8529_s5 + $0x1940] sm:$0xff] }
  0xc3   : > { %5879 = vmatpush1.bf16.msra.mxu0 %v7780_v51  ;;  %6043 = vmatpush1.bf16.msra.mxu1 %v7782_v52  ;;  %v7911_v51 = vcombine.high %v918_v46, %v926_v47  ;;  %v933_v52 = vld [vmem:[%s8529_s5 + $0x1600] sm:$0xff]  ;;  %v8780_v46 = vpack.c.bf16 %v220_v39, %v220_v39  ;;  %v1030_v47 = vld [vmem:[%s8529_s5 + $0x1908] sm:$0xff] }
  0xc4   : > { %5880 = vmatprep.subr.bf16.mxu0 %v7797_v53  ;;  %6044 = vmatprep.subr.bf16.mxu1 %v7799_v54  ;;  %v941_v53 = vld [vmem:[%s8529_s5 + $0x1640] sm:$0xff]  ;;  %v934_v54 = vld [vmem:[%s8529_s5 + $0x1608] sm:$0xff] }
  0xc5   : > { %v7925_v59 = vcombine.high %v933_v52, %v941_v53  ;;  %v7924_v1 = vcombine.low %v933_v52, %v941_v53  ;;  %v7926_v2 = vcombine.low %v934_v54, %v942_v55  ;;  %v1045_v53 = vld [vmem:[%s8529_s5 + $0x1980] sm:$0xff] }
  0xc7   : > { %5881 = vmatpush1.bf16.msra.mxu0 %v7796_v60  ;;  %6045 = vmatpush1.bf16.msra.mxu1 %v7798_v61  ;;  %v7927_v60 = vcombine.high %v934_v54, %v942_v55  ;;  %v949_v61 = vld [vmem:[%s8529_s5 + $0x1680] sm:$0xff]  ;;  %v1046_v55 = vld [vmem:[%s8529_s5 + $0x1988] sm:$0xff] }
  0xc8   : > { %5882 = vmatprep.subr.bf16.mxu0 %v7813_v62  ;;  %6046 = vmatprep.subr.bf16.mxu1 %v7815_v63  ;;  %v957_v62 = vld [vmem:[%s8529_s5 + $0x16c0] sm:$0xff]  ;;  %v950_v63 = vld [vmem:[%s8529_s5 + $0x1688] sm:$0xff] }
  0xc9   : > { %v7941_v3 = vcombine.high %v949_v61, %v957_v62  ;;  %v7940_v9 = vcombine.low %v949_v61, %v957_v62  ;;  %v7942_v10 = vcombine.low %v950_v63, %v958_v0  ;;  %v1053_v54 = vld [vmem:[%s8529_s5 + $0x19c0] sm:$0xff] }
  0xca   : > { %v1061_v62 = vld [vmem:[%s8529_s5 + $0x1a00] sm:$0xff] }
  0xcb   : > { %5883 = vmatpush1.bf16.msra.mxu0 %v7812_v4  ;;  %6047 = vmatpush1.bf16.msra.mxu1 %v7814_v5  ;;  %v7943_v4 = vcombine.high %v950_v63, %v958_v0  ;;  %v965_v5 = vld [vmem:[%s8529_s5 + $0x1700] sm:$0xff]  ;;  %v1062_v0 = vld [vmem:[%s8529_s5 + $0x1a08] sm:$0xff] }
  0xcc   : > { %5884 = vmatprep.subr.bf16.mxu0 %v7829_v6  ;;  %6048 = vmatprep.subr.bf16.mxu1 %v7831_v7  ;;  %v973_v6 = vld [vmem:[%s8529_s5 + $0x1740] sm:$0xff]  ;;  %v966_v7 = vld [vmem:[%s8529_s5 + $0x1708] sm:$0xff] }
  0xcd   : > { %v7957_v11 = vcombine.high %v965_v5, %v973_v6  ;;  %v7956_v18 = vcombine.low %v965_v5, %v973_v6  ;;  %v7958_v19 = vcombine.low %v966_v7, %v974_v8  ;;  %v1069_v63 = vld [vmem:[%s8529_s5 + $0x1a40] sm:$0xff] }
  0xce   : > { %v1077_v6 = vld [vmem:[%s8529_s5 + $0x1a80] sm:$0xff] }
  0xcf   : > { %5885 = vmatpush1.bf16.msra.mxu0 %v7828_v13  ;;  %6049 = vmatpush1.bf16.msra.mxu1 %v7830_v14  ;;  %v7959_v13 = vcombine.high %v966_v7, %v974_v8  ;;  %v981_v14 = vld [vmem:[%s8529_s5 + $0x1780] sm:$0xff]  ;;  %v1078_v8 = vld [vmem:[%s8529_s5 + $0x1a88] sm:$0xff] }
  0xd0   : > { %5886 = vmatprep.subr.bf16.mxu0 %v7845_v15  ;;  %6050 = vmatprep.subr.bf16.mxu1 %v7847_v16  ;;  %v989_v15 = vld [vmem:[%s8529_s5 + $0x17c0] sm:$0xff]  ;;  %v982_v16 = vld [vmem:[%s8529_s5 + $0x1788] sm:$0xff] }
  0xd1   : > { %v7973_v20 = vcombine.high %v981_v14, %v989_v15  ;;  %v7972_v28 = vcombine.low %v981_v14, %v989_v15  ;;  %v7974_v30 = vcombine.low %v982_v16, %v990_v17  ;;  %v1085_v7 = vld [vmem:[%s8529_s5 + $0x1ac0] sm:$0xff] }
  0xd2   : > { %v1093_v15 = vld [vmem:[%s8529_s5 + $0x1b00] sm:$0xff] }
  0xd3   : > { %5887 = vmatpush1.bf16.msra.mxu0 %v7844_v23  ;;  %6051 = vmatpush1.bf16.msra.mxu1 %v7846_v24  ;;  %v7975_v23 = vcombine.high %v982_v16, %v990_v17  ;;  %v997_v24 = vld [vmem:[%s8529_s5 + $0x1800] sm:$0xff]  ;;  %v1094_v17 = vld [vmem:[%s8529_s5 + $0x1b08] sm:$0xff] }
  0xd4   : > { %5888 = vmatprep.subr.bf16.mxu0 %v7861_v25  ;;  %6052 = vmatprep.subr.bf16.mxu1 %v7863_v26  ;;  %v1005_v25 = vld [vmem:[%s8529_s5 + $0x1840] sm:$0xff]  ;;  %v998_v26 = vld [vmem:[%s8529_s5 + $0x1808] sm:$0xff] }
  0xd5   : > { %v1101_v16 = vld [vmem:[%s8529_s5 + $0x1b40] sm:$0xff] }
  0xd6   : > { %v8084_v29 = vcombine.low %v1093_v15, %v1101_v16 }
  0xd7   : > { %5889 = vmatpush1.bf16.msra.mxu0 %v7860_v31  ;;  %6053 = vmatpush1.bf16.msra.mxu1 %v7862_v33  ;;  %v7989_v31 = vcombine.high %v997_v24, %v1005_v25  ;;  %v7991_v33 = vcombine.high %v998_v26, %v1006_v27 }
  0xd8   : > { %5890 = vmatprep.subr.bf16.mxu0 %v7877_v34  ;;  %6054 = vmatprep.subr.bf16.mxu1 %v7879_v35  ;;  %v1013_v34 = vld [vmem:[%s8529_s5 + $0x1880] sm:$0xff] }
  0xd9   : > { %v1021_v35 = vld [vmem:[%s8529_s5 + $0x18c0] sm:$0xff] }
  0xdb   : > { %5891 = vmatpush1.bf16.msra.mxu0 %v7876_v40  ;;  %6055 = vmatpush1.bf16.msra.mxu1 %v7878_v41  ;;  %v7988_v40 = vcombine.low %v997_v24, %v1005_v25  ;;  %v7990_v41 = vcombine.low %v998_v26, %v1006_v27  ;;  %v1109_v25 = vld [vmem:[%s8529_s5 + $0x1b80] sm:$0xff]  ;;  %v1110_v27 = vld [vmem:[%s8529_s5 + $0x1b88] sm:$0xff] }
  0xdc   : > { %5892 = vmatprep.subr.bf16.mxu0 %v7893_v42  ;;  %6056 = vmatprep.subr.bf16.mxu1 %v7895_v43  ;;  %v8005_v42 = vcombine.high %v1013_v34, %v1021_v35  ;;  %v8007_v43 = vcombine.high %v1014_v37, %v1022_v38  ;;  %v1117_v26 = vld [vmem:[%s8529_s5 + $0x1bc0] sm:$0xff] }
  0xdf   : > { %5893 = vmatpush1.bf16.msra.mxu0 %v7892_v48  ;;  %6057 = vmatpush1.bf16.msra.mxu1 %v7894_v49  ;;  %v1038_v48 = vld [vmem:[%s8529_s5 + $0x1948] sm:$0xff]  ;;  %v8004_v49 = vcombine.low %v1013_v34, %v1021_v35  ;;  %v1125_v34 = vld [vmem:[%s8529_s5 + $0x1c00] sm:$0xff] }
  0xe0   : > { %5894 = vmatprep.subr.bf16.mxu0 %v7909_v50  ;;  %6058 = vmatprep.subr.bf16.mxu1 %v7911_v51  ;;  %v8006_v50 = vcombine.low %v1014_v37, %v1022_v38  ;;  %v8021_v51 = vcombine.high %v1029_v44, %v1037_v45  ;;  %v8023_v52 = vcombine.high %v1030_v47, %v1038_v48  ;;  %v1126_v35 = vld [vmem:[%s8529_s5 + $0x1c08] sm:$0xff] }
  0xe1   : > { %v8100_v37 = vcombine.low %v1109_v25, %v1117_v26  ;;  %v8117_v39 = vcombine.high %v1125_v34, %v1125_v34 }
  0xe3   : > { %5895 = vmatpush1.bf16.msra.mxu0 %v7908_v56  ;;  %6059 = vmatpush1.bf16.msra.mxu1 %v7910_v58  ;;  %v1054_v56 = vld [vmem:[%s8529_s5 + $0x19c8] sm:$0xff]  ;;  %v8020_v58 = vcombine.low %v1029_v44, %v1037_v45  ;;  %v239_v44 = vld [vmem:[%s8529_s5 + $0x50] sm:$0xff]  ;;  %v232_v45 = vld [vmem:[%s8529_s5 + $0x18] sm:$0xff] }
  0xe4   : > { %5896 = vmatprep.subr.bf16.mxu0 %v7925_v59  ;;  %6060 = vmatprep.subr.bf16.mxu1 %v7927_v60  ;;  %v8022_v59 = vcombine.low %v1030_v47, %v1038_v48  ;;  %v8037_v60 = vcombine.high %v1045_v53, %v1053_v54  ;;  %v8039_v61 = vcombine.high %v1046_v55, %v1054_v56  ;;  %v240_v47 = vld [vmem:[%s8529_s5 + $0x58] sm:$0xff]  ;;  %v219_v48 = vld [vmem:[%s9668_s0 + $0x30] sm:$0xff] }
  0xe7   : > { %5897 = vmatpush1.bf16.msra.mxu0 %v7924_v1  ;;  %6061 = vmatpush1.bf16.msra.mxu1 %v7926_v2  ;;  %v1070_v1 = vld [vmem:[%s8529_s5 + $0x1a48] sm:$0xff]  ;;  %v8036_v2 = vcombine.low %v1045_v53, %v1053_v54  ;;  %v247_v53 = vld [vmem:[%s8529_s5 + $0x90] sm:$0xff] }
  0xe8   : > { %5898 = vmatprep.subr.bf16.mxu0 %v7941_v3  ;;  %6062 = vmatprep.subr.bf16.mxu1 %v7943_v4  ;;  %v8038_v3 = vcombine.low %v1046_v55, %v1054_v56  ;;  %v8053_v4 = vcombine.high %v1061_v62, %v1069_v63  ;;  %v8055_v5 = vcombine.high %v1062_v0, %v1070_v1  ;;  %v255_v54 = vld [vmem:[%s8529_s5 + $0xd0] sm:$0xff]  ;;  %v248_v56 = vld [vmem:[%s8529_s5 + $0x98] sm:$0xff] }
  0xe9   : > { %v8825_v55 = vpack.c.bf16 %v219_v48, %v219_v48  ;;  %v352_v48 = vld [vmem:[%s8529_s5 + $0x3d8] sm:$0xff] }
  0xeb   : > { %5899 = vmatpush1.bf16.msra.mxu0 %v7940_v9  ;;  %6063 = vmatpush1.bf16.msra.mxu1 %v7942_v10  ;;  %v1086_v9 = vld [vmem:[%s8529_s5 + $0x1ac8] sm:$0xff]  ;;  %v8052_v10 = vcombine.low %v1061_v62, %v1069_v63  ;;  %v263_v63 = vld [vmem:[%s8529_s5 + $0x110] sm:$0xff] }
  0xec   : > { %5900 = vmatprep.subr.bf16.mxu0 %v7957_v11  ;;  %6064 = vmatprep.subr.bf16.mxu1 %v7959_v13  ;;  %v8054_v11 = vcombine.low %v1062_v0, %v1070_v1  ;;  %v8069_v13 = vcombine.high %v1077_v6, %v1085_v7  ;;  %v8071_v14 = vcombine.high %v1078_v8, %v1086_v9  ;;  %v271_v0 = vld [vmem:[%s8529_s5 + $0x150] sm:$0xff]  ;;  %v264_v1 = vld [vmem:[%s8529_s5 + $0x118] sm:$0xff] }
  0xef   : > { %5901 = vmatpush1.bf16.msra.mxu0 %v7956_v18  ;;  %6065 = vmatpush1.bf16.msra.mxu1 %v7958_v19  ;;  %v1102_v18 = vld [vmem:[%s8529_s5 + $0x1b48] sm:$0xff]  ;;  %v8068_v19 = vcombine.low %v1077_v6, %v1085_v7  ;;  %v279_v7 = vld [vmem:[%s8529_s5 + $0x190] sm:$0xff] }
  0xf0   : > { %5902 = vmatprep.subr.bf16.mxu0 %v7973_v20  ;;  %6066 = vmatprep.subr.bf16.mxu1 %v7975_v23  ;;  %v8070_v20 = vcombine.low %v1078_v8, %v1086_v9  ;;  %v8085_v23 = vcombine.high %v1093_v15, %v1101_v16  ;;  %v8087_v24 = vcombine.high %v1094_v17, %v1102_v18  ;;  %v287_v8 = vld [vmem:[%s8529_s5 + $0x1d0] sm:$0xff]  ;;  %v280_v9 = vld [vmem:[%s8529_s5 + $0x198] sm:$0xff] }
  0xf1   : > { %v295_v16 = vld [vmem:[%s8529_s5 + $0x210] sm:$0xff] }
  0xf3   : > { %5903 = vmatpush1.bf16.msra.mxu0 %v7972_v28  ;;  %6067 = vmatpush1.bf16.msra.mxu1 %v7974_v30  ;;  %v1118_v28 = vld [vmem:[%s8529_s5 + $0x1bc8] sm:$0xff]  ;;  %v8086_v30 = vcombine.low %v1094_v17, %v1102_v18  ;;  %v303_v17 = vld [vmem:[%s8529_s5 + $0x250] sm:$0xff]  ;;  %v296_v18 = vld [vmem:[%s8529_s5 + $0x218] sm:$0xff] }
  0xf4   : > { %5913 = vmatprep.subr.bf16.mxu0 %v7989_v31  ;;  %6077 = vmatprep.subr.bf16.mxu1 %v7991_v33  ;;  %v8101_v31 = vcombine.high %v1109_v25, %v1117_v26  ;;  %v8103_v33 = vcombine.high %v1110_v27, %v1118_v28  ;;  %v8102_v38 = vcombine.low %v1110_v27, %v1118_v28  ;;  %v311_v26 = vld [vmem:[%s8529_s5 + $0x290] sm:$0xff]  ;;  %v312_v28 = vld [vmem:[%s8529_s5 + $0x298] sm:$0xff] }
  0xf5   : > { %v319_v27 = vld [vmem:[%s8529_s5 + $0x2d0] sm:$0xff] }
  0xf6   : > { %5905 = vmatmul.mubr.bf16.vlgmr.msra.gmra.mrb[0].mxu0 %v8771_v36  ;;  %6069 = vmatmul.mubr.bf16.vlgmr.msra.gmra.mrb[0].mxu1 %v8771_v36 }
  0xf7   : > { %5914 = vmatpush1.bf16.msra.mxu0 %v7988_v40  ;;  %6078 = vmatpush1.bf16.msra.mxu1 %v7990_v41  ;;  %v8116_v40 = vcombine.low %v1125_v34, %v1125_v34  ;;  %v8119_v41 = vcombine.high %v1126_v35, %v1126_v35 }
  0xf8   : > { %5915 = vmatprep.subr.bf16.mxu0 %v8005_v42  ;;  %6079 = vmatprep.subr.bf16.mxu1 %v8007_v43  ;;  %v8118_v42 = vcombine.low %v1126_v35, %v1126_v35  ;;  %v231_v43 = vld [vmem:[%s8529_s5 + $0x10] sm:$0xff] }
  0xf9   : > { %8133 = vmatprep.mubr.msk.bf16.mxu0 %vm5737_vm0, %v8780_v46  ;;  %8135 = vmatprep.mubr.msk.bf16.mxu1 %vm5737_vm0, %v8780_v46  ;;  %v327_v35 = vld [vmem:[%s8529_s5 + $0x310] sm:$0xff] }
  0xfb   : > { %5916 = vmatpush1.bf16.msra.mxu0 %v8004_v49  ;;  %6080 = vmatpush1.bf16.msra.mxu1 %v8006_v50  ;;  %v5743_v49 = vsel %vm5741_vm1, %v8116_v40, 0  ;;  %v7225_v50 = vcombine.high %v231_v43, %v239_v44  ;;  %v7304_v40 = vcombine.low %v311_v26, %v319_v27 }
  0xfc   : > { %5917 = vmatprep.subr.bf16.mxu0 %v8021_v51  ;;  %6081 = vmatprep.subr.bf16.mxu1 %v8023_v52  ;;  %v5749_v51 = vsel %vm5741_vm1, %v8118_v42, 0  ;;  %v7227_v52 = vcombine.high %v232_v45, %v240_v47 }
  0xff   : > { %5918 = vmatpush1.bf16.msra.mxu0 %v8020_v58  ;;  %6082 = vmatpush1.bf16.msra.mxu1 %v8022_v59  ;;  %v256_v58 = vld [vmem:[%s8529_s5 + $0xd8] sm:$0xff]  ;;  %v7224_v59 = vcombine.low %v231_v43, %v239_v44  ;;  %v343_v44 = vld [vmem:[%s8529_s5 + $0x390] sm:$0xff] }
 0x100   : > { %5919 = vmatprep.subr.bf16.mxu0 %v8037_v60  ;;  %6083 = vmatprep.subr.bf16.mxu1 %v8039_v61  ;;  %v7226_v60 = vcombine.low %v232_v45, %v240_v47  ;;  %v7241_v61 = vcombine.high %v247_v53, %v255_v54  ;;  %v7243_v62 = vcombine.high %v248_v56, %v256_v58  ;;  %v351_v45 = vld [vmem:[%s8529_s5 + $0x3d0] sm:$0xff]  ;;  %v344_v47 = vld [vmem:[%s8529_s5 + $0x398] sm:$0xff] }
 0x103   : > { %5920 = vmatpush1.bf16.msra.mxu0 %v8036_v2  ;;  %6084 = vmatpush1.bf16.msra.mxu1 %v8038_v3  ;;  %v272_v2 = vld [vmem:[%s8529_s5 + $0x158] sm:$0xff]  ;;  %v7240_v3 = vcombine.low %v247_v53, %v255_v54  ;;  %v359_v53 = vld [vmem:[%s8529_s5 + $0x410] sm:$0xff] }
 0x104   : > { %5921 = vmatprep.subr.bf16.mxu0 %v8053_v4  ;;  %6085 = vmatprep.subr.bf16.mxu1 %v8055_v5  ;;  %v7242_v4 = vcombine.low %v248_v56, %v256_v58  ;;  %v7257_v5 = vcombine.high %v263_v63, %v271_v0  ;;  %v7259_v6 = vcombine.high %v264_v1, %v272_v2  ;;  %v367_v54 = vld [vmem:[%s8529_s5 + $0x450] sm:$0xff]  ;;  %v360_v56 = vld [vmem:[%s8529_s5 + $0x418] sm:$0xff] }
 0x105   : > { %v368_v58 = vld [vmem:[%s8529_s5 + $0x458] sm:$0xff] }
 0x107   : > { %5922 = vmatpush1.bf16.msra.mxu0 %v8052_v10  ;;  %6086 = vmatpush1.bf16.msra.mxu1 %v8054_v11  ;;  %v288_v10 = vld [vmem:[%s8529_s5 + $0x1d8] sm:$0xff]  ;;  %v7256_v11 = vcombine.low %v263_v63, %v271_v0  ;;  %v375_v63 = vld [vmem:[%s8529_s5 + $0x490] sm:$0xff] }
 0x108   : > { %5923 = vmatprep.subr.bf16.mxu0 %v8069_v13  ;;  %6087 = vmatprep.subr.bf16.mxu1 %v8071_v14  ;;  %v7258_v13 = vcombine.low %v264_v1, %v272_v2  ;;  %v7273_v14 = vcombine.high %v279_v7, %v287_v8  ;;  %v7275_v15 = vcombine.high %v280_v9, %v288_v10  ;;  %v383_v0 = vld [vmem:[%s8529_s5 + $0x4d0] sm:$0xff]  ;;  %v376_v1 = vld [vmem:[%s8529_s5 + $0x498] sm:$0xff] }
 0x109   : > { %v384_v2 = vld [vmem:[%s8529_s5 + $0x4d8] sm:$0xff] }
 0x10b   : > { %5924 = vmatpush1.bf16.msra.mxu0 %v8068_v19  ;;  %6088 = vmatpush1.bf16.msra.mxu1 %v8070_v20  ;;  %v304_v19 = vld [vmem:[%s8529_s5 + $0x258] sm:$0xff]  ;;  %v7272_v20 = vcombine.low %v279_v7, %v287_v8  ;;  %v391_v7 = vld [vmem:[%s8529_s5 + $0x510] sm:$0xff] }
 0x10c   : > { %5925 = vmatprep.subr.bf16.mxu0 %v8085_v23  ;;  %6089 = vmatprep.subr.bf16.mxu1 %v8087_v24  ;;  %v7274_v23 = vcombine.low %v280_v9, %v288_v10  ;;  %v7289_v24 = vcombine.high %v295_v16, %v303_v17  ;;  %v7291_v25 = vcombine.high %v296_v18, %v304_v19  ;;  %v399_v8 = vld [vmem:[%s8529_s5 + $0x550] sm:$0xff]  ;;  %v392_v9 = vld [vmem:[%s8529_s5 + $0x518] sm:$0xff] }
 0x10d   : > { %v400_v10 = vld [vmem:[%s8529_s5 + $0x558] sm:$0xff] }
 0x10f   : > { %5926 = vmatpush1.bf16.msra.mxu0 %v8084_v29  ;;  %6090 = vmatpush1.bf16.msra.mxu1 %v8086_v30  ;;  %v320_v29 = vld [vmem:[%s8529_s5 + $0x2d8] sm:$0xff]  ;;  %v7288_v30 = vcombine.low %v295_v16, %v303_v17  ;;  %v407_v16 = vld [vmem:[%s8529_s5 + $0x590] sm:$0xff] }
 0x110   : > { %5927 = vmatprep.subr.bf16.mxu0 %v8101_v31  ;;  %6091 = vmatprep.subr.bf16.mxu1 %v8103_v33  ;;  %v7290_v31 = vcombine.low %v296_v18, %v304_v19  ;;  %v7305_v33 = vcombine.high %v311_v26, %v319_v27  ;;  %v7307_v34 = vcombine.high %v312_v28, %v320_v29  ;;  %v415_v17 = vld [vmem:[%s8529_s5 + $0x5d0] sm:$0xff]  ;;  %v408_v18 = vld [vmem:[%s8529_s5 + $0x598] sm:$0xff] }
 0x111   : > { %v416_v19 = vld [vmem:[%s8529_s5 + $0x5d8] sm:$0xff]  ;;  %v423_v26 = vld [vmem:[%s8529_s5 + $0x610] sm:$0xff] }
 0x112   : > { %v431_v27 = vld [vmem:[%s8529_s5 + $0x650] sm:$0xff] }
 0x113   : > { %5928 = vmatpush1.bf16.msra.mxu0 %v8100_v37  ;;  %6092 = vmatpush1.bf16.msra.mxu1 %v8102_v38  ;;  %v335_v37 = vld [vmem:[%s8529_s5 + $0x350] sm:$0xff]  ;;  %v328_v38 = vld [vmem:[%s8529_s5 + $0x318] sm:$0xff] }
 0x114   : > { %8132 = vmatprep.subr.msk.bf16.mxu0 %vm5741_vm1, %v8117_v39  ;;  %8134 = vmatprep.subr.msk.bf16.mxu1 %vm5741_vm1, %v8119_v41  ;;  %v336_v39 = vld [vmem:[%s8529_s5 + $0x358] sm:$0xff]  ;;  %v7306_v41 = vcombine.low %v312_v28, %v320_v29  ;;  %v7321_v42 = vcombine.high %v327_v35, %v335_v37 }
 0x115   : > { %v7323_v43 = vcombine.high %v328_v38, %v336_v39  ;;  %v424_v28 = vld [vmem:[%s8529_s5 + $0x618] sm:$0xff] }
 0x116   : > { %v432_v29 = vld [vmem:[%s8529_s5 + $0x658] sm:$0xff] }
 0x117   : > { %5930 = vmatpush1.bf16.msra.mxu0 %v5743_v49  ;;  %6094 = vmatpush1.bf16.msra.mxu1 %v5749_v51  ;;  %v7320_v49 = vcombine.low %v327_v35, %v335_v37  ;;  %v7337_v51 = vcombine.high %v343_v44, %v351_v45  ;;  %v439_v35 = vld [vmem:[%s8529_s5 + $0x690] sm:$0xff] }
 0x118   : > { %6118 = vmatprep.subr.bf16.mxu0 %v7225_v50  ;;  %6282 = vmatprep.subr.bf16.mxu1 %v7227_v52  ;;  %v7322_v50 = vcombine.low %v328_v38, %v336_v39  ;;  %v7339_v52 = vcombine.high %v344_v47, %v352_v48  ;;  %v447_v37 = vld [vmem:[%s8529_s5 + $0x6d0] sm:$0xff]  ;;  %v440_v38 = vld [vmem:[%s8529_s5 + $0x698] sm:$0xff] }
 0x119   : > { %v448_v39 = vld [vmem:[%s8529_s5 + $0x6d8] sm:$0xff] }
 0x11a   : > { %5946 = vmatmul.mubr.bf16.vlgmr.msra.gmra.mrb[0].mxu0 %v8825_v55  ;;  %6110 = vmatmul.mubr.bf16.vlgmr.msra.gmra.mrb[0].mxu1 %v8825_v55 }
 0x11b   : > { %6119 = vmatpush1.bf16.msra.mxu0 %v7224_v59  ;;  %6283 = vmatpush1.bf16.msra.mxu1 %v7226_v60  ;;  %v7336_v59 = vcombine.low %v343_v44, %v351_v45  ;;  %v7338_v60 = vcombine.low %v344_v47, %v352_v48  ;;  %v455_v44 = vld [vmem:[%s8529_s5 + $0x710] sm:$0xff]  ;;  %v456_v47 = vld [vmem:[%s8529_s5 + $0x718] sm:$0xff] }
 0x11c   : > { %6120 = vmatprep.subr.bf16.mxu0 %v7241_v61  ;;  %6284 = vmatprep.subr.bf16.mxu1 %v7243_v62  ;;  %v7353_v61 = vcombine.high %v359_v53, %v367_v54  ;;  %v7355_v62 = vcombine.high %v360_v56, %v368_v58  ;;  %v463_v45 = vld [vmem:[%s8529_s5 + $0x750] sm:$0xff]  ;;  %v464_v48 = vld [vmem:[%s8529_s5 + $0x758] sm:$0xff] }
 0x11d   : > { %6150 = vmatprep.mubr.bf16.mxu0 %v8568_v57  ;;  %6314 = vmatprep.mubr.bf16.mxu1 %v8568_v57 }
 0x11f   : > { %6121 = vmatpush1.bf16.msra.mxu0 %v7240_v3  ;;  %6285 = vmatpush1.bf16.msra.mxu1 %v7242_v4  ;;  %v7352_v3 = vcombine.low %v359_v53, %v367_v54  ;;  %v7354_v4 = vcombine.low %v360_v56, %v368_v58  ;;  %v471_v53 = vld [vmem:[%s8529_s5 + $0x790] sm:$0xff]  ;;  %v472_v56 = vld [vmem:[%s8529_s5 + $0x798] sm:$0xff] }
 0x120   : > { %6122 = vmatprep.subr.bf16.mxu0 %v7257_v5  ;;  %6286 = vmatprep.subr.bf16.mxu1 %v7259_v6  ;;  %v7369_v5 = vcombine.high %v375_v63, %v383_v0  ;;  %v7371_v6 = vcombine.high %v376_v1, %v384_v2  ;;  %v479_v54 = vld [vmem:[%s8529_s5 + $0x7d0] sm:$0xff]  ;;  %v480_v58 = vld [vmem:[%s8529_s5 + $0x7d8] sm:$0xff] }
 0x123   : > { %6123 = vmatpush1.bf16.msra.mxu0 %v7256_v11  ;;  %6287 = vmatpush1.bf16.msra.mxu1 %v7258_v13  ;;  %v7368_v11 = vcombine.low %v375_v63, %v383_v0  ;;  %v7370_v13 = vcombine.low %v376_v1, %v384_v2  ;;  %v487_v63 = vld [vmem:[%s8529_s5 + $0x810] sm:$0xff]  ;;  %v488_v1 = vld [vmem:[%s8529_s5 + $0x818] sm:$0xff] }
 0x124   : > { %6124 = vmatprep.subr.bf16.mxu0 %v7273_v14  ;;  %6288 = vmatprep.subr.bf16.mxu1 %v7275_v15  ;;  %v7385_v14 = vcombine.high %v391_v7, %v399_v8  ;;  %v7387_v15 = vcombine.high %v392_v9, %v400_v10  ;;  %v495_v0 = vld [vmem:[%s8529_s5 + $0x850] sm:$0xff]  ;;  %v496_v2 = vld [vmem:[%s8529_s5 + $0x858] sm:$0xff] }
 0x127   : > { %6125 = vmatpush1.bf16.msra.mxu0 %v7272_v20  ;;  %6289 = vmatpush1.bf16.msra.mxu1 %v7274_v23  ;;  %v7384_v20 = vcombine.low %v391_v7, %v399_v8  ;;  %v7386_v23 = vcombine.low %v392_v9, %v400_v10  ;;  %v503_v7 = vld [vmem:[%s8529_s5 + $0x890] sm:$0xff]  ;;  %v504_v9 = vld [vmem:[%s8529_s5 + $0x898] sm:$0xff] }
 0x128   : > { %6126 = vmatprep.subr.bf16.mxu0 %v7289_v24  ;;  %6290 = vmatprep.subr.bf16.mxu1 %v7291_v25  ;;  %v7401_v24 = vcombine.high %v407_v16, %v415_v17  ;;  %v7403_v25 = vcombine.high %v408_v18, %v416_v19  ;;  %v511_v8 = vld [vmem:[%s8529_s5 + $0x8d0] sm:$0xff]  ;;  %v512_v10 = vld [vmem:[%s8529_s5 + $0x8d8] sm:$0xff] }
 0x12b   : > { %6127 = vmatpush1.bf16.msra.mxu0 %v7288_v30  ;;  %6291 = vmatpush1.bf16.msra.mxu1 %v7290_v31  ;;  %v7400_v30 = vcombine.low %v407_v16, %v415_v17  ;;  %v7402_v31 = vcombine.low %v408_v18, %v416_v19  ;;  %v519_v16 = vld [vmem:[%s8529_s5 + $0x910] sm:$0xff]  ;;  %v520_v18 = vld [vmem:[%s8529_s5 + $0x918] sm:$0xff] }
 0x12c   : > { %6128 = vmatprep.subr.bf16.mxu0 %v7305_v33  ;;  %6292 = vmatprep.subr.bf16.mxu1 %v7307_v34  ;;  %v7417_v33 = vcombine.high %v423_v26, %v431_v27  ;;  %v7419_v34 = vcombine.high %v424_v28, %v432_v29  ;;  %v527_v17 = vld [vmem:[%s8529_s5 + $0x950] sm:$0xff]  ;;  %v528_v19 = vld [vmem:[%s8529_s5 + $0x958] sm:$0xff] }
 0x12f   : > { %6129 = vmatpush1.bf16.msra.mxu0 %v7304_v40  ;;  %6293 = vmatpush1.bf16.msra.mxu1 %v7306_v41  ;;  %v7416_v40 = vcombine.low %v423_v26, %v431_v27  ;;  %v7418_v41 = vcombine.low %v424_v28, %v432_v29  ;;  %v535_v26 = vld [vmem:[%s8529_s5 + $0x990] sm:$0xff]  ;;  %v536_v28 = vld [vmem:[%s8529_s5 + $0x998] sm:$0xff] }
 0x130   : > { %6130 = vmatprep.subr.bf16.mxu0 %v7321_v42  ;;  %6294 = vmatprep.subr.bf16.mxu1 %v7323_v43  ;;  %v7433_v42 = vcombine.high %v439_v35, %v447_v37  ;;  %v7435_v43 = vcombine.high %v440_v38, %v448_v39  ;;  %v543_v27 = vld [vmem:[%s8529_s5 + $0x9d0] sm:$0xff]  ;;  %v544_v29 = vld [vmem:[%s8529_s5 + $0x9d8] sm:$0xff] }
 0x133   : > { %6131 = vmatpush1.bf16.msra.mxu0 %v7320_v49  ;;  %6295 = vmatpush1.bf16.msra.mxu1 %v7322_v50  ;;  %v7432_v49 = vcombine.low %v439_v35, %v447_v37  ;;  %v7434_v50 = vcombine.low %v440_v38, %v448_v39  ;;  %v551_v35 = vld [vmem:[%s8529_s5 + $0xa10] sm:$0xff]  ;;  %v552_v38 = vld [vmem:[%s8529_s5 + $0xa18] sm:$0xff] }
 0x134   : > { %6132 = vmatprep.subr.bf16.mxu0 %v7337_v51  ;;  %6296 = vmatprep.subr.bf16.mxu1 %v7339_v52  ;;  %v7449_v51 = vcombine.high %v455_v44, %v463_v45  ;;  %v7451_v52 = vcombine.high %v456_v47, %v464_v48  ;;  %v559_v37 = vld [vmem:[%s8529_s5 + $0xa50] sm:$0xff]  ;;  %v560_v39 = vld [vmem:[%s8529_s5 + $0xa58] sm:$0xff] }
 0x137   : > { %6133 = vmatpush1.bf16.msra.mxu0 %v7336_v59  ;;  %6297 = vmatpush1.bf16.msra.mxu1 %v7338_v60  ;;  %v7448_v59 = vcombine.low %v455_v44, %v463_v45  ;;  %v7450_v60 = vcombine.low %v456_v47, %v464_v48  ;;  %v567_v44 = vld [vmem:[%s8529_s5 + $0xa90] sm:$0xff]  ;;  %v568_v47 = vld [vmem:[%s8529_s5 + $0xa98] sm:$0xff] }
 0x138   : > { %6134 = vmatprep.subr.bf16.mxu0 %v7353_v61  ;;  %6298 = vmatprep.subr.bf16.mxu1 %v7355_v62  ;;  %v7465_v61 = vcombine.high %v471_v53, %v479_v54  ;;  %v7467_v62 = vcombine.high %v472_v56, %v480_v58  ;;  %v575_v45 = vld [vmem:[%s8529_s5 + $0xad0] sm:$0xff]  ;;  %v576_v48 = vld [vmem:[%s8529_s5 + $0xad8] sm:$0xff] }
 0x13b   : > { %6135 = vmatpush1.bf16.msra.mxu0 %v7352_v3  ;;  %6299 = vmatpush1.bf16.msra.mxu1 %v7354_v4  ;;  %v7464_v3 = vcombine.low %v471_v53, %v479_v54  ;;  %v7466_v4 = vcombine.low %v472_v56, %v480_v58  ;;  %v583_v53 = vld [vmem:[%s8529_s5 + $0xb10] sm:$0xff]  ;;  %v584_v56 = vld [vmem:[%s8529_s5 + $0xb18] sm:$0xff] }
 0x13c   : > { %6136 = vmatprep.subr.bf16.mxu0 %v7369_v5  ;;  %6300 = vmatprep.subr.bf16.mxu1 %v7371_v6  ;;  %v7481_v5 = vcombine.high %v487_v63, %v495_v0  ;;  %v7483_v6 = vcombine.high %v488_v1, %v496_v2  ;;  %v591_v54 = vld [vmem:[%s8529_s5 + $0xb50] sm:$0xff]  ;;  %v592_v58 = vld [vmem:[%s8529_s5 + $0xb58] sm:$0xff] }
 0x13f   : > { %6137 = vmatpush1.bf16.msra.mxu0 %v7368_v11  ;;  %6301 = vmatpush1.bf16.msra.mxu1 %v7370_v13  ;;  %v7480_v11 = vcombine.low %v487_v63, %v495_v0  ;;  %v7482_v13 = vcombine.low %v488_v1, %v496_v2  ;;  %v599_v63 = vld [vmem:[%s8529_s5 + $0xb90] sm:$0xff]  ;;  %v600_v1 = vld [vmem:[%s8529_s5 + $0xb98] sm:$0xff] }
 0x140   : > { %6138 = vmatprep.subr.bf16.mxu0 %v7385_v14  ;;  %6302 = vmatprep.subr.bf16.mxu1 %v7387_v15  ;;  %v7497_v14 = vcombine.high %v503_v7, %v511_v8  ;;  %v7499_v15 = vcombine.high %v504_v9, %v512_v10  ;;  %v607_v0 = vld [vmem:[%s8529_s5 + $0xbd0] sm:$0xff]  ;;  %v608_v2 = vld [vmem:[%s8529_s5 + $0xbd8] sm:$0xff] }
 0x143   : > { %6139 = vmatpush1.bf16.msra.mxu0 %v7384_v20  ;;  %6303 = vmatpush1.bf16.msra.mxu1 %v7386_v23  ;;  %v7496_v20 = vcombine.low %v503_v7, %v511_v8  ;;  %v7498_v23 = vcombine.low %v504_v9, %v512_v10  ;;  %v615_v7 = vld [vmem:[%s8529_s5 + $0xc10] sm:$0xff]  ;;  %v616_v9 = vld [vmem:[%s8529_s5 + $0xc18] sm:$0xff] }
 0x144   : > { %6140 = vmatprep.subr.bf16.mxu0 %v7401_v24  ;;  %6304 = vmatprep.subr.bf16.mxu1 %v7403_v25  ;;  %v7513_v24 = vcombine.high %v519_v16, %v527_v17  ;;  %v7515_v25 = vcombine.high %v520_v18, %v528_v19  ;;  %v623_v8 = vld [vmem:[%s8529_s5 + $0xc50] sm:$0xff]  ;;  %v624_v10 = vld [vmem:[%s8529_s5 + $0xc58] sm:$0xff] }
 0x147   : > { %6141 = vmatpush1.bf16.msra.mxu0 %v7400_v30  ;;  %6305 = vmatpush1.bf16.msra.mxu1 %v7402_v31  ;;  %v7512_v30 = vcombine.low %v519_v16, %v527_v17  ;;  %v7514_v31 = vcombine.low %v520_v18, %v528_v19  ;;  %v631_v16 = vld [vmem:[%s8529_s5 + $0xc90] sm:$0xff]  ;;  %v632_v18 = vld [vmem:[%s8529_s5 + $0xc98] sm:$0xff] }
 0x148   : > { %6142 = vmatprep.subr.bf16.mxu0 %v7417_v33  ;;  %6306 = vmatprep.subr.bf16.mxu1 %v7419_v34  ;;  %v7529_v33 = vcombine.high %v535_v26, %v543_v27  ;;  %v7531_v34 = vcombine.high %v536_v28, %v544_v29  ;;  %v639_v17 = vld [vmem:[%s8529_s5 + $0xcd0] sm:$0xff]  ;;  %v640_v19 = vld [vmem:[%s8529_s5 + $0xcd8] sm:$0xff] }
 0x14b   : > { %6143 = vmatpush1.bf16.msra.mxu0 %v7416_v40  ;;  %6307 = vmatpush1.bf16.msra.mxu1 %v7418_v41  ;;  %v7528_v40 = vcombine.low %v535_v26, %v543_v27  ;;  %v7530_v41 = vcombine.low %v536_v28, %v544_v29  ;;  %v647_v26 = vld [vmem:[%s8529_s5 + $0xd10] sm:$0xff]  ;;  %v648_v28 = vld [vmem:[%s8529_s5 + $0xd18] sm:$0xff] }
 0x14c   : > { %6144 = vmatprep.subr.bf16.mxu0 %v7433_v42  ;;  %6308 = vmatprep.subr.bf16.mxu1 %v7435_v43  ;;  %v7545_v42 = vcombine.high %v551_v35, %v559_v37  ;;  %v7547_v43 = vcombine.high %v552_v38, %v560_v39  ;;  %v655_v27 = vld [vmem:[%s8529_s5 + $0xd50] sm:$0xff]  ;;  %v656_v29 = vld [vmem:[%s8529_s5 + $0xd58] sm:$0xff] }
 0x14f   : > { %6145 = vmatpush1.bf16.msra.mxu0 %v7432_v49  ;;  %6309 = vmatpush1.bf16.msra.mxu1 %v7434_v50  ;;  %v7544_v49 = vcombine.low %v551_v35, %v559_v37  ;;  %v7546_v50 = vcombine.low %v552_v38, %v560_v39  ;;  %v663_v35 = vld [vmem:[%s8529_s5 + $0xd90] sm:$0xff]  ;;  %v664_v38 = vld [vmem:[%s8529_s5 + $0xd98] sm:$0xff] }
 0x150   : > { %6146 = vmatprep.subr.bf16.mxu0 %v7449_v51  ;;  %6310 = vmatprep.subr.bf16.mxu1 %v7451_v52  ;;  %v7561_v51 = vcombine.high %v567_v44, %v575_v45  ;;  %v7563_v52 = vcombine.high %v568_v47, %v576_v48  ;;  %v671_v37 = vld [vmem:[%s8529_s5 + $0xdd0] sm:$0xff]  ;;  %v672_v39 = vld [vmem:[%s8529_s5 + $0xdd8] sm:$0xff] }
 0x153   : > { %6147 = vmatpush1.bf16.msra.mxu0 %v7448_v59  ;;  %6311 = vmatpush1.bf16.msra.mxu1 %v7450_v60  ;;  %v7560_v59 = vcombine.low %v567_v44, %v575_v45  ;;  %v7562_v60 = vcombine.low %v568_v47, %v576_v48  ;;  %v679_v44 = vld [vmem:[%s8529_s5 + $0xe10] sm:$0xff]  ;;  %v680_v47 = vld [vmem:[%s8529_s5 + $0xe18] sm:$0xff] }
 0x154   : > { %6148 = vmatprep.subr.bf16.mxu0 %v7465_v61  ;;  %6312 = vmatprep.subr.bf16.mxu1 %v7467_v62  ;;  %v7577_v61 = vcombine.high %v583_v53, %v591_v54  ;;  %v7579_v62 = vcombine.high %v584_v56, %v592_v58  ;;  %v687_v45 = vld [vmem:[%s8529_s5 + $0xe50] sm:$0xff]  ;;  %v688_v48 = vld [vmem:[%s8529_s5 + $0xe58] sm:$0xff] }
 0x157   : > { %6149 = vmatpush1.bf16.msra.mxu0 %v7464_v3  ;;  %6313 = vmatpush1.bf16.msra.mxu1 %v7466_v4  ;;  %v7576_v3 = vcombine.low %v583_v53, %v591_v54  ;;  %v7578_v4 = vcombine.low %v584_v56, %v592_v58  ;;  %v695_v53 = vld [vmem:[%s8529_s5 + $0xe90] sm:$0xff]  ;;  %v696_v56 = vld [vmem:[%s8529_s5 + $0xe98] sm:$0xff] }
 0x158   : > { %6159 = vmatprep.subr.bf16.mxu0 %v7481_v5  ;;  %6323 = vmatprep.subr.bf16.mxu1 %v7483_v6  ;;  %v7593_v5 = vcombine.high %v599_v63, %v607_v0  ;;  %v7595_v6 = vcombine.high %v600_v1, %v608_v2  ;;  %v703_v54 = vld [vmem:[%s8529_s5 + $0xed0] sm:$0xff]  ;;  %v704_v58 = vld [vmem:[%s8529_s5 + $0xed8] sm:$0xff] }
 0x15a   : > { %6151 = vmatmul.mubr.bf16.vlgmr.msra.gmra.mrb[4].mxu0 %v8615_v12  ;;  %6315 = vmatmul.mubr.bf16.vlgmr.msra.gmra.mrb[4].mxu1 %v8615_v12 }
 0x15b   : > { %6160 = vmatpush1.bf16.msra.mxu0 %v7480_v11  ;;  %6324 = vmatpush1.bf16.msra.mxu1 %v7482_v13  ;;  %v7592_v11 = vcombine.low %v599_v63, %v607_v0  ;;  %v7594_v13 = vcombine.low %v600_v1, %v608_v2  ;;  %v711_v63 = vld [vmem:[%s8529_s5 + $0xf10] sm:$0xff]  ;;  %v712_v1 = vld [vmem:[%s8529_s5 + $0xf18] sm:$0xff] }
 0x15c   : > { %6161 = vmatprep.subr.bf16.mxu0 %v7497_v14  ;;  %6325 = vmatprep.subr.bf16.mxu1 %v7499_v15  ;;  %v7609_v14 = vcombine.high %v615_v7, %v623_v8  ;;  %v7611_v15 = vcombine.high %v616_v9, %v624_v10  ;;  %v719_v0 = vld [vmem:[%s8529_s5 + $0xf50] sm:$0xff]  ;;  %v720_v2 = vld [vmem:[%s8529_s5 + $0xf58] sm:$0xff] }
 0x15d   : > { %6191 = vmatprep.mubr.bf16.mxu0 %v8624_v22  ;;  %6355 = vmatprep.mubr.bf16.mxu1 %v8624_v22 }
 0x15f   : > { %6162 = vmatpush1.bf16.msra.mxu0 %v7496_v20  ;;  %6326 = vmatpush1.bf16.msra.mxu1 %v7498_v23  ;;  %v7608_v20 = vcombine.low %v615_v7, %v623_v8  ;;  %v7610_v23 = vcombine.low %v616_v9, %v624_v10  ;;  %v727_v7 = vld [vmem:[%s8529_s5 + $0xf90] sm:$0xff]  ;;  %v728_v9 = vld [vmem:[%s8529_s5 + $0xf98] sm:$0xff] }
 0x160   : > { %6163 = vmatprep.subr.bf16.mxu0 %v7513_v24  ;;  %6327 = vmatprep.subr.bf16.mxu1 %v7515_v25  ;;  %v7625_v24 = vcombine.high %v631_v16, %v639_v17  ;;  %v7627_v25 = vcombine.high %v632_v18, %v640_v19  ;;  %v735_v8 = vld [vmem:[%s8529_s5 + $0xfd0] sm:$0xff]  ;;  %v736_v10 = vld [vmem:[%s8529_s5 + $0xfd8] sm:$0xff] }
 0x163   : > { %6164 = vmatpush1.bf16.msra.mxu0 %v7512_v30  ;;  %6328 = vmatpush1.bf16.msra.mxu1 %v7514_v31  ;;  %v7624_v30 = vcombine.low %v631_v16, %v639_v17  ;;  %v7626_v31 = vcombine.low %v632_v18, %v640_v19  ;;  %v743_v16 = vld [vmem:[%s8529_s5 + $0x1010] sm:$0xff]  ;;  %v744_v18 = vld [vmem:[%s8529_s5 + $0x1018] sm:$0xff] }
 0x164   : > { %6165 = vmatprep.subr.bf16.mxu0 %v7529_v33  ;;  %6329 = vmatprep.subr.bf16.mxu1 %v7531_v34  ;;  %v7641_v33 = vcombine.high %v647_v26, %v655_v27  ;;  %v7643_v34 = vcombine.high %v648_v28, %v656_v29  ;;  %v751_v17 = vld [vmem:[%s8529_s5 + $0x1050] sm:$0xff]  ;;  %v752_v19 = vld [vmem:[%s8529_s5 + $0x1058] sm:$0xff] }
 0x167   : > { %6166 = vmatpush1.bf16.msra.mxu0 %v7528_v40  ;;  %6330 = vmatpush1.bf16.msra.mxu1 %v7530_v41  ;;  %v7640_v40 = vcombine.low %v647_v26, %v655_v27  ;;  %v7642_v41 = vcombine.low %v648_v28, %v656_v29  ;;  %v759_v26 = vld [vmem:[%s8529_s5 + $0x1090] sm:$0xff]  ;;  %v760_v28 = vld [vmem:[%s8529_s5 + $0x1098] sm:$0xff] }
 0x168   : > { %6167 = vmatprep.subr.bf16.mxu0 %v7545_v42  ;;  %6331 = vmatprep.subr.bf16.mxu1 %v7547_v43  ;;  %v7657_v42 = vcombine.high %v663_v35, %v671_v37  ;;  %v7659_v43 = vcombine.high %v664_v38, %v672_v39  ;;  %v767_v27 = vld [vmem:[%s8529_s5 + $0x10d0] sm:$0xff]  ;;  %v768_v29 = vld [vmem:[%s8529_s5 + $0x10d8] sm:$0xff] }
 0x16b   : > { %6168 = vmatpush1.bf16.msra.mxu0 %v7544_v49  ;;  %6332 = vmatpush1.bf16.msra.mxu1 %v7546_v50  ;;  %v7656_v49 = vcombine.low %v663_v35, %v671_v37  ;;  %v7658_v50 = vcombine.low %v664_v38, %v672_v39  ;;  %v775_v35 = vld [vmem:[%s8529_s5 + $0x1110] sm:$0xff]  ;;  %v776_v38 = vld [vmem:[%s8529_s5 + $0x1118] sm:$0xff] }
 0x16c   : > { %6169 = vmatprep.subr.bf16.mxu0 %v7561_v51  ;;  %6333 = vmatprep.subr.bf16.mxu1 %v7563_v52  ;;  %v7673_v51 = vcombine.high %v679_v44, %v687_v45  ;;  %v7675_v52 = vcombine.high %v680_v47, %v688_v48  ;;  %v783_v37 = vld [vmem:[%s8529_s5 + $0x1150] sm:$0xff]  ;;  %v784_v39 = vld [vmem:[%s8529_s5 + $0x1158] sm:$0xff] }
 0x16f   : > { %6170 = vmatpush1.bf16.msra.mxu0 %v7560_v59  ;;  %6334 = vmatpush1.bf16.msra.mxu1 %v7562_v60  ;;  %v7672_v59 = vcombine.low %v679_v44, %v687_v45  ;;  %v7674_v60 = vcombine.low %v680_v47, %v688_v48  ;;  %v791_v44 = vld [vmem:[%s8529_s5 + $0x1190] sm:$0xff]  ;;  %v792_v47 = vld [vmem:[%s8529_s5 + $0x1198] sm:$0xff] }
 0x170   : > { %6171 = vmatprep.subr.bf16.mxu0 %v7577_v61  ;;  %6335 = vmatprep.subr.bf16.mxu1 %v7579_v62  ;;  %v7689_v61 = vcombine.high %v695_v53, %v703_v54  ;;  %v7691_v62 = vcombine.high %v696_v56, %v704_v58  ;;  %v799_v45 = vld [vmem:[%s8529_s5 + $0x11d0] sm:$0xff]  ;;  %v800_v48 = vld [vmem:[%s8529_s5 + $0x11d8] sm:$0xff] }
 0x173   : > { %6172 = vmatpush1.bf16.msra.mxu0 %v7576_v3  ;;  %6336 = vmatpush1.bf16.msra.mxu1 %v7578_v4  ;;  %v7688_v3 = vcombine.low %v695_v53, %v703_v54  ;;  %v7690_v4 = vcombine.low %v696_v56, %v704_v58  ;;  %v807_v53 = vld [vmem:[%s8529_s5 + $0x1210] sm:$0xff]  ;;  %v808_v56 = vld [vmem:[%s8529_s5 + $0x1218] sm:$0xff] }
 0x174   : > { %6173 = vmatprep.subr.bf16.mxu0 %v7593_v5  ;;  %6337 = vmatprep.subr.bf16.mxu1 %v7595_v6  ;;  %v7705_v5 = vcombine.high %v711_v63, %v719_v0  ;;  %v7707_v6 = vcombine.high %v712_v1, %v720_v2  ;;  %v815_v54 = vld [vmem:[%s8529_s5 + $0x1250] sm:$0xff]  ;;  %v816_v58 = vld [vmem:[%s8529_s5 + $0x1258] sm:$0xff] }
 0x177   : > { %6174 = vmatpush1.bf16.msra.mxu0 %v7592_v11  ;;  %6338 = vmatpush1.bf16.msra.mxu1 %v7594_v13  ;;  %v7704_v11 = vcombine.low %v711_v63, %v719_v0  ;;  %v7706_v13 = vcombine.low %v712_v1, %v720_v2  ;;  %v823_v63 = vld [vmem:[%s8529_s5 + $0x1290] sm:$0xff]  ;;  %v824_v1 = vld [vmem:[%s8529_s5 + $0x1298] sm:$0xff] }
 0x178   : > { %6175 = vmatprep.subr.bf16.mxu0 %v7609_v14  ;;  %6339 = vmatprep.subr.bf16.mxu1 %v7611_v15  ;;  %v7721_v14 = vcombine.high %v727_v7, %v735_v8  ;;  %v7723_v15 = vcombine.high %v728_v9, %v736_v10  ;;  %v831_v0 = vld [vmem:[%s8529_s5 + $0x12d0] sm:$0xff]  ;;  %v832_v2 = vld [vmem:[%s8529_s5 + $0x12d8] sm:$0xff] }
 0x17b   : > { %6176 = vmatpush1.bf16.msra.mxu0 %v7608_v20  ;;  %6340 = vmatpush1.bf16.msra.mxu1 %v7610_v23  ;;  %v7720_v20 = vcombine.low %v727_v7, %v735_v8  ;;  %v7722_v23 = vcombine.low %v728_v9, %v736_v10  ;;  %v839_v7 = vld [vmem:[%s8529_s5 + $0x1310] sm:$0xff]  ;;  %v840_v9 = vld [vmem:[%s8529_s5 + $0x1318] sm:$0xff] }
 0x17c   : > { %6177 = vmatprep.subr.bf16.mxu0 %v7625_v24  ;;  %6341 = vmatprep.subr.bf16.mxu1 %v7627_v25  ;;  %v7737_v24 = vcombine.high %v743_v16, %v751_v17  ;;  %v7739_v25 = vcombine.high %v744_v18, %v752_v19  ;;  %v847_v8 = vld [vmem:[%s8529_s5 + $0x1350] sm:$0xff]  ;;  %v848_v10 = vld [vmem:[%s8529_s5 + $0x1358] sm:$0xff] }
 0x17f   : > { %6178 = vmatpush1.bf16.msra.mxu0 %v7624_v30  ;;  %6342 = vmatpush1.bf16.msra.mxu1 %v7626_v31  ;;  %v7736_v30 = vcombine.low %v743_v16, %v751_v17  ;;  %v7738_v31 = vcombine.low %v744_v18, %v752_v19  ;;  %v855_v16 = vld [vmem:[%s8529_s5 + $0x1390] sm:$0xff]  ;;  %v856_v18 = vld [vmem:[%s8529_s5 + $0x1398] sm:$0xff] }
 0x180   : > { %6179 = vmatprep.subr.bf16.mxu0 %v7641_v33  ;;  %6343 = vmatprep.subr.bf16.mxu1 %v7643_v34  ;;  %v7753_v33 = vcombine.high %v759_v26, %v767_v27  ;;  %v7755_v34 = vcombine.high %v760_v28, %v768_v29  ;;  %v863_v17 = vld [vmem:[%s8529_s5 + $0x13d0] sm:$0xff]  ;;  %v864_v19 = vld [vmem:[%s8529_s5 + $0x13d8] sm:$0xff] }
 0x183   : > { %6180 = vmatpush1.bf16.msra.mxu0 %v7640_v40  ;;  %6344 = vmatpush1.bf16.msra.mxu1 %v7642_v41  ;;  %v7752_v40 = vcombine.low %v759_v26, %v767_v27  ;;  %v7754_v41 = vcombine.low %v760_v28, %v768_v29  ;;  %v871_v26 = vld [vmem:[%s8529_s5 + $0x1410] sm:$0xff]  ;;  %v872_v28 = vld [vmem:[%s8529_s5 + $0x1418] sm:$0xff] }
 0x184   : > { %6181 = vmatprep.subr.bf16.mxu0 %v7657_v42  ;;  %6345 = vmatprep.subr.bf16.mxu1 %v7659_v43  ;;  %v7769_v42 = vcombine.high %v775_v35, %v783_v37  ;;  %v7771_v43 = vcombine.high %v776_v38, %v784_v39  ;;  %v879_v27 = vld [vmem:[%s8529_s5 + $0x1450] sm:$0xff]  ;;  %v880_v29 = vld [vmem:[%s8529_s5 + $0x1458] sm:$0xff] }
 0x187   : > { %6182 = vmatpush1.bf16.msra.mxu0 %v7656_v49  ;;  %6346 = vmatpush1.bf16.msra.mxu1 %v7658_v50  ;;  %v7768_v49 = vcombine.low %v775_v35, %v783_v37  ;;  %v7770_v50 = vcombine.low %v776_v38, %v784_v39  ;;  %v887_v35 = vld [vmem:[%s8529_s5 + $0x1490] sm:$0xff]  ;;  %v888_v38 = vld [vmem:[%s8529_s5 + $0x1498] sm:$0xff] }
 0x188   : > { %6183 = vmatprep.subr.bf16.mxu0 %v7673_v51  ;;  %6347 = vmatprep.subr.bf16.mxu1 %v7675_v52  ;;  %v7785_v51 = vcombine.high %v791_v44, %v799_v45  ;;  %v7787_v52 = vcombine.high %v792_v47, %v800_v48  ;;  %v895_v37 = vld [vmem:[%s8529_s5 + $0x14d0] sm:$0xff]  ;;  %v896_v39 = vld [vmem:[%s8529_s5 + $0x14d8] sm:$0xff] }
 0x18b   : > { %6184 = vmatpush1.bf16.msra.mxu0 %v7672_v59  ;;  %6348 = vmatpush1.bf16.msra.mxu1 %v7674_v60  ;;  %v7784_v59 = vcombine.low %v791_v44, %v799_v45  ;;  %v7786_v60 = vcombine.low %v792_v47, %v800_v48  ;;  %v903_v44 = vld [vmem:[%s8529_s5 + $0x1510] sm:$0xff]  ;;  %v904_v47 = vld [vmem:[%s8529_s5 + $0x1518] sm:$0xff] }
 0x18c   : > { %6185 = vmatprep.subr.bf16.mxu0 %v7689_v61  ;;  %6349 = vmatprep.subr.bf16.mxu1 %v7691_v62  ;;  %v7801_v61 = vcombine.high %v807_v53, %v815_v54  ;;  %v7803_v62 = vcombine.high %v808_v56, %v816_v58  ;;  %v911_v45 = vld [vmem:[%s8529_s5 + $0x1550] sm:$0xff]  ;;  %v912_v48 = vld [vmem:[%s8529_s5 + $0x1558] sm:$0xff] }
 0x18f   : > { %6186 = vmatpush1.bf16.msra.mxu0 %v7688_v3  ;;  %6350 = vmatpush1.bf16.msra.mxu1 %v7690_v4  ;;  %v7800_v3 = vcombine.low %v807_v53, %v815_v54  ;;  %v7802_v4 = vcombine.low %v808_v56, %v816_v58  ;;  %v919_v53 = vld [vmem:[%s8529_s5 + $0x1590] sm:$0xff]  ;;  %v920_v56 = vld [vmem:[%s8529_s5 + $0x1598] sm:$0xff] }
 0x190   : > { %6187 = vmatprep.subr.bf16.mxu0 %v7705_v5  ;;  %6351 = vmatprep.subr.bf16.mxu1 %v7707_v6  ;;  %v7817_v5 = vcombine.high %v823_v63, %v831_v0  ;;  %v7819_v6 = vcombine.high %v824_v1, %v832_v2  ;;  %v927_v54 = vld [vmem:[%s8529_s5 + $0x15d0] sm:$0xff]  ;;  %v928_v58 = vld [vmem:[%s8529_s5 + $0x15d8] sm:$0xff] }
 0x193   : > { %6188 = vmatpush1.bf16.msra.mxu0 %v7704_v11  ;;  %6352 = vmatpush1.bf16.msra.mxu1 %v7706_v13  ;;  %v7816_v11 = vcombine.low %v823_v63, %v831_v0  ;;  %v7818_v13 = vcombine.low %v824_v1, %v832_v2  ;;  %v935_v63 = vld [vmem:[%s8529_s5 + $0x1610] sm:$0xff]  ;;  %v936_v1 = vld [vmem:[%s8529_s5 + $0x1618] sm:$0xff] }
 0x194   : > { %6189 = vmatprep.subr.bf16.mxu0 %v7721_v14  ;;  %6353 = vmatprep.subr.bf16.mxu1 %v7723_v15  ;;  %v7833_v14 = vcombine.high %v839_v7, %v847_v8  ;;  %v7835_v15 = vcombine.high %v840_v9, %v848_v10  ;;  %v943_v0 = vld [vmem:[%s8529_s5 + $0x1650] sm:$0xff]  ;;  %v944_v2 = vld [vmem:[%s8529_s5 + $0x1658] sm:$0xff] }
 0x197   : > { %6190 = vmatpush1.bf16.msra.mxu0 %v7720_v20  ;;  %6354 = vmatpush1.bf16.msra.mxu1 %v7722_v23  ;;  %v7832_v20 = vcombine.low %v839_v7, %v847_v8  ;;  %v7834_v23 = vcombine.low %v840_v9, %v848_v10  ;;  %v951_v7 = vld [vmem:[%s8529_s5 + $0x1690] sm:$0xff]  ;;  %v952_v9 = vld [vmem:[%s8529_s5 + $0x1698] sm:$0xff] }
 0x198   : > { %6200 = vmatprep.subr.bf16.mxu0 %v7737_v24  ;;  %6364 = vmatprep.subr.bf16.mxu1 %v7739_v25  ;;  %v7849_v24 = vcombine.high %v855_v16, %v863_v17  ;;  %v7851_v25 = vcombine.high %v856_v18, %v864_v19  ;;  %v959_v8 = vld [vmem:[%s8529_s5 + $0x16d0] sm:$0xff]  ;;  %v960_v10 = vld [vmem:[%s8529_s5 + $0x16d8] sm:$0xff] }
 0x19a   : > { %6192 = vmatmul.mubr.bf16.vlgmr.msra.gmra.mrb[4].mxu0 %v8693_v21  ;;  %6356 = vmatmul.mubr.bf16.vlgmr.msra.gmra.mrb[4].mxu1 %v8693_v21 }
 0x19b   : > { %6201 = vmatpush1.bf16.msra.mxu0 %v7736_v30  ;;  %6365 = vmatpush1.bf16.msra.mxu1 %v7738_v31  ;;  %v7848_v30 = vcombine.low %v855_v16, %v863_v17  ;;  %v7850_v31 = vcombine.low %v856_v18, %v864_v19  ;;  %v967_v16 = vld [vmem:[%s8529_s5 + $0x1710] sm:$0xff]  ;;  %v968_v18 = vld [vmem:[%s8529_s5 + $0x1718] sm:$0xff] }
 0x19c   : > { %6202 = vmatprep.subr.bf16.mxu0 %v7753_v33  ;;  %6366 = vmatprep.subr.bf16.mxu1 %v7755_v34  ;;  %v7865_v33 = vcombine.high %v871_v26, %v879_v27  ;;  %v7867_v34 = vcombine.high %v872_v28, %v880_v29  ;;  %v975_v17 = vld [vmem:[%s8529_s5 + $0x1750] sm:$0xff]  ;;  %v976_v19 = vld [vmem:[%s8529_s5 + $0x1758] sm:$0xff] }
 0x19d   : > { %6232 = vmatprep.mubr.bf16.mxu0 %v8702_v32  ;;  %6396 = vmatprep.mubr.bf16.mxu1 %v8702_v32 }
 0x19f   : > { %6203 = vmatpush1.bf16.msra.mxu0 %v7752_v40  ;;  %6367 = vmatpush1.bf16.msra.mxu1 %v7754_v41  ;;  %v7864_v40 = vcombine.low %v871_v26, %v879_v27  ;;  %v7866_v41 = vcombine.low %v872_v28, %v880_v29  ;;  %v983_v26 = vld [vmem:[%s8529_s5 + $0x1790] sm:$0xff]  ;;  %v984_v28 = vld [vmem:[%s8529_s5 + $0x1798] sm:$0xff] }
 0x1a0   : > { %6204 = vmatprep.subr.bf16.mxu0 %v7769_v42  ;;  %6368 = vmatprep.subr.bf16.mxu1 %v7771_v43  ;;  %v7881_v42 = vcombine.high %v887_v35, %v895_v37  ;;  %v7883_v43 = vcombine.high %v888_v38, %v896_v39  ;;  %v991_v27 = vld [vmem:[%s8529_s5 + $0x17d0] sm:$0xff]  ;;  %v992_v29 = vld [vmem:[%s8529_s5 + $0x17d8] sm:$0xff] }
 0x1a3   : > { %6205 = vmatpush1.bf16.msra.mxu0 %v7768_v49  ;;  %6369 = vmatpush1.bf16.msra.mxu1 %v7770_v50  ;;  %v7880_v49 = vcombine.low %v887_v35, %v895_v37  ;;  %v7882_v50 = vcombine.low %v888_v38, %v896_v39  ;;  %v999_v35 = vld [vmem:[%s8529_s5 + $0x1810] sm:$0xff]  ;;  %v1000_v38 = vld [vmem:[%s8529_s5 + $0x1818] sm:$0xff] }
 0x1a4   : > { %6206 = vmatprep.subr.bf16.mxu0 %v7785_v51  ;;  %6370 = vmatprep.subr.bf16.mxu1 %v7787_v52  ;;  %v7897_v51 = vcombine.high %v903_v44, %v911_v45  ;;  %v7899_v52 = vcombine.high %v904_v47, %v912_v48  ;;  %v1007_v37 = vld [vmem:[%s8529_s5 + $0x1850] sm:$0xff]  ;;  %v1008_v39 = vld [vmem:[%s8529_s5 + $0x1858] sm:$0xff] }
 0x1a7   : > { %6207 = vmatpush1.bf16.msra.mxu0 %v7784_v59  ;;  %6371 = vmatpush1.bf16.msra.mxu1 %v7786_v60  ;;  %v7896_v59 = vcombine.low %v903_v44, %v911_v45  ;;  %v7898_v60 = vcombine.low %v904_v47, %v912_v48  ;;  %v1015_v44 = vld [vmem:[%s8529_s5 + $0x1890] sm:$0xff]  ;;  %v1016_v47 = vld [vmem:[%s8529_s5 + $0x1898] sm:$0xff] }
 0x1a8   : > { %6208 = vmatprep.subr.bf16.mxu0 %v7801_v61  ;;  %6372 = vmatprep.subr.bf16.mxu1 %v7803_v62  ;;  %v7913_v61 = vcombine.high %v919_v53, %v927_v54  ;;  %v7915_v62 = vcombine.high %v920_v56, %v928_v58  ;;  %v1023_v45 = vld [vmem:[%s8529_s5 + $0x18d0] sm:$0xff]  ;;  %v1024_v48 = vld [vmem:[%s8529_s5 + $0x18d8] sm:$0xff] }
 0x1ab   : > { %6209 = vmatpush1.bf16.msra.mxu0 %v7800_v3  ;;  %6373 = vmatpush1.bf16.msra.mxu1 %v7802_v4  ;;  %v7912_v3 = vcombine.low %v919_v53, %v927_v54  ;;  %v7914_v4 = vcombine.low %v920_v56, %v928_v58  ;;  %v1031_v53 = vld [vmem:[%s8529_s5 + $0x1910] sm:$0xff]  ;;  %v1032_v56 = vld [vmem:[%s8529_s5 + $0x1918] sm:$0xff] }
 0x1ac   : > { %6210 = vmatprep.subr.bf16.mxu0 %v7817_v5  ;;  %6374 = vmatprep.subr.bf16.mxu1 %v7819_v6  ;;  %v7929_v5 = vcombine.high %v935_v63, %v943_v0  ;;  %v7931_v6 = vcombine.high %v936_v1, %v944_v2  ;;  %v1039_v54 = vld [vmem:[%s8529_s5 + $0x1950] sm:$0xff]  ;;  %v1040_v58 = vld [vmem:[%s8529_s5 + $0x1958] sm:$0xff] }
 0x1af   : > { %6211 = vmatpush1.bf16.msra.mxu0 %v7816_v11  ;;  %6375 = vmatpush1.bf16.msra.mxu1 %v7818_v13  ;;  %v7928_v11 = vcombine.low %v935_v63, %v943_v0  ;;  %v7930_v13 = vcombine.low %v936_v1, %v944_v2  ;;  %v1047_v63 = vld [vmem:[%s8529_s5 + $0x1990] sm:$0xff]  ;;  %v1048_v1 = vld [vmem:[%s8529_s5 + $0x1998] sm:$0xff] }
 0x1b0   : > { %6212 = vmatprep.subr.bf16.mxu0 %v7833_v14  ;;  %6376 = vmatprep.subr.bf16.mxu1 %v7835_v15  ;;  %v7945_v14 = vcombine.high %v951_v7, %v959_v8  ;;  %v7947_v15 = vcombine.high %v952_v9, %v960_v10  ;;  %v1055_v0 = vld [vmem:[%s8529_s5 + $0x19d0] sm:$0xff]  ;;  %v1056_v2 = vld [vmem:[%s8529_s5 + $0x19d8] sm:$0xff] }
 0x1b3   : > { %6213 = vmatpush1.bf16.msra.mxu0 %v7832_v20  ;;  %6377 = vmatpush1.bf16.msra.mxu1 %v7834_v23  ;;  %v7944_v20 = vcombine.low %v951_v7, %v959_v8  ;;  %v7946_v23 = vcombine.low %v952_v9, %v960_v10  ;;  %v8043_v7 = vcombine.high %v1048_v1, %v1056_v2  ;;  %v1063_v8 = vld [vmem:[%s8529_s5 + $0x1a10] sm:$0xff]  ;;  %v1064_v10 = vld [vmem:[%s8529_s5 + $0x1a18] sm:$0xff] }
 0x1b4   : > { %6214 = vmatprep.subr.bf16.mxu0 %v7849_v24  ;;  %6378 = vmatprep.subr.bf16.mxu1 %v7851_v25  ;;  %v7961_v24 = vcombine.high %v967_v16, %v975_v17  ;;  %v7963_v25 = vcombine.high %v968_v18, %v976_v19  ;;  %v1071_v9 = vld [vmem:[%s8529_s5 + $0x1a50] sm:$0xff] }
 0x1b7   : > { %6215 = vmatpush1.bf16.msra.mxu0 %v7848_v30  ;;  %6379 = vmatpush1.bf16.msra.mxu1 %v7850_v31  ;;  %v7960_v30 = vcombine.low %v967_v16, %v975_v17  ;;  %v7962_v31 = vcombine.low %v968_v18, %v976_v19  ;;  %v8057_v16 = vcombine.high %v1063_v8, %v1071_v9  ;;  %v1079_v18 = vld [vmem:[%s8529_s5 + $0x1a90] sm:$0xff] }
 0x1b8   : > { %6216 = vmatprep.subr.bf16.mxu0 %v7865_v33  ;;  %6380 = vmatprep.subr.bf16.mxu1 %v7867_v34  ;;  %v7977_v33 = vcombine.high %v983_v26, %v991_v27  ;;  %v7979_v34 = vcombine.high %v984_v28, %v992_v29  ;;  %v1087_v19 = vld [vmem:[%s8529_s5 + $0x1ad0] sm:$0xff] }
 0x1bb   : > { %6217 = vmatpush1.bf16.msra.mxu0 %v7864_v40  ;;  %6381 = vmatpush1.bf16.msra.mxu1 %v7866_v41  ;;  %v7976_v40 = vcombine.low %v983_v26, %v991_v27  ;;  %v7978_v41 = vcombine.low %v984_v28, %v992_v29  ;;  %v1133_v26 = vld [vmem:[%s9062_s26] sm:$0xff] }
 0x1bc   : > { %6218 = vmatprep.subr.bf16.mxu0 %v7881_v42  ;;  %6382 = vmatprep.subr.bf16.mxu1 %v7883_v43  ;;  %v7993_v42 = vcombine.high %v999_v35, %v1007_v37  ;;  %v7995_v43 = vcombine.high %v1000_v38, %v1008_v39 }
 0x1bf   : > { %6219 = vmatpush1.bf16.msra.mxu0 %v7880_v49  ;;  %6383 = vmatpush1.bf16.msra.mxu1 %v7882_v50  ;;  %v7992_v49 = vcombine.low %v999_v35, %v1007_v37  ;;  %v7994_v50 = vcombine.low %v1000_v38, %v1008_v39  ;;  %v1103_v35 = vld [vmem:[%s8529_s5 + $0x1b50] sm:$0xff]  ;;  %v1096_v38 = vld [vmem:[%s8529_s5 + $0x1b18] sm:$0xff] }
 0x1c0   : > { %6220 = vmatprep.subr.bf16.mxu0 %v7897_v51  ;;  %6384 = vmatprep.subr.bf16.mxu1 %v7899_v52  ;;  %v8009_v51 = vcombine.high %v1015_v44, %v1023_v45  ;;  %v8011_v52 = vcombine.high %v1016_v47, %v1024_v48  ;;  %v1104_v39 = vld [vmem:[%s8529_s5 + $0x1b58] sm:$0xff] }
 0x1c3   : > { %6221 = vmatpush1.bf16.msra.mxu0 %v7896_v59  ;;  %6385 = vmatpush1.bf16.msra.mxu1 %v7898_v60  ;;  %v8008_v59 = vcombine.low %v1015_v44, %v1023_v45  ;;  %v8010_v60 = vcombine.low %v1016_v47, %v1024_v48  ;;  %v8091_v48 = vcombine.high %v1096_v38, %v1104_v39 }
 0x1c4   : > { %6222 = vmatprep.subr.bf16.mxu0 %v7913_v61  ;;  %6386 = vmatprep.subr.bf16.mxu1 %v7915_v62  ;;  %v8025_v61 = vcombine.high %v1031_v53, %v1039_v54  ;;  %v8027_v62 = vcombine.high %v1032_v56, %v1040_v58 }
 0x1c7   : > { %6223 = vmatpush1.bf16.msra.mxu0 %v7912_v3  ;;  %6387 = vmatpush1.bf16.msra.mxu1 %v7914_v4  ;;  %v1137_v3 = vlaneseq  ;;  %v8024_v4 = vcombine.low %v1031_v53, %v1039_v54  ;;  %v1112_v54 = vld [vmem:[%s8529_s5 + $0x1b98] sm:$0xff] }
 0x1c8   : > { %6224 = vmatprep.subr.bf16.mxu0 %v7929_v5  ;;  %6388 = vmatprep.subr.bf16.mxu1 %v7931_v6  ;;  %v8026_v5 = vcombine.low %v1032_v56, %v1040_v58  ;;  %v8041_v6 = vcombine.high %v1047_v63, %v1055_v0  ;;  %v1120_v56 = vld [vmem:[%s8529_s5 + $0x1bd8] sm:$0xff] }
 0x1cb   : > { %6225 = vmatpush1.bf16.msra.mxu0 %v7928_v11  ;;  %6389 = vmatpush1.bf16.msra.mxu1 %v7930_v13  ;;  %v1072_v11 = vld [vmem:[%s8529_s5 + $0x1a58] sm:$0xff]  ;;  %v9056_v13 = vshrl.u32 %v1137_v3, 7 }
 0x1cc   : > { %6226 = vmatprep.subr.bf16.mxu0 %v7945_v14  ;;  %6390 = vmatprep.subr.bf16.mxu1 %v7947_v15  ;;  %v8040_v14 = vcombine.low %v1047_v63, %v1055_v0  ;;  %v8042_v15 = vcombine.low %v1048_v1, %v1056_v2  ;;  %v8059_v17 = vcombine.high %v1064_v10, %v1072_v11 }
 0x1cd   : > { %v1147_v27 = vsub.s32 2, %v9056_v13  ;;  %v1143_v28 = vsub.s32 1, %v9056_v13  ;;  %v8058_v29 = vcombine.low %v1064_v10, %v1072_v11  ;;  %v8090_v2 = vcombine.low %v1096_v38, %v1104_v39 }
 0x1cf   : > { %6227 = vmatpush1.bf16.msra.mxu0 %v7944_v20  ;;  %6391 = vmatpush1.bf16.msra.mxu1 %v7946_v23  ;;  %v1139_v20 = vsub.s32 0, %v9056_v13  ;;  %v1080_v23 = vld [vmem:[%s8529_s5 + $0x1a98] sm:$0xff] }
 0x1d0   : > { %6228 = vmatprep.subr.bf16.mxu0 %v7961_v24  ;;  %6392 = vmatprep.subr.bf16.mxu1 %v7963_v25  ;;  %v1088_v24 = vld [vmem:[%s8529_s5 + $0x1ad8] sm:$0xff]  ;;  %v8056_v25 = vcombine.low %v1063_v8, %v1071_v9  ;;  %v8106_v9 = vcombine.low %v1112_v54, %v1120_v56 }
 0x1d1   : > { %v1140_v37 = vrot.slane %v1133_v26, %v1139_v20  ;;  %v8074_v44 = vcombine.low %v1080_v23, %v1088_v24 }
 0x1d3   : > { %6229 = vmatpush1.bf16.msra.mxu0 %v7960_v30  ;;  %6393 = vmatpush1.bf16.msra.mxu1 %v7962_v31  ;;  %v1151_v30 = vsub.s32 3, %v9056_v13  ;;  %v8073_v31 = vcombine.high %v1079_v18, %v1087_v19 }
 0x1d4   : > { %6230 = vmatprep.subr.bf16.mxu0 %v7977_v33  ;;  %6394 = vmatprep.subr.bf16.mxu1 %v7979_v34  ;;  %v8075_v33 = vcombine.high %v1080_v23, %v1088_v24  ;;  %v1095_v34 = vld [vmem:[%s8529_s5 + $0x1b10] sm:$0xff] }
 0x1d5   : > { %v8089_v45 = vcombine.high %v1095_v34, %v1103_v35 }
 0x1d7   : > { %6231 = vmatpush1.bf16.msra.mxu0 %v7976_v40  ;;  %6395 = vmatpush1.bf16.msra.mxu1 %v7978_v41  ;;  %v1148_v40 = vrot.slane %v1133_v26, %v1147_v27  ;;  %v1144_v41 = vrot.slane %v1133_v26, %v1143_v28 }
 0x1d8   : > { %6241 = vmatprep.subr.bf16.mxu0 %v7993_v42  ;;  %6405 = vmatprep.subr.bf16.mxu1 %v7995_v43  ;;  %v8072_v42 = vcombine.low %v1079_v18, %v1087_v19  ;;  %v1152_v43 = vrot.slane %v1133_v26, %v1151_v30  ;;  %v234_v18 = vld [vmem:[%s8529_s5 + $0x28] sm:$0xff] }
 0x1d9   : > { %v242_v19 = vld [vmem:[%s8529_s5 + $0x68] sm:$0xff] }
 0x1da   : > { %6233 = vmatmul.mubr.bf16.vlgmr.msra.gmra.mrb[4].mxu0 %v8771_v36  ;;  %6397 = vmatmul.mubr.bf16.vlgmr.msra.gmra.mrb[4].mxu1 %v8771_v36  ;;  %v7231_v26 = vcombine.high %v234_v18, %v242_v19 }
 0x1db   : > { %6242 = vmatpush1.bf16.msra.mxu0 %v7992_v49  ;;  %6406 = vmatpush1.bf16.msra.mxu1 %v7994_v50  ;;  %v1111_v49 = vld [vmem:[%s8529_s5 + $0x1b90] sm:$0xff] }
 0x1dc   : > { %6243 = vmatprep.subr.bf16.mxu0 %v8009_v51  ;;  %6407 = vmatprep.subr.bf16.mxu1 %v8011_v52  ;;  %v1119_v50 = vld [vmem:[%s8529_s5 + $0x1bd0] sm:$0xff] }
 0x1dd   : > { %8137 = vmatprep.mubr.msk.bf16.mxu0 %vm5737_vm0, %v8780_v46  ;;  %8139 = vmatprep.mubr.msk.bf16.mxu1 %vm5737_vm0, %v8780_v46  ;;  %v8105_v3 = vcombine.high %v1111_v49, %v1119_v50  ;;  %v8104_v8 = vcombine.low %v1111_v49, %v1119_v50 }
 0x1df   : > { %6244 = vmatpush1.bf16.msra.mxu0 %v8008_v59  ;;  %6408 = vmatpush1.bf16.msra.mxu1 %v8010_v60 }
 0x1e0   : > { %6245 = vmatprep.subr.bf16.mxu0 %v8025_v61  ;;  %6409 = vmatprep.subr.bf16.mxu1 %v8027_v62  ;;  %v8088_v62 = vcombine.low %v1095_v34, %v1103_v35  ;;  %v250_v34 = vld [vmem:[%s8529_s5 + $0xa8] sm:$0xff] }
 0x1e1   : > { %v258_v35 = vld [vmem:[%s8529_s5 + $0xe8] sm:$0xff] }
 0x1e2   : > { %v7246_v50 = vcombine.low %v250_v34, %v258_v35 }
 0x1e3   : > { %6246 = vmatpush1.bf16.msra.mxu0 %v8024_v4  ;;  %6410 = vmatpush1.bf16.msra.mxu1 %v8026_v5  ;;  %v8107_v5 = vcombine.high %v1112_v54, %v1120_v56  ;;  %v289_v54 = vld [vmem:[%s8529_s5 + $0x1e0] sm:$0xff]  ;;  %v282_v56 = vld [vmem:[%s8529_s5 + $0x1a8] sm:$0xff] }
 0x1e4   : > { %6247 = vmatprep.subr.bf16.mxu0 %v8041_v6  ;;  %6411 = vmatprep.subr.bf16.mxu1 %v8043_v7  ;;  %v1127_v6 = vld [vmem:[%s8529_s5 + $0x1c10] sm:$0xff]  ;;  %v1128_v7 = vld [vmem:[%s8529_s5 + $0x1c18] sm:$0xff] }
 0x1e5   : > { %v8121_v10 = vcombine.high %v1127_v6, %v1127_v6  ;;  %v8120_v11 = vcombine.low %v1127_v6, %v1127_v6 }
 0x1e7   : > { %6248 = vmatpush1.bf16.msra.mxu0 %v8040_v14  ;;  %6412 = vmatpush1.bf16.msra.mxu1 %v8042_v15  ;;  %v8123_v14 = vcombine.high %v1128_v7, %v1128_v7  ;;  %v8122_v15 = vcombine.low %v1128_v7, %v1128_v7  ;;  %v5755_v23 = vsel %vm5741_vm1, %v8120_v11, 0  ;;  %v313_v7 = vld [vmem:[%s8529_s5 + $0x2a0] sm:$0xff] }
 0x1e8   : > { %6249 = vmatprep.subr.bf16.mxu0 %v8057_v16  ;;  %6413 = vmatprep.subr.bf16.mxu1 %v8059_v17  ;;  %v233_v16 = vld [vmem:[%s8529_s5 + $0x20] sm:$0xff] }
 0x1e9   : > { %v241_v17 = vld [vmem:[%s8529_s5 + $0x60] sm:$0xff] }
 0x1ea   : > { %v7229_v24 = vcombine.high %v233_v16, %v241_v17  ;;  %v7228_v38 = vcombine.low %v233_v16, %v241_v17  ;;  %v329_v17 = vld [vmem:[%s8529_s5 + $0x320] sm:$0xff] }
 0x1eb   : > { %6250 = vmatpush1.bf16.msra.mxu0 %v8056_v25  ;;  %6414 = vmatpush1.bf16.msra.mxu1 %v8058_v29  ;;  %v5761_v25 = vsel %vm5741_vm1, %v8122_v15, 0  ;;  %v249_v29 = vld [vmem:[%s8529_s5 + $0xa0] sm:$0xff] }
 0x1ec   : > { %6251 = vmatprep.subr.bf16.mxu0 %v8073_v31  ;;  %6415 = vmatprep.subr.bf16.mxu1 %v8075_v33  ;;  %v257_v31 = vld [vmem:[%s8529_s5 + $0xe0] sm:$0xff] }
 0x1ed   : > { %v5947_v47 = vpop.f32.mrb[0].mxu0  ;;  %v6111_v52 = vpop.f32.mrb[0].mxu1  ;;  %v7244_v49 = vcombine.low %v249_v29, %v257_v31 }
 0x1ee   : > { %v8151_v51 = vadd.f32 %v5947_v47, %v1140_v37  ;;  %v5949_v53 = vpop.f32.mrb[1].mxu0  ;;  %v8153_v58 = vadd.f32 %v6111_v52, %v1148_v40  ;;  %v6113_v60 = vpop.f32.mrb[1].mxu1  ;;  %v7230_v40 = vcombine.low %v234_v18, %v242_v19  ;;  %v266_v47 = vld [vmem:[%s8529_s5 + $0x128] sm:$0xff]  ;;  %v337_v18 = vld [vmem:[%s8529_s5 + $0x360] sm:$0xff] }
 0x1ef   : > { %v8152_v59 = vadd.f32 %v5949_v53, %v1144_v41  ;;  %v5951_v61 = vpop.f32.mrb[2].mxu0  ;;  %6252 = vmatpush1.bf16.msra.mxu0 %v8072_v42  ;;  %v8154_v63 = vadd.f32 %v6113_v60, %v1152_v43  ;;  %v6115_v0 = vpop.f32.mrb[2].mxu1  ;;  %6416 = vmatpush1.bf16.msra.mxu1 %v8074_v44  ;;  %v7245_v41 = vcombine.high %v249_v29, %v257_v31  ;;  %v265_v44 = vld [vmem:[%s8529_s5 + $0x120] sm:$0xff]  ;;  %v330_v19 = vld [vmem:[%s8529_s5 + $0x328] sm:$0xff] }
 0x1f0   : > { %8323 = vtanh.f32 %v8151_v51  ;;  %v5952_v1 = vpop.f32.mrb[3].mxu0  ;;  %6253 = vmatprep.subr.bf16.mxu0 %v8089_v45  ;;  %v6116_v4 = vpop.f32.mrb[3].mxu1  ;;  %6417 = vmatprep.subr.bf16.mxu1 %v8091_v48  ;;  %v7247_v43 = vcombine.high %v250_v34, %v258_v35  ;;  %v273_v45 = vld [vmem:[%s8529_s5 + $0x160] sm:$0xff]  ;;  %v274_v48 = vld [vmem:[%s8529_s5 + $0x168] sm:$0xff] }
 0x1f1   : > { %8325 = vtanh.f32 %v8153_v58  ;;  %v7261_v51 = vcombine.high %v265_v44, %v273_v45  ;;  %v7263_v52 = vcombine.high %v266_v47, %v274_v48  ;;  %v281_v53 = vld [vmem:[%s8529_s5 + $0x1a0] sm:$0xff]  ;;  %v290_v58 = vld [vmem:[%s8529_s5 + $0x1e8] sm:$0xff]  ;;  %v7262_v60 = vcombine.low %v266_v47, %v274_v48 }
 0x1f2   : > { %8327 = vtanh.f32 %v8152_v59  ;;  %v7260_v59 = vcombine.low %v265_v44, %v273_v45  ;;  %v7277_v61 = vcombine.high %v281_v53, %v289_v54  ;;  %v305_v0 = vld [vmem:[%s8529_s5 + $0x260] sm:$0xff]  ;;  %v298_v1 = vld [vmem:[%s8529_s5 + $0x228] sm:$0xff]  ;;  %v7278_v4 = vcombine.low %v282_v56, %v290_v58 }
 0x1f3   : > { %8329 = vtanh.f32 %v8154_v63  ;;  %6254 = vmatpush1.bf16.msra.mxu0 %v8088_v62  ;;  %6418 = vmatpush1.bf16.msra.mxu1 %v8090_v2  ;;  %v7279_v62 = vcombine.high %v282_v56, %v290_v58  ;;  %v297_v63 = vld [vmem:[%s8529_s5 + $0x220] sm:$0xff]  ;;  %v306_v2 = vld [vmem:[%s8529_s5 + $0x268] sm:$0xff] }
 0x1f4   : > { %6255 = vmatprep.subr.bf16.mxu0 %v8105_v3  ;;  %6419 = vmatprep.subr.bf16.mxu1 %v8107_v5  ;;  %v7276_v3 = vcombine.low %v281_v53, %v289_v54  ;;  %v7293_v5 = vcombine.high %v297_v63, %v305_v0  ;;  %v7295_v6 = vcombine.high %v298_v1, %v306_v2  ;;  %v345_v31 = vld [vmem:[%s8529_s5 + $0x3a0] sm:$0xff]  ;;  %v346_v34 = vld [vmem:[%s8529_s5 + $0x3a8] sm:$0xff] }
 0x1f5   : > { %v7292_v11 = vcombine.low %v297_v63, %v305_v0  ;;  %v354_v35 = vld [vmem:[%s8529_s5 + $0x3e8] sm:$0xff] }
 0x1f6   : > { %v370_v44 = vld [vmem:[%s8529_s5 + $0x468] sm:$0xff]  ;;  %v7342_v47 = vcombine.low %v346_v34, %v354_v35 }
 0x1f7   : > { %6256 = vmatpush1.bf16.msra.mxu0 %v8104_v8  ;;  %6420 = vmatpush1.bf16.msra.mxu1 %v8106_v9  ;;  %v321_v8 = vld [vmem:[%s8529_s5 + $0x2e0] sm:$0xff]  ;;  %v314_v9 = vld [vmem:[%s8529_s5 + $0x2a8] sm:$0xff] }
 0x1f8   : > { %8136 = vmatprep.subr.msk.bf16.mxu0 %vm5741_vm1, %v8121_v10  ;;  %8138 = vmatprep.subr.msk.bf16.mxu1 %vm5741_vm1, %v8123_v14  ;;  %v322_v10 = vld [vmem:[%s8529_s5 + $0x2e8] sm:$0xff]  ;;  %v7294_v14 = vcombine.low %v298_v1, %v306_v2  ;;  %v7309_v15 = vcombine.high %v313_v7, %v321_v8 }
 0x1f9   : > { %v7311_v16 = vcombine.high %v314_v9, %v322_v10  ;;  %v386_v53 = vld [vmem:[%s8529_s5 + $0x4e8] sm:$0xff] }
 0x1fa   : > { %v8324_v33 = vpop.eup %8323  ;;  %v402_v63 = vld [vmem:[%s8529_s5 + $0x568] sm:$0xff] }
 0x1fb   : > { %v8326_v37 = vpop.eup %8325  ;;  %7118 = vst [vmem:[%s9099_s25] sm:$0xff] %v8324_v33  ;;  %6258 = vmatpush1.bf16.msra.mxu0 %v5755_v23  ;;  %6422 = vmatpush1.bf16.msra.mxu1 %v5761_v25  ;;  %v338_v23 = vld [vmem:[%s8529_s5 + $0x368] sm:$0xff]  ;;  %v7310_v25 = vcombine.low %v314_v9, %v322_v10  ;;  %v353_v33 = vld [vmem:[%s8529_s5 + $0x3e0] sm:$0xff] }
 0x1fc   : > { %v8328_v39 = vpop.eup %8327  ;;  %7120 = vst [vmem:[%s9099_s25 + $0x10] sm:$0xff] %v8326_v37  ;;  %6446 = vmatprep.subr.bf16.mxu0 %v7229_v24  ;;  %6610 = vmatprep.subr.bf16.mxu1 %v7231_v26  ;;  %v7308_v24 = vcombine.low %v313_v7, %v321_v8  ;;  %v7325_v26 = vcombine.high %v329_v17, %v337_v18  ;;  %v418_v7 = vld [vmem:[%s8529_s5 + $0x5e8] sm:$0xff] }
 0x1fd   : > { %v8330_v42 = vpop.eup %8329  ;;  %7119 = vst [vmem:[%s9099_s25 + $0x8] sm:$0xff] %v8328_v39  ;;  %v7327_v29 = vcombine.high %v330_v19, %v338_v23  ;;  %v7324_v37 = vcombine.low %v329_v17, %v337_v18  ;;  %v7341_v39 = vcombine.high %v345_v31, %v353_v33  ;;  %v7340_v45 = vcombine.low %v345_v31, %v353_v33  ;;  %v434_v17 = vld [vmem:[%s8529_s5 + $0x668] sm:$0xff] }
 0x1fe   : > { %7121 = vst [vmem:[%s9099_s25 + $0x18] sm:$0xff] %v8330_v42  ;;  %6274 = vmatmul.mubr.bf16.vlgmr.msra.gmra.mrb[4].mxu0 %v8825_v55  ;;  %6438 = vmatmul.mubr.bf16.vlgmr.msra.gmra.mrb[4].mxu1 %v8825_v55  ;;  %v369_v42 = vld [vmem:[%s8529_s5 + $0x460] sm:$0xff]  ;;  %v450_v31 = vld [vmem:[%s8529_s5 + $0x6e8] sm:$0xff] }
 0x1ff   : > { %6447 = vmatpush1.bf16.msra.mxu0 %v7228_v38  ;;  %6611 = vmatpush1.bf16.msra.mxu1 %v7230_v40  ;;  %v7326_v38 = vcombine.low %v330_v19, %v338_v23  ;;  %v7343_v40 = vcombine.high %v346_v34, %v354_v35 }
 0x200   : > { %6448 = vmatprep.subr.bf16.mxu0 %v7245_v41  ;;  %6612 = vmatprep.subr.bf16.mxu1 %v7247_v43  ;;  %v361_v41 = vld [vmem:[%s8529_s5 + $0x420] sm:$0xff]  ;;  %v362_v43 = vld [vmem:[%s8529_s5 + $0x428] sm:$0xff] }
 0x201   : > { %6478 = vmatprep.mubr.bf16.mxu0 %v8568_v57  ;;  %6642 = vmatprep.mubr.bf16.mxu1 %v8568_v57  ;;  %v7357_v48 = vcombine.high %v361_v41, %v369_v42  ;;  %v7356_v54 = vcombine.low %v361_v41, %v369_v42  ;;  %v7358_v56 = vcombine.low %v362_v43, %v370_v44  ;;  %v466_v41 = vld [vmem:[%s8529_s5 + $0x768] sm:$0xff] }
 0x203   : > { %6449 = vmatpush1.bf16.msra.mxu0 %v7244_v49  ;;  %6613 = vmatpush1.bf16.msra.mxu1 %v7246_v50  ;;  %v7359_v49 = vcombine.high %v362_v43, %v370_v44  ;;  %v377_v50 = vld [vmem:[%s8529_s5 + $0x4a0] sm:$0xff] }
 0x204   : > { %6450 = vmatprep.subr.bf16.mxu0 %v7261_v51  ;;  %6614 = vmatprep.subr.bf16.mxu1 %v7263_v52  ;;  %v385_v51 = vld [vmem:[%s8529_s5 + $0x4e0] sm:$0xff]  ;;  %v378_v52 = vld [vmem:[%s8529_s5 + $0x4a8] sm:$0xff] }
 0x205   : > { %v7373_v58 = vcombine.high %v377_v50, %v385_v51  ;;  %v7372_v0 = vcombine.low %v377_v50, %v385_v51  ;;  %v7374_v1 = vcombine.low %v378_v52, %v386_v53  ;;  %v482_v50 = vld [vmem:[%s8529_s5 + $0x7e8] sm:$0xff] }
 0x207   : > { %6451 = vmatpush1.bf16.msra.mxu0 %v7260_v59  ;;  %6615 = vmatpush1.bf16.msra.mxu1 %v7262_v60  ;;  %v7375_v59 = vcombine.high %v378_v52, %v386_v53  ;;  %v393_v60 = vld [vmem:[%s8529_s5 + $0x520] sm:$0xff] }
 0x208   : > { %6452 = vmatprep.subr.bf16.mxu0 %v7277_v61  ;;  %6616 = vmatprep.subr.bf16.mxu1 %v7279_v62  ;;  %v401_v61 = vld [vmem:[%s8529_s5 + $0x560] sm:$0xff]  ;;  %v394_v62 = vld [vmem:[%s8529_s5 + $0x528] sm:$0xff] }
 0x209   : > { %v7389_v2 = vcombine.high %v393_v60, %v401_v61  ;;  %v7388_v8 = vcombine.low %v393_v60, %v401_v61  ;;  %v7390_v9 = vcombine.low %v394_v62, %v402_v63  ;;  %v498_v60 = vld [vmem:[%s8529_s5 + $0x868] sm:$0xff] }
 0x20b   : > { %6453 = vmatpush1.bf16.msra.mxu0 %v7276_v3  ;;  %6617 = vmatpush1.bf16.msra.mxu1 %v7278_v4  ;;  %v7391_v3 = vcombine.high %v394_v62, %v402_v63  ;;  %v409_v4 = vld [vmem:[%s8529_s5 + $0x5a0] sm:$0xff] }
 0x20c   : > { %6454 = vmatprep.subr.bf16.mxu0 %v7293_v5  ;;  %6618 = vmatprep.subr.bf16.mxu1 %v7295_v6  ;;  %v417_v5 = vld [vmem:[%s8529_s5 + $0x5e0] sm:$0xff]  ;;  %v410_v6 = vld [vmem:[%s8529_s5 + $0x5a8] sm:$0xff] }
 0x20d   : > { %v7405_v10 = vcombine.high %v409_v4, %v417_v5  ;;  %v7404_v18 = vcombine.low %v409_v4, %v417_v5  ;;  %v7406_v19 = vcombine.low %v410_v6, %v418_v7  ;;  %v514_v4 = vld [vmem:[%s8529_s5 + $0x8e8] sm:$0xff] }
 0x20f   : > { %6455 = vmatpush1.bf16.msra.mxu0 %v7292_v11  ;;  %6619 = vmatpush1.bf16.msra.mxu1 %v7294_v14  ;;  %v7407_v11 = vcombine.high %v410_v6, %v418_v7  ;;  %v425_v14 = vld [vmem:[%s8529_s5 + $0x620] sm:$0xff] }
 0x210   : > { %6456 = vmatprep.subr.bf16.mxu0 %v7309_v15  ;;  %6620 = vmatprep.subr.bf16.mxu1 %v7311_v16  ;;  %v433_v15 = vld [vmem:[%s8529_s5 + $0x660] sm:$0xff]  ;;  %v426_v16 = vld [vmem:[%s8529_s5 + $0x628] sm:$0xff] }
 0x211   : > { %v7421_v23 = vcombine.high %v425_v14, %v433_v15  ;;  %v7420_v33 = vcombine.low %v425_v14, %v433_v15  ;;  %v7422_v34 = vcombine.low %v426_v16, %v434_v17  ;;  %v530_v14 = vld [vmem:[%s8529_s5 + $0x968] sm:$0xff] }
 0x213   : > { %6457 = vmatpush1.bf16.msra.mxu0 %v7308_v24  ;;  %6621 = vmatpush1.bf16.msra.mxu1 %v7310_v25  ;;  %v7423_v24 = vcombine.high %v426_v16, %v434_v17  ;;  %v441_v25 = vld [vmem:[%s8529_s5 + $0x6a0] sm:$0xff] }
 0x214   : > { %6458 = vmatprep.subr.bf16.mxu0 %v7325_v26  ;;  %6622 = vmatprep.subr.bf16.mxu1 %v7327_v29  ;;  %v449_v26 = vld [vmem:[%s8529_s5 + $0x6e0] sm:$0xff]  ;;  %v442_v29 = vld [vmem:[%s8529_s5 + $0x6a8] sm:$0xff] }
 0x215   : > { %v7437_v35 = vcombine.high %v441_v25, %v449_v26  ;;  %v7436_v42 = vcombine.low %v441_v25, %v449_v26  ;;  %v7438_v43 = vcombine.low %v442_v29, %v450_v31  ;;  %v546_v25 = vld [vmem:[%s8529_s5 + $0x9e8] sm:$0xff] }
 0x217   : > { %6459 = vmatpush1.bf16.msra.mxu0 %v7324_v37  ;;  %6623 = vmatpush1.bf16.msra.mxu1 %v7326_v38  ;;  %v7439_v37 = vcombine.high %v442_v29, %v450_v31  ;;  %v457_v38 = vld [vmem:[%s8529_s5 + $0x720] sm:$0xff] }
 0x218   : > { %6460 = vmatprep.subr.bf16.mxu0 %v7341_v39  ;;  %6624 = vmatprep.subr.bf16.mxu1 %v7343_v40  ;;  %v465_v39 = vld [vmem:[%s8529_s5 + $0x760] sm:$0xff]  ;;  %v458_v40 = vld [vmem:[%s8529_s5 + $0x728] sm:$0xff] }
 0x219   : > { %v7453_v44 = vcombine.high %v457_v38, %v465_v39  ;;  %v7452_v51 = vcombine.low %v457_v38, %v465_v39  ;;  %v7454_v52 = vcombine.low %v458_v40, %v466_v41  ;;  %v562_v38 = vld [vmem:[%s8529_s5 + $0xa68] sm:$0xff] }
 0x21b   : > { %6461 = vmatpush1.bf16.msra.mxu0 %v7340_v45  ;;  %6625 = vmatpush1.bf16.msra.mxu1 %v7342_v47  ;;  %v7455_v45 = vcombine.high %v458_v40, %v466_v41  ;;  %v473_v47 = vld [vmem:[%s8529_s5 + $0x7a0] sm:$0xff] }
 0x21c   : > { %6462 = vmatprep.subr.bf16.mxu0 %v7357_v48  ;;  %6626 = vmatprep.subr.bf16.mxu1 %v7359_v49  ;;  %v481_v48 = vld [vmem:[%s8529_s5 + $0x7e0] sm:$0xff]  ;;  %v474_v49 = vld [vmem:[%s8529_s5 + $0x7a8] sm:$0xff] }
 0x21d   : > { %v7469_v53 = vcombine.high %v473_v47, %v481_v48  ;;  %v7468_v61 = vcombine.low %v473_v47, %v481_v48  ;;  %v7470_v62 = vcombine.low %v474_v49, %v482_v50  ;;  %v578_v47 = vld [vmem:[%s8529_s5 + $0xae8] sm:$0xff] }
 0x21f   : > { %6463 = vmatpush1.bf16.msra.mxu0 %v7356_v54  ;;  %6627 = vmatpush1.bf16.msra.mxu1 %v7358_v56  ;;  %v7471_v54 = vcombine.high %v474_v49, %v482_v50  ;;  %v489_v56 = vld [vmem:[%s8529_s5 + $0x820] sm:$0xff] }
 0x220   : > { %6464 = vmatprep.subr.bf16.mxu0 %v7373_v58  ;;  %6628 = vmatprep.subr.bf16.mxu1 %v7375_v59  ;;  %v497_v58 = vld [vmem:[%s8529_s5 + $0x860] sm:$0xff]  ;;  %v490_v59 = vld [vmem:[%s8529_s5 + $0x828] sm:$0xff] }
 0x221   : > { %v7485_v63 = vcombine.high %v489_v56, %v497_v58  ;;  %v7484_v5 = vcombine.low %v489_v56, %v497_v58  ;;  %v7486_v6 = vcombine.low %v490_v59, %v498_v60  ;;  %v594_v56 = vld [vmem:[%s8529_s5 + $0xb68] sm:$0xff] }
 0x223   : > { %6465 = vmatpush1.bf16.msra.mxu0 %v7372_v0  ;;  %6629 = vmatpush1.bf16.msra.mxu1 %v7374_v1  ;;  %v7487_v0 = vcombine.high %v490_v59, %v498_v60  ;;  %v505_v1 = vld [vmem:[%s8529_s5 + $0x8a0] sm:$0xff] }
 0x224   : > { %6466 = vmatprep.subr.bf16.mxu0 %v7389_v2  ;;  %6630 = vmatprep.subr.bf16.mxu1 %v7391_v3  ;;  %v513_v2 = vld [vmem:[%s8529_s5 + $0x8e0] sm:$0xff]  ;;  %v506_v3 = vld [vmem:[%s8529_s5 + $0x8a8] sm:$0xff] }
 0x225   : > { %v7501_v7 = vcombine.high %v505_v1, %v513_v2  ;;  %v7500_v15 = vcombine.low %v505_v1, %v513_v2  ;;  %v7502_v16 = vcombine.low %v506_v3, %v514_v4  ;;  %v610_v1 = vld [vmem:[%s8529_s5 + $0xbe8] sm:$0xff] }
 0x227   : > { %6467 = vmatpush1.bf16.msra.mxu0 %v7388_v8  ;;  %6631 = vmatpush1.bf16.msra.mxu1 %v7390_v9  ;;  %v7503_v8 = vcombine.high %v506_v3, %v514_v4  ;;  %v521_v9 = vld [vmem:[%s8529_s5 + $0x920] sm:$0xff] }
 0x228   : > { %6468 = vmatprep.subr.bf16.mxu0 %v7405_v10  ;;  %6632 = vmatprep.subr.bf16.mxu1 %v7407_v11  ;;  %v529_v10 = vld [vmem:[%s8529_s5 + $0x960] sm:$0xff]  ;;  %v522_v11 = vld [vmem:[%s8529_s5 + $0x928] sm:$0xff] }
 0x229   : > { %v7517_v17 = vcombine.high %v521_v9, %v529_v10  ;;  %v7516_v26 = vcombine.low %v521_v9, %v529_v10  ;;  %v7518_v29 = vcombine.low %v522_v11, %v530_v14  ;;  %v626_v9 = vld [vmem:[%s8529_s5 + $0xc68] sm:$0xff] }
 0x22b   : > { %6469 = vmatpush1.bf16.msra.mxu0 %v7404_v18  ;;  %6633 = vmatpush1.bf16.msra.mxu1 %v7406_v19  ;;  %v7519_v18 = vcombine.high %v522_v11, %v530_v14  ;;  %v537_v19 = vld [vmem:[%s8529_s5 + $0x9a0] sm:$0xff] }
 0x22c   : > { %6470 = vmatprep.subr.bf16.mxu0 %v7421_v23  ;;  %6634 = vmatprep.subr.bf16.mxu1 %v7423_v24  ;;  %v545_v23 = vld [vmem:[%s8529_s5 + $0x9e0] sm:$0xff]  ;;  %v538_v24 = vld [vmem:[%s8529_s5 + $0x9a8] sm:$0xff] }
 0x22d   : > { %v7533_v31 = vcombine.high %v537_v19, %v545_v23  ;;  %v7532_v39 = vcombine.low %v537_v19, %v545_v23  ;;  %v7534_v40 = vcombine.low %v538_v24, %v546_v25  ;;  %v642_v19 = vld [vmem:[%s8529_s5 + $0xce8] sm:$0xff] }
 0x22f   : > { %6471 = vmatpush1.bf16.msra.mxu0 %v7420_v33  ;;  %6635 = vmatpush1.bf16.msra.mxu1 %v7422_v34  ;;  %v7535_v33 = vcombine.high %v538_v24, %v546_v25  ;;  %v553_v34 = vld [vmem:[%s8529_s5 + $0xa20] sm:$0xff] }
 0x230   : > { %6472 = vmatprep.subr.bf16.mxu0 %v7437_v35  ;;  %6636 = vmatprep.subr.bf16.mxu1 %v7439_v37  ;;  %v561_v35 = vld [vmem:[%s8529_s5 + $0xa60] sm:$0xff]  ;;  %v554_v37 = vld [vmem:[%s8529_s5 + $0xa28] sm:$0xff] }
 0x231   : > { %v7549_v41 = vcombine.high %v553_v34, %v561_v35  ;;  %v7548_v48 = vcombine.low %v553_v34, %v561_v35  ;;  %v7550_v49 = vcombine.low %v554_v37, %v562_v38  ;;  %v658_v34 = vld [vmem:[%s8529_s5 + $0xd68] sm:$0xff] }
 0x233   : > { %6473 = vmatpush1.bf16.msra.mxu0 %v7436_v42  ;;  %6637 = vmatpush1.bf16.msra.mxu1 %v7438_v43  ;;  %v7551_v42 = vcombine.high %v554_v37, %v562_v38  ;;  %v569_v43 = vld [vmem:[%s8529_s5 + $0xaa0] sm:$0xff] }
 0x234   : > { %6474 = vmatprep.subr.bf16.mxu0 %v7453_v44  ;;  %6638 = vmatprep.subr.bf16.mxu1 %v7455_v45  ;;  %v577_v44 = vld [vmem:[%s8529_s5 + $0xae0] sm:$0xff]  ;;  %v570_v45 = vld [vmem:[%s8529_s5 + $0xaa8] sm:$0xff] }
 0x235   : > { %v7565_v50 = vcombine.high %v569_v43, %v577_v44  ;;  %v7564_v58 = vcombine.low %v569_v43, %v577_v44  ;;  %v7566_v59 = vcombine.low %v570_v45, %v578_v47  ;;  %v674_v43 = vld [vmem:[%s8529_s5 + $0xde8] sm:$0xff] }
 0x237   : > { %6475 = vmatpush1.bf16.msra.mxu0 %v7452_v51  ;;  %6639 = vmatpush1.bf16.msra.mxu1 %v7454_v52  ;;  %v7567_v51 = vcombine.high %v570_v45, %v578_v47  ;;  %v585_v52 = vld [vmem:[%s8529_s5 + $0xb20] sm:$0xff] }
 0x238   : > { %6476 = vmatprep.subr.bf16.mxu0 %v7469_v53  ;;  %6640 = vmatprep.subr.bf16.mxu1 %v7471_v54  ;;  %v593_v53 = vld [vmem:[%s8529_s5 + $0xb60] sm:$0xff]  ;;  %v586_v54 = vld [vmem:[%s8529_s5 + $0xb28] sm:$0xff] }
 0x239   : > { %v7581_v60 = vcombine.high %v585_v52, %v593_v53  ;;  %v7580_v2 = vcombine.low %v585_v52, %v593_v53  ;;  %v7582_v3 = vcombine.low %v586_v54, %v594_v56  ;;  %v690_v52 = vld [vmem:[%s8529_s5 + $0xe68] sm:$0xff] }
 0x23b   : > { %6477 = vmatpush1.bf16.msra.mxu0 %v7468_v61  ;;  %6641 = vmatpush1.bf16.msra.mxu1 %v7470_v62  ;;  %v7583_v61 = vcombine.high %v586_v54, %v594_v56  ;;  %v601_v62 = vld [vmem:[%s8529_s5 + $0xba0] sm:$0xff] }
 0x23c   : > { %6487 = vmatprep.subr.bf16.mxu0 %v7485_v63  ;;  %6651 = vmatprep.subr.bf16.mxu1 %v7487_v0  ;;  %v609_v63 = vld [vmem:[%s8529_s5 + $0xbe0] sm:$0xff]  ;;  %v602_v0 = vld [vmem:[%s8529_s5 + $0xba8] sm:$0xff] }
 0x23d   : > { %v7597_v4 = vcombine.high %v601_v62, %v609_v63  ;;  %v7596_v10 = vcombine.low %v601_v62, %v609_v63  ;;  %v7598_v11 = vcombine.low %v602_v0, %v610_v1  ;;  %v706_v62 = vld [vmem:[%s8529_s5 + $0xee8] sm:$0xff] }
 0x23e   : > { %6479 = vmatmul.mubr.bf16.vlgmr.msra.gmra.mrb[8].mxu0 %v8615_v12  ;;  %6643 = vmatmul.mubr.bf16.vlgmr.msra.gmra.mrb[8].mxu1 %v8615_v12 }
 0x23f   : > { %6488 = vmatpush1.bf16.msra.mxu0 %v7484_v5  ;;  %6652 = vmatpush1.bf16.msra.mxu1 %v7486_v6  ;;  %v7599_v5 = vcombine.high %v602_v0, %v610_v1  ;;  %v617_v6 = vld [vmem:[%s8529_s5 + $0xc20] sm:$0xff] }
 0x240   : > { %6489 = vmatprep.subr.bf16.mxu0 %v7501_v7  ;;  %6653 = vmatprep.subr.bf16.mxu1 %v7503_v8  ;;  %v625_v7 = vld [vmem:[%s8529_s5 + $0xc60] sm:$0xff]  ;;  %v618_v8 = vld [vmem:[%s8529_s5 + $0xc28] sm:$0xff] }
 0x241   : > { %6519 = vmatprep.mubr.bf16.mxu0 %v8624_v22  ;;  %6683 = vmatprep.mubr.bf16.mxu1 %v8624_v22  ;;  %v7613_v14 = vcombine.high %v617_v6, %v625_v7  ;;  %v7612_v23 = vcombine.low %v617_v6, %v625_v7  ;;  %v7614_v24 = vcombine.low %v618_v8, %v626_v9  ;;  %v722_v6 = vld [vmem:[%s8529_s5 + $0xf68] sm:$0xff] }
 0x243   : > { %6490 = vmatpush1.bf16.msra.mxu0 %v7500_v15  ;;  %6654 = vmatpush1.bf16.msra.mxu1 %v7502_v16  ;;  %v7615_v15 = vcombine.high %v618_v8, %v626_v9  ;;  %v633_v16 = vld [vmem:[%s8529_s5 + $0xca0] sm:$0xff] }
 0x244   : > { %6491 = vmatprep.subr.bf16.mxu0 %v7517_v17  ;;  %6655 = vmatprep.subr.bf16.mxu1 %v7519_v18  ;;  %v641_v17 = vld [vmem:[%s8529_s5 + $0xce0] sm:$0xff]  ;;  %v634_v18 = vld [vmem:[%s8529_s5 + $0xca8] sm:$0xff] }
 0x245   : > { %v7629_v25 = vcombine.high %v633_v16, %v641_v17  ;;  %v7628_v35 = vcombine.low %v633_v16, %v641_v17  ;;  %v7630_v37 = vcombine.low %v634_v18, %v642_v19  ;;  %v738_v16 = vld [vmem:[%s8529_s5 + $0xfe8] sm:$0xff] }
 0x247   : > { %6492 = vmatpush1.bf16.msra.mxu0 %v7516_v26  ;;  %6656 = vmatpush1.bf16.msra.mxu1 %v7518_v29  ;;  %v7631_v26 = vcombine.high %v634_v18, %v642_v19  ;;  %v649_v29 = vld [vmem:[%s8529_s5 + $0xd20] sm:$0xff] }
 0x248   : > { %6493 = vmatprep.subr.bf16.mxu0 %v7533_v31  ;;  %6657 = vmatprep.subr.bf16.mxu1 %v7535_v33  ;;  %v657_v31 = vld [vmem:[%s8529_s5 + $0xd60] sm:$0xff]  ;;  %v650_v33 = vld [vmem:[%s8529_s5 + $0xd28] sm:$0xff] }
 0x249   : > { %v7645_v38 = vcombine.high %v649_v29, %v657_v31  ;;  %v7644_v44 = vcombine.low %v649_v29, %v657_v31  ;;  %v7646_v45 = vcombine.low %v650_v33, %v658_v34  ;;  %v754_v29 = vld [vmem:[%s8529_s5 + $0x1068] sm:$0xff] }
 0x24b   : > { %6494 = vmatpush1.bf16.msra.mxu0 %v7532_v39  ;;  %6658 = vmatpush1.bf16.msra.mxu1 %v7534_v40  ;;  %v7647_v39 = vcombine.high %v650_v33, %v658_v34  ;;  %v665_v40 = vld [vmem:[%s8529_s5 + $0xda0] sm:$0xff] }
 0x24c   : > { %6495 = vmatprep.subr.bf16.mxu0 %v7549_v41  ;;  %6659 = vmatprep.subr.bf16.mxu1 %v7551_v42  ;;  %v673_v41 = vld [vmem:[%s8529_s5 + $0xde0] sm:$0xff]  ;;  %v666_v42 = vld [vmem:[%s8529_s5 + $0xda8] sm:$0xff] }
 0x24d   : > { %v7661_v47 = vcombine.high %v665_v40, %v673_v41  ;;  %v7660_v53 = vcombine.low %v665_v40, %v673_v41  ;;  %v7662_v54 = vcombine.low %v666_v42, %v674_v43  ;;  %v770_v40 = vld [vmem:[%s8529_s5 + $0x10e8] sm:$0xff] }
 0x24f   : > { %6496 = vmatpush1.bf16.msra.mxu0 %v7548_v48  ;;  %6660 = vmatpush1.bf16.msra.mxu1 %v7550_v49  ;;  %v7663_v48 = vcombine.high %v666_v42, %v674_v43  ;;  %v681_v49 = vld [vmem:[%s8529_s5 + $0xe20] sm:$0xff] }
 0x250   : > { %6497 = vmatprep.subr.bf16.mxu0 %v7565_v50  ;;  %6661 = vmatprep.subr.bf16.mxu1 %v7567_v51  ;;  %v689_v50 = vld [vmem:[%s8529_s5 + $0xe60] sm:$0xff]  ;;  %v682_v51 = vld [vmem:[%s8529_s5 + $0xe28] sm:$0xff] }
 0x251   : > { %v7677_v56 = vcombine.high %v681_v49, %v689_v50  ;;  %v7676_v63 = vcombine.low %v681_v49, %v689_v50  ;;  %v7678_v0 = vcombine.low %v682_v51, %v690_v52  ;;  %v786_v49 = vld [vmem:[%s8529_s5 + $0x1168] sm:$0xff] }
 0x253   : > { %6498 = vmatpush1.bf16.msra.mxu0 %v7564_v58  ;;  %6662 = vmatpush1.bf16.msra.mxu1 %v7566_v59  ;;  %v7679_v58 = vcombine.high %v682_v51, %v690_v52  ;;  %v697_v59 = vld [vmem:[%s8529_s5 + $0xea0] sm:$0xff] }
 0x254   : > { %6499 = vmatprep.subr.bf16.mxu0 %v7581_v60  ;;  %6663 = vmatprep.subr.bf16.mxu1 %v7583_v61  ;;  %v705_v60 = vld [vmem:[%s8529_s5 + $0xee0] sm:$0xff]  ;;  %v698_v61 = vld [vmem:[%s8529_s5 + $0xea8] sm:$0xff] }
 0x255   : > { %v7693_v1 = vcombine.high %v697_v59, %v705_v60  ;;  %v7692_v7 = vcombine.low %v697_v59, %v705_v60  ;;  %v7694_v8 = vcombine.low %v698_v61, %v706_v62  ;;  %v802_v59 = vld [vmem:[%s8529_s5 + $0x11e8] sm:$0xff] }
 0x257   : > { %6500 = vmatpush1.bf16.msra.mxu0 %v7580_v2  ;;  %6664 = vmatpush1.bf16.msra.mxu1 %v7582_v3  ;;  %v7695_v2 = vcombine.high %v698_v61, %v706_v62  ;;  %v713_v3 = vld [vmem:[%s8529_s5 + $0xf20] sm:$0xff] }
 0x258   : > { %6501 = vmatprep.subr.bf16.mxu0 %v7597_v4  ;;  %6665 = vmatprep.subr.bf16.mxu1 %v7599_v5  ;;  %v721_v4 = vld [vmem:[%s8529_s5 + $0xf60] sm:$0xff]  ;;  %v714_v5 = vld [vmem:[%s8529_s5 + $0xf28] sm:$0xff] }
 0x259   : > { %v7709_v9 = vcombine.high %v713_v3, %v721_v4  ;;  %v7708_v17 = vcombine.low %v713_v3, %v721_v4  ;;  %v7710_v18 = vcombine.low %v714_v5, %v722_v6  ;;  %v818_v3 = vld [vmem:[%s8529_s5 + $0x1268] sm:$0xff] }
 0x25b   : > { %6502 = vmatpush1.bf16.msra.mxu0 %v7596_v10  ;;  %6666 = vmatpush1.bf16.msra.mxu1 %v7598_v11  ;;  %v7711_v10 = vcombine.high %v714_v5, %v722_v6  ;;  %v729_v11 = vld [vmem:[%s8529_s5 + $0xfa0] sm:$0xff] }
 0x25c   : > { %6503 = vmatprep.subr.bf16.mxu0 %v7613_v14  ;;  %6667 = vmatprep.subr.bf16.mxu1 %v7615_v15  ;;  %v737_v14 = vld [vmem:[%s8529_s5 + $0xfe0] sm:$0xff]  ;;  %v730_v15 = vld [vmem:[%s8529_s5 + $0xfa8] sm:$0xff] }
 0x25d   : > { %v7725_v19 = vcombine.high %v729_v11, %v737_v14  ;;  %v7724_v31 = vcombine.low %v729_v11, %v737_v14  ;;  %v7726_v33 = vcombine.low %v730_v15, %v738_v16  ;;  %v834_v11 = vld [vmem:[%s8529_s5 + $0x12e8] sm:$0xff] }
 0x25f   : > { %6504 = vmatpush1.bf16.msra.mxu0 %v7612_v23  ;;  %6668 = vmatpush1.bf16.msra.mxu1 %v7614_v24  ;;  %v7727_v23 = vcombine.high %v730_v15, %v738_v16  ;;  %v745_v24 = vld [vmem:[%s8529_s5 + $0x1020] sm:$0xff] }
 0x260   : > { %6505 = vmatprep.subr.bf16.mxu0 %v7629_v25  ;;  %6669 = vmatprep.subr.bf16.mxu1 %v7631_v26  ;;  %v753_v25 = vld [vmem:[%s8529_s5 + $0x1060] sm:$0xff]  ;;  %v746_v26 = vld [vmem:[%s8529_s5 + $0x1028] sm:$0xff] }
 0x261   : > { %v7741_v34 = vcombine.high %v745_v24, %v753_v25  ;;  %v7740_v41 = vcombine.low %v745_v24, %v753_v25  ;;  %v7742_v42 = vcombine.low %v746_v26, %v754_v29  ;;  %v850_v24 = vld [vmem:[%s8529_s5 + $0x1368] sm:$0xff] }
 0x263   : > { %6506 = vmatpush1.bf16.msra.mxu0 %v7628_v35  ;;  %6670 = vmatpush1.bf16.msra.mxu1 %v7630_v37  ;;  %v7743_v35 = vcombine.high %v746_v26, %v754_v29  ;;  %v761_v37 = vld [vmem:[%s8529_s5 + $0x10a0] sm:$0xff] }
 0x264   : > { %6507 = vmatprep.subr.bf16.mxu0 %v7645_v38  ;;  %6671 = vmatprep.subr.bf16.mxu1 %v7647_v39  ;;  %v769_v38 = vld [vmem:[%s8529_s5 + $0x10e0] sm:$0xff]  ;;  %v762_v39 = vld [vmem:[%s8529_s5 + $0x10a8] sm:$0xff] }
 0x265   : > { %v7757_v43 = vcombine.high %v761_v37, %v769_v38  ;;  %v7756_v50 = vcombine.low %v761_v37, %v769_v38  ;;  %v7758_v51 = vcombine.low %v762_v39, %v770_v40  ;;  %v866_v37 = vld [vmem:[%s8529_s5 + $0x13e8] sm:$0xff] }
 0x267   : > { %6508 = vmatpush1.bf16.msra.mxu0 %v7644_v44  ;;  %6672 = vmatpush1.bf16.msra.mxu1 %v7646_v45  ;;  %v7759_v44 = vcombine.high %v762_v39, %v770_v40  ;;  %v777_v45 = vld [vmem:[%s8529_s5 + $0x1120] sm:$0xff] }
 0x268   : > { %6509 = vmatprep.subr.bf16.mxu0 %v7661_v47  ;;  %6673 = vmatprep.subr.bf16.mxu1 %v7663_v48  ;;  %v785_v47 = vld [vmem:[%s8529_s5 + $0x1160] sm:$0xff]  ;;  %v778_v48 = vld [vmem:[%s8529_s5 + $0x1128] sm:$0xff] }
 0x269   : > { %v7773_v52 = vcombine.high %v777_v45, %v785_v47  ;;  %v7772_v60 = vcombine.low %v777_v45, %v785_v47  ;;  %v7774_v61 = vcombine.low %v778_v48, %v786_v49  ;;  %v882_v45 = vld [vmem:[%s8529_s5 + $0x1468] sm:$0xff] }
 0x26b   : > { %6510 = vmatpush1.bf16.msra.mxu0 %v7660_v53  ;;  %6674 = vmatpush1.bf16.msra.mxu1 %v7662_v54  ;;  %v7775_v53 = vcombine.high %v778_v48, %v786_v49  ;;  %v793_v54 = vld [vmem:[%s8529_s5 + $0x11a0] sm:$0xff] }
 0x26c   : > { %6511 = vmatprep.subr.bf16.mxu0 %v7677_v56  ;;  %6675 = vmatprep.subr.bf16.mxu1 %v7679_v58  ;;  %v801_v56 = vld [vmem:[%s8529_s5 + $0x11e0] sm:$0xff]  ;;  %v794_v58 = vld [vmem:[%s8529_s5 + $0x11a8] sm:$0xff] }
 0x26d   : > { %v7789_v62 = vcombine.high %v793_v54, %v801_v56  ;;  %v7788_v4 = vcombine.low %v793_v54, %v801_v56  ;;  %v7790_v5 = vcombine.low %v794_v58, %v802_v59  ;;  %v898_v54 = vld [vmem:[%s8529_s5 + $0x14e8] sm:$0xff] }
 0x26f   : > { %6512 = vmatpush1.bf16.msra.mxu0 %v7676_v63  ;;  %6676 = vmatpush1.bf16.msra.mxu1 %v7678_v0  ;;  %v7791_v63 = vcombine.high %v794_v58, %v802_v59  ;;  %v809_v0 = vld [vmem:[%s8529_s5 + $0x1220] sm:$0xff] }
 0x270   : > { %6513 = vmatprep.subr.bf16.mxu0 %v7693_v1  ;;  %6677 = vmatprep.subr.bf16.mxu1 %v7695_v2  ;;  %v817_v1 = vld [vmem:[%s8529_s5 + $0x1260] sm:$0xff]  ;;  %v810_v2 = vld [vmem:[%s8529_s5 + $0x1228] sm:$0xff] }
 0x271   : > { %v7805_v6 = vcombine.high %v809_v0, %v817_v1  ;;  %v7804_v14 = vcombine.low %v809_v0, %v817_v1  ;;  %v7806_v15 = vcombine.low %v810_v2, %v818_v3  ;;  %v914_v0 = vld [vmem:[%s8529_s5 + $0x1568] sm:$0xff] }
 0x273   : > { %6514 = vmatpush1.bf16.msra.mxu0 %v7692_v7  ;;  %6678 = vmatpush1.bf16.msra.mxu1 %v7694_v8  ;;  %v7807_v7 = vcombine.high %v810_v2, %v818_v3  ;;  %v825_v8 = vld [vmem:[%s8529_s5 + $0x12a0] sm:$0xff] }
 0x274   : > { %6515 = vmatprep.subr.bf16.mxu0 %v7709_v9  ;;  %6679 = vmatprep.subr.bf16.mxu1 %v7711_v10  ;;  %v833_v9 = vld [vmem:[%s8529_s5 + $0x12e0] sm:$0xff]  ;;  %v826_v10 = vld [vmem:[%s8529_s5 + $0x12a8] sm:$0xff] }
 0x275   : > { %v7821_v16 = vcombine.high %v825_v8, %v833_v9  ;;  %v7820_v25 = vcombine.low %v825_v8, %v833_v9  ;;  %v7822_v26 = vcombine.low %v826_v10, %v834_v11  ;;  %v930_v8 = vld [vmem:[%s8529_s5 + $0x15e8] sm:$0xff] }
 0x277   : > { %6516 = vmatpush1.bf16.msra.mxu0 %v7708_v17  ;;  %6680 = vmatpush1.bf16.msra.mxu1 %v7710_v18  ;;  %v7823_v17 = vcombine.high %v826_v10, %v834_v11  ;;  %v841_v18 = vld [vmem:[%s8529_s5 + $0x1320] sm:$0xff] }
 0x278   : > { %6517 = vmatprep.subr.bf16.mxu0 %v7725_v19  ;;  %6681 = vmatprep.subr.bf16.mxu1 %v7727_v23  ;;  %v849_v19 = vld [vmem:[%s8529_s5 + $0x1360] sm:$0xff]  ;;  %v842_v23 = vld [vmem:[%s8529_s5 + $0x1328] sm:$0xff] }
 0x279   : > { %v7837_v29 = vcombine.high %v841_v18, %v849_v19  ;;  %v7836_v38 = vcombine.low %v841_v18, %v849_v19  ;;  %v7838_v39 = vcombine.low %v842_v23, %v850_v24  ;;  %v946_v18 = vld [vmem:[%s8529_s5 + $0x1668] sm:$0xff] }
 0x27b   : > { %6518 = vmatpush1.bf16.msra.mxu0 %v7724_v31  ;;  %6682 = vmatpush1.bf16.msra.mxu1 %v7726_v33  ;;  %v7839_v31 = vcombine.high %v842_v23, %v850_v24  ;;  %v857_v33 = vld [vmem:[%s8529_s5 + $0x13a0] sm:$0xff] }
 0x27c   : > { %6528 = vmatprep.subr.bf16.mxu0 %v7741_v34  ;;  %6692 = vmatprep.subr.bf16.mxu1 %v7743_v35  ;;  %v865_v34 = vld [vmem:[%s8529_s5 + $0x13e0] sm:$0xff]  ;;  %v858_v35 = vld [vmem:[%s8529_s5 + $0x13a8] sm:$0xff] }
 0x27d   : > { %v7853_v40 = vcombine.high %v857_v33, %v865_v34  ;;  %v7852_v47 = vcombine.low %v857_v33, %v865_v34  ;;  %v7854_v48 = vcombine.low %v858_v35, %v866_v37  ;;  %v962_v33 = vld [vmem:[%s8529_s5 + $0x16e8] sm:$0xff] }
 0x27e   : > { %6520 = vmatmul.mubr.bf16.vlgmr.msra.gmra.mrb[8].mxu0 %v8693_v21  ;;  %6684 = vmatmul.mubr.bf16.vlgmr.msra.gmra.mrb[8].mxu1 %v8693_v21 }
 0x27f   : > { %6529 = vmatpush1.bf16.msra.mxu0 %v7740_v41  ;;  %6693 = vmatpush1.bf16.msra.mxu1 %v7742_v42  ;;  %v7855_v41 = vcombine.high %v858_v35, %v866_v37  ;;  %v873_v42 = vld [vmem:[%s8529_s5 + $0x1420] sm:$0xff] }
 0x280   : > { %6530 = vmatprep.subr.bf16.mxu0 %v7757_v43  ;;  %6694 = vmatprep.subr.bf16.mxu1 %v7759_v44  ;;  %v881_v43 = vld [vmem:[%s8529_s5 + $0x1460] sm:$0xff]  ;;  %v874_v44 = vld [vmem:[%s8529_s5 + $0x1428] sm:$0xff] }
 0x281   : > { %6560 = vmatprep.mubr.bf16.mxu0 %v8702_v32  ;;  %6724 = vmatprep.mubr.bf16.mxu1 %v8702_v32  ;;  %v7869_v49 = vcombine.high %v873_v42, %v881_v43  ;;  %v7868_v56 = vcombine.low %v873_v42, %v881_v43  ;;  %v7870_v58 = vcombine.low %v874_v44, %v882_v45  ;;  %v978_v42 = vld [vmem:[%s8529_s5 + $0x1768] sm:$0xff] }
 0x283   : > { %6531 = vmatpush1.bf16.msra.mxu0 %v7756_v50  ;;  %6695 = vmatpush1.bf16.msra.mxu1 %v7758_v51  ;;  %v7871_v50 = vcombine.high %v874_v44, %v882_v45  ;;  %v889_v51 = vld [vmem:[%s8529_s5 + $0x14a0] sm:$0xff] }
 0x284   : > { %6532 = vmatprep.subr.bf16.mxu0 %v7773_v52  ;;  %6696 = vmatprep.subr.bf16.mxu1 %v7775_v53  ;;  %v897_v52 = vld [vmem:[%s8529_s5 + $0x14e0] sm:$0xff]  ;;  %v890_v53 = vld [vmem:[%s8529_s5 + $0x14a8] sm:$0xff] }
 0x285   : > { %v7885_v59 = vcombine.high %v889_v51, %v897_v52  ;;  %v7884_v1 = vcombine.low %v889_v51, %v897_v52  ;;  %v7886_v2 = vcombine.low %v890_v53, %v898_v54  ;;  %v994_v51 = vld [vmem:[%s8529_s5 + $0x17e8] sm:$0xff] }
 0x287   : > { %6533 = vmatpush1.bf16.msra.mxu0 %v7772_v60  ;;  %6697 = vmatpush1.bf16.msra.mxu1 %v7774_v61  ;;  %v7887_v60 = vcombine.high %v890_v53, %v898_v54  ;;  %v905_v61 = vld [vmem:[%s8529_s5 + $0x1520] sm:$0xff] }
 0x288   : > { %6534 = vmatprep.subr.bf16.mxu0 %v7789_v62  ;;  %6698 = vmatprep.subr.bf16.mxu1 %v7791_v63  ;;  %v913_v62 = vld [vmem:[%s8529_s5 + $0x1560] sm:$0xff]  ;;  %v906_v63 = vld [vmem:[%s8529_s5 + $0x1528] sm:$0xff] }
 0x289   : > { %v7901_v3 = vcombine.high %v905_v61, %v913_v62  ;;  %v7900_v9 = vcombine.low %v905_v61, %v913_v62  ;;  %v7902_v10 = vcombine.low %v906_v63, %v914_v0  ;;  %v1010_v61 = vld [vmem:[%s8529_s5 + $0x1868] sm:$0xff] }
 0x28b   : > { %6535 = vmatpush1.bf16.msra.mxu0 %v7788_v4  ;;  %6699 = vmatpush1.bf16.msra.mxu1 %v7790_v5  ;;  %v7903_v4 = vcombine.high %v906_v63, %v914_v0  ;;  %v921_v5 = vld [vmem:[%s8529_s5 + $0x15a0] sm:$0xff] }
 0x28c   : > { %6536 = vmatprep.subr.bf16.mxu0 %v7805_v6  ;;  %6700 = vmatprep.subr.bf16.mxu1 %v7807_v7  ;;  %v929_v6 = vld [vmem:[%s8529_s5 + $0x15e0] sm:$0xff]  ;;  %v922_v7 = vld [vmem:[%s8529_s5 + $0x15a8] sm:$0xff] }
 0x28d   : > { %v7917_v11 = vcombine.high %v921_v5, %v929_v6  ;;  %v7916_v19 = vcombine.low %v921_v5, %v929_v6  ;;  %v7918_v23 = vcombine.low %v922_v7, %v930_v8  ;;  %v1026_v5 = vld [vmem:[%s8529_s5 + $0x18e8] sm:$0xff] }
 0x28f   : > { %6537 = vmatpush1.bf16.msra.mxu0 %v7804_v14  ;;  %6701 = vmatpush1.bf16.msra.mxu1 %v7806_v15  ;;  %v7919_v14 = vcombine.high %v922_v7, %v930_v8  ;;  %v937_v15 = vld [vmem:[%s8529_s5 + $0x1620] sm:$0xff] }
 0x290   : > { %6538 = vmatprep.subr.bf16.mxu0 %v7821_v16  ;;  %6702 = vmatprep.subr.bf16.mxu1 %v7823_v17  ;;  %v945_v16 = vld [vmem:[%s8529_s5 + $0x1660] sm:$0xff]  ;;  %v938_v17 = vld [vmem:[%s8529_s5 + $0x1628] sm:$0xff] }
 0x291   : > { %v7933_v24 = vcombine.high %v937_v15, %v945_v16  ;;  %v7932_v34 = vcombine.low %v937_v15, %v945_v16  ;;  %v7934_v35 = vcombine.low %v938_v17, %v946_v18  ;;  %v1042_v15 = vld [vmem:[%s8529_s5 + $0x1968] sm:$0xff] }
 0x293   : > { %6539 = vmatpush1.bf16.msra.mxu0 %v7820_v25  ;;  %6703 = vmatpush1.bf16.msra.mxu1 %v7822_v26  ;;  %v7935_v25 = vcombine.high %v938_v17, %v946_v18  ;;  %v953_v26 = vld [vmem:[%s8529_s5 + $0x16a0] sm:$0xff] }
 0x294   : > { %6540 = vmatprep.subr.bf16.mxu0 %v7837_v29  ;;  %6704 = vmatprep.subr.bf16.mxu1 %v7839_v31  ;;  %v961_v29 = vld [vmem:[%s8529_s5 + $0x16e0] sm:$0xff]  ;;  %v954_v31 = vld [vmem:[%s8529_s5 + $0x16a8] sm:$0xff] }
 0x295   : > { %v7949_v37 = vcombine.high %v953_v26, %v961_v29  ;;  %v7948_v43 = vcombine.low %v953_v26, %v961_v29  ;;  %v7950_v44 = vcombine.low %v954_v31, %v962_v33  ;;  %v1058_v26 = vld [vmem:[%s8529_s5 + $0x19e8] sm:$0xff] }
 0x297   : > { %6541 = vmatpush1.bf16.msra.mxu0 %v7836_v38  ;;  %6705 = vmatpush1.bf16.msra.mxu1 %v7838_v39  ;;  %v7951_v38 = vcombine.high %v954_v31, %v962_v33  ;;  %v969_v39 = vld [vmem:[%s8529_s5 + $0x1720] sm:$0xff] }
 0x298   : > { %6542 = vmatprep.subr.bf16.mxu0 %v7853_v40  ;;  %6706 = vmatprep.subr.bf16.mxu1 %v7855_v41  ;;  %v977_v40 = vld [vmem:[%s8529_s5 + $0x1760] sm:$0xff]  ;;  %v970_v41 = vld [vmem:[%s8529_s5 + $0x1728] sm:$0xff] }
 0x299   : > { %v7965_v45 = vcombine.high %v969_v39, %v977_v40  ;;  %v7964_v52 = vcombine.low %v969_v39, %v977_v40  ;;  %v7966_v53 = vcombine.low %v970_v41, %v978_v42  ;;  %v1074_v39 = vld [vmem:[%s8529_s5 + $0x1a68] sm:$0xff] }
 0x29b   : > { %6543 = vmatpush1.bf16.msra.mxu0 %v7852_v47  ;;  %6707 = vmatpush1.bf16.msra.mxu1 %v7854_v48  ;;  %v7967_v47 = vcombine.high %v970_v41, %v978_v42  ;;  %v985_v48 = vld [vmem:[%s8529_s5 + $0x17a0] sm:$0xff] }
 0x29c   : > { %6544 = vmatprep.subr.bf16.mxu0 %v7869_v49  ;;  %6708 = vmatprep.subr.bf16.mxu1 %v7871_v50  ;;  %v993_v49 = vld [vmem:[%s8529_s5 + $0x17e0] sm:$0xff]  ;;  %v986_v50 = vld [vmem:[%s8529_s5 + $0x17a8] sm:$0xff] }
 0x29d   : > { %v7981_v54 = vcombine.high %v985_v48, %v993_v49  ;;  %v7980_v62 = vcombine.low %v985_v48, %v993_v49  ;;  %v7982_v63 = vcombine.low %v986_v50, %v994_v51  ;;  %v1082_v48 = vld [vmem:[%s8529_s5 + $0x1aa8] sm:$0xff] }
 0x29e   : > { %v1090_v49 = vld [vmem:[%s8529_s5 + $0x1ae8] sm:$0xff] }
 0x29f   : > { %6545 = vmatpush1.bf16.msra.mxu0 %v7868_v56  ;;  %6709 = vmatpush1.bf16.msra.mxu1 %v7870_v58  ;;  %v7983_v56 = vcombine.high %v986_v50, %v994_v51  ;;  %v1001_v58 = vld [vmem:[%s8529_s5 + $0x1820] sm:$0xff]  ;;  %v1163_v51 = vsub.s32 6, %v9056_v13 }
 0x2a0   : > { %6546 = vmatprep.subr.bf16.mxu0 %v7885_v59  ;;  %6710 = vmatprep.subr.bf16.mxu1 %v7887_v60  ;;  %v1009_v59 = vld [vmem:[%s8529_s5 + $0x1860] sm:$0xff]  ;;  %v1002_v60 = vld [vmem:[%s8529_s5 + $0x1828] sm:$0xff] }
 0x2a1   : > { %v7997_v0 = vcombine.high %v1001_v58, %v1009_v59  ;;  %v7996_v6 = vcombine.low %v1001_v58, %v1009_v59  ;;  %v7998_v7 = vcombine.low %v1002_v60, %v1010_v61  ;;  %v8079_v58 = vcombine.high %v1082_v48, %v1090_v49  ;;  %v1097_v59 = vld [vmem:[%s8529_s5 + $0x1b20] sm:$0xff] }
 0x2a3   : > { %6547 = vmatpush1.bf16.msra.mxu0 %v7884_v1  ;;  %6711 = vmatpush1.bf16.msra.mxu1 %v7886_v2  ;;  %v7999_v1 = vcombine.high %v1002_v60, %v1010_v61  ;;  %v1017_v2 = vld [vmem:[%s8529_s5 + $0x18a0] sm:$0xff] }
 0x2a4   : > { %6548 = vmatprep.subr.bf16.mxu0 %v7901_v3  ;;  %6712 = vmatprep.subr.bf16.mxu1 %v7903_v4  ;;  %v1025_v3 = vld [vmem:[%s8529_s5 + $0x18e0] sm:$0xff]  ;;  %v1018_v4 = vld [vmem:[%s8529_s5 + $0x18a8] sm:$0xff] }
 0x2a5   : > { %v8013_v8 = vcombine.high %v1017_v2, %v1025_v3  ;;  %v8012_v16 = vcombine.low %v1017_v2, %v1025_v3  ;;  %v8014_v17 = vcombine.low %v1018_v4, %v1026_v5  ;;  %v1105_v60 = vld [vmem:[%s8529_s5 + $0x1b60] sm:$0xff] }
 0x2a6   : > { %v8355_v61 = vld [vmem:[%s9062_s26] sm:$0xff] }
 0x2a7   : > { %6549 = vmatpush1.bf16.msra.mxu0 %v7900_v9  ;;  %6713 = vmatpush1.bf16.msra.mxu1 %v7902_v10  ;;  %v8015_v9 = vcombine.high %v1018_v4, %v1026_v5  ;;  %v1033_v10 = vld [vmem:[%s8529_s5 + $0x1920] sm:$0xff]  ;;  %v8078_v5 = vcombine.low %v1082_v48, %v1090_v49  ;;  %v235_v48 = vld [vmem:[%s8529_s5 + $0x30] sm:$0xff] }
 0x2a8   : > { %6550 = vmatprep.subr.bf16.mxu0 %v7917_v11  ;;  %6714 = vmatprep.subr.bf16.mxu1 %v7919_v14  ;;  %v1041_v11 = vld [vmem:[%s8529_s5 + $0x1960] sm:$0xff]  ;;  %v1034_v14 = vld [vmem:[%s8529_s5 + $0x1928] sm:$0xff]  ;;  %v243_v49 = vld [vmem:[%s8529_s5 + $0x70] sm:$0xff] }
 0x2a9   : > { %v8029_v18 = vcombine.high %v1033_v10, %v1041_v11  ;;  %v8028_v29 = vcombine.low %v1033_v10, %v1041_v11  ;;  %v8030_v31 = vcombine.low %v1034_v14, %v1042_v15  ;;  %v1121_v10 = vld [vmem:[%s8529_s5 + $0x1be0] sm:$0xff] }
 0x2ab   : > { %6551 = vmatpush1.bf16.msra.mxu0 %v7916_v19  ;;  %6715 = vmatpush1.bf16.msra.mxu1 %v7918_v23  ;;  %v8031_v19 = vcombine.high %v1034_v14, %v1042_v15  ;;  %v1049_v23 = vld [vmem:[%s8529_s5 + $0x19a0] sm:$0xff] }
 0x2ac   : > { %6552 = vmatprep.subr.bf16.mxu0 %v7933_v24  ;;  %6716 = vmatprep.subr.bf16.mxu1 %v7935_v25  ;;  %v1057_v24 = vld [vmem:[%s8529_s5 + $0x19e0] sm:$0xff]  ;;  %v1050_v25 = vld [vmem:[%s8529_s5 + $0x19a8] sm:$0xff] }
 0x2ad   : > { %v8045_v33 = vcombine.high %v1049_v23, %v1057_v24  ;;  %v8044_v40 = vcombine.low %v1049_v23, %v1057_v24  ;;  %v8046_v41 = vcombine.low %v1050_v25, %v1058_v26 }
 0x2af   : > { %6553 = vmatpush1.bf16.msra.mxu0 %v7932_v34  ;;  %6717 = vmatpush1.bf16.msra.mxu1 %v7934_v35  ;;  %v8047_v34 = vcombine.high %v1050_v25, %v1058_v26  ;;  %v1065_v35 = vld [vmem:[%s8529_s5 + $0x1a20] sm:$0xff]  ;;  %v8092_v25 = vcombine.low %v1097_v59, %v1105_v60 }
 0x2b0   : > { %6554 = vmatprep.subr.bf16.mxu0 %v7949_v37  ;;  %6718 = vmatprep.subr.bf16.mxu1 %v7951_v38  ;;  %v1073_v37 = vld [vmem:[%s8529_s5 + $0x1a60] sm:$0xff]  ;;  %v1066_v38 = vld [vmem:[%s8529_s5 + $0x1a28] sm:$0xff] }
 0x2b1   : > { %v8061_v42 = vcombine.high %v1065_v35, %v1073_v37  ;;  %v8060_v50 = vcombine.low %v1065_v35, %v1073_v37 }
 0x2b3   : > { %6555 = vmatpush1.bf16.msra.mxu0 %v7948_v43  ;;  %6719 = vmatpush1.bf16.msra.mxu1 %v7950_v44  ;;  %v8063_v43 = vcombine.high %v1066_v38, %v1074_v39  ;;  %v1081_v44 = vld [vmem:[%s8529_s5 + $0x1aa0] sm:$0xff] }
 0x2b4   : > { %6556 = vmatprep.subr.bf16.mxu0 %v7965_v45  ;;  %6720 = vmatprep.subr.bf16.mxu1 %v7967_v47  ;;  %v1089_v45 = vld [vmem:[%s8529_s5 + $0x1ae0] sm:$0xff]  ;;  %v1155_v47 = vsub.s32 4, %v9056_v13 }
 0x2b5   : > { %v8076_v3 = vcombine.low %v1081_v44, %v1089_v45 }
 0x2b7   : > { %6557 = vmatpush1.bf16.msra.mxu0 %v7964_v52  ;;  %6721 = vmatpush1.bf16.msra.mxu1 %v7966_v53  ;;  %v1159_v52 = vsub.s32 5, %v9056_v13  ;;  %v8062_v53 = vcombine.low %v1066_v38, %v1074_v39  ;;  %v1129_v38 = vld [vmem:[%s8529_s5 + $0x1c20] sm:$0xff]  ;;  %v1130_v39 = vld [vmem:[%s8529_s5 + $0x1c28] sm:$0xff] }
 0x2b8   : > { %6558 = vmatprep.subr.bf16.mxu0 %v7981_v54  ;;  %6722 = vmatprep.subr.bf16.mxu1 %v7983_v56  ;;  %v1167_v54 = vsub.s32 7, %v9056_v13  ;;  %v8077_v56 = vcombine.high %v1081_v44, %v1089_v45  ;;  %v8127_v44 = vcombine.high %v1130_v39, %v1130_v39  ;;  %v8126_v45 = vcombine.low %v1130_v39, %v1130_v39 }
 0x2b9   : > { %v1160_v2 = vrot.slane %v8355_v61, %v1159_v52 }
 0x2ba   : > { %v1168_v4 = vrot.slane %v8355_v61, %v1167_v54 }
 0x2bb   : > { %6559 = vmatpush1.bf16.msra.mxu0 %v7980_v62  ;;  %6723 = vmatpush1.bf16.msra.mxu1 %v7982_v63  ;;  %v1156_v62 = vrot.slane %v8355_v61, %v1155_v47  ;;  %v1098_v63 = vld [vmem:[%s8529_s5 + $0x1b28] sm:$0xff] }
 0x2bc   : > { %6569 = vmatprep.subr.bf16.mxu0 %v7997_v0  ;;  %6733 = vmatprep.subr.bf16.mxu1 %v7999_v1  ;;  %v1106_v0 = vld [vmem:[%s8529_s5 + $0x1b68] sm:$0xff]  ;;  %v1164_v1 = vrot.slane %v8355_v61, %v1163_v51  ;;  %v251_v61 = vld [vmem:[%s8529_s5 + $0xb0] sm:$0xff] }
 0x2be   : > { %6561 = vmatmul.mubr.bf16.vlgmr.msra.gmra.mrb[8].mxu0 %v8771_v36  ;;  %6725 = vmatmul.mubr.bf16.vlgmr.msra.gmra.mrb[8].mxu1 %v8771_v36 }
 0x2bf   : > { %6570 = vmatpush1.bf16.msra.mxu0 %v7996_v6  ;;  %6734 = vmatpush1.bf16.msra.mxu1 %v7998_v7  ;;  %v8093_v6 = vcombine.high %v1097_v59, %v1105_v60  ;;  %v5773_v59 = vsel %vm5741_vm1, %v8126_v45, 0  ;;  %v324_v45 = vld [vmem:[%s8529_s5 + $0x2f8] sm:$0xff] }
 0x2c0   : > { %6571 = vmatprep.subr.bf16.mxu0 %v8013_v8  ;;  %6735 = vmatprep.subr.bf16.mxu1 %v8015_v9  ;;  %v8095_v8 = vcombine.high %v1098_v63, %v1106_v0  ;;  %v1113_v9 = vld [vmem:[%s8529_s5 + $0x1ba0] sm:$0xff] }
 0x2c1   : > { %8141 = vmatprep.mubr.msk.bf16.mxu0 %vm5737_vm0, %v8780_v46  ;;  %8143 = vmatprep.mubr.msk.bf16.mxu1 %vm5737_vm0, %v8780_v46 }
 0x2c3   : > { %6572 = vmatpush1.bf16.msra.mxu0 %v8012_v16  ;;  %6736 = vmatpush1.bf16.msra.mxu1 %v8014_v17  ;;  %v1114_v16 = vld [vmem:[%s8529_s5 + $0x1ba8] sm:$0xff] }
 0x2c4   : > { %6573 = vmatprep.subr.bf16.mxu0 %v8029_v18  ;;  %6737 = vmatprep.subr.bf16.mxu1 %v8031_v19  ;;  %v1122_v17 = vld [vmem:[%s8529_s5 + $0x1be8] sm:$0xff] }
 0x2c5   : > { %v8111_v37 = vcombine.high %v1114_v16, %v1122_v17 }
 0x2c7   : > { %6574 = vmatpush1.bf16.msra.mxu0 %v8028_v29  ;;  %6738 = vmatpush1.bf16.msra.mxu1 %v8030_v31 }
 0x2c8   : > { %6575 = vmatprep.subr.bf16.mxu0 %v8045_v33  ;;  %6739 = vmatprep.subr.bf16.mxu1 %v8047_v34  ;;  %v8094_v33 = vcombine.low %v1098_v63, %v1106_v0  ;;  %v8109_v34 = vcombine.high %v1113_v9, %v1121_v10  ;;  %v252_v0 = vld [vmem:[%s8529_s5 + $0xb8] sm:$0xff] }
 0x2cb   : > { %6576 = vmatpush1.bf16.msra.mxu0 %v8044_v40  ;;  %6740 = vmatpush1.bf16.msra.mxu1 %v8046_v41  ;;  %v8108_v40 = vcombine.low %v1113_v9, %v1121_v10  ;;  %v8110_v41 = vcombine.low %v1114_v16, %v1122_v17  ;;  %v267_v9 = vld [vmem:[%s8529_s5 + $0x130] sm:$0xff] }
 0x2cc   : > { %6577 = vmatprep.subr.bf16.mxu0 %v8061_v42  ;;  %6741 = vmatprep.subr.bf16.mxu1 %v8063_v43  ;;  %v8125_v42 = vcombine.high %v1129_v38, %v1129_v38  ;;  %v8124_v43 = vcombine.low %v1129_v38, %v1129_v38  ;;  %v275_v10 = vld [vmem:[%s8529_s5 + $0x170] sm:$0xff]  ;;  %v308_v38 = vld [vmem:[%s8529_s5 + $0x278] sm:$0xff] }
 0x2cd   : > { %v7265_v17 = vcombine.high %v267_v9, %v275_v10 }
 0x2cf   : > { %6578 = vmatpush1.bf16.msra.mxu0 %v8060_v50  ;;  %6742 = vmatpush1.bf16.msra.mxu1 %v8062_v53  ;;  %v236_v50 = vld [vmem:[%s8529_s5 + $0x38] sm:$0xff] }
 0x2d0   : > { %6579 = vmatprep.subr.bf16.mxu0 %v8077_v56  ;;  %6743 = vmatprep.subr.bf16.mxu1 %v8079_v58  ;;  %v244_v53 = vld [vmem:[%s8529_s5 + $0x78] sm:$0xff]  ;;  %v5767_v56 = vsel %vm5741_vm1, %v8124_v43, 0  ;;  %v7233_v58 = vcombine.high %v235_v48, %v243_v49  ;;  %v323_v43 = vld [vmem:[%s8529_s5 + $0x2f0] sm:$0xff] }
 0x2d1   : > { %v6275_v7 = vpop.f32.mrb[4].mxu0  ;;  %v6439_v14 = vpop.f32.mrb[4].mxu1  ;;  %v7235_v60 = vcombine.high %v236_v50, %v244_v53 }
 0x2d2   : > { %v8155_v11 = vadd.f32 %v6275_v7, %v1156_v62  ;;  %v6277_v15 = vpop.f32.mrb[5].mxu0  ;;  %v8157_v18 = vadd.f32 %v6439_v14, %v1164_v1  ;;  %v6441_v23 = vpop.f32.mrb[5].mxu1  ;;  %v259_v62 = vld [vmem:[%s8529_s5 + $0xf0] sm:$0xff]  ;;  %v260_v1 = vld [vmem:[%s8529_s5 + $0xf8] sm:$0xff] }
 0x2d3   : > { %v8156_v19 = vadd.f32 %v6277_v15, %v1160_v2  ;;  %v6279_v24 = vpop.f32.mrb[6].mxu0  ;;  %6580 = vmatpush1.bf16.msra.mxu0 %v8076_v3  ;;  %v8158_v26 = vadd.f32 %v6441_v23, %v1168_v4  ;;  %v6443_v29 = vpop.f32.mrb[6].mxu1  ;;  %6744 = vmatpush1.bf16.msra.mxu1 %v8078_v5  ;;  %v7232_v3 = vcombine.low %v235_v48, %v243_v49  ;;  %v276_v14 = vld [vmem:[%s8529_s5 + $0x178] sm:$0xff]  ;;  %v291_v23 = vld [vmem:[%s8529_s5 + $0x1f0] sm:$0xff] }
 0x2d4   : > { %8331 = vtanh.f32 %v8155_v11  ;;  %v6280_v31 = vpop.f32.mrb[7].mxu0  ;;  %6581 = vmatprep.subr.bf16.mxu0 %v8093_v6  ;;  %v6444_v35 = vpop.f32.mrb[7].mxu1  ;;  %6745 = vmatprep.subr.bf16.mxu1 %v8095_v8  ;;  %v7234_v5 = vcombine.low %v236_v50, %v244_v53  ;;  %v7249_v6 = vcombine.high %v251_v61, %v259_v62  ;;  %v7251_v8 = vcombine.high %v252_v0, %v260_v1  ;;  %v268_v11 = vld [vmem:[%s8529_s5 + $0x138] sm:$0xff] }
 0x2d5   : > { %8333 = vtanh.f32 %v8157_v18  ;;  %v7248_v15 = vcombine.low %v251_v61, %v259_v62  ;;  %v7250_v16 = vcombine.low %v252_v0, %v260_v1  ;;  %v7267_v18 = vcombine.high %v268_v11, %v276_v14  ;;  %v284_v24 = vld [vmem:[%s8529_s5 + $0x1b8] sm:$0xff]  ;;  %v307_v35 = vld [vmem:[%s8529_s5 + $0x270] sm:$0xff] }
 0x2d6   : > { %8335 = vtanh.f32 %v8156_v19  ;;  %v283_v19 = vld [vmem:[%s8529_s5 + $0x1b0] sm:$0xff]  ;;  %v7266_v29 = vcombine.low %v268_v11, %v276_v14  ;;  %v364_v11 = vld [vmem:[%s8529_s5 + $0x438] sm:$0xff] }
 0x2d7   : > { %8337 = vtanh.f32 %v8158_v26  ;;  %6582 = vmatpush1.bf16.msra.mxu0 %v8092_v25  ;;  %6746 = vmatpush1.bf16.msra.mxu1 %v8094_v33  ;;  %v292_v25 = vld [vmem:[%s8529_s5 + $0x1f8] sm:$0xff]  ;;  %v7264_v26 = vcombine.low %v267_v9, %v275_v10  ;;  %v7281_v31 = vcombine.high %v283_v19, %v291_v23  ;;  %v7280_v39 = vcombine.low %v283_v19, %v291_v23  ;;  %v347_v1 = vld [vmem:[%s8529_s5 + $0x3b0] sm:$0xff] }
 0x2d8   : > { %6583 = vmatprep.subr.bf16.mxu0 %v8109_v34  ;;  %6747 = vmatprep.subr.bf16.mxu1 %v8111_v37  ;;  %v7283_v33 = vcombine.high %v284_v24, %v292_v25  ;;  %v299_v34 = vld [vmem:[%s8529_s5 + $0x230] sm:$0xff]  ;;  %v300_v37 = vld [vmem:[%s8529_s5 + $0x238] sm:$0xff] }
 0x2d9   : > { %v7296_v48 = vcombine.low %v299_v34, %v307_v35  ;;  %v7298_v49 = vcombine.low %v300_v37, %v308_v38  ;;  %v363_v9 = vld [vmem:[%s8529_s5 + $0x430] sm:$0xff]  ;;  %v372_v14 = vld [vmem:[%s8529_s5 + $0x478] sm:$0xff] }
 0x2da   : > { %v371_v10 = vld [vmem:[%s8529_s5 + $0x470] sm:$0xff] }
 0x2db   : > { %6584 = vmatpush1.bf16.msra.mxu0 %v8108_v40  ;;  %6748 = vmatpush1.bf16.msra.mxu1 %v8110_v41  ;;  %v7297_v40 = vcombine.high %v299_v34, %v307_v35  ;;  %v7299_v41 = vcombine.high %v300_v37, %v308_v38  ;;  %v379_v19 = vld [vmem:[%s8529_s5 + $0x4b0] sm:$0xff]  ;;  %v396_v37 = vld [vmem:[%s8529_s5 + $0x538] sm:$0xff] }
 0x2dc   : > { %8140 = vmatprep.subr.msk.bf16.mxu0 %vm5741_vm1, %v8125_v42  ;;  %8142 = vmatprep.subr.msk.bf16.mxu1 %vm5741_vm1, %v8127_v44  ;;  %v315_v42 = vld [vmem:[%s8529_s5 + $0x2b0] sm:$0xff]  ;;  %v316_v44 = vld [vmem:[%s8529_s5 + $0x2b8] sm:$0xff] }
 0x2dd   : > { %v7313_v50 = vcombine.high %v315_v42, %v323_v43  ;;  %v7315_v53 = vcombine.high %v316_v44, %v324_v45  ;;  %v7312_v61 = vcombine.low %v315_v42, %v323_v43  ;;  %v7314_v62 = vcombine.low %v316_v44, %v324_v45  ;;  %v387_v23 = vld [vmem:[%s8529_s5 + $0x4f0] sm:$0xff]  ;;  %v404_v38 = vld [vmem:[%s8529_s5 + $0x578] sm:$0xff] }
 0x2de   : > { %v8332_v63 = vpop.eup %8331  ;;  %v395_v34 = vld [vmem:[%s8529_s5 + $0x530] sm:$0xff]  ;;  %v412_v44 = vld [vmem:[%s8529_s5 + $0x5b8] sm:$0xff] }
 0x2df   : > { %v8334_v2 = vpop.eup %8333  ;;  %7122 = vst [vmem:[%s9099_s25 + $0x20] sm:$0xff] %v8332_v63  ;;  %6586 = vmatpush1.bf16.msra.mxu0 %v5767_v56  ;;  %6750 = vmatpush1.bf16.msra.mxu1 %v5773_v59  ;;  %v331_v56 = vld [vmem:[%s8529_s5 + $0x330] sm:$0xff]  ;;  %v332_v59 = vld [vmem:[%s8529_s5 + $0x338] sm:$0xff] }
 0x2e0   : > { %v8336_v4 = vpop.eup %8335  ;;  %7124 = vst [vmem:[%s9099_s25 + $0x30] sm:$0xff] %v8334_v2  ;;  %6774 = vmatprep.subr.bf16.mxu0 %v7233_v58  ;;  %6938 = vmatprep.subr.bf16.mxu1 %v7235_v60  ;;  %v339_v58 = vld [vmem:[%s8529_s5 + $0x370] sm:$0xff]  ;;  %v340_v60 = vld [vmem:[%s8529_s5 + $0x378] sm:$0xff] }
 0x2e1   : > { %v8338_v7 = vpop.eup %8337  ;;  %7123 = vst [vmem:[%s9099_s25 + $0x28] sm:$0xff] %v8336_v4  ;;  %v7329_v63 = vcombine.high %v331_v56, %v339_v58  ;;  %v7331_v0 = vcombine.high %v332_v59, %v340_v60  ;;  %v355_v2 = vld [vmem:[%s8529_s5 + $0x3f0] sm:$0xff]  ;;  %v356_v4 = vld [vmem:[%s8529_s5 + $0x3f8] sm:$0xff] }
 0x2e2   : > { %7125 = vst [vmem:[%s9099_s25 + $0x38] sm:$0xff] %v8338_v7  ;;  %6602 = vmatmul.mubr.bf16.vlgmr.msra.gmra.mrb[8].mxu0 %v8825_v55  ;;  %6766 = vmatmul.mubr.bf16.vlgmr.msra.gmra.mrb[8].mxu1 %v8825_v55  ;;  %v7345_v7 = vcombine.high %v347_v1, %v355_v2  ;;  %v403_v35 = vld [vmem:[%s8529_s5 + $0x570] sm:$0xff]  ;;  %v420_v45 = vld [vmem:[%s8529_s5 + $0x5f8] sm:$0xff] }
 0x2e3   : > { %6775 = vmatpush1.bf16.msra.mxu0 %v7232_v3  ;;  %6939 = vmatpush1.bf16.msra.mxu1 %v7234_v5  ;;  %v348_v3 = vld [vmem:[%s8529_s5 + $0x3b8] sm:$0xff]  ;;  %v7328_v5 = vcombine.low %v331_v56, %v339_v58  ;;  %v411_v42 = vld [vmem:[%s8529_s5 + $0x5b0] sm:$0xff] }
 0x2e4   : > { %6776 = vmatprep.subr.bf16.mxu0 %v7249_v6  ;;  %6940 = vmatprep.subr.bf16.mxu1 %v7251_v8  ;;  %v7330_v6 = vcombine.low %v332_v59, %v340_v60  ;;  %v7347_v8 = vcombine.high %v348_v3, %v356_v4  ;;  %v419_v43 = vld [vmem:[%s8529_s5 + $0x5f0] sm:$0xff]  ;;  %v428_v59 = vld [vmem:[%s8529_s5 + $0x638] sm:$0xff] }
 0x2e5   : > { %6806 = vmatprep.mubr.bf16.mxu0 %v8568_v57  ;;  %6970 = vmatprep.mubr.bf16.mxu1 %v8568_v57  ;;  %v7282_v57 = vcombine.low %v284_v24, %v292_v25  ;;  %v380_v24 = vld [vmem:[%s8529_s5 + $0x4b8] sm:$0xff]  ;;  %v427_v56 = vld [vmem:[%s8529_s5 + $0x630] sm:$0xff] }
 0x2e6   : > { %v388_v25 = vld [vmem:[%s8529_s5 + $0x4f8] sm:$0xff]  ;;  %v435_v58 = vld [vmem:[%s8529_s5 + $0x670] sm:$0xff] }
 0x2e7   : > { %6777 = vmatpush1.bf16.msra.mxu0 %v7248_v15  ;;  %6941 = vmatpush1.bf16.msra.mxu1 %v7250_v16  ;;  %v7344_v15 = vcombine.low %v347_v1, %v355_v2  ;;  %v7346_v16 = vcombine.low %v348_v3, %v356_v4  ;;  %v436_v60 = vld [vmem:[%s8529_s5 + $0x678] sm:$0xff]  ;;  %v443_v1 = vld [vmem:[%s8529_s5 + $0x6b0] sm:$0xff] }
 0x2e8   : > { %6778 = vmatprep.subr.bf16.mxu0 %v7265_v17  ;;  %6942 = vmatprep.subr.bf16.mxu1 %v7267_v18  ;;  %v7361_v17 = vcombine.high %v363_v9, %v371_v10  ;;  %v7363_v18 = vcombine.high %v364_v11, %v372_v14  ;;  %v451_v2 = vld [vmem:[%s8529_s5 + $0x6f0] sm:$0xff]  ;;  %v444_v3 = vld [vmem:[%s8529_s5 + $0x6b8] sm:$0xff] }
 0x2e9   : > { %v452_v4 = vld [vmem:[%s8529_s5 + $0x6f8] sm:$0xff] }
 0x2eb   : > { %6779 = vmatpush1.bf16.msra.mxu0 %v7264_v26  ;;  %6943 = vmatpush1.bf16.msra.mxu1 %v7266_v29  ;;  %v7360_v26 = vcombine.low %v363_v9, %v371_v10  ;;  %v7362_v29 = vcombine.low %v364_v11, %v372_v14  ;;  %v459_v9 = vld [vmem:[%s8529_s5 + $0x730] sm:$0xff]  ;;  %v460_v11 = vld [vmem:[%s8529_s5 + $0x738] sm:$0xff] }
 0x2ec   : > { %6780 = vmatprep.subr.bf16.mxu0 %v7281_v31  ;;  %6944 = vmatprep.subr.bf16.mxu1 %v7283_v33  ;;  %v7377_v31 = vcombine.high %v379_v19, %v387_v23  ;;  %v7379_v33 = vcombine.high %v380_v24, %v388_v25  ;;  %v467_v10 = vld [vmem:[%s8529_s5 + $0x770] sm:$0xff]  ;;  %v468_v14 = vld [vmem:[%s8529_s5 + $0x778] sm:$0xff] }
 0x2ef   : > { %6781 = vmatpush1.bf16.msra.mxu0 %v7280_v39  ;;  %6945 = vmatpush1.bf16.msra.mxu1 %v7282_v57  ;;  %v7376_v39 = vcombine.low %v379_v19, %v387_v23  ;;  %v7378_v57 = vcombine.low %v380_v24, %v388_v25  ;;  %v475_v19 = vld [vmem:[%s8529_s5 + $0x7b0] sm:$0xff]  ;;  %v476_v24 = vld [vmem:[%s8529_s5 + $0x7b8] sm:$0xff] }
 0x2f0   : > { %6782 = vmatprep.subr.bf16.mxu0 %v7297_v40  ;;  %6946 = vmatprep.subr.bf16.mxu1 %v7299_v41  ;;  %v7393_v40 = vcombine.high %v395_v34, %v403_v35  ;;  %v7395_v41 = vcombine.high %v396_v37, %v404_v38  ;;  %v483_v23 = vld [vmem:[%s8529_s5 + $0x7f0] sm:$0xff]  ;;  %v484_v25 = vld [vmem:[%s8529_s5 + $0x7f8] sm:$0xff] }
 0x2f3   : > { %6783 = vmatpush1.bf16.msra.mxu0 %v7296_v48  ;;  %6947 = vmatpush1.bf16.msra.mxu1 %v7298_v49  ;;  %v7392_v48 = vcombine.low %v395_v34, %v403_v35  ;;  %v7394_v49 = vcombine.low %v396_v37, %v404_v38  ;;  %v491_v34 = vld [vmem:[%s8529_s5 + $0x830] sm:$0xff]  ;;  %v492_v37 = vld [vmem:[%s8529_s5 + $0x838] sm:$0xff] }
 0x2f4   : > { %6784 = vmatprep.subr.bf16.mxu0 %v7313_v50  ;;  %6948 = vmatprep.subr.bf16.mxu1 %v7315_v53  ;;  %v7409_v50 = vcombine.high %v411_v42, %v419_v43  ;;  %v7411_v53 = vcombine.high %v412_v44, %v420_v45  ;;  %v499_v35 = vld [vmem:[%s8529_s5 + $0x870] sm:$0xff]  ;;  %v500_v38 = vld [vmem:[%s8529_s5 + $0x878] sm:$0xff] }
 0x2f7   : > { %6785 = vmatpush1.bf16.msra.mxu0 %v7312_v61  ;;  %6949 = vmatpush1.bf16.msra.mxu1 %v7314_v62  ;;  %v7408_v61 = vcombine.low %v411_v42, %v419_v43  ;;  %v7410_v62 = vcombine.low %v412_v44, %v420_v45  ;;  %v507_v42 = vld [vmem:[%s8529_s5 + $0x8b0] sm:$0xff]  ;;  %v508_v44 = vld [vmem:[%s8529_s5 + $0x8b8] sm:$0xff] }
 0x2f8   : > { %6786 = vmatprep.subr.bf16.mxu0 %v7329_v63  ;;  %6950 = vmatprep.subr.bf16.mxu1 %v7331_v0  ;;  %v7425_v63 = vcombine.high %v427_v56, %v435_v58  ;;  %v7427_v0 = vcombine.high %v428_v59, %v436_v60  ;;  %v515_v43 = vld [vmem:[%s8529_s5 + $0x8f0] sm:$0xff]  ;;  %v516_v45 = vld [vmem:[%s8529_s5 + $0x8f8] sm:$0xff] }
 0x2fb   : > { %6787 = vmatpush1.bf16.msra.mxu0 %v7328_v5  ;;  %6951 = vmatpush1.bf16.msra.mxu1 %v7330_v6  ;;  %v7424_v5 = vcombine.low %v427_v56, %v435_v58  ;;  %v7426_v6 = vcombine.low %v428_v59, %v436_v60  ;;  %v523_v56 = vld [vmem:[%s8529_s5 + $0x930] sm:$0xff]  ;;  %v524_v59 = vld [vmem:[%s8529_s5 + $0x938] sm:$0xff] }
 0x2fc   : > { %6788 = vmatprep.subr.bf16.mxu0 %v7345_v7  ;;  %6952 = vmatprep.subr.bf16.mxu1 %v7347_v8  ;;  %v7441_v7 = vcombine.high %v443_v1, %v451_v2  ;;  %v7443_v8 = vcombine.high %v444_v3, %v452_v4  ;;  %v531_v58 = vld [vmem:[%s8529_s5 + $0x970] sm:$0xff]  ;;  %v532_v60 = vld [vmem:[%s8529_s5 + $0x978] sm:$0xff] }
 0x2ff   : > { %6789 = vmatpush1.bf16.msra.mxu0 %v7344_v15  ;;  %6953 = vmatpush1.bf16.msra.mxu1 %v7346_v16  ;;  %v7440_v15 = vcombine.low %v443_v1, %v451_v2  ;;  %v7442_v16 = vcombine.low %v444_v3, %v452_v4  ;;  %v539_v1 = vld [vmem:[%s8529_s5 + $0x9b0] sm:$0xff]  ;;  %v540_v3 = vld [vmem:[%s8529_s5 + $0x9b8] sm:$0xff] }
 0x300   : > { %6790 = vmatprep.subr.bf16.mxu0 %v7361_v17  ;;  %6954 = vmatprep.subr.bf16.mxu1 %v7363_v18  ;;  %v7457_v17 = vcombine.high %v459_v9, %v467_v10  ;;  %v7459_v18 = vcombine.high %v460_v11, %v468_v14  ;;  %v547_v2 = vld [vmem:[%s8529_s5 + $0x9f0] sm:$0xff]  ;;  %v548_v4 = vld [vmem:[%s8529_s5 + $0x9f8] sm:$0xff] }
 0x303   : > { %6791 = vmatpush1.bf16.msra.mxu0 %v7360_v26  ;;  %6955 = vmatpush1.bf16.msra.mxu1 %v7362_v29  ;;  %v7456_v26 = vcombine.low %v459_v9, %v467_v10  ;;  %v7458_v29 = vcombine.low %v460_v11, %v468_v14  ;;  %v563_v9 = vld [vmem:[%s8529_s5 + $0xa70] sm:$0xff]  ;;  %v556_v10 = vld [vmem:[%s8529_s5 + $0xa38] sm:$0xff]  ;;  %v7536_v14 = vcombine.low %v539_v1, %v547_v2 }
 0x304   : > { %6792 = vmatprep.subr.bf16.mxu0 %v7377_v31  ;;  %6956 = vmatprep.subr.bf16.mxu1 %v7379_v33  ;;  %v7473_v31 = vcombine.high %v475_v19, %v483_v23  ;;  %v7475_v33 = vcombine.high %v476_v24, %v484_v25  ;;  %v564_v11 = vld [vmem:[%s8529_s5 + $0xa78] sm:$0xff] }
 0x307   : > { %6793 = vmatpush1.bf16.msra.mxu0 %v7376_v39  ;;  %6957 = vmatpush1.bf16.msra.mxu1 %v7378_v57  ;;  %v7472_v39 = vcombine.low %v475_v19, %v483_v23  ;;  %v7474_v57 = vcombine.low %v476_v24, %v484_v25  ;;  %v572_v19 = vld [vmem:[%s8529_s5 + $0xab8] sm:$0xff]  ;;  %v7554_v25 = vcombine.low %v556_v10, %v564_v11 }
 0x308   : > { %6794 = vmatprep.subr.bf16.mxu0 %v7393_v40  ;;  %6958 = vmatprep.subr.bf16.mxu1 %v7395_v41  ;;  %v7489_v40 = vcombine.high %v491_v34, %v499_v35  ;;  %v7491_v41 = vcombine.high %v492_v37, %v500_v38  ;;  %v580_v23 = vld [vmem:[%s8529_s5 + $0xaf8] sm:$0xff] }
 0x30b   : > { %6795 = vmatpush1.bf16.msra.mxu0 %v7392_v48  ;;  %6959 = vmatpush1.bf16.msra.mxu1 %v7394_v49  ;;  %v7488_v48 = vcombine.low %v491_v34, %v499_v35  ;;  %v7490_v49 = vcombine.low %v492_v37, %v500_v38  ;;  %v588_v34 = vld [vmem:[%s8529_s5 + $0xb38] sm:$0xff]  ;;  %v7570_v38 = vcombine.low %v572_v19, %v580_v23 }
 0x30c   : > { %6796 = vmatprep.subr.bf16.mxu0 %v7409_v50  ;;  %6960 = vmatprep.subr.bf16.mxu1 %v7411_v53  ;;  %v7505_v50 = vcombine.high %v507_v42, %v515_v43  ;;  %v7507_v53 = vcombine.high %v508_v44, %v516_v45  ;;  %v596_v35 = vld [vmem:[%s8529_s5 + $0xb78] sm:$0xff] }
 0x30f   : > { %6797 = vmatpush1.bf16.msra.mxu0 %v7408_v61  ;;  %6961 = vmatpush1.bf16.msra.mxu1 %v7410_v62  ;;  %v7504_v61 = vcombine.low %v507_v42, %v515_v43  ;;  %v7506_v62 = vcombine.low %v508_v44, %v516_v45  ;;  %v604_v42 = vld [vmem:[%s8529_s5 + $0xbb8] sm:$0xff]  ;;  %v7586_v45 = vcombine.low %v588_v34, %v596_v35 }
 0x310   : > { %6798 = vmatprep.subr.bf16.mxu0 %v7425_v63  ;;  %6962 = vmatprep.subr.bf16.mxu1 %v7427_v0  ;;  %v7521_v63 = vcombine.high %v523_v56, %v531_v58  ;;  %v7523_v0 = vcombine.high %v524_v59, %v532_v60  ;;  %v612_v43 = vld [vmem:[%s8529_s5 + $0xbf8] sm:$0xff] }
 0x313   : > { %6799 = vmatpush1.bf16.msra.mxu0 %v7424_v5  ;;  %6963 = vmatpush1.bf16.msra.mxu1 %v7426_v6  ;;  %v7522_v5 = vcombine.low %v524_v59, %v532_v60  ;;  %v7537_v6 = vcombine.high %v539_v1, %v547_v2  ;;  %v7602_v60 = vcombine.low %v604_v42, %v612_v43  ;;  %v636_v1 = vld [vmem:[%s8529_s5 + $0xcb8] sm:$0xff] }
 0x314   : > { %6800 = vmatprep.subr.bf16.mxu0 %v7441_v7  ;;  %6964 = vmatprep.subr.bf16.mxu1 %v7443_v8  ;;  %v7539_v7 = vcombine.high %v540_v3, %v548_v4  ;;  %v555_v8 = vld [vmem:[%s8529_s5 + $0xa30] sm:$0xff]  ;;  %v644_v2 = vld [vmem:[%s8529_s5 + $0xcf8] sm:$0xff] }
 0x315   : > { %v7552_v24 = vcombine.low %v555_v8, %v563_v9 }
 0x317   : > { %6801 = vmatpush1.bf16.msra.mxu0 %v7440_v15  ;;  %6965 = vmatpush1.bf16.msra.mxu1 %v7442_v16  ;;  %v7553_v15 = vcombine.high %v555_v8, %v563_v9  ;;  %v7555_v16 = vcombine.high %v556_v10, %v564_v11  ;;  %v652_v8 = vld [vmem:[%s8529_s5 + $0xd38] sm:$0xff]  ;;  %v7634_v11 = vcombine.low %v636_v1, %v644_v2 }
 0x318   : > { %6802 = vmatprep.subr.bf16.mxu0 %v7457_v17  ;;  %6966 = vmatprep.subr.bf16.mxu1 %v7459_v18  ;;  %v571_v17 = vld [vmem:[%s8529_s5 + $0xab0] sm:$0xff]  ;;  %v660_v9 = vld [vmem:[%s8529_s5 + $0xd78] sm:$0xff] }
 0x319   : > { %v579_v18 = vld [vmem:[%s8529_s5 + $0xaf0] sm:$0xff] }
 0x31a   : > { %v7568_v37 = vcombine.low %v571_v17, %v579_v18 }
 0x31b   : > { %6803 = vmatpush1.bf16.msra.mxu0 %v7456_v26  ;;  %6967 = vmatpush1.bf16.msra.mxu1 %v7458_v29  ;;  %v7569_v26 = vcombine.high %v571_v17, %v579_v18  ;;  %v7571_v29 = vcombine.high %v572_v19, %v580_v23  ;;  %v668_v17 = vld [vmem:[%s8529_s5 + $0xdb8] sm:$0xff]  ;;  %v7650_v23 = vcombine.low %v652_v8, %v660_v9 }
 0x31c   : > { %6804 = vmatprep.subr.bf16.mxu0 %v7473_v31  ;;  %6968 = vmatprep.subr.bf16.mxu1 %v7475_v33  ;;  %v587_v31 = vld [vmem:[%s8529_s5 + $0xb30] sm:$0xff]  ;;  %v676_v18 = vld [vmem:[%s8529_s5 + $0xdf8] sm:$0xff] }
 0x31d   : > { %v595_v33 = vld [vmem:[%s8529_s5 + $0xb70] sm:$0xff] }
 0x31e   : > { %v7584_v44 = vcombine.low %v587_v31, %v595_v33 }
 0x31f   : > { %6805 = vmatpush1.bf16.msra.mxu0 %v7472_v39  ;;  %6969 = vmatpush1.bf16.msra.mxu1 %v7474_v57  ;;  %v7585_v39 = vcombine.high %v587_v31, %v595_v33  ;;  %v7587_v57 = vcombine.high %v588_v34, %v596_v35  ;;  %v684_v31 = vld [vmem:[%s8529_s5 + $0xe38] sm:$0xff]  ;;  %v7666_v35 = vcombine.low %v668_v17, %v676_v18 }
 0x320   : > { %6815 = vmatprep.subr.bf16.mxu0 %v7489_v40  ;;  %6979 = vmatprep.subr.bf16.mxu1 %v7491_v41  ;;  %v603_v40 = vld [vmem:[%s8529_s5 + $0xbb0] sm:$0xff]  ;;  %v692_v33 = vld [vmem:[%s8529_s5 + $0xe78] sm:$0xff] }
 0x321   : > { %v611_v41 = vld [vmem:[%s8529_s5 + $0xbf0] sm:$0xff] }
 0x322   : > { %6807 = vmatmul.mubr.bf16.vlgmr.msra.gmra.mrb[12].mxu0 %v8615_v12  ;;  %6971 = vmatmul.mubr.bf16.vlgmr.msra.gmra.mrb[12].mxu1 %v8615_v12  ;;  %v7520_v12 = vcombine.low %v523_v56, %v531_v58  ;;  %v620_v56 = vld [vmem:[%s8529_s5 + $0xc38] sm:$0xff]  ;;  %v7600_v59 = vcombine.low %v603_v40, %v611_v41 }
 0x323   : > { %6816 = vmatpush1.bf16.msra.mxu0 %v7488_v48  ;;  %6980 = vmatpush1.bf16.msra.mxu1 %v7490_v49  ;;  %v7601_v48 = vcombine.high %v603_v40, %v611_v41  ;;  %v7603_v49 = vcombine.high %v604_v42, %v612_v43  ;;  %v628_v58 = vld [vmem:[%s8529_s5 + $0xc78] sm:$0xff]  ;;  %v7682_v43 = vcombine.low %v684_v31, %v692_v33 }
 0x324   : > { %6817 = vmatprep.subr.bf16.mxu0 %v7505_v50  ;;  %6981 = vmatprep.subr.bf16.mxu1 %v7507_v53  ;;  %v619_v50 = vld [vmem:[%s8529_s5 + $0xc30] sm:$0xff]  ;;  %v700_v40 = vld [vmem:[%s8529_s5 + $0xeb8] sm:$0xff] }
 0x325   : > { %6847 = vmatprep.mubr.bf16.mxu0 %v8624_v22  ;;  %7011 = vmatprep.mubr.bf16.mxu1 %v8624_v22  ;;  %v7538_v22 = vcombine.low %v540_v3, %v548_v4  ;;  %v627_v53 = vld [vmem:[%s8529_s5 + $0xc70] sm:$0xff]  ;;  %v7618_v4 = vcombine.low %v620_v56, %v628_v58  ;;  %v708_v41 = vld [vmem:[%s8529_s5 + $0xef8] sm:$0xff] }
 0x326   : > { %v7616_v3 = vcombine.low %v619_v50, %v627_v53 }
 0x327   : > { %6818 = vmatpush1.bf16.msra.mxu0 %v7504_v61  ;;  %6982 = vmatpush1.bf16.msra.mxu1 %v7506_v62  ;;  %v7617_v61 = vcombine.high %v619_v50, %v627_v53  ;;  %v7619_v62 = vcombine.high %v620_v56, %v628_v58  ;;  %v716_v50 = vld [vmem:[%s8529_s5 + $0xf38] sm:$0xff]  ;;  %v7698_v58 = vcombine.low %v700_v40, %v708_v41 }
 0x328   : > { %6819 = vmatprep.subr.bf16.mxu0 %v7521_v63  ;;  %6983 = vmatprep.subr.bf16.mxu1 %v7523_v0  ;;  %v635_v63 = vld [vmem:[%s8529_s5 + $0xcb0] sm:$0xff]  ;;  %v724_v53 = vld [vmem:[%s8529_s5 + $0xf78] sm:$0xff] }
 0x329   : > { %v643_v0 = vld [vmem:[%s8529_s5 + $0xcf0] sm:$0xff] }
 0x32a   : > { %v7632_v10 = vcombine.low %v635_v63, %v643_v0 }
 0x32b   : > { %6820 = vmatpush1.bf16.msra.mxu0 %v7520_v12  ;;  %6984 = vmatpush1.bf16.msra.mxu1 %v7522_v5  ;;  %v7633_v12 = vcombine.high %v635_v63, %v643_v0  ;;  %v7635_v5 = vcombine.high %v636_v1, %v644_v2  ;;  %v732_v63 = vld [vmem:[%s8529_s5 + $0xfb8] sm:$0xff]  ;;  %v7714_v2 = vcombine.low %v716_v50, %v724_v53 }
 0x32c   : > { %6821 = vmatprep.subr.bf16.mxu0 %v7537_v6  ;;  %6985 = vmatprep.subr.bf16.mxu1 %v7539_v7  ;;  %v651_v6 = vld [vmem:[%s8529_s5 + $0xd30] sm:$0xff]  ;;  %v740_v0 = vld [vmem:[%s8529_s5 + $0xff8] sm:$0xff] }
 0x32d   : > { %v659_v7 = vld [vmem:[%s8529_s5 + $0xd70] sm:$0xff] }
 0x32e   : > { %v7648_v19 = vcombine.low %v651_v6, %v659_v7 }
 0x32f   : > { %6822 = vmatpush1.bf16.msra.mxu0 %v7536_v14  ;;  %6986 = vmatpush1.bf16.msra.mxu1 %v7538_v22  ;;  %v7649_v14 = vcombine.high %v651_v6, %v659_v7  ;;  %v7651_v22 = vcombine.high %v652_v8, %v660_v9  ;;  %v748_v6 = vld [vmem:[%s8529_s5 + $0x1038] sm:$0xff]  ;;  %v7730_v9 = vcombine.low %v732_v63, %v740_v0 }
 0x330   : > { %6823 = vmatprep.subr.bf16.mxu0 %v7553_v15  ;;  %6987 = vmatprep.subr.bf16.mxu1 %v7555_v16  ;;  %v667_v15 = vld [vmem:[%s8529_s5 + $0xdb0] sm:$0xff]  ;;  %v756_v7 = vld [vmem:[%s8529_s5 + $0x1078] sm:$0xff] }
 0x331   : > { %v675_v16 = vld [vmem:[%s8529_s5 + $0xdf0] sm:$0xff] }
 0x332   : > { %v7664_v34 = vcombine.low %v667_v15, %v675_v16 }
 0x333   : > { %6824 = vmatpush1.bf16.msra.mxu0 %v7552_v24  ;;  %6988 = vmatpush1.bf16.msra.mxu1 %v7554_v25  ;;  %v7665_v24 = vcombine.high %v667_v15, %v675_v16  ;;  %v7667_v25 = vcombine.high %v668_v17, %v676_v18  ;;  %v764_v15 = vld [vmem:[%s8529_s5 + $0x10b8] sm:$0xff]  ;;  %v7746_v18 = vcombine.low %v748_v6, %v756_v7 }
 0x334   : > { %6825 = vmatprep.subr.bf16.mxu0 %v7569_v26  ;;  %6989 = vmatprep.subr.bf16.mxu1 %v7571_v29  ;;  %v683_v26 = vld [vmem:[%s8529_s5 + $0xe30] sm:$0xff]  ;;  %v772_v16 = vld [vmem:[%s8529_s5 + $0x10f8] sm:$0xff] }
 0x335   : > { %v691_v29 = vld [vmem:[%s8529_s5 + $0xe70] sm:$0xff] }
 0x336   : > { %v7680_v42 = vcombine.low %v683_v26, %v691_v29 }
 0x337   : > { %6826 = vmatpush1.bf16.msra.mxu0 %v7568_v37  ;;  %6990 = vmatpush1.bf16.msra.mxu1 %v7570_v38  ;;  %v7681_v37 = vcombine.high %v683_v26, %v691_v29  ;;  %v7683_v38 = vcombine.high %v684_v31, %v692_v33  ;;  %v780_v26 = vld [vmem:[%s8529_s5 + $0x1138] sm:$0xff]  ;;  %v7762_v33 = vcombine.low %v764_v15, %v772_v16 }
 0x338   : > { %6827 = vmatprep.subr.bf16.mxu0 %v7585_v39  ;;  %6991 = vmatprep.subr.bf16.mxu1 %v7587_v57  ;;  %v699_v39 = vld [vmem:[%s8529_s5 + $0xeb0] sm:$0xff]  ;;  %v788_v29 = vld [vmem:[%s8529_s5 + $0x1178] sm:$0xff] }
 0x339   : > { %v707_v57 = vld [vmem:[%s8529_s5 + $0xef0] sm:$0xff] }
 0x33a   : > { %v7696_v56 = vcombine.low %v699_v39, %v707_v57 }
 0x33b   : > { %6828 = vmatpush1.bf16.msra.mxu0 %v7584_v44  ;;  %6992 = vmatpush1.bf16.msra.mxu1 %v7586_v45  ;;  %v7697_v44 = vcombine.high %v699_v39, %v707_v57  ;;  %v7699_v45 = vcombine.high %v700_v40, %v708_v41  ;;  %v796_v39 = vld [vmem:[%s8529_s5 + $0x11b8] sm:$0xff]  ;;  %v7778_v40 = vcombine.low %v780_v26, %v788_v29 }
 0x33c   : > { %6829 = vmatprep.subr.bf16.mxu0 %v7601_v48  ;;  %6993 = vmatprep.subr.bf16.mxu1 %v7603_v49  ;;  %v715_v48 = vld [vmem:[%s8529_s5 + $0xf30] sm:$0xff]  ;;  %v804_v57 = vld [vmem:[%s8529_s5 + $0x11f8] sm:$0xff] }
 0x33d   : > { %v723_v49 = vld [vmem:[%s8529_s5 + $0xf70] sm:$0xff] }
 0x33e   : > { %v7712_v1 = vcombine.low %v715_v48, %v723_v49 }
 0x33f   : > { %6830 = vmatpush1.bf16.msra.mxu0 %v7600_v59  ;;  %6994 = vmatpush1.bf16.msra.mxu1 %v7602_v60  ;;  %v7713_v59 = vcombine.high %v715_v48, %v723_v49  ;;  %v7715_v60 = vcombine.high %v716_v50, %v724_v53  ;;  %v820_v48 = vld [vmem:[%s8529_s5 + $0x1278] sm:$0xff] }
 0x340   : > { %6831 = vmatprep.subr.bf16.mxu0 %v7617_v61  ;;  %6995 = vmatprep.subr.bf16.mxu1 %v7619_v62  ;;  %v731_v61 = vld [vmem:[%s8529_s5 + $0xfb0] sm:$0xff] }
 0x341   : > { %v739_v62 = vld [vmem:[%s8529_s5 + $0xff0] sm:$0xff] }
 0x342   : > { %v7728_v8 = vcombine.low %v731_v61, %v739_v62 }
 0x343   : > { %6832 = vmatpush1.bf16.msra.mxu0 %v7616_v3  ;;  %6996 = vmatpush1.bf16.msra.mxu1 %v7618_v4  ;;  %v7729_v3 = vcombine.high %v731_v61, %v739_v62  ;;  %v7731_v4 = vcombine.high %v732_v63, %v740_v0 }
 0x344   : > { %6833 = vmatprep.subr.bf16.mxu0 %v7633_v12  ;;  %6997 = vmatprep.subr.bf16.mxu1 %v7635_v5  ;;  %v747_v12 = vld [vmem:[%s8529_s5 + $0x1030] sm:$0xff] }
 0x345   : > { %v755_v5 = vld [vmem:[%s8529_s5 + $0x1070] sm:$0xff] }
 0x346   : > { %v7744_v17 = vcombine.low %v747_v12, %v755_v5 }
 0x347   : > { %6834 = vmatpush1.bf16.msra.mxu0 %v7632_v10  ;;  %6998 = vmatpush1.bf16.msra.mxu1 %v7634_v11  ;;  %v7745_v10 = vcombine.high %v747_v12, %v755_v5  ;;  %v7747_v11 = vcombine.high %v748_v6, %v756_v7 }
 0x348   : > { %6835 = vmatprep.subr.bf16.mxu0 %v7649_v14  ;;  %6999 = vmatprep.subr.bf16.mxu1 %v7651_v22  ;;  %v763_v14 = vld [vmem:[%s8529_s5 + $0x10b0] sm:$0xff] }
 0x349   : > { %v771_v22 = vld [vmem:[%s8529_s5 + $0x10f0] sm:$0xff] }
 0x34a   : > { %v7760_v31 = vcombine.low %v763_v14, %v771_v22 }
 0x34b   : > { %6836 = vmatpush1.bf16.msra.mxu0 %v7648_v19  ;;  %7000 = vmatpush1.bf16.msra.mxu1 %v7650_v23  ;;  %v7761_v19 = vcombine.high %v763_v14, %v771_v22  ;;  %v7763_v23 = vcombine.high %v764_v15, %v772_v16 }
 0x34c   : > { %6837 = vmatprep.subr.bf16.mxu0 %v7665_v24  ;;  %7001 = vmatprep.subr.bf16.mxu1 %v7667_v25  ;;  %v779_v24 = vld [vmem:[%s8529_s5 + $0x1130] sm:$0xff] }
 0x34d   : > { %v787_v25 = vld [vmem:[%s8529_s5 + $0x1170] sm:$0xff] }
 0x34f   : > { %6838 = vmatpush1.bf16.msra.mxu0 %v7664_v34  ;;  %7002 = vmatpush1.bf16.msra.mxu1 %v7666_v35  ;;  %v7777_v34 = vcombine.high %v779_v24, %v787_v25  ;;  %v7779_v35 = vcombine.high %v780_v26, %v788_v29 }
 0x350   : > { %6839 = vmatprep.subr.bf16.mxu0 %v7681_v37  ;;  %7003 = vmatprep.subr.bf16.mxu1 %v7683_v38  ;;  %v795_v37 = vld [vmem:[%s8529_s5 + $0x11b0] sm:$0xff] }
 0x351   : > { %v803_v38 = vld [vmem:[%s8529_s5 + $0x11f0] sm:$0xff] }
 0x352   : > { %v7793_v41 = vcombine.high %v795_v37, %v803_v38  ;;  %v7792_v49 = vcombine.low %v795_v37, %v803_v38 }
 0x353   : > { %6840 = vmatpush1.bf16.msra.mxu0 %v7680_v42  ;;  %7004 = vmatpush1.bf16.msra.mxu1 %v7682_v43  ;;  %v7795_v42 = vcombine.high %v796_v39, %v804_v57  ;;  %v811_v43 = vld [vmem:[%s8529_s5 + $0x1230] sm:$0xff] }
 0x354   : > { %6841 = vmatprep.subr.bf16.mxu0 %v7697_v44  ;;  %7005 = vmatprep.subr.bf16.mxu1 %v7699_v45  ;;  %v819_v44 = vld [vmem:[%s8529_s5 + $0x1270] sm:$0xff]  ;;  %v812_v45 = vld [vmem:[%s8529_s5 + $0x1238] sm:$0xff] }
 0x355   : > { %v7809_v50 = vcombine.high %v811_v43, %v819_v44  ;;  %v7811_v53 = vcombine.high %v812_v45, %v820_v48  ;;  %v7808_v61 = vcombine.low %v811_v43, %v819_v44  ;;  %v7810_v62 = vcombine.low %v812_v45, %v820_v48 }
 0x357   : > { %6842 = vmatpush1.bf16.msra.mxu0 %v7696_v56  ;;  %7006 = vmatpush1.bf16.msra.mxu1 %v7698_v58  ;;  %v827_v56 = vld [vmem:[%s8529_s5 + $0x12b0] sm:$0xff] }
 0x358   : > { %6843 = vmatprep.subr.bf16.mxu0 %v7713_v59  ;;  %7007 = vmatprep.subr.bf16.mxu1 %v7715_v60  ;;  %v835_v58 = vld [vmem:[%s8529_s5 + $0x12f0] sm:$0xff]  ;;  %v828_v59 = vld [vmem:[%s8529_s5 + $0x12b8] sm:$0xff] }
 0x359   : > { %v836_v60 = vld [vmem:[%s8529_s5 + $0x12f8] sm:$0xff]  ;;  %v7825_v63 = vcombine.high %v827_v56, %v835_v58  ;;  %v7824_v12 = vcombine.low %v827_v56, %v835_v58 }
 0x35a   : > { %v7827_v0 = vcombine.high %v828_v59, %v836_v60  ;;  %v7826_v5 = vcombine.low %v828_v59, %v836_v60 }
 0x35b   : > { %6844 = vmatpush1.bf16.msra.mxu0 %v7712_v1  ;;  %7008 = vmatpush1.bf16.msra.mxu1 %v7714_v2  ;;  %v843_v1 = vld [vmem:[%s8529_s5 + $0x1330] sm:$0xff] }
 0x35c   : > { %6845 = vmatprep.subr.bf16.mxu0 %v7729_v3  ;;  %7009 = vmatprep.subr.bf16.mxu1 %v7731_v4  ;;  %v851_v2 = vld [vmem:[%s8529_s5 + $0x1370] sm:$0xff]  ;;  %v844_v3 = vld [vmem:[%s8529_s5 + $0x1338] sm:$0xff] }
 0x35d   : > { %v852_v4 = vld [vmem:[%s8529_s5 + $0x1378] sm:$0xff]  ;;  %v7841_v6 = vcombine.high %v843_v1, %v851_v2  ;;  %v7840_v14 = vcombine.low %v843_v1, %v851_v2 }
 0x35e   : > { %v7843_v7 = vcombine.high %v844_v3, %v852_v4  ;;  %v7842_v22 = vcombine.low %v844_v3, %v852_v4 }
 0x35f   : > { %6846 = vmatpush1.bf16.msra.mxu0 %v7728_v8  ;;  %7010 = vmatpush1.bf16.msra.mxu1 %v7730_v9  ;;  %v859_v8 = vld [vmem:[%s8529_s5 + $0x13b0] sm:$0xff] }
 0x360   : > { %6856 = vmatprep.subr.bf16.mxu0 %v7745_v10  ;;  %7020 = vmatprep.subr.bf16.mxu1 %v7747_v11  ;;  %v867_v9 = vld [vmem:[%s8529_s5 + $0x13f0] sm:$0xff]  ;;  %v860_v10 = vld [vmem:[%s8529_s5 + $0x13b8] sm:$0xff] }
 0x361   : > { %v868_v11 = vld [vmem:[%s8529_s5 + $0x13f8] sm:$0xff]  ;;  %v7857_v15 = vcombine.high %v859_v8, %v867_v9 }
 0x362   : > { %6848 = vmatmul.mubr.bf16.vlgmr.msra.gmra.mrb[12].mxu0 %v8693_v21  ;;  %7012 = vmatmul.mubr.bf16.vlgmr.msra.gmra.mrb[12].mxu1 %v8693_v21  ;;  %v7776_v21 = vcombine.low %v779_v24, %v787_v25  ;;  %v7859_v16 = vcombine.high %v860_v10, %v868_v11  ;;  %v7856_v24 = vcombine.low %v859_v8, %v867_v9 }
 0x363   : > { %6857 = vmatpush1.bf16.msra.mxu0 %v7744_v17  ;;  %7021 = vmatpush1.bf16.msra.mxu1 %v7746_v18  ;;  %v875_v17 = vld [vmem:[%s8529_s5 + $0x1430] sm:$0xff]  ;;  %v7858_v25 = vcombine.low %v860_v10, %v868_v11 }
 0x364   : > { %6858 = vmatprep.subr.bf16.mxu0 %v7761_v19  ;;  %7022 = vmatprep.subr.bf16.mxu1 %v7763_v23  ;;  %v883_v18 = vld [vmem:[%s8529_s5 + $0x1470] sm:$0xff]  ;;  %v876_v19 = vld [vmem:[%s8529_s5 + $0x1438] sm:$0xff] }
 0x365   : > { %6888 = vmatprep.mubr.bf16.mxu0 %v8702_v32  ;;  %7052 = vmatprep.mubr.bf16.mxu1 %v8702_v32  ;;  %v7794_v32 = vcombine.low %v796_v39, %v804_v57  ;;  %v884_v23 = vld [vmem:[%s8529_s5 + $0x1478] sm:$0xff]  ;;  %v7873_v26 = vcombine.high %v875_v17, %v883_v18  ;;  %v7872_v37 = vcombine.low %v875_v17, %v883_v18 }
 0x366   : > { %v7875_v29 = vcombine.high %v876_v19, %v884_v23  ;;  %v7874_v38 = vcombine.low %v876_v19, %v884_v23 }
 0x367   : > { %6859 = vmatpush1.bf16.msra.mxu0 %v7760_v31  ;;  %7023 = vmatpush1.bf16.msra.mxu1 %v7762_v33  ;;  %v891_v31 = vld [vmem:[%s8529_s5 + $0x14b0] sm:$0xff] }
 0x368   : > { %6860 = vmatprep.subr.bf16.mxu0 %v7777_v34  ;;  %7024 = vmatprep.subr.bf16.mxu1 %v7779_v35  ;;  %v899_v33 = vld [vmem:[%s8529_s5 + $0x14f0] sm:$0xff]  ;;  %v892_v34 = vld [vmem:[%s8529_s5 + $0x14b8] sm:$0xff] }
 0x369   : > { %v900_v35 = vld [vmem:[%s8529_s5 + $0x14f8] sm:$0xff]  ;;  %v7889_v39 = vcombine.high %v891_v31, %v899_v33  ;;  %v7888_v43 = vcombine.low %v891_v31, %v899_v33 }
 0x36a   : > { %v7891_v57 = vcombine.high %v892_v34, %v900_v35  ;;  %v7890_v44 = vcombine.low %v892_v34, %v900_v35 }
 0x36b   : > { %6861 = vmatpush1.bf16.msra.mxu0 %v7776_v21  ;;  %7025 = vmatpush1.bf16.msra.mxu1 %v7778_v40  ;;  %v907_v21 = vld [vmem:[%s8529_s5 + $0x1530] sm:$0xff] }
 0x36c   : > { %6862 = vmatprep.subr.bf16.mxu0 %v7793_v41  ;;  %7026 = vmatprep.subr.bf16.mxu1 %v7795_v42  ;;  %v915_v40 = vld [vmem:[%s8529_s5 + $0x1570] sm:$0xff]  ;;  %v908_v41 = vld [vmem:[%s8529_s5 + $0x1538] sm:$0xff] }
 0x36d   : > { %v916_v42 = vld [vmem:[%s8529_s5 + $0x1578] sm:$0xff]  ;;  %v7905_v45 = vcombine.high %v907_v21, %v915_v40  ;;  %v7904_v56 = vcombine.low %v907_v21, %v915_v40 }
 0x36e   : > { %v7907_v48 = vcombine.high %v908_v41, %v916_v42  ;;  %v7906_v58 = vcombine.low %v908_v41, %v916_v42 }
 0x36f   : > { %6863 = vmatpush1.bf16.msra.mxu0 %v7792_v49  ;;  %7027 = vmatpush1.bf16.msra.mxu1 %v7794_v32  ;;  %v923_v49 = vld [vmem:[%s8529_s5 + $0x15b0] sm:$0xff] }
 0x370   : > { %6864 = vmatprep.subr.bf16.mxu0 %v7809_v50  ;;  %7028 = vmatprep.subr.bf16.mxu1 %v7811_v53  ;;  %v931_v32 = vld [vmem:[%s8529_s5 + $0x15f0] sm:$0xff]  ;;  %v924_v50 = vld [vmem:[%s8529_s5 + $0x15b8] sm:$0xff] }
 0x371   : > { %v932_v53 = vld [vmem:[%s8529_s5 + $0x15f8] sm:$0xff]  ;;  %v7921_v59 = vcombine.high %v923_v49, %v931_v32  ;;  %v7920_v1 = vcombine.low %v923_v49, %v931_v32 }
 0x372   : > { %v7923_v60 = vcombine.high %v924_v50, %v932_v53  ;;  %v7922_v2 = vcombine.low %v924_v50, %v932_v53 }
 0x373   : > { %6865 = vmatpush1.bf16.msra.mxu0 %v7808_v61  ;;  %7029 = vmatpush1.bf16.msra.mxu1 %v7810_v62  ;;  %v939_v61 = vld [vmem:[%s8529_s5 + $0x1630] sm:$0xff] }
 0x374   : > { %6866 = vmatprep.subr.bf16.mxu0 %v7825_v63  ;;  %7030 = vmatprep.subr.bf16.mxu1 %v7827_v0  ;;  %v947_v62 = vld [vmem:[%s8529_s5 + $0x1670] sm:$0xff]  ;;  %v940_v63 = vld [vmem:[%s8529_s5 + $0x1638] sm:$0xff] }
 0x375   : > { %v948_v0 = vld [vmem:[%s8529_s5 + $0x1678] sm:$0xff]  ;;  %v7937_v3 = vcombine.high %v939_v61, %v947_v62  ;;  %v7936_v8 = vcombine.low %v939_v61, %v947_v62 }
 0x376   : > { %v7939_v4 = vcombine.high %v940_v63, %v948_v0  ;;  %v7938_v9 = vcombine.low %v940_v63, %v948_v0 }
 0x377   : > { %6867 = vmatpush1.bf16.msra.mxu0 %v7824_v12  ;;  %7031 = vmatpush1.bf16.msra.mxu1 %v7826_v5  ;;  %v955_v12 = vld [vmem:[%s8529_s5 + $0x16b0] sm:$0xff] }
 0x378   : > { %6868 = vmatprep.subr.bf16.mxu0 %v7841_v6  ;;  %7032 = vmatprep.subr.bf16.mxu1 %v7843_v7  ;;  %v963_v5 = vld [vmem:[%s8529_s5 + $0x16f0] sm:$0xff]  ;;  %v956_v6 = vld [vmem:[%s8529_s5 + $0x16b8] sm:$0xff] }
 0x379   : > { %v964_v7 = vld [vmem:[%s8529_s5 + $0x16f8] sm:$0xff]  ;;  %v7953_v10 = vcombine.high %v955_v12, %v963_v5  ;;  %v7952_v17 = vcombine.low %v955_v12, %v963_v5 }
 0x37a   : > { %v7955_v11 = vcombine.high %v956_v6, %v964_v7  ;;  %v7954_v18 = vcombine.low %v956_v6, %v964_v7  ;;  %v1067_v7 = vld [vmem:[%s8529_s5 + $0x1a30] sm:$0xff] }
 0x37b   : > { %6869 = vmatpush1.bf16.msra.mxu0 %v7840_v14  ;;  %7033 = vmatpush1.bf16.msra.mxu1 %v7842_v22  ;;  %v971_v14 = vld [vmem:[%s8529_s5 + $0x1730] sm:$0xff] }
 0x37c   : > { %6870 = vmatprep.subr.bf16.mxu0 %v7857_v15  ;;  %7034 = vmatprep.subr.bf16.mxu1 %v7859_v16  ;;  %v979_v22 = vld [vmem:[%s8529_s5 + $0x1770] sm:$0xff]  ;;  %v972_v15 = vld [vmem:[%s8529_s5 + $0x1738] sm:$0xff] }
 0x37d   : > { %v980_v16 = vld [vmem:[%s8529_s5 + $0x1778] sm:$0xff]  ;;  %v7969_v19 = vcombine.high %v971_v14, %v979_v22  ;;  %v7968_v31 = vcombine.low %v971_v14, %v979_v22 }
 0x37e   : > { %v7971_v23 = vcombine.high %v972_v15, %v980_v16  ;;  %v7970_v33 = vcombine.low %v972_v15, %v980_v16  ;;  %v1083_v15 = vld [vmem:[%s8529_s5 + $0x1ab0] sm:$0xff] }
 0x37f   : > { %6871 = vmatpush1.bf16.msra.mxu0 %v7856_v24  ;;  %7035 = vmatpush1.bf16.msra.mxu1 %v7858_v25  ;;  %v987_v24 = vld [vmem:[%s8529_s5 + $0x17b0] sm:$0xff] }
 0x380   : > { %6872 = vmatprep.subr.bf16.mxu0 %v7873_v26  ;;  %7036 = vmatprep.subr.bf16.mxu1 %v7875_v29  ;;  %v995_v25 = vld [vmem:[%s8529_s5 + $0x17f0] sm:$0xff]  ;;  %v988_v26 = vld [vmem:[%s8529_s5 + $0x17b8] sm:$0xff] }
 0x381   : > { %v996_v29 = vld [vmem:[%s8529_s5 + $0x17f8] sm:$0xff]  ;;  %v7985_v34 = vcombine.high %v987_v24, %v995_v25  ;;  %v7984_v21 = vcombine.low %v987_v24, %v995_v25  ;;  %v1091_v16 = vld [vmem:[%s8529_s5 + $0x1af0] sm:$0xff] }
 0x382   : > { %v7987_v35 = vcombine.high %v988_v26, %v996_v29  ;;  %v7986_v40 = vcombine.low %v988_v26, %v996_v29  ;;  %v8081_v25 = vcombine.high %v1083_v15, %v1091_v16  ;;  %v1099_v29 = vld [vmem:[%s8529_s5 + $0x1b30] sm:$0xff] }
 0x383   : > { %6873 = vmatpush1.bf16.msra.mxu0 %v7872_v37  ;;  %7037 = vmatpush1.bf16.msra.mxu1 %v7874_v38  ;;  %v1003_v37 = vld [vmem:[%s8529_s5 + $0x1830] sm:$0xff] }
 0x384   : > { %6874 = vmatprep.subr.bf16.mxu0 %v7889_v39  ;;  %7038 = vmatprep.subr.bf16.mxu1 %v7891_v57  ;;  %v1011_v38 = vld [vmem:[%s8529_s5 + $0x1870] sm:$0xff]  ;;  %v1004_v39 = vld [vmem:[%s8529_s5 + $0x1838] sm:$0xff] }
 0x385   : > { %v1012_v57 = vld [vmem:[%s8529_s5 + $0x1878] sm:$0xff]  ;;  %v8001_v41 = vcombine.high %v1003_v37, %v1011_v38  ;;  %v8000_v49 = vcombine.low %v1003_v37, %v1011_v38 }
 0x386   : > { %v8003_v42 = vcombine.high %v1004_v39, %v1012_v57  ;;  %v8002_v32 = vcombine.low %v1004_v39, %v1012_v57  ;;  %v8080_v39 = vcombine.low %v1083_v15, %v1091_v16 }
 0x387   : > { %6875 = vmatpush1.bf16.msra.mxu0 %v7888_v43  ;;  %7039 = vmatpush1.bf16.msra.mxu1 %v7890_v44  ;;  %v1019_v43 = vld [vmem:[%s8529_s5 + $0x18b0] sm:$0xff] }
 0x388   : > { %6876 = vmatprep.subr.bf16.mxu0 %v7905_v45  ;;  %7040 = vmatprep.subr.bf16.mxu1 %v7907_v48  ;;  %v1027_v44 = vld [vmem:[%s8529_s5 + $0x18f0] sm:$0xff]  ;;  %v1020_v45 = vld [vmem:[%s8529_s5 + $0x18b8] sm:$0xff] }
 0x389   : > { %v1028_v48 = vld [vmem:[%s8529_s5 + $0x18f8] sm:$0xff]  ;;  %v8017_v50 = vcombine.high %v1019_v43, %v1027_v44  ;;  %v8016_v61 = vcombine.low %v1019_v43, %v1027_v44 }
 0x38a   : > { %v8019_v53 = vcombine.high %v1020_v45, %v1028_v48  ;;  %v8018_v62 = vcombine.low %v1020_v45, %v1028_v48  ;;  %v1116_v48 = vld [vmem:[%s8529_s5 + $0x1bb8] sm:$0xff] }
 0x38b   : > { %6877 = vmatpush1.bf16.msra.mxu0 %v7904_v56  ;;  %7041 = vmatpush1.bf16.msra.mxu1 %v7906_v58  ;;  %v1035_v56 = vld [vmem:[%s8529_s5 + $0x1930] sm:$0xff] }
 0x38c   : > { %6878 = vmatprep.subr.bf16.mxu0 %v7921_v59  ;;  %7042 = vmatprep.subr.bf16.mxu1 %v7923_v60  ;;  %v1043_v58 = vld [vmem:[%s8529_s5 + $0x1970] sm:$0xff]  ;;  %v1036_v59 = vld [vmem:[%s8529_s5 + $0x1938] sm:$0xff] }
 0x38d   : > { %v1044_v60 = vld [vmem:[%s8529_s5 + $0x1978] sm:$0xff]  ;;  %v8033_v63 = vcombine.high %v1035_v56, %v1043_v58 }
 0x38e   : > { %v8035_v0 = vcombine.high %v1036_v59, %v1044_v60  ;;  %v8034_v12 = vcombine.low %v1036_v59, %v1044_v60 }
 0x38f   : > { %6879 = vmatpush1.bf16.msra.mxu0 %v7920_v1  ;;  %7043 = vmatpush1.bf16.msra.mxu1 %v7922_v2  ;;  %v1051_v1 = vld [vmem:[%s8529_s5 + $0x19b0] sm:$0xff] }
 0x390   : > { %6880 = vmatprep.subr.bf16.mxu0 %v7937_v3  ;;  %7044 = vmatprep.subr.bf16.mxu1 %v7939_v4  ;;  %v1059_v2 = vld [vmem:[%s8529_s5 + $0x19f0] sm:$0xff]  ;;  %v1052_v3 = vld [vmem:[%s8529_s5 + $0x19b8] sm:$0xff] }
 0x391   : > { %v1060_v4 = vld [vmem:[%s8529_s5 + $0x19f8] sm:$0xff]  ;;  %v8049_v5 = vcombine.high %v1051_v1, %v1059_v2 }
 0x392   : > { %v8051_v6 = vcombine.high %v1052_v3, %v1060_v4 }
 0x393   : > { %6881 = vmatpush1.bf16.msra.mxu0 %v7936_v8  ;;  %7045 = vmatpush1.bf16.msra.mxu1 %v7938_v9  ;;  %v1075_v8 = vld [vmem:[%s8529_s5 + $0x1a70] sm:$0xff]  ;;  %v1068_v9 = vld [vmem:[%s8529_s5 + $0x1a38] sm:$0xff] }
 0x394   : > { %6882 = vmatprep.subr.bf16.mxu0 %v7953_v10  ;;  %7046 = vmatprep.subr.bf16.mxu1 %v7955_v11  ;;  %v1076_v10 = vld [vmem:[%s8529_s5 + $0x1a78] sm:$0xff]  ;;  %v8048_v11 = vcombine.low %v1051_v1, %v1059_v2  ;;  %v8065_v14 = vcombine.high %v1067_v7, %v1075_v8 }
 0x395   : > { %v8067_v22 = vcombine.high %v1068_v9, %v1076_v10  ;;  %v8066_v24 = vcombine.low %v1068_v9, %v1076_v10  ;;  %v1132_v1 = vld [vmem:[%s8529_s5 + $0x1c38] sm:$0xff] }
 0x397   : > { %6883 = vmatpush1.bf16.msra.mxu0 %v7952_v17  ;;  %7047 = vmatpush1.bf16.msra.mxu1 %v7954_v18  ;;  %v1084_v17 = vld [vmem:[%s8529_s5 + $0x1ab8] sm:$0xff] }
 0x398   : > { %6884 = vmatprep.subr.bf16.mxu0 %v7969_v19  ;;  %7048 = vmatprep.subr.bf16.mxu1 %v7971_v23  ;;  %v1092_v18 = vld [vmem:[%s8529_s5 + $0x1af8] sm:$0xff]  ;;  %v8064_v19 = vcombine.low %v1067_v7, %v1075_v8  ;;  %v9605_v23 = vld [vmem:[%s9062_s26 + $0x8] sm:$0xff] }
 0x399   : > { %v8083_v26 = vcombine.high %v1084_v17, %v1092_v18  ;;  %v1180_v37 = vrot.slane %v9605_v23, %v1147_v27  ;;  %v1176_v38 = vrot.slane %v9605_v23, %v1143_v28  ;;  %v8082_v57 = vcombine.low %v1084_v17, %v1092_v18  ;;  %v1123_v27 = vld [vmem:[%s8529_s5 + $0x1bf0] sm:$0xff]  ;;  %v1124_v28 = vld [vmem:[%s8529_s5 + $0x1bf8] sm:$0xff] }
 0x39a   : > { %v1200_v15 = vrot.slane %v9605_v23, %v1167_v54 }
 0x39b   : > { %6885 = vmatpush1.bf16.msra.mxu0 %v7968_v31  ;;  %7049 = vmatpush1.bf16.msra.mxu1 %v7970_v33  ;;  %v1107_v31 = vld [vmem:[%s8529_s5 + $0x1b70] sm:$0xff]  ;;  %v1172_v33 = vrot.slane %v9605_v23, %v1139_v20  ;;  %v1184_v20 = vrot.slane %v9605_v23, %v1151_v30 }
 0x39c   : > { %6886 = vmatprep.subr.bf16.mxu0 %v7985_v34  ;;  %7050 = vmatprep.subr.bf16.mxu1 %v7987_v35  ;;  %v1100_v34 = vld [vmem:[%s8529_s5 + $0x1b38] sm:$0xff]  ;;  %v8096_v30 = vcombine.low %v1099_v29, %v1107_v31 }
 0x39d   : > { %v1108_v35 = vld [vmem:[%s8529_s5 + $0x1b78] sm:$0xff] }
 0x39e   : > { %v8098_v60 = vcombine.low %v1100_v34, %v1108_v35 }
 0x39f   : > { %6887 = vmatpush1.bf16.msra.mxu0 %v7984_v21  ;;  %7051 = vmatpush1.bf16.msra.mxu1 %v7986_v40  ;;  %v8097_v21 = vcombine.high %v1099_v29, %v1107_v31 }
 0x3a0   : > { %6897 = vmatprep.subr.bf16.mxu0 %v8001_v41  ;;  %7061 = vmatprep.subr.bf16.mxu1 %v8003_v42  ;;  %v8099_v41 = vcombine.high %v1100_v34, %v1108_v35  ;;  %v1115_v42 = vld [vmem:[%s8529_s5 + $0x1bb0] sm:$0xff] }
 0x3a1   : > { %v8112_v2 = vcombine.low %v1115_v42, %v1123_v27 }
 0x3a2   : > { %6889 = vmatmul.mubr.bf16.vlgmr.msra.gmra.mrb[12].mxu0 %v8771_v36  ;;  %7053 = vmatmul.mubr.bf16.vlgmr.msra.gmra.mrb[12].mxu1 %v8771_v36  ;;  %v8032_v36 = vcombine.low %v1035_v56, %v1043_v58 }
 0x3a3   : > { %6898 = vmatpush1.bf16.msra.mxu0 %v8000_v49  ;;  %7062 = vmatpush1.bf16.msra.mxu1 %v8002_v32 }
 0x3a4   : > { %6899 = vmatprep.subr.bf16.mxu0 %v8017_v50  ;;  %7063 = vmatprep.subr.bf16.mxu1 %v8019_v53 }
 0x3a5   : > { %8145 = vmatprep.mubr.msk.bf16.mxu0 %vm5737_vm0, %v8780_v46  ;;  %8147 = vmatprep.mubr.msk.bf16.mxu1 %vm5737_vm0, %v8780_v46  ;;  %v8050_v46 = vcombine.low %v1052_v3, %v1060_v4  ;;  %v8114_v3 = vcombine.low %v1116_v48, %v1124_v28 }
 0x3a7   : > { %6900 = vmatpush1.bf16.msra.mxu0 %v8016_v61  ;;  %7064 = vmatpush1.bf16.msra.mxu1 %v8018_v62  ;;  %v8113_v61 = vcombine.high %v1115_v42, %v1123_v27 }
 0x3a8   : > { %6901 = vmatprep.subr.bf16.mxu0 %v8033_v63  ;;  %7065 = vmatprep.subr.bf16.mxu1 %v8035_v0  ;;  %v8115_v63 = vcombine.high %v1116_v48, %v1124_v28  ;;  %v1131_v0 = vld [vmem:[%s8529_s5 + $0x1c30] sm:$0xff] }
 0x3a9   : > { %v8129_v4 = vcombine.high %v1131_v0, %v1131_v0 }
 0x3ab   : > { %6902 = vmatpush1.bf16.msra.mxu0 %v8032_v36  ;;  %7066 = vmatpush1.bf16.msra.mxu1 %v8034_v12  ;;  %v8128_v36 = vcombine.low %v1131_v0, %v1131_v0  ;;  %v8131_v12 = vcombine.high %v1132_v1, %v1132_v1 }
 0x3ac   : > { %6903 = vmatprep.subr.bf16.mxu0 %v8049_v5  ;;  %7067 = vmatprep.subr.bf16.mxu1 %v8051_v6  ;;  %v8130_v5 = vcombine.low %v1132_v1, %v1132_v1 }
 0x3ad   : > { %v5779_v6 = vsel %vm5741_vm1, %v8128_v36, 0 }
 0x3ae   : > { %v5785_v7 = vsel %vm5741_vm1, %v8130_v5, 0 }
 0x3af   : > { %6904 = vmatpush1.bf16.msra.mxu0 %v8048_v11  ;;  %7068 = vmatpush1.bf16.msra.mxu1 %v8050_v46  ;;  %v1188_v46 = vrot.slane %v9605_v23, %v1155_v47 }
 0x3b0   : > { %6905 = vmatprep.subr.bf16.mxu0 %v8065_v14  ;;  %7069 = vmatprep.subr.bf16.mxu1 %v8067_v22  ;;  %v1196_v14 = vrot.slane %v9605_v23, %v1163_v51  ;;  %v1192_v22 = vrot.slane %v9605_v23, %v1159_v52 }
 0x3b3   : > { %6906 = vmatpush1.bf16.msra.mxu0 %v8064_v19  ;;  %7070 = vmatpush1.bf16.msra.mxu1 %v8066_v24 }
 0x3b4   : > { %6907 = vmatprep.subr.bf16.mxu0 %v8081_v25  ;;  %7071 = vmatprep.subr.bf16.mxu1 %v8083_v26 }
 0x3b5   : > { %v6603_v40 = vpop.f32.mrb[8].mxu0  ;;  %v6767_v44 = vpop.f32.mrb[8].mxu1 }
 0x3b6   : > { %v8159_v43 = vadd.f32 %v6603_v40, %v1172_v33  ;;  %v6605_v45 = vpop.f32.mrb[9].mxu0  ;;  %v8161_v49 = vadd.f32 %v6767_v44, %v1180_v37  ;;  %v6769_v50 = vpop.f32.mrb[9].mxu1 }
 0x3b7   : > { %v8160_v32 = vadd.f32 %v6605_v45, %v1176_v38  ;;  %v6607_v53 = vpop.f32.mrb[10].mxu0  ;;  %6908 = vmatpush1.bf16.msra.mxu0 %v8080_v39  ;;  %v8162_v56 = vadd.f32 %v6769_v50, %v1184_v20  ;;  %v6771_v58 = vpop.f32.mrb[10].mxu1  ;;  %7072 = vmatpush1.bf16.msra.mxu1 %v8082_v57 }
 0x3b8   : > { %8339 = vtanh.f32 %v8159_v43  ;;  %v6608_v59 = vpop.f32.mrb[11].mxu0  ;;  %6909 = vmatprep.subr.bf16.mxu0 %v8097_v21  ;;  %v6772_v62 = vpop.f32.mrb[11].mxu1  ;;  %7073 = vmatprep.subr.bf16.mxu1 %v8099_v41 }
 0x3b9   : > { %8341 = vtanh.f32 %v8161_v49 }
 0x3ba   : > { %8343 = vtanh.f32 %v8160_v32 }
 0x3bb   : > { %8345 = vtanh.f32 %v8162_v56  ;;  %6910 = vmatpush1.bf16.msra.mxu0 %v8096_v30  ;;  %7074 = vmatpush1.bf16.msra.mxu1 %v8098_v60 }
 0x3bc   : > { %6911 = vmatprep.subr.bf16.mxu0 %v8113_v61  ;;  %7075 = vmatprep.subr.bf16.mxu1 %v8115_v63 }
 0x3bf   : > { %6912 = vmatpush1.bf16.msra.mxu0 %v8112_v2  ;;  %7076 = vmatpush1.bf16.msra.mxu1 %v8114_v3 }
 0x3c0   : > { %8144 = vmatprep.subr.msk.bf16.mxu0 %vm5741_vm1, %v8129_v4  ;;  %8146 = vmatprep.subr.msk.bf16.mxu1 %vm5741_vm1, %v8131_v12 }
 0x3c2   : > { %v8340_v8 = vpop.eup %8339 }
 0x3c3   : > { %v8342_v9 = vpop.eup %8341  ;;  %7126 = vst [vmem:[%s9099_s25 + $0x40] sm:$0xff] %v8340_v8  ;;  %6914 = vmatpush1.bf16.msra.mxu0 %v5779_v6  ;;  %7078 = vmatpush1.bf16.msra.mxu1 %v5785_v7 }
 0x3c4   : > { %v8344_v10 = vpop.eup %8343  ;;  %7128 = vst [vmem:[%s9099_s25 + $0x50] sm:$0xff] %v8342_v9 }
 0x3c5   : > { %v8346_v11 = vpop.eup %8345  ;;  %7127 = vst [vmem:[%s9099_s25 + $0x48] sm:$0xff] %v8344_v10 }
 0x3c6   : > { %7129 = vst [vmem:[%s9099_s25 + $0x58] sm:$0xff] %v8346_v11  ;;  %6930 = vmatmul.mubr.bf16.vlgmr.msra.gmra.mrb[12].mxu0 %v8825_v55  ;;  %7094 = vmatmul.mubr.bf16.vlgmr.msra.gmra.mrb[12].mxu1 %v8825_v55 }
 0x499   : > { %v6931_v16 = vpop.f32.mrb[12].mxu0  ;;  %v7095_v18 = vpop.f32.mrb[12].mxu1 }
 0x49a   : > { %v8163_v17 = vadd.f32 %v6931_v16, %v1188_v46  ;;  %v6933_v55 = vpop.f32.mrb[13].mxu0  ;;  %v8165_v19 = vadd.f32 %v7095_v18, %v1196_v14  ;;  %v7097_v24 = vpop.f32.mrb[13].mxu1 }
 0x49b   : > { %v8164_v47 = vadd.f32 %v6933_v55, %v1192_v22  ;;  %v6935_v25 = vpop.f32.mrb[14].mxu0  ;;  %v8166_v51 = vadd.f32 %v7097_v24, %v1200_v15  ;;  %v7099_v26 = vpop.f32.mrb[14].mxu1 }
 0x49c   : > { %8347 = vtanh.f32 %v8163_v17  ;;  %v6936_v52 = vpop.f32.mrb[15].mxu0  ;;  %v7100_v13 = vpop.f32.mrb[15].mxu1 }
 0x49d   : > { %8349 = vtanh.f32 %v8165_v19 }
 0x49e   : > { %8351 = vtanh.f32 %v8164_v47 }
 0x49f   : > { %8353 = vtanh.f32 %v8166_v51 }
 0x4a6   : > { %v8348_v54 = vpop.eup %8347 }
 0x4a7   : > { %v8350_v23 = vpop.eup %8349  ;;  %7130 = vst [vmem:[%s9099_s25 + $0x60] sm:$0xff] %v8348_v54 }
 0x4a8   : > { %v8352_v29 = vpop.eup %8351  ;;  %7132 = vst [vmem:[%s9099_s25 + $0x70] sm:$0xff] %v8350_v23 }
 0x4a9   : > { %v8354_v31 = vpop.eup %8353  ;;  %7131 = vst [vmem:[%s9099_s25 + $0x68] sm:$0xff] %v8352_v29 }
 0x4aa   : > { %7133 = vst [vmem:[%s9099_s25 + $0x78] sm:$0xff] %v8354_v31 }
 0x4ab PF: > { %p13_p8 = scmp.ge.s32.totalorder %s8466_s17, 25   ;;  %s9674_s12 = smov %s8412_s13 }
 0x4ac   : > { %s9675_s13 = smov %s8416_s14  ;;  %s9676_s14 = smov %s8476_s20 }
 0x4ad   : > { %s9677_s15 = smov %s8466_s17  ;;  %15 = sbr.rel (!%p13_p8) target bundleno = 3 (0x3), region = 75 }
 0x4b4   :  { %7156 = vsyncpa [#allocation3], 1 }
 0x4b5   :  { %7158 = vsyncpa [#allocation3 + $0x1], 1 }

// kernel: autoencoder_forward.2
= control target key start
LH: loop header
LB: loop body
LE: loop exit
PB: predicated region body
PF: predicated region fallthrough
CT: control target
= control target key end

     0   :  { %8 = vsyncpa [#allocation4], 0  ;;  %s10352_s0 = inlined_call_operand.vmem [shape: f32[8,47104], index: 0, kind: input, shape index: {}]   ;;  %s10353_s1 = inlined_call_operand.hbm [shape: bf16[47104,904], index: 1, kind: input, shape index: {}]   ;;  %s10354_s2 = inlined_call_operand.vmem [shape: f32[1,904], index: 2, kind: input, shape index: {}]   ;;  %s10355_s3 = inlined_call_operand.vmem [shape: f32[8,904], index: 3, kind: output, shape index: {}]  }
   0x1   :  { %10 = vsyncpa [#allocation4 + $0x1], 0  ;;  %s9020_s12 = smov 0   ;;  %s9022_s13 = smov 0  }
   0x2   :  { %s9024_s14 = smov 0   ;;  %s9026_s15 = smov 0  }
   0x3 LB: > { %s9039_s16 = sadd.s32 4294967295, %s8994_s15   ;;  %s9042_s17 = sadd.s32 1, %s8994_s15   ;;  %s8994_s15 = sphi %s9026_s15, %s10362_s15   ;;  %s8990_s14 = sphi %s9024_s14, %s10361_s14   ;;  %s8986_s13 = sphi %s9022_s13, %s10360_s13   ;;  %s8982_s12 = sphi %s9020_s12, %s10359_s12  }
   0x4   : > { %s46_s18 = ssub.s32 %s8994_s15, %s9042_s17  ;;  %s49_s19 = sadd.s32 1, %s8990_s14 }
   0x5   : > { %p47_p0 = scmp.eq.s32.totalorder %s46_s18, 0  ;;  %p56_p1 = scmp.ne.s32.totalorder %s8990_s14, %s8986_s13 }
   0x6   : > { %p57_p2 = scmp.eq.s32.totalorder %s8994_s15, 0  ;;  %p62_p3 = scmp.ne.s32.totalorder %s8986_s13, %s8982_s12 }
   0x7   : > { %s9052_s20 = scalar_select %p47_p0, %s8990_s14, %s49_s19  }
   0x8   : > { %p58_p4 = por %p57_p2, %p56_p1  ;;  %p63_p5 = scmp.eq.s32.totalorder %s9039_s16, 0 }
   0x9   : > { %p8894_p6 = scmp.lt.s32.totalorder %s8994_s15, 23  ;;  %s140_s22 = sand.u32 1, %s8990_s14  }
   0xa   : > { %p9056_p7 = por %p63_p5, %p62_p3  ;;  %s7850_s23 = sshll.u32 %s140_s22, 13 }
   0xb   : > { %s8887_s24 = sshll.u32 %s8994_s15, 17  ;;  %s144_s28 = scalar_lea.vmem [#allocation3], %s7850_s23 }
   0xc   : > { %s9065_s27 = scalar_lea.hbm %s10353_s1, %s8887_s24  ;;  %s152_s29 = sshll.u32 %s144_s28, 4  ;;  %s9067_s29 = int_to_ptr.vmem [resolvable:$true] %s152_s29 }
   0xd   : > { %p9069_p8 = pnand %p8894_p6, %p58_p4  ;;  %s9074_s4 = scalar_lea.sflag [#allocation4], %s140_s22 }
   0xe   : > { %s8930_s5 = scalar_lea.hbm %s9065_s27, 131072  ;;  %s8935_s8 = scalar_lea.hbm %s10353_s1, 3014656 }
   0xf   : > { %p8931_p10 = scmp.ne.s32.totalorder %s9065_s27, %s8930_s5  ;;  %p8932_p11 = pneg %p9069_p8 }
  0x10   : > { %p8936_p0 = scmp.lt.u32.totalorder %s9065_s27, %s10353_s1  ;;  %p8937_p1 = scmp.lt.u32.totalorder %s8935_s8, %s8930_s5 }
  0x11   : > { %p8933_p12 = pnand %p8932_p11, %p8931_p10  ;;  %p8939_p3 = scmp.lt.u32.totalorder %s8930_s5, %s9065_s27 }
  0x12   : > { %p8938_p2 = por %p8937_p1, %p8936_p0 }
  0x13   : > { %p8934_p13 = pneg %p8933_p12 }
  0x14   : > { %p8940_p4 = por %p8939_p3, %p8938_p2 }
  0x16   : > { %p8941_p5 = pnand %p8940_p4, %p8934_p13 }
  0x18   : > { %8944 = shalt.err (!%p8941_p5)
}
  0x19   : > { %s8945_s11 = scalar_lea.vmem %s9067_s29, 131072  ;;  %s8996_s12 = smov [#allocation3]  }
  0x1a   : > { %p8946_p6 = scmp.ne.s32.totalorder %s9067_s29, %s8945_s11  ;;  %s8950_s18 = sshll.u32 %s8996_s12, 4  ;;  %s8951_s18 = int_to_ptr.vmem [resolvable:$false] %s8950_s18 }
  0x1b   : > { %s8952_s19 = scalar_lea.vmem %s8951_s18, 262144  ;;  %p8953_p9 = scmp.lt.s32.totalorder %s9067_s29, %s8951_s18 }
  0x1c   : > { %p8948_p10 = pnand %p8946_p6, %p8932_p11  ;;  %p8954_p0 = scmp.lt.s32.totalorder %s8952_s19, %s8945_s11 }
  0x1e   : > { %p8949_p12 = pneg %p8948_p10  ;;  %p8955_p1 = por %p8954_p0, %p8953_p9 }
  0x20   : > { %p8956_p2 = pnand %p8955_p1, %p8949_p12 }
  0x22   : > { %8959 = shalt.err (!%p8956_p2)
}
  0x23   : > { %s8997_s22 = smov 512   ;;  %s8998_s23 = smov 32  }
  0x24   : > { %8893 = dma.hbm_to_vmem [thread:$0]  (!%p9069_p8), %s9065_s27, 131072, %s9067_s29, %s9074_s4, %s8997_s22, %s8997_s22, %s8998_s23  }
  0x25   : > { %p160_p11 = scmp.lt.s32.totalorder %s8994_s15, 24  ;;  %p10358_p13 = scmp.ge.s32.totalorder %s8994_s15, 1 }
  0x27   : > { %p161_p3 = pnand %p10358_p13, %p160_p11 }
  0x28   : > { %s166_s24 = sand.u32 (!%p161_p3), 1, %s8986_s13  }
  0x29   : > { %164 = sbr.rel (%p161_p3) target bundleno = 1321 (0x529), region = 32  ;;  %s7855_s25 = sshll.u32 (!%p161_p3), %s166_s24, 13 }
  0x2a   : > { %s167_s26 = scalar_lea.sflag (!%p161_p3), [#allocation4], %s166_s24  ;;  %s9106_s28 = scalar_lea.vmem (!%p161_p3), [#allocation3], %s7855_s25 }
  0x30   : > { %8977 = dma.done.wait (%p9056_p7), %s167_s26, 131072  }
  0x31   : > { %8979 = vsyncadd (%p9056_p7), %s167_s26, 4294836224  ;;  %s7856_s5 = sshll.u32 %s9039_s16, 4  ;;  %p7858_p8 = scmp.ne.s32.totalorder %s9039_s16, 0 }
  0x32   : > { %p194_p9 = scmp.lt.s32.totalorder %s7856_s5, 367  ;;  %vm211_vm0 = vcmask (!%p7858_p8), 64512   ;;  %v8999_v0 = vmov (!%p7858_p8), 0.0  }
  0x33   : > { %203 = sbr.rel (%p7858_p8) target bundleno = 58 (0x3a), region = 40  ;;  %204 = vst [vmem:[#allocation2] sm:$0xff] (!%p7858_p8), %v8999_v0  ;;  %205 = vst [vmem:[#allocation2 + $0x8] sm:$0xff] (!%p7858_p8), %v8999_v0 }
  0x34   : > { %s10364_s5 = smov (!%p194_p9, %s7856_s5), 367  ;;  %206 = vst [vmem:[#allocation2 + $0x10] sm:$0xff] (!%p7858_p8), %v8999_v0  ;;  %207 = vst [vmem:[#allocation2 + $0x18] sm:$0xff] (!%p7858_p8), %v8999_v0 }
  0x35   : > { %s7857_s27 = sshll.u32 %s10364_s5, 3  ;;  %208 = vst [vmem:[#allocation2 + $0x20] sm:$0xff] (!%p7858_p8), %v8999_v0  ;;  %209 = vst [vmem:[#allocation2 + $0x28] sm:$0xff] (!%p7858_p8), %v8999_v0 }
  0x36   : > { %s9116_s30 = scalar_lea.vmem %s10352_s0, %s7857_s27  ;;  %210 = vst [vmem:[#allocation2 + $0x30] sm:$0xff] (!%p7858_p8), %v8999_v0  ;;  %212 = vst.msk [vmem:[#allocation2 + $0x38] sm:$0xff] (!%p7858_p8), %vm211_vm0, %v8999_v0 }
  0x3a PF: > { %v253_v1 = vld [vmem:[%s9106_s28] sm:$0xff]  ;;  %v222_v54 = vld [vmem:[%s9116_s30 + $0x8] sm:$0xff]  ;;  %v224_v55 = vld [vmem:[%s9116_s30 + $0x18] sm:$0xff]  ;;  %vm7724_vm1 = vcmask 64512   ;;  %p8883_p7 = scmp.ne.s32.totalorder %s9039_s16, 22 }
  0x3b   : > { %v257_v2 = vld [vmem:[%s9106_s28 + $0x20] sm:$0xff]  ;;  %v9151_v59 = vpack.c.bf16 %v222_v54, %v222_v54  ;;  %v9153_v60 = vpack.c.bf16 %v224_v55, %v224_v55 }
  0x3c   : > { %v381_v3 = vld [vmem:[%s9106_s28 + $0x400] sm:$0xff]  ;;  %v7860_v4 = vcombine.high %v253_v1, %v257_v2  ;;  %v7859_v6 = vcombine.low %v253_v1, %v257_v2 }
  0x3d   : > { %v385_v5 = vld [vmem:[%s9106_s28 + $0x420] sm:$0xff]  ;;  %6429 = vmatprep.mubr.bf16.mxu0 %v9151_v59  ;;  %6470 = vmatprep.mubr.bf16.mxu1 %v9153_v60 }
  0x3e   : > { %v261_v7 = vld [vmem:[%s9106_s28 + $0x40] sm:$0xff]  ;;  %v7988_v9 = vcombine.high %v381_v3, %v385_v5  ;;  %v7987_v10 = vcombine.low %v381_v3, %v385_v5  ;;  %6397 = vmatprep.subr.bf16.mxu0 %v7860_v4 }
  0x3f   : > { %v265_v8 = vld [vmem:[%s9106_s28 + $0x60] sm:$0xff]  ;;  %6398 = vmatpush1.bf16.msra.mxu0 %v7859_v6 }
  0x40   : > { %v7868_v11 = vcombine.high %v261_v7, %v265_v8  ;;  %v389_v12 = vld [vmem:[%s9106_s28 + $0x440] sm:$0xff]  ;;  %6438 = vmatprep.subr.bf16.mxu1 %v7988_v9  ;;  %v7867_v19 = vcombine.low %v261_v7, %v265_v8 }
  0x41   : > { %v393_v13 = vld [vmem:[%s9106_s28 + $0x460] sm:$0xff]  ;;  %6439 = vmatpush1.bf16.msra.mxu1 %v7987_v10 }
  0x42   : > { %v269_v14 = vld [vmem:[%s9106_s28 + $0x80] sm:$0xff]  ;;  %v7996_v15 = vcombine.high %v389_v12, %v393_v13  ;;  %6399 = vmatprep.subr.bf16.mxu0 %v7868_v11  ;;  %v7995_v20 = vcombine.low %v389_v12, %v393_v13 }
  0x43   : > { %v273_v16 = vld [vmem:[%s9106_s28 + $0xa0] sm:$0xff]  ;;  %6400 = vmatpush1.bf16.msra.mxu0 %v7867_v19 }
  0x44   : > { %v397_v17 = vld [vmem:[%s9106_s28 + $0x480] sm:$0xff]  ;;  %v7876_v21 = vcombine.high %v269_v14, %v273_v16  ;;  %6440 = vmatprep.subr.bf16.mxu1 %v7996_v15  ;;  %v7875_v27 = vcombine.low %v269_v14, %v273_v16 }
  0x45   : > { %v401_v18 = vld [vmem:[%s9106_s28 + $0x4a0] sm:$0xff]  ;;  %6441 = vmatpush1.bf16.msra.mxu1 %v7995_v20 }
  0x46   : > { %v8004_v22 = vcombine.high %v397_v17, %v401_v18  ;;  %v277_v23 = vld [vmem:[%s9106_s28 + $0xc0] sm:$0xff]  ;;  %6401 = vmatprep.subr.bf16.mxu0 %v7876_v21  ;;  %v8003_v28 = vcombine.low %v397_v17, %v401_v18 }
  0x47   : > { %v281_v24 = vld [vmem:[%s9106_s28 + $0xe0] sm:$0xff]  ;;  %6402 = vmatpush1.bf16.msra.mxu0 %v7875_v27 }
  0x48   : > { %v405_v25 = vld [vmem:[%s9106_s28 + $0x4c0] sm:$0xff]  ;;  %v7884_v29 = vcombine.high %v277_v23, %v281_v24  ;;  %6442 = vmatprep.subr.bf16.mxu1 %v8004_v22  ;;  %v7883_v35 = vcombine.low %v277_v23, %v281_v24 }
  0x49   : > { %v409_v26 = vld [vmem:[%s9106_s28 + $0x4e0] sm:$0xff]  ;;  %6443 = vmatpush1.bf16.msra.mxu1 %v8003_v28 }
  0x4a   : > { %v8012_v30 = vcombine.high %v405_v25, %v409_v26  ;;  %v285_v31 = vld [vmem:[%s9106_s28 + $0x100] sm:$0xff]  ;;  %6403 = vmatprep.subr.bf16.mxu0 %v7884_v29  ;;  %v8011_v36 = vcombine.low %v405_v25, %v409_v26 }
  0x4b   : > { %v289_v32 = vld [vmem:[%s9106_s28 + $0x120] sm:$0xff]  ;;  %6404 = vmatpush1.bf16.msra.mxu0 %v7883_v35 }
  0x4c   : > { %v413_v33 = vld [vmem:[%s9106_s28 + $0x500] sm:$0xff]  ;;  %v7892_v37 = vcombine.high %v285_v31, %v289_v32  ;;  %6444 = vmatprep.subr.bf16.mxu1 %v8012_v30  ;;  %v7891_v43 = vcombine.low %v285_v31, %v289_v32 }
  0x4d   : > { %v417_v34 = vld [vmem:[%s9106_s28 + $0x520] sm:$0xff]  ;;  %6445 = vmatpush1.bf16.msra.mxu1 %v8011_v36 }
  0x4e   : > { %v8020_v38 = vcombine.high %v413_v33, %v417_v34  ;;  %v293_v39 = vld [vmem:[%s9106_s28 + $0x140] sm:$0xff]  ;;  %6405 = vmatprep.subr.bf16.mxu0 %v7892_v37  ;;  %v8019_v44 = vcombine.low %v413_v33, %v417_v34 }
  0x4f   : > { %v297_v40 = vld [vmem:[%s9106_s28 + $0x160] sm:$0xff]  ;;  %6406 = vmatpush1.bf16.msra.mxu0 %v7891_v43 }
  0x50   : > { %v421_v41 = vld [vmem:[%s9106_s28 + $0x540] sm:$0xff]  ;;  %v7900_v45 = vcombine.high %v293_v39, %v297_v40  ;;  %6446 = vmatprep.subr.bf16.mxu1 %v8020_v38  ;;  %v7899_v51 = vcombine.low %v293_v39, %v297_v40 }
  0x51   : > { %v425_v42 = vld [vmem:[%s9106_s28 + $0x560] sm:$0xff]  ;;  %6447 = vmatpush1.bf16.msra.mxu1 %v8019_v44 }
  0x52   : > { %v8028_v46 = vcombine.high %v421_v41, %v425_v42  ;;  %v301_v47 = vld [vmem:[%s9106_s28 + $0x180] sm:$0xff]  ;;  %6407 = vmatprep.subr.bf16.mxu0 %v7900_v45  ;;  %v8027_v52 = vcombine.low %v421_v41, %v425_v42 }
  0x53   : > { %v305_v48 = vld [vmem:[%s9106_s28 + $0x1a0] sm:$0xff]  ;;  %6408 = vmatpush1.bf16.msra.mxu0 %v7899_v51 }
  0x54   : > { %v429_v49 = vld [vmem:[%s9106_s28 + $0x580] sm:$0xff]  ;;  %v7908_v53 = vcombine.high %v301_v47, %v305_v48  ;;  %6448 = vmatprep.subr.bf16.mxu1 %v8028_v46  ;;  %v7907_v63 = vcombine.low %v301_v47, %v305_v48 }
  0x55   : > { %v433_v50 = vld [vmem:[%s9106_s28 + $0x5a0] sm:$0xff]  ;;  %6449 = vmatpush1.bf16.msra.mxu1 %v8027_v52 }
  0x56   : > { %v8036_v56 = vcombine.high %v429_v49, %v433_v50  ;;  %v309_v57 = vld [vmem:[%s9106_s28 + $0x1c0] sm:$0xff]  ;;  %6409 = vmatprep.subr.bf16.mxu0 %v7908_v53  ;;  %v8035_v0 = vcombine.low %v429_v49, %v433_v50 }
  0x57   : > { %v313_v58 = vld [vmem:[%s9106_s28 + $0x1e0] sm:$0xff]  ;;  %6410 = vmatpush1.bf16.msra.mxu0 %v7907_v63 }
  0x58   : > { %v437_v61 = vld [vmem:[%s9106_s28 + $0x5c0] sm:$0xff]  ;;  %v7916_v1 = vcombine.high %v309_v57, %v313_v58  ;;  %6450 = vmatprep.subr.bf16.mxu1 %v8036_v56  ;;  %v7915_v7 = vcombine.low %v309_v57, %v313_v58 }
  0x59   : > { %v441_v62 = vld [vmem:[%s9106_s28 + $0x5e0] sm:$0xff]  ;;  %6451 = vmatpush1.bf16.msra.mxu1 %v8035_v0 }
  0x5a   : > { %v8044_v2 = vcombine.high %v437_v61, %v441_v62  ;;  %v317_v3 = vld [vmem:[%s9106_s28 + $0x200] sm:$0xff]  ;;  %6411 = vmatprep.subr.bf16.mxu0 %v7916_v1  ;;  %v8043_v8 = vcombine.low %v437_v61, %v441_v62 }
  0x5b   : > { %v321_v4 = vld [vmem:[%s9106_s28 + $0x220] sm:$0xff]  ;;  %6412 = vmatpush1.bf16.msra.mxu0 %v7915_v7 }
  0x5c   : > { %v445_v5 = vld [vmem:[%s9106_s28 + $0x600] sm:$0xff]  ;;  %v7924_v9 = vcombine.high %v317_v3, %v321_v4  ;;  %6452 = vmatprep.subr.bf16.mxu1 %v8044_v2  ;;  %v7923_v15 = vcombine.low %v317_v3, %v321_v4 }
  0x5d   : > { %v449_v6 = vld [vmem:[%s9106_s28 + $0x620] sm:$0xff]  ;;  %6453 = vmatpush1.bf16.msra.mxu1 %v8043_v8 }
  0x5e   : > { %v8052_v10 = vcombine.high %v445_v5, %v449_v6  ;;  %v325_v11 = vld [vmem:[%s9106_s28 + $0x240] sm:$0xff]  ;;  %6413 = vmatprep.subr.bf16.mxu0 %v7924_v9  ;;  %v8051_v16 = vcombine.low %v445_v5, %v449_v6 }
  0x5f   : > { %v329_v12 = vld [vmem:[%s9106_s28 + $0x260] sm:$0xff]  ;;  %6414 = vmatpush1.bf16.msra.mxu0 %v7923_v15 }
  0x60   : > { %v453_v13 = vld [vmem:[%s9106_s28 + $0x640] sm:$0xff]  ;;  %v7932_v17 = vcombine.high %v325_v11, %v329_v12  ;;  %6454 = vmatprep.subr.bf16.mxu1 %v8052_v10  ;;  %v7931_v23 = vcombine.low %v325_v11, %v329_v12  ;;  %v223_v12 = vld [vmem:[%s9116_s30 + $0x10] sm:$0xff] }
  0x61   : > { %v457_v14 = vld [vmem:[%s9106_s28 + $0x660] sm:$0xff]  ;;  %6455 = vmatpush1.bf16.msra.mxu1 %v8051_v16 }
  0x62   : > { %v8060_v18 = vcombine.high %v453_v13, %v457_v14  ;;  %v333_v19 = vld [vmem:[%s9106_s28 + $0x280] sm:$0xff]  ;;  %6415 = vmatprep.subr.bf16.mxu0 %v7932_v17  ;;  %v8059_v24 = vcombine.low %v453_v13, %v457_v14 }
  0x63   : > { %v337_v20 = vld [vmem:[%s9106_s28 + $0x2a0] sm:$0xff]  ;;  %6416 = vmatpush1.bf16.msra.mxu0 %v7931_v23  ;;  %v228_v23 = vld [vmem:[%s9116_s30 + $0x38] sm:$0xff] }
  0x64   : > { %v461_v21 = vld [vmem:[%s9106_s28 + $0x680] sm:$0xff]  ;;  %v7940_v25 = vcombine.high %v333_v19, %v337_v20  ;;  %6456 = vmatprep.subr.bf16.mxu1 %v8060_v18  ;;  %v7939_v31 = vcombine.low %v333_v19, %v337_v20  ;;  %v226_v20 = vld [vmem:[%s9116_s30 + $0x28] sm:$0xff] }
  0x65   : > { %v465_v22 = vld [vmem:[%s9106_s28 + $0x6a0] sm:$0xff]  ;;  %6457 = vmatpush1.bf16.msra.mxu1 %v8059_v24 }
  0x66   : > { %v8068_v26 = vcombine.high %v461_v21, %v465_v22  ;;  %v341_v27 = vld [vmem:[%s9106_s28 + $0x2c0] sm:$0xff]  ;;  %6417 = vmatprep.subr.bf16.mxu0 %v7940_v25  ;;  %v8067_v32 = vcombine.low %v461_v21, %v465_v22  ;;  %v9204_v21 = vpack.c.bf16 %v223_v12, %v223_v12 }
  0x67   : > { %v345_v28 = vld [vmem:[%s9106_s28 + $0x2e0] sm:$0xff]  ;;  %6418 = vmatpush1.bf16.msra.mxu0 %v7939_v31 }
  0x68   : > { %v469_v29 = vld [vmem:[%s9106_s28 + $0x6c0] sm:$0xff]  ;;  %v7948_v33 = vcombine.high %v341_v27, %v345_v28  ;;  %6458 = vmatprep.subr.bf16.mxu1 %v8068_v26  ;;  %v7947_v39 = vcombine.low %v341_v27, %v345_v28 }
  0x69   : > { %v473_v30 = vld [vmem:[%s9106_s28 + $0x6e0] sm:$0xff]  ;;  %6459 = vmatpush1.bf16.msra.mxu1 %v8067_v32  ;;  %v9214_v32 = vpack.c.bf16 %v228_v23, %v228_v23 }
  0x6a   : > { %v8076_v34 = vcombine.high %v469_v29, %v473_v30  ;;  %v349_v35 = vld [vmem:[%s9106_s28 + $0x300] sm:$0xff]  ;;  %6419 = vmatprep.subr.bf16.mxu0 %v7948_v33  ;;  %v8075_v40 = vcombine.low %v469_v29, %v473_v30  ;;  %v9209_v29 = vpack.c.bf16 %v226_v20, %v226_v20 }
  0x6b   : > { %v353_v36 = vld [vmem:[%s9106_s28 + $0x320] sm:$0xff]  ;;  %6420 = vmatpush1.bf16.msra.mxu0 %v7947_v39 }
  0x6c   : > { %v477_v37 = vld [vmem:[%s9106_s28 + $0x700] sm:$0xff]  ;;  %v7956_v41 = vcombine.high %v349_v35, %v353_v36  ;;  %6460 = vmatprep.subr.bf16.mxu1 %v8076_v34  ;;  %v7955_v47 = vcombine.low %v349_v35, %v353_v36 }
  0x6d   : > { %v481_v38 = vld [vmem:[%s9106_s28 + $0x720] sm:$0xff]  ;;  %6461 = vmatpush1.bf16.msra.mxu1 %v8075_v40 }
  0x6e   : > { %v8084_v42 = vcombine.high %v477_v37, %v481_v38  ;;  %v357_v43 = vld [vmem:[%s9106_s28 + $0x340] sm:$0xff]  ;;  %6421 = vmatprep.subr.bf16.mxu0 %v7956_v41  ;;  %v8083_v48 = vcombine.low %v477_v37, %v481_v38 }
  0x6f   : > { %v361_v44 = vld [vmem:[%s9106_s28 + $0x360] sm:$0xff]  ;;  %6422 = vmatpush1.bf16.msra.mxu0 %v7955_v47 }
  0x70   : > { %v485_v45 = vld [vmem:[%s9106_s28 + $0x740] sm:$0xff]  ;;  %v7964_v49 = vcombine.high %v357_v43, %v361_v44  ;;  %6462 = vmatprep.subr.bf16.mxu1 %v8084_v42  ;;  %v7963_v55 = vcombine.low %v357_v43, %v361_v44 }
  0x71   : > { %v489_v46 = vld [vmem:[%s9106_s28 + $0x760] sm:$0xff]  ;;  %6463 = vmatpush1.bf16.msra.mxu1 %v8083_v48 }
  0x72   : > { %v8092_v50 = vcombine.high %v485_v45, %v489_v46  ;;  %v365_v51 = vld [vmem:[%s9106_s28 + $0x380] sm:$0xff]  ;;  %6423 = vmatprep.subr.bf16.mxu0 %v7964_v49  ;;  %v8091_v56 = vcombine.low %v485_v45, %v489_v46 }
  0x73   : > { %v369_v52 = vld [vmem:[%s9106_s28 + $0x3a0] sm:$0xff]  ;;  %6424 = vmatpush1.bf16.msra.mxu0 %v7963_v55 }
  0x74   : > { %v493_v53 = vld [vmem:[%s9106_s28 + $0x780] sm:$0xff]  ;;  %v7972_v57 = vcombine.high %v365_v51, %v369_v52  ;;  %6464 = vmatprep.subr.bf16.mxu1 %v8092_v50  ;;  %v7971_v1 = vcombine.low %v365_v51, %v369_v52 }
  0x75   : > { %v497_v54 = vld [vmem:[%s9106_s28 + $0x7a0] sm:$0xff]  ;;  %6465 = vmatpush1.bf16.msra.mxu1 %v8091_v56 }
  0x76   : > { %v8100_v58 = vcombine.high %v493_v53, %v497_v54  ;;  %v373_v61 = vld [vmem:[%s9106_s28 + $0x3c0] sm:$0xff]  ;;  %6425 = vmatprep.subr.bf16.mxu0 %v7972_v57  ;;  %v8099_v2 = vcombine.low %v493_v53, %v497_v54 }
  0x77   : > { %v377_v62 = vld [vmem:[%s9106_s28 + $0x3e0] sm:$0xff]  ;;  %6426 = vmatpush1.bf16.msra.mxu0 %v7971_v1 }
  0x78   : > { %v501_v63 = vld [vmem:[%s9106_s28 + $0x7c0] sm:$0xff]  ;;  %v7980_v3 = vcombine.high %v373_v61, %v377_v62  ;;  %6466 = vmatprep.subr.bf16.mxu1 %v8100_v58  ;;  %v7979_v9 = vcombine.low %v373_v61, %v377_v62 }
  0x79   : > { %v505_v0 = vld [vmem:[%s9106_s28 + $0x7e0] sm:$0xff]  ;;  %6467 = vmatpush1.bf16.msra.mxu1 %v8099_v2 }
  0x7a   : > { %v8108_v4 = vcombine.high %v501_v63, %v505_v0  ;;  %v509_v5 = vld [vmem:[%s9106_s28 + $0x800] sm:$0xff]  ;;  %6427 = vmatprep.subr.bf16.mxu0 %v7980_v3  ;;  %v8107_v11 = vcombine.low %v501_v63, %v505_v0 }
  0x7b   : > { %v513_v6 = vld [vmem:[%s9106_s28 + $0x820] sm:$0xff]  ;;  %6428 = vmatpush1.bf16.msra.mxu0 %v7979_v9 }
  0x7c   : > { %v637_v7 = vld [vmem:[%s9106_s28 + $0xc00] sm:$0xff]  ;;  %v8116_v13 = vcombine.high %v509_v5, %v513_v6  ;;  %6468 = vmatprep.subr.bf16.mxu1 %v8108_v4  ;;  %v8115_v22 = vcombine.low %v509_v5, %v513_v6 }
  0x7d   : > { %v641_v8 = vld [vmem:[%s9106_s28 + $0xc20] sm:$0xff]  ;;  %6469 = vmatpush1.bf16.msra.mxu1 %v8107_v11 }
  0x7e   : > { %v221_v10 = vld [vmem:[%s9116_s30] sm:$0xff]  ;;  %v8244_v14 = vcombine.high %v637_v7, %v641_v8  ;;  %6479 = vmatprep.subr.bf16.mxu0 %v8116_v13  ;;  %v8243_v24 = vcombine.low %v637_v7, %v641_v8 }
  0x7f   : > { %v517_v15 = vld [vmem:[%s9106_s28 + $0x840] sm:$0xff]  ;;  %v9199_v17 = vpack.c.bf16 %v221_v10, %v221_v10 }
  0x80   : > { %v521_v16 = vld [vmem:[%s9106_s28 + $0x860] sm:$0xff]  ;;  %6520 = vmatprep.subr.bf16.mxu1 %v8244_v14  ;;  %6471 = vmatmul.mubr.bf16.vlgmr.msra.gmra.mrb[0].mxu1 %v9204_v21 }
  0x81   : > { %v645_v18 = vld [vmem:[%s9106_s28 + $0xc40] sm:$0xff]  ;;  %v8124_v25 = vcombine.high %v517_v15, %v521_v16  ;;  %6430 = vmatmul.mubr.bf16.vlgmr.msra.gmra.mrb[0].mxu0 %v9199_v17  ;;  %v8123_v33 = vcombine.low %v517_v15, %v521_v16  ;;  %6521 = vmatpush1.bf16.msra.mxu1 %v8243_v24 }
  0x82   : > { %v649_v19 = vld [vmem:[%s9106_s28 + $0xc60] sm:$0xff]  ;;  %6480 = vmatpush1.bf16.msra.mxu0 %v8115_v22  ;;  %6511 = vmatprep.mubr.bf16.mxu0 %v9209_v29 }
  0x83   : > { %v8252_v26 = vcombine.high %v645_v18, %v649_v19  ;;  %v525_v27 = vld [vmem:[%s9106_s28 + $0x880] sm:$0xff]  ;;  %6481 = vmatprep.subr.bf16.mxu0 %v8124_v25  ;;  %v8251_v34 = vcombine.low %v645_v18, %v649_v19  ;;  %6552 = vmatprep.mubr.bf16.mxu1 %v9214_v32 }
  0x84   : > { %v529_v28 = vld [vmem:[%s9106_s28 + $0x8a0] sm:$0xff] }
  0x85   : > { %v653_v30 = vld [vmem:[%s9106_s28 + $0xc80] sm:$0xff]  ;;  %v8132_v35 = vcombine.high %v525_v27, %v529_v28  ;;  %6522 = vmatprep.subr.bf16.mxu1 %v8252_v26  ;;  %v8131_v41 = vcombine.low %v525_v27, %v529_v28 }
  0x86   : > { %v657_v31 = vld [vmem:[%s9106_s28 + $0xca0] sm:$0xff]  ;;  %6482 = vmatpush1.bf16.msra.mxu0 %v8123_v33  ;;  %6523 = vmatpush1.bf16.msra.mxu1 %v8251_v34 }
  0x87   : > { %v8260_v36 = vcombine.high %v653_v30, %v657_v31  ;;  %v533_v37 = vld [vmem:[%s9106_s28 + $0x8c0] sm:$0xff]  ;;  %6483 = vmatprep.subr.bf16.mxu0 %v8132_v35  ;;  %v8259_v42 = vcombine.low %v653_v30, %v657_v31 }
  0x88   : > { %v537_v38 = vld [vmem:[%s9106_s28 + $0x8e0] sm:$0xff] }
  0x89   : > { %v661_v39 = vld [vmem:[%s9106_s28 + $0xcc0] sm:$0xff]  ;;  %v8140_v43 = vcombine.high %v533_v37, %v537_v38  ;;  %6524 = vmatprep.subr.bf16.mxu1 %v8260_v36  ;;  %v8139_v49 = vcombine.low %v533_v37, %v537_v38 }
  0x8a   : > { %v665_v40 = vld [vmem:[%s9106_s28 + $0xce0] sm:$0xff]  ;;  %6484 = vmatpush1.bf16.msra.mxu0 %v8131_v41  ;;  %6525 = vmatpush1.bf16.msra.mxu1 %v8259_v42 }
  0x8b   : > { %v8268_v44 = vcombine.high %v661_v39, %v665_v40  ;;  %v541_v45 = vld [vmem:[%s9106_s28 + $0x900] sm:$0xff]  ;;  %6485 = vmatprep.subr.bf16.mxu0 %v8140_v43  ;;  %v8267_v50 = vcombine.low %v661_v39, %v665_v40 }
  0x8c   : > { %v545_v46 = vld [vmem:[%s9106_s28 + $0x920] sm:$0xff] }
  0x8d   : > { %v669_v47 = vld [vmem:[%s9106_s28 + $0xd00] sm:$0xff]  ;;  %v8148_v51 = vcombine.high %v541_v45, %v545_v46  ;;  %6526 = vmatprep.subr.bf16.mxu1 %v8268_v44  ;;  %v8147_v57 = vcombine.low %v541_v45, %v545_v46 }
  0x8e   : > { %v673_v48 = vld [vmem:[%s9106_s28 + $0xd20] sm:$0xff]  ;;  %6486 = vmatpush1.bf16.msra.mxu0 %v8139_v49  ;;  %6527 = vmatpush1.bf16.msra.mxu1 %v8267_v50 }
  0x8f   : > { %v8276_v52 = vcombine.high %v669_v47, %v673_v48  ;;  %v549_v53 = vld [vmem:[%s9106_s28 + $0x940] sm:$0xff]  ;;  %6487 = vmatprep.subr.bf16.mxu0 %v8148_v51  ;;  %v8275_v58 = vcombine.low %v669_v47, %v673_v48 }
  0x90   : > { %v553_v54 = vld [vmem:[%s9106_s28 + $0x960] sm:$0xff] }
  0x91   : > { %v677_v55 = vld [vmem:[%s9106_s28 + $0xd40] sm:$0xff]  ;;  %v8156_v61 = vcombine.high %v549_v53, %v553_v54  ;;  %6528 = vmatprep.subr.bf16.mxu1 %v8276_v52  ;;  %v8155_v3 = vcombine.low %v549_v53, %v553_v54 }
  0x92   : > { %v681_v56 = vld [vmem:[%s9106_s28 + $0xd60] sm:$0xff]  ;;  %6488 = vmatpush1.bf16.msra.mxu0 %v8147_v57  ;;  %6529 = vmatpush1.bf16.msra.mxu1 %v8275_v58 }
  0x93   : > { %v8284_v62 = vcombine.high %v677_v55, %v681_v56  ;;  %v557_v63 = vld [vmem:[%s9106_s28 + $0x980] sm:$0xff]  ;;  %6489 = vmatprep.subr.bf16.mxu0 %v8156_v61  ;;  %v8283_v4 = vcombine.low %v677_v55, %v681_v56 }
  0x94   : > { %v561_v0 = vld [vmem:[%s9106_s28 + $0x9a0] sm:$0xff] }
  0x95   : > { %v685_v1 = vld [vmem:[%s9106_s28 + $0xd80] sm:$0xff]  ;;  %v8164_v5 = vcombine.high %v557_v63, %v561_v0  ;;  %6530 = vmatprep.subr.bf16.mxu1 %v8284_v62  ;;  %v8163_v11 = vcombine.low %v557_v63, %v561_v0 }
  0x96   : > { %v689_v2 = vld [vmem:[%s9106_s28 + $0xda0] sm:$0xff]  ;;  %6490 = vmatpush1.bf16.msra.mxu0 %v8155_v3  ;;  %6531 = vmatpush1.bf16.msra.mxu1 %v8283_v4 }
  0x97   : > { %v8292_v6 = vcombine.high %v685_v1, %v689_v2  ;;  %v565_v7 = vld [vmem:[%s9106_s28 + $0x9c0] sm:$0xff]  ;;  %6491 = vmatprep.subr.bf16.mxu0 %v8164_v5  ;;  %v8291_v12 = vcombine.low %v685_v1, %v689_v2 }
  0x98   : > { %v569_v8 = vld [vmem:[%s9106_s28 + $0x9e0] sm:$0xff] }
  0x99   : > { %v693_v9 = vld [vmem:[%s9106_s28 + $0xdc0] sm:$0xff]  ;;  %v8172_v13 = vcombine.high %v565_v7, %v569_v8  ;;  %6532 = vmatprep.subr.bf16.mxu1 %v8292_v6  ;;  %v8171_v20 = vcombine.low %v565_v7, %v569_v8 }
  0x9a   : > { %v697_v10 = vld [vmem:[%s9106_s28 + $0xde0] sm:$0xff]  ;;  %6492 = vmatpush1.bf16.msra.mxu0 %v8163_v11  ;;  %6533 = vmatpush1.bf16.msra.mxu1 %v8291_v12 }
  0x9b   : > { %v8300_v14 = vcombine.high %v693_v9, %v697_v10  ;;  %v573_v15 = vld [vmem:[%s9106_s28 + $0xa00] sm:$0xff]  ;;  %6493 = vmatprep.subr.bf16.mxu0 %v8172_v13  ;;  %v8299_v22 = vcombine.low %v693_v9, %v697_v10 }
  0x9c   : > { %v577_v16 = vld [vmem:[%s9106_s28 + $0xa20] sm:$0xff] }
  0x9d   : > { %v701_v18 = vld [vmem:[%s9106_s28 + $0xe00] sm:$0xff]  ;;  %v8180_v23 = vcombine.high %v573_v15, %v577_v16  ;;  %6534 = vmatprep.subr.bf16.mxu1 %v8300_v14  ;;  %v8179_v30 = vcombine.low %v573_v15, %v577_v16 }
  0x9e   : > { %v705_v19 = vld [vmem:[%s9106_s28 + $0xe20] sm:$0xff]  ;;  %6494 = vmatpush1.bf16.msra.mxu0 %v8171_v20  ;;  %6535 = vmatpush1.bf16.msra.mxu1 %v8299_v22 }
  0x9f   : > { %v8308_v24 = vcombine.high %v701_v18, %v705_v19  ;;  %v581_v25 = vld [vmem:[%s9106_s28 + $0xa40] sm:$0xff]  ;;  %6495 = vmatprep.subr.bf16.mxu0 %v8180_v23  ;;  %v8307_v31 = vcombine.low %v701_v18, %v705_v19 }
  0xa0   : > { %v585_v26 = vld [vmem:[%s9106_s28 + $0xa60] sm:$0xff] }
  0xa1   : > { %v709_v27 = vld [vmem:[%s9106_s28 + $0xe40] sm:$0xff]  ;;  %v8188_v33 = vcombine.high %v581_v25, %v585_v26  ;;  %6536 = vmatprep.subr.bf16.mxu1 %v8308_v24  ;;  %v8187_v39 = vcombine.low %v581_v25, %v585_v26 }
  0xa2   : > { %v713_v28 = vld [vmem:[%s9106_s28 + $0xe60] sm:$0xff]  ;;  %6496 = vmatpush1.bf16.msra.mxu0 %v8179_v30  ;;  %6537 = vmatpush1.bf16.msra.mxu1 %v8307_v31  ;;  %v227_v31 = vld [vmem:[%s9116_s30 + $0x30] sm:$0xff] }
  0xa3   : > { %v8316_v34 = vcombine.high %v709_v27, %v713_v28  ;;  %v589_v35 = vld [vmem:[%s9106_s28 + $0xa80] sm:$0xff]  ;;  %6497 = vmatprep.subr.bf16.mxu0 %v8188_v33  ;;  %v8315_v40 = vcombine.low %v709_v27, %v713_v28 }
  0xa4   : > { %v593_v36 = vld [vmem:[%s9106_s28 + $0xaa0] sm:$0xff] }
  0xa5   : > { %v717_v37 = vld [vmem:[%s9106_s28 + $0xe80] sm:$0xff]  ;;  %v8196_v41 = vcombine.high %v589_v35, %v593_v36  ;;  %6538 = vmatprep.subr.bf16.mxu1 %v8316_v34  ;;  %v8195_v47 = vcombine.low %v589_v35, %v593_v36 }
  0xa6   : > { %v721_v38 = vld [vmem:[%s9106_s28 + $0xea0] sm:$0xff]  ;;  %6498 = vmatpush1.bf16.msra.mxu0 %v8187_v39  ;;  %6539 = vmatpush1.bf16.msra.mxu1 %v8315_v40  ;;  %v230_v40 = vld [vmem:[%s9116_s30 + $0x48] sm:$0xff] }
  0xa7   : > { %v8324_v42 = vcombine.high %v717_v37, %v721_v38  ;;  %v597_v43 = vld [vmem:[%s9106_s28 + $0xac0] sm:$0xff]  ;;  %6499 = vmatprep.subr.bf16.mxu0 %v8196_v41  ;;  %v8323_v48 = vcombine.low %v717_v37, %v721_v38  ;;  %v9284_v41 = vpack.c.bf16 %v227_v31, %v227_v31 }
  0xa8   : > { %v601_v44 = vld [vmem:[%s9106_s28 + $0xae0] sm:$0xff] }
  0xa9   : > { %v725_v45 = vld [vmem:[%s9106_s28 + $0xec0] sm:$0xff]  ;;  %v8204_v49 = vcombine.high %v597_v43, %v601_v44  ;;  %6540 = vmatprep.subr.bf16.mxu1 %v8324_v42  ;;  %v8203_v55 = vcombine.low %v597_v43, %v601_v44  ;;  %v232_v43 = vld [vmem:[%s9116_s30 + $0x58] sm:$0xff] }
  0xaa   : > { %v729_v46 = vld [vmem:[%s9106_s28 + $0xee0] sm:$0xff]  ;;  %6500 = vmatpush1.bf16.msra.mxu0 %v8195_v47  ;;  %6541 = vmatpush1.bf16.msra.mxu1 %v8323_v48 }
  0xab   : > { %v8332_v50 = vcombine.high %v725_v45, %v729_v46  ;;  %v605_v51 = vld [vmem:[%s9106_s28 + $0xb00] sm:$0xff]  ;;  %6501 = vmatprep.subr.bf16.mxu0 %v8204_v49  ;;  %v8331_v56 = vcombine.low %v725_v45, %v729_v46  ;;  %v9289_v49 = vpack.c.bf16 %v230_v40, %v230_v40 }
  0xac   : > { %v609_v52 = vld [vmem:[%s9106_s28 + $0xb20] sm:$0xff] }
  0xad   : > { %v733_v53 = vld [vmem:[%s9106_s28 + $0xf00] sm:$0xff]  ;;  %v8212_v57 = vcombine.high %v605_v51, %v609_v52  ;;  %6542 = vmatprep.subr.bf16.mxu1 %v8332_v50  ;;  %v8211_v1 = vcombine.low %v605_v51, %v609_v52  ;;  %v9294_v52 = vpack.c.bf16 %v232_v43, %v232_v43 }
  0xae   : > { %v737_v54 = vld [vmem:[%s9106_s28 + $0xf20] sm:$0xff]  ;;  %6502 = vmatpush1.bf16.msra.mxu0 %v8203_v55  ;;  %6543 = vmatpush1.bf16.msra.mxu1 %v8331_v56 }
  0xaf   : > { %v8340_v58 = vcombine.high %v733_v53, %v737_v54  ;;  %v613_v61 = vld [vmem:[%s9106_s28 + $0xb40] sm:$0xff]  ;;  %6503 = vmatprep.subr.bf16.mxu0 %v8212_v57  ;;  %v8339_v2 = vcombine.low %v733_v53, %v737_v54 }
  0xb0   : > { %v617_v62 = vld [vmem:[%s9106_s28 + $0xb60] sm:$0xff] }
  0xb1   : > { %v741_v63 = vld [vmem:[%s9106_s28 + $0xf40] sm:$0xff]  ;;  %v8220_v3 = vcombine.high %v613_v61, %v617_v62  ;;  %6544 = vmatprep.subr.bf16.mxu1 %v8340_v58  ;;  %v8219_v9 = vcombine.low %v613_v61, %v617_v62 }
  0xb2   : > { %v745_v0 = vld [vmem:[%s9106_s28 + $0xf60] sm:$0xff]  ;;  %6504 = vmatpush1.bf16.msra.mxu0 %v8211_v1  ;;  %6545 = vmatpush1.bf16.msra.mxu1 %v8339_v2 }
  0xb3   : > { %v8348_v4 = vcombine.high %v741_v63, %v745_v0  ;;  %v621_v5 = vld [vmem:[%s9106_s28 + $0xb80] sm:$0xff]  ;;  %6505 = vmatprep.subr.bf16.mxu0 %v8220_v3  ;;  %v8347_v10 = vcombine.low %v741_v63, %v745_v0 }
  0xb4   : > { %v625_v6 = vld [vmem:[%s9106_s28 + $0xba0] sm:$0xff] }
  0xb5   : > { %v749_v7 = vld [vmem:[%s9106_s28 + $0xf80] sm:$0xff]  ;;  %v8228_v11 = vcombine.high %v621_v5, %v625_v6  ;;  %6546 = vmatprep.subr.bf16.mxu1 %v8348_v4  ;;  %v8227_v18 = vcombine.low %v621_v5, %v625_v6 }
  0xb6   : > { %v753_v8 = vld [vmem:[%s9106_s28 + $0xfa0] sm:$0xff]  ;;  %6506 = vmatpush1.bf16.msra.mxu0 %v8219_v9  ;;  %6547 = vmatpush1.bf16.msra.mxu1 %v8347_v10 }
  0xb7   : > { %v8356_v12 = vcombine.high %v749_v7, %v753_v8  ;;  %v629_v13 = vld [vmem:[%s9106_s28 + $0xbc0] sm:$0xff]  ;;  %6507 = vmatprep.subr.bf16.mxu0 %v8228_v11  ;;  %v8355_v19 = vcombine.low %v749_v7, %v753_v8 }
  0xb8   : > { %v633_v14 = vld [vmem:[%s9106_s28 + $0xbe0] sm:$0xff] }
  0xb9   : > { %v757_v15 = vld [vmem:[%s9106_s28 + $0xfc0] sm:$0xff]  ;;  %v8236_v20 = vcombine.high %v629_v13, %v633_v14  ;;  %6548 = vmatprep.subr.bf16.mxu1 %v8356_v12  ;;  %v8235_v27 = vcombine.low %v629_v13, %v633_v14 }
  0xba   : > { %v761_v16 = vld [vmem:[%s9106_s28 + $0xfe0] sm:$0xff]  ;;  %6508 = vmatpush1.bf16.msra.mxu0 %v8227_v18  ;;  %6549 = vmatpush1.bf16.msra.mxu1 %v8355_v19 }
  0xbb   : > { %v8364_v22 = vcombine.high %v757_v15, %v761_v16  ;;  %v765_v23 = vld [vmem:[%s9106_s28 + $0x1000] sm:$0xff]  ;;  %6509 = vmatprep.subr.bf16.mxu0 %v8236_v20  ;;  %v8363_v30 = vcombine.low %v757_v15, %v761_v16 }
  0xbc   : > { %v769_v24 = vld [vmem:[%s9106_s28 + $0x1020] sm:$0xff] }
  0xbd   : > { %v893_v25 = vld [vmem:[%s9106_s28 + $0x1400] sm:$0xff]  ;;  %v8372_v33 = vcombine.high %v765_v23, %v769_v24  ;;  %6550 = vmatprep.subr.bf16.mxu1 %v8364_v22  ;;  %v8371_v42 = vcombine.low %v765_v23, %v769_v24 }
  0xbe   : > { %v897_v26 = vld [vmem:[%s9106_s28 + $0x1420] sm:$0xff]  ;;  %6510 = vmatpush1.bf16.msra.mxu0 %v8235_v27  ;;  %6551 = vmatpush1.bf16.msra.mxu1 %v8363_v30 }
  0xbf   : > { %v225_v28 = vld [vmem:[%s9116_s30 + $0x20] sm:$0xff]  ;;  %v8500_v34 = vcombine.high %v893_v25, %v897_v26  ;;  %6561 = vmatprep.subr.bf16.mxu0 %v8372_v33  ;;  %v8499_v44 = vcombine.low %v893_v25, %v897_v26 }
  0xc0   : > { %v773_v35 = vld [vmem:[%s9106_s28 + $0x1040] sm:$0xff]  ;;  %v9279_v37 = vpack.c.bf16 %v225_v28, %v225_v28 }
  0xc1   : > { %v777_v36 = vld [vmem:[%s9106_s28 + $0x1060] sm:$0xff]  ;;  %6602 = vmatprep.subr.bf16.mxu1 %v8500_v34  ;;  %6553 = vmatmul.mubr.bf16.vlgmr.msra.gmra.mrb[4].mxu1 %v9284_v41 }
  0xc2   : > { %v901_v38 = vld [vmem:[%s9106_s28 + $0x1440] sm:$0xff]  ;;  %v8380_v45 = vcombine.high %v773_v35, %v777_v36  ;;  %6512 = vmatmul.mubr.bf16.vlgmr.msra.gmra.mrb[4].mxu0 %v9279_v37  ;;  %v8379_v53 = vcombine.low %v773_v35, %v777_v36  ;;  %6603 = vmatpush1.bf16.msra.mxu1 %v8499_v44 }
  0xc3   : > { %v905_v39 = vld [vmem:[%s9106_s28 + $0x1460] sm:$0xff]  ;;  %6562 = vmatpush1.bf16.msra.mxu0 %v8371_v42  ;;  %6593 = vmatprep.mubr.bf16.mxu0 %v9289_v49 }
  0xc4   : > { %v8508_v46 = vcombine.high %v901_v38, %v905_v39  ;;  %v781_v47 = vld [vmem:[%s9106_s28 + $0x1080] sm:$0xff]  ;;  %6563 = vmatprep.subr.bf16.mxu0 %v8380_v45  ;;  %v8507_v54 = vcombine.low %v901_v38, %v905_v39  ;;  %6634 = vmatprep.mubr.bf16.mxu1 %v9294_v52 }
  0xc5   : > { %v785_v48 = vld [vmem:[%s9106_s28 + $0x10a0] sm:$0xff] }
  0xc6   : > { %v909_v50 = vld [vmem:[%s9106_s28 + $0x1480] sm:$0xff]  ;;  %v8388_v55 = vcombine.high %v781_v47, %v785_v48  ;;  %6604 = vmatprep.subr.bf16.mxu1 %v8508_v46  ;;  %v8387_v63 = vcombine.low %v781_v47, %v785_v48 }
  0xc7   : > { %v913_v51 = vld [vmem:[%s9106_s28 + $0x14a0] sm:$0xff]  ;;  %6564 = vmatpush1.bf16.msra.mxu0 %v8379_v53  ;;  %6605 = vmatpush1.bf16.msra.mxu1 %v8507_v54 }
  0xc8   : > { %v8516_v56 = vcombine.high %v909_v50, %v913_v51  ;;  %v789_v57 = vld [vmem:[%s9106_s28 + $0x10c0] sm:$0xff]  ;;  %6565 = vmatprep.subr.bf16.mxu0 %v8388_v55  ;;  %v8515_v0 = vcombine.low %v909_v50, %v913_v51 }
  0xc9   : > { %v793_v58 = vld [vmem:[%s9106_s28 + $0x10e0] sm:$0xff] }
  0xca   : > { %v917_v61 = vld [vmem:[%s9106_s28 + $0x14c0] sm:$0xff]  ;;  %v8396_v1 = vcombine.high %v789_v57, %v793_v58  ;;  %6606 = vmatprep.subr.bf16.mxu1 %v8516_v56  ;;  %v8395_v7 = vcombine.low %v789_v57, %v793_v58 }
  0xcb   : > { %v921_v62 = vld [vmem:[%s9106_s28 + $0x14e0] sm:$0xff]  ;;  %6566 = vmatpush1.bf16.msra.mxu0 %v8387_v63  ;;  %6607 = vmatpush1.bf16.msra.mxu1 %v8515_v0 }
  0xcc   : > { %v8524_v2 = vcombine.high %v917_v61, %v921_v62  ;;  %v797_v3 = vld [vmem:[%s9106_s28 + $0x1100] sm:$0xff]  ;;  %6567 = vmatprep.subr.bf16.mxu0 %v8396_v1  ;;  %v8523_v8 = vcombine.low %v917_v61, %v921_v62 }
  0xcd   : > { %v801_v4 = vld [vmem:[%s9106_s28 + $0x1120] sm:$0xff] }
  0xce   : > { %v925_v5 = vld [vmem:[%s9106_s28 + $0x1500] sm:$0xff]  ;;  %v8404_v9 = vcombine.high %v797_v3, %v801_v4  ;;  %6608 = vmatprep.subr.bf16.mxu1 %v8524_v2  ;;  %v8403_v15 = vcombine.low %v797_v3, %v801_v4 }
  0xcf   : > { %v929_v6 = vld [vmem:[%s9106_s28 + $0x1520] sm:$0xff]  ;;  %6568 = vmatpush1.bf16.msra.mxu0 %v8395_v7  ;;  %6609 = vmatpush1.bf16.msra.mxu1 %v8523_v8 }
  0xd0   : > { %v8532_v10 = vcombine.high %v925_v5, %v929_v6  ;;  %v805_v11 = vld [vmem:[%s9106_s28 + $0x1140] sm:$0xff]  ;;  %6569 = vmatprep.subr.bf16.mxu0 %v8404_v9  ;;  %v8531_v16 = vcombine.low %v925_v5, %v929_v6 }
  0xd1   : > { %v809_v12 = vld [vmem:[%s9106_s28 + $0x1160] sm:$0xff] }
  0xd2   : > { %v933_v13 = vld [vmem:[%s9106_s28 + $0x1540] sm:$0xff]  ;;  %v8412_v18 = vcombine.high %v805_v11, %v809_v12  ;;  %6610 = vmatprep.subr.bf16.mxu1 %v8532_v10  ;;  %v8411_v25 = vcombine.low %v805_v11, %v809_v12 }
  0xd3   : > { %v937_v14 = vld [vmem:[%s9106_s28 + $0x1560] sm:$0xff]  ;;  %6570 = vmatpush1.bf16.msra.mxu0 %v8403_v15  ;;  %6611 = vmatpush1.bf16.msra.mxu1 %v8531_v16 }
  0xd4   : > { %v8540_v19 = vcombine.high %v933_v13, %v937_v14  ;;  %v813_v20 = vld [vmem:[%s9106_s28 + $0x1180] sm:$0xff]  ;;  %6571 = vmatprep.subr.bf16.mxu0 %v8412_v18  ;;  %v8539_v26 = vcombine.low %v933_v13, %v937_v14 }
  0xd5   : > { %v817_v22 = vld [vmem:[%s9106_s28 + $0x11a0] sm:$0xff] }
  0xd6   : > { %v941_v23 = vld [vmem:[%s9106_s28 + $0x1580] sm:$0xff]  ;;  %v8420_v27 = vcombine.high %v813_v20, %v817_v22  ;;  %6612 = vmatprep.subr.bf16.mxu1 %v8540_v19  ;;  %v8419_v35 = vcombine.low %v813_v20, %v817_v22 }
  0xd7   : > { %v945_v24 = vld [vmem:[%s9106_s28 + $0x15a0] sm:$0xff]  ;;  %6572 = vmatpush1.bf16.msra.mxu0 %v8411_v25  ;;  %6613 = vmatpush1.bf16.msra.mxu1 %v8539_v26 }
  0xd8   : > { %v8548_v28 = vcombine.high %v941_v23, %v945_v24  ;;  %v821_v30 = vld [vmem:[%s9106_s28 + $0x11c0] sm:$0xff]  ;;  %6573 = vmatprep.subr.bf16.mxu0 %v8420_v27  ;;  %v8547_v36 = vcombine.low %v941_v23, %v945_v24 }
  0xd9   : > { %v825_v31 = vld [vmem:[%s9106_s28 + $0x11e0] sm:$0xff] }
  0xda   : > { %v949_v33 = vld [vmem:[%s9106_s28 + $0x15c0] sm:$0xff]  ;;  %v8428_v38 = vcombine.high %v821_v30, %v825_v31  ;;  %6614 = vmatprep.subr.bf16.mxu1 %v8548_v28  ;;  %v8427_v45 = vcombine.low %v821_v30, %v825_v31 }
  0xdb   : > { %v953_v34 = vld [vmem:[%s9106_s28 + $0x15e0] sm:$0xff]  ;;  %6574 = vmatpush1.bf16.msra.mxu0 %v8419_v35  ;;  %6615 = vmatpush1.bf16.msra.mxu1 %v8547_v36 }
  0xdc   : > { %v8556_v39 = vcombine.high %v949_v33, %v953_v34  ;;  %v829_v40 = vld [vmem:[%s9106_s28 + $0x1200] sm:$0xff]  ;;  %6575 = vmatprep.subr.bf16.mxu0 %v8428_v38  ;;  %v8555_v46 = vcombine.low %v949_v33, %v953_v34 }
  0xdd   : > { %v833_v42 = vld [vmem:[%s9106_s28 + $0x1220] sm:$0xff] }
  0xde   : > { %v957_v43 = vld [vmem:[%s9106_s28 + $0x1600] sm:$0xff]  ;;  %v8436_v47 = vcombine.high %v829_v40, %v833_v42  ;;  %6616 = vmatprep.subr.bf16.mxu1 %v8556_v39  ;;  %v8435_v55 = vcombine.low %v829_v40, %v833_v42 }
  0xdf   : > { %v961_v44 = vld [vmem:[%s9106_s28 + $0x1620] sm:$0xff]  ;;  %6576 = vmatpush1.bf16.msra.mxu0 %v8427_v45  ;;  %6617 = vmatpush1.bf16.msra.mxu1 %v8555_v46 }
  0xe0   : > { %v8564_v48 = vcombine.high %v957_v43, %v961_v44  ;;  %v837_v50 = vld [vmem:[%s9106_s28 + $0x1240] sm:$0xff]  ;;  %6577 = vmatprep.subr.bf16.mxu0 %v8436_v47  ;;  %v8563_v56 = vcombine.low %v957_v43, %v961_v44 }
  0xe1   : > { %v841_v51 = vld [vmem:[%s9106_s28 + $0x1260] sm:$0xff] }
  0xe2   : > { %v965_v53 = vld [vmem:[%s9106_s28 + $0x1640] sm:$0xff]  ;;  %v8444_v57 = vcombine.high %v837_v50, %v841_v51  ;;  %6618 = vmatprep.subr.bf16.mxu1 %v8564_v48  ;;  %v8443_v1 = vcombine.low %v837_v50, %v841_v51 }
  0xe3   : > { %v969_v54 = vld [vmem:[%s9106_s28 + $0x1660] sm:$0xff]  ;;  %6578 = vmatpush1.bf16.msra.mxu0 %v8435_v55  ;;  %6619 = vmatpush1.bf16.msra.mxu1 %v8563_v56 }
  0xe4   : > { %v8572_v58 = vcombine.high %v965_v53, %v969_v54  ;;  %v845_v61 = vld [vmem:[%s9106_s28 + $0x1280] sm:$0xff]  ;;  %6579 = vmatprep.subr.bf16.mxu0 %v8444_v57  ;;  %v8571_v2 = vcombine.low %v965_v53, %v969_v54 }
  0xe5   : > { %v849_v62 = vld [vmem:[%s9106_s28 + $0x12a0] sm:$0xff] }
  0xe6   : > { %v973_v63 = vld [vmem:[%s9106_s28 + $0x1680] sm:$0xff]  ;;  %v8452_v3 = vcombine.high %v845_v61, %v849_v62  ;;  %6620 = vmatprep.subr.bf16.mxu1 %v8572_v58  ;;  %v8451_v9 = vcombine.low %v845_v61, %v849_v62  ;;  %v231_v62 = vld [vmem:[%s9116_s30 + $0x50] sm:$0xff] }
  0xe7   : > { %v977_v0 = vld [vmem:[%s9106_s28 + $0x16a0] sm:$0xff]  ;;  %6580 = vmatpush1.bf16.msra.mxu0 %v8443_v1  ;;  %6621 = vmatpush1.bf16.msra.mxu1 %v8571_v2 }
  0xe8   : > { %v8580_v4 = vcombine.high %v973_v63, %v977_v0  ;;  %v853_v5 = vld [vmem:[%s9106_s28 + $0x12c0] sm:$0xff]  ;;  %6581 = vmatprep.subr.bf16.mxu0 %v8452_v3  ;;  %v8579_v10 = vcombine.low %v973_v63, %v977_v0 }
  0xe9   : > { %v857_v6 = vld [vmem:[%s9106_s28 + $0x12e0] sm:$0xff] }
  0xea   : > { %v981_v7 = vld [vmem:[%s9106_s28 + $0x16c0] sm:$0xff]  ;;  %v8460_v11 = vcombine.high %v853_v5, %v857_v6  ;;  %6622 = vmatprep.subr.bf16.mxu1 %v8580_v4  ;;  %v8459_v18 = vcombine.low %v853_v5, %v857_v6  ;;  %v234_v6 = vld [vmem:[%s9116_s30 + $0x68] sm:$0xff] }
  0xeb   : > { %v985_v8 = vld [vmem:[%s9106_s28 + $0x16e0] sm:$0xff]  ;;  %6582 = vmatpush1.bf16.msra.mxu0 %v8451_v9  ;;  %6623 = vmatpush1.bf16.msra.mxu1 %v8579_v10  ;;  %v236_v9 = vld [vmem:[%s9116_s30 + $0x78] sm:$0xff] }
  0xec   : > { %v8588_v12 = vcombine.high %v981_v7, %v985_v8  ;;  %v861_v13 = vld [vmem:[%s9106_s28 + $0x1300] sm:$0xff]  ;;  %6583 = vmatprep.subr.bf16.mxu0 %v8460_v11  ;;  %v8587_v19 = vcombine.low %v981_v7, %v985_v8  ;;  %v9364_v7 = vpack.c.bf16 %v231_v62, %v231_v62 }
  0xed   : > { %v865_v14 = vld [vmem:[%s9106_s28 + $0x1320] sm:$0xff] }
  0xee   : > { %v989_v15 = vld [vmem:[%s9106_s28 + $0x1700] sm:$0xff]  ;;  %v8468_v20 = vcombine.high %v861_v13, %v865_v14  ;;  %6624 = vmatprep.subr.bf16.mxu1 %v8588_v12  ;;  %v8467_v27 = vcombine.low %v861_v13, %v865_v14 }
  0xef   : > { %v993_v16 = vld [vmem:[%s9106_s28 + $0x1720] sm:$0xff]  ;;  %6584 = vmatpush1.bf16.msra.mxu0 %v8459_v18  ;;  %6625 = vmatpush1.bf16.msra.mxu1 %v8587_v19  ;;  %v9374_v19 = vpack.c.bf16 %v236_v9, %v236_v9 }
  0xf0   : > { %v8596_v22 = vcombine.high %v989_v15, %v993_v16  ;;  %v869_v23 = vld [vmem:[%s9106_s28 + $0x1340] sm:$0xff]  ;;  %6585 = vmatprep.subr.bf16.mxu0 %v8468_v20  ;;  %v8595_v28 = vcombine.low %v989_v15, %v993_v16  ;;  %v9369_v15 = vpack.c.bf16 %v234_v6, %v234_v6 }
  0xf1   : > { %v873_v24 = vld [vmem:[%s9106_s28 + $0x1360] sm:$0xff] }
  0xf2   : > { %v997_v25 = vld [vmem:[%s9106_s28 + $0x1740] sm:$0xff]  ;;  %v8476_v30 = vcombine.high %v869_v23, %v873_v24  ;;  %6626 = vmatprep.subr.bf16.mxu1 %v8596_v22  ;;  %v8475_v38 = vcombine.low %v869_v23, %v873_v24 }
  0xf3   : > { %v1001_v26 = vld [vmem:[%s9106_s28 + $0x1760] sm:$0xff]  ;;  %6586 = vmatpush1.bf16.msra.mxu0 %v8467_v27  ;;  %6627 = vmatpush1.bf16.msra.mxu1 %v8595_v28 }
  0xf4   : > { %v8604_v31 = vcombine.high %v997_v25, %v1001_v26  ;;  %v877_v33 = vld [vmem:[%s9106_s28 + $0x1380] sm:$0xff]  ;;  %6587 = vmatprep.subr.bf16.mxu0 %v8476_v30  ;;  %v8603_v39 = vcombine.low %v997_v25, %v1001_v26 }
  0xf5   : > { %v881_v34 = vld [vmem:[%s9106_s28 + $0x13a0] sm:$0xff] }
  0xf6   : > { %v1005_v35 = vld [vmem:[%s9106_s28 + $0x1780] sm:$0xff]  ;;  %v8484_v40 = vcombine.high %v877_v33, %v881_v34  ;;  %6628 = vmatprep.subr.bf16.mxu1 %v8604_v31  ;;  %v8483_v47 = vcombine.low %v877_v33, %v881_v34 }
  0xf7   : > { %v1009_v36 = vld [vmem:[%s9106_s28 + $0x17a0] sm:$0xff]  ;;  %6588 = vmatpush1.bf16.msra.mxu0 %v8475_v38  ;;  %6629 = vmatpush1.bf16.msra.mxu1 %v8603_v39 }
  0xf8   : > { %v8612_v42 = vcombine.high %v1005_v35, %v1009_v36  ;;  %v885_v43 = vld [vmem:[%s9106_s28 + $0x13c0] sm:$0xff]  ;;  %6589 = vmatprep.subr.bf16.mxu0 %v8484_v40  ;;  %v8611_v48 = vcombine.low %v1005_v35, %v1009_v36 }
  0xf9   : > { %v889_v44 = vld [vmem:[%s9106_s28 + $0x13e0] sm:$0xff] }
  0xfa   : > { %v1013_v45 = vld [vmem:[%s9106_s28 + $0x17c0] sm:$0xff]  ;;  %v8492_v50 = vcombine.high %v885_v43, %v889_v44  ;;  %6630 = vmatprep.subr.bf16.mxu1 %v8612_v42  ;;  %v8491_v57 = vcombine.low %v885_v43, %v889_v44 }
  0xfb   : > { %v1017_v46 = vld [vmem:[%s9106_s28 + $0x17e0] sm:$0xff]  ;;  %6590 = vmatpush1.bf16.msra.mxu0 %v8483_v47  ;;  %6631 = vmatpush1.bf16.msra.mxu1 %v8611_v48 }
  0xfc   : > { %v8620_v51 = vcombine.high %v1013_v45, %v1017_v46  ;;  %v1021_v53 = vld [vmem:[%s9106_s28 + $0x1800] sm:$0xff]  ;;  %6591 = vmatprep.subr.bf16.mxu0 %v8492_v50  ;;  %v8619_v61 = vcombine.low %v1013_v45, %v1017_v46 }
  0xfd   : > { %v1025_v54 = vld [vmem:[%s9106_s28 + $0x1820] sm:$0xff] }
  0xfe   : > { %v1149_v55 = vld [vmem:[%s9106_s28 + $0x1c00] sm:$0xff]  ;;  %v8628_v63 = vcombine.high %v1021_v53, %v1025_v54  ;;  %6632 = vmatprep.subr.bf16.mxu1 %v8620_v51  ;;  %v8627_v8 = vcombine.low %v1021_v53, %v1025_v54 }
  0xff   : > { %v1153_v56 = vld [vmem:[%s9106_s28 + $0x1c20] sm:$0xff]  ;;  %6592 = vmatpush1.bf16.msra.mxu0 %v8491_v57  ;;  %6633 = vmatpush1.bf16.msra.mxu1 %v8619_v61 }
 0x100   : > { %v229_v58 = vld [vmem:[%s9116_s30 + $0x40] sm:$0xff]  ;;  %v8756_v0 = vcombine.high %v1149_v55, %v1153_v56  ;;  %6643 = vmatprep.subr.bf16.mxu0 %v8628_v63  ;;  %v8755_v10 = vcombine.low %v1149_v55, %v1153_v56 }
 0x101   : > { %v1029_v1 = vld [vmem:[%s9106_s28 + $0x1840] sm:$0xff]  ;;  %v9359_v3 = vpack.c.bf16 %v229_v58, %v229_v58 }
 0x102   : > { %v1033_v2 = vld [vmem:[%s9106_s28 + $0x1860] sm:$0xff]  ;;  %6684 = vmatprep.subr.bf16.mxu1 %v8756_v0  ;;  %6635 = vmatmul.mubr.bf16.vlgmr.msra.gmra.mrb[8].mxu1 %v9364_v7 }
 0x103   : > { %v1157_v4 = vld [vmem:[%s9106_s28 + $0x1c40] sm:$0xff]  ;;  %v8636_v11 = vcombine.high %v1029_v1, %v1033_v2  ;;  %6594 = vmatmul.mubr.bf16.vlgmr.msra.gmra.mrb[8].mxu0 %v9359_v3  ;;  %v8635_v20 = vcombine.low %v1029_v1, %v1033_v2  ;;  %6685 = vmatpush1.bf16.msra.mxu1 %v8755_v10 }
 0x104   : > { %v1161_v5 = vld [vmem:[%s9106_s28 + $0x1c60] sm:$0xff]  ;;  %6644 = vmatpush1.bf16.msra.mxu0 %v8627_v8  ;;  %6675 = vmatprep.mubr.bf16.mxu0 %v9369_v15 }
 0x105   : > { %v8764_v12 = vcombine.high %v1157_v4, %v1161_v5  ;;  %v1037_v13 = vld [vmem:[%s9106_s28 + $0x1880] sm:$0xff]  ;;  %6645 = vmatprep.subr.bf16.mxu0 %v8636_v11  ;;  %v8763_v22 = vcombine.low %v1157_v4, %v1161_v5  ;;  %6716 = vmatprep.mubr.bf16.mxu1 %v9374_v19 }
 0x106   : > { %v1041_v14 = vld [vmem:[%s9106_s28 + $0x18a0] sm:$0xff] }
 0x107   : > { %v1165_v16 = vld [vmem:[%s9106_s28 + $0x1c80] sm:$0xff]  ;;  %v8644_v23 = vcombine.high %v1037_v13, %v1041_v14  ;;  %6686 = vmatprep.subr.bf16.mxu1 %v8764_v12  ;;  %v8643_v30 = vcombine.low %v1037_v13, %v1041_v14 }
 0x108   : > { %v1169_v18 = vld [vmem:[%s9106_s28 + $0x1ca0] sm:$0xff]  ;;  %6646 = vmatpush1.bf16.msra.mxu0 %v8635_v20  ;;  %6687 = vmatpush1.bf16.msra.mxu1 %v8763_v22 }
 0x109   : > { %v8772_v24 = vcombine.high %v1165_v16, %v1169_v18  ;;  %v1045_v25 = vld [vmem:[%s9106_s28 + $0x18c0] sm:$0xff]  ;;  %6647 = vmatprep.subr.bf16.mxu0 %v8644_v23  ;;  %v8771_v31 = vcombine.low %v1165_v16, %v1169_v18 }
 0x10a   : > { %v1049_v26 = vld [vmem:[%s9106_s28 + $0x18e0] sm:$0xff] }
 0x10b   : > { %v1173_v27 = vld [vmem:[%s9106_s28 + $0x1cc0] sm:$0xff]  ;;  %v8652_v33 = vcombine.high %v1045_v25, %v1049_v26  ;;  %6688 = vmatprep.subr.bf16.mxu1 %v8772_v24  ;;  %v8651_v40 = vcombine.low %v1045_v25, %v1049_v26 }
 0x10c   : > { %v1177_v28 = vld [vmem:[%s9106_s28 + $0x1ce0] sm:$0xff]  ;;  %6648 = vmatpush1.bf16.msra.mxu0 %v8643_v30  ;;  %6689 = vmatpush1.bf16.msra.mxu1 %v8771_v31 }
 0x10d   : > { %v8780_v34 = vcombine.high %v1173_v27, %v1177_v28  ;;  %v1053_v35 = vld [vmem:[%s9106_s28 + $0x1900] sm:$0xff]  ;;  %6649 = vmatprep.subr.bf16.mxu0 %v8652_v33  ;;  %v8779_v42 = vcombine.low %v1173_v27, %v1177_v28 }
 0x10e   : > { %v1057_v36 = vld [vmem:[%s9106_s28 + $0x1920] sm:$0xff] }
 0x10f   : > { %v1181_v38 = vld [vmem:[%s9106_s28 + $0x1d00] sm:$0xff]  ;;  %v8660_v43 = vcombine.high %v1053_v35, %v1057_v36  ;;  %6690 = vmatprep.subr.bf16.mxu1 %v8780_v34  ;;  %v8659_v50 = vcombine.low %v1053_v35, %v1057_v36 }
 0x110   : > { %v1185_v39 = vld [vmem:[%s9106_s28 + $0x1d20] sm:$0xff]  ;;  %6650 = vmatpush1.bf16.msra.mxu0 %v8651_v40  ;;  %6691 = vmatpush1.bf16.msra.mxu1 %v8779_v42 }
 0x111   : > { %v8788_v44 = vcombine.high %v1181_v38, %v1185_v39  ;;  %v1061_v45 = vld [vmem:[%s9106_s28 + $0x1940] sm:$0xff]  ;;  %6651 = vmatprep.subr.bf16.mxu0 %v8660_v43  ;;  %v8787_v51 = vcombine.low %v1181_v38, %v1185_v39 }
 0x112   : > { %v1065_v46 = vld [vmem:[%s9106_s28 + $0x1960] sm:$0xff] }
 0x113   : > { %v1189_v47 = vld [vmem:[%s9106_s28 + $0x1d40] sm:$0xff]  ;;  %v8668_v53 = vcombine.high %v1061_v45, %v1065_v46  ;;  %6692 = vmatprep.subr.bf16.mxu1 %v8788_v44  ;;  %v8667_v61 = vcombine.low %v1061_v45, %v1065_v46 }
 0x114   : > { %v1193_v48 = vld [vmem:[%s9106_s28 + $0x1d60] sm:$0xff]  ;;  %6652 = vmatpush1.bf16.msra.mxu0 %v8659_v50  ;;  %6693 = vmatpush1.bf16.msra.mxu1 %v8787_v51 }
 0x115   : > { %v8796_v54 = vcombine.high %v1189_v47, %v1193_v48  ;;  %v1069_v55 = vld [vmem:[%s9106_s28 + $0x1980] sm:$0xff]  ;;  %6653 = vmatprep.subr.bf16.mxu0 %v8668_v53  ;;  %v8795_v62 = vcombine.low %v1189_v47, %v1193_v48 }
 0x116   : > { %v1073_v56 = vld [vmem:[%s9106_s28 + $0x19a0] sm:$0xff] }
 0x117   : > { %v1197_v57 = vld [vmem:[%s9106_s28 + $0x1d80] sm:$0xff]  ;;  %v8676_v63 = vcombine.high %v1069_v55, %v1073_v56  ;;  %6694 = vmatprep.subr.bf16.mxu1 %v8796_v54  ;;  %v8675_v6 = vcombine.low %v1069_v55, %v1073_v56 }
 0x118   : > { %v1201_v58 = vld [vmem:[%s9106_s28 + $0x1da0] sm:$0xff]  ;;  %6654 = vmatpush1.bf16.msra.mxu0 %v8667_v61  ;;  %6695 = vmatpush1.bf16.msra.mxu1 %v8795_v62 }
 0x119   : > { %v8804_v0 = vcombine.high %v1197_v57, %v1201_v58  ;;  %v1077_v1 = vld [vmem:[%s9106_s28 + $0x19c0] sm:$0xff]  ;;  %6655 = vmatprep.subr.bf16.mxu0 %v8676_v63  ;;  %v8803_v8 = vcombine.low %v1197_v57, %v1201_v58 }
 0x11a   : > { %v1081_v2 = vld [vmem:[%s9106_s28 + $0x19e0] sm:$0xff] }
 0x11b   : > { %v1205_v4 = vld [vmem:[%s9106_s28 + $0x1dc0] sm:$0xff]  ;;  %v8684_v9 = vcombine.high %v1077_v1, %v1081_v2  ;;  %6696 = vmatprep.subr.bf16.mxu1 %v8804_v0  ;;  %v8683_v16 = vcombine.low %v1077_v1, %v1081_v2 }
 0x11c   : > { %v1209_v5 = vld [vmem:[%s9106_s28 + $0x1de0] sm:$0xff]  ;;  %6656 = vmatpush1.bf16.msra.mxu0 %v8675_v6  ;;  %6697 = vmatpush1.bf16.msra.mxu1 %v8803_v8 }
 0x11d   : > { %v8812_v10 = vcombine.high %v1205_v4, %v1209_v5  ;;  %v1085_v11 = vld [vmem:[%s9106_s28 + $0x1a00] sm:$0xff]  ;;  %6657 = vmatprep.subr.bf16.mxu0 %v8684_v9  ;;  %v8811_v18 = vcombine.low %v1205_v4, %v1209_v5 }
 0x11e   : > { %v1089_v12 = vld [vmem:[%s9106_s28 + $0x1a20] sm:$0xff] }
 0x11f   : > { %v1213_v13 = vld [vmem:[%s9106_s28 + $0x1e00] sm:$0xff]  ;;  %v8692_v20 = vcombine.high %v1085_v11, %v1089_v12  ;;  %6698 = vmatprep.subr.bf16.mxu1 %v8812_v10  ;;  %v8691_v27 = vcombine.low %v1085_v11, %v1089_v12 }
 0x120   : > { %v1217_v14 = vld [vmem:[%s9106_s28 + $0x1e20] sm:$0xff]  ;;  %6658 = vmatpush1.bf16.msra.mxu0 %v8683_v16  ;;  %6699 = vmatpush1.bf16.msra.mxu1 %v8811_v18 }
 0x121   : > { %v8820_v22 = vcombine.high %v1213_v13, %v1217_v14  ;;  %v1093_v23 = vld [vmem:[%s9106_s28 + $0x1a40] sm:$0xff]  ;;  %6659 = vmatprep.subr.bf16.mxu0 %v8692_v20  ;;  %v8819_v28 = vcombine.low %v1213_v13, %v1217_v14 }
 0x122   : > { %v1097_v24 = vld [vmem:[%s9106_s28 + $0x1a60] sm:$0xff] }
 0x123   : > { %v1221_v25 = vld [vmem:[%s9106_s28 + $0x1e40] sm:$0xff]  ;;  %v8700_v30 = vcombine.high %v1093_v23, %v1097_v24  ;;  %6700 = vmatprep.subr.bf16.mxu1 %v8820_v22  ;;  %v8699_v38 = vcombine.low %v1093_v23, %v1097_v24 }
 0x124   : > { %v1225_v26 = vld [vmem:[%s9106_s28 + $0x1e60] sm:$0xff]  ;;  %6660 = vmatpush1.bf16.msra.mxu0 %v8691_v27  ;;  %6701 = vmatpush1.bf16.msra.mxu1 %v8819_v28 }
 0x125   : > { %v8828_v31 = vcombine.high %v1221_v25, %v1225_v26  ;;  %v1101_v33 = vld [vmem:[%s9106_s28 + $0x1a80] sm:$0xff]  ;;  %6661 = vmatprep.subr.bf16.mxu0 %v8700_v30  ;;  %v8827_v39 = vcombine.low %v1221_v25, %v1225_v26  ;;  %v254_v30 = vld [vmem:[%s9106_s28 + $0x8] sm:$0xff] }
 0x126   : > { %v1105_v34 = vld [vmem:[%s9106_s28 + $0x1aa0] sm:$0xff] }
 0x127   : > { %v1229_v35 = vld [vmem:[%s9106_s28 + $0x1e80] sm:$0xff]  ;;  %v8708_v40 = vcombine.high %v1101_v33, %v1105_v34  ;;  %6702 = vmatprep.subr.bf16.mxu1 %v8828_v31  ;;  %v8707_v47 = vcombine.low %v1101_v33, %v1105_v34  ;;  %v258_v31 = vld [vmem:[%s9106_s28 + $0x28] sm:$0xff] }
 0x128   : > { %v1233_v36 = vld [vmem:[%s9106_s28 + $0x1ea0] sm:$0xff]  ;;  %6662 = vmatpush1.bf16.msra.mxu0 %v8699_v38  ;;  %6703 = vmatpush1.bf16.msra.mxu1 %v8827_v39  ;;  %v382_v33 = vld [vmem:[%s9106_s28 + $0x408] sm:$0xff]  ;;  %v235_v39 = vld [vmem:[%s9116_s30 + $0x70] sm:$0xff] }
 0x129   : > { %v8836_v42 = vcombine.high %v1229_v35, %v1233_v36  ;;  %v1109_v43 = vld [vmem:[%s9106_s28 + $0x1ac0] sm:$0xff]  ;;  %6663 = vmatprep.subr.bf16.mxu0 %v8708_v40  ;;  %v8835_v48 = vcombine.low %v1229_v35, %v1233_v36  ;;  %v386_v34 = vld [vmem:[%s9106_s28 + $0x428] sm:$0xff]  ;;  %v7862_v40 = vcombine.high %v254_v30, %v258_v31 }
 0x12a   : > { %v1113_v44 = vld [vmem:[%s9106_s28 + $0x1ae0] sm:$0xff] }
 0x12b   : > { %v1237_v45 = vld [vmem:[%s9106_s28 + $0x1ec0] sm:$0xff]  ;;  %v8716_v50 = vcombine.high %v1109_v43, %v1113_v44  ;;  %6704 = vmatprep.subr.bf16.mxu1 %v8836_v42  ;;  %v8715_v57 = vcombine.low %v1109_v43, %v1113_v44  ;;  %v7990_v42 = vcombine.high %v382_v33, %v386_v34  ;;  %v262_v43 = vld [vmem:[%s9106_s28 + $0x48] sm:$0xff] }
 0x12c   : > { %v1241_v46 = vld [vmem:[%s9106_s28 + $0x1ee0] sm:$0xff]  ;;  %6664 = vmatpush1.bf16.msra.mxu0 %v8707_v47  ;;  %6705 = vmatpush1.bf16.msra.mxu1 %v8835_v48  ;;  %v266_v44 = vld [vmem:[%s9106_s28 + $0x68] sm:$0xff]  ;;  %v9443_v48 = vpack.c.bf16 %v235_v39, %v235_v39 }
 0x12d   : > { %v8844_v51 = vcombine.high %v1237_v45, %v1241_v46  ;;  %v1117_v53 = vld [vmem:[%s9106_s28 + $0x1b00] sm:$0xff]  ;;  %6665 = vmatprep.subr.bf16.mxu0 %v8716_v50  ;;  %v8843_v58 = vcombine.low %v1237_v45, %v1241_v46  ;;  %v390_v46 = vld [vmem:[%s9106_s28 + $0x448] sm:$0xff]  ;;  %v7861_v50 = vcombine.low %v254_v30, %v258_v31 }
 0x12e   : > { %v1121_v54 = vld [vmem:[%s9106_s28 + $0x1b20] sm:$0xff]  ;;  %v394_v47 = vld [vmem:[%s9106_s28 + $0x468] sm:$0xff] }
 0x12f   : > { %v1245_v55 = vld [vmem:[%s9106_s28 + $0x1f00] sm:$0xff]  ;;  %v8724_v61 = vcombine.high %v1117_v53, %v1121_v54  ;;  %6706 = vmatprep.subr.bf16.mxu1 %v8844_v51  ;;  %v8723_v4 = vcombine.low %v1117_v53, %v1121_v54  ;;  %v7989_v51 = vcombine.low %v382_v33, %v386_v34  ;;  %v7870_v53 = vcombine.high %v262_v43, %v266_v44  ;;  %v302_v33 = vld [vmem:[%s9106_s28 + $0x188] sm:$0xff] }
 0x130   : > { %v1249_v56 = vld [vmem:[%s9106_s28 + $0x1f20] sm:$0xff]  ;;  %6666 = vmatpush1.bf16.msra.mxu0 %v8715_v57  ;;  %6707 = vmatpush1.bf16.msra.mxu1 %v8843_v58  ;;  %v7998_v54 = vcombine.high %v390_v46, %v394_v47  ;;  %v398_v57 = vld [vmem:[%s9106_s28 + $0x488] sm:$0xff] }
 0x131   : > { %v8852_v62 = vcombine.high %v1245_v55, %v1249_v56  ;;  %v1125_v63 = vld [vmem:[%s9106_s28 + $0x1b40] sm:$0xff]  ;;  %6667 = vmatprep.subr.bf16.mxu0 %v8724_v61  ;;  %v8851_v5 = vcombine.low %v1245_v55, %v1249_v56  ;;  %v270_v55 = vld [vmem:[%s9106_s28 + $0x88] sm:$0xff]  ;;  %v7869_v61 = vcombine.low %v262_v43, %v266_v44 }
 0x132   : > { %v1129_v0 = vld [vmem:[%s9106_s28 + $0x1b60] sm:$0xff]  ;;  %v274_v56 = vld [vmem:[%s9106_s28 + $0xa8] sm:$0xff] }
 0x133   : > { %v1253_v1 = vld [vmem:[%s9106_s28 + $0x1f40] sm:$0xff]  ;;  %v8732_v6 = vcombine.high %v1125_v63, %v1129_v0  ;;  %6708 = vmatprep.subr.bf16.mxu1 %v8852_v62  ;;  %v8731_v13 = vcombine.low %v1125_v63, %v1129_v0  ;;  %v402_v58 = vld [vmem:[%s9106_s28 + $0x4a8] sm:$0xff]  ;;  %v7997_v62 = vcombine.low %v390_v46, %v394_v47  ;;  %v7878_v63 = vcombine.high %v270_v55, %v274_v56 }
 0x134   : > { %v1257_v2 = vld [vmem:[%s9106_s28 + $0x1f60] sm:$0xff]  ;;  %6668 = vmatpush1.bf16.msra.mxu0 %v8723_v4  ;;  %6709 = vmatpush1.bf16.msra.mxu1 %v8851_v5  ;;  %v8006_v0 = vcombine.high %v398_v57, %v402_v58  ;;  %v406_v4 = vld [vmem:[%s9106_s28 + $0x4c8] sm:$0xff] }
 0x135   : > { %v8860_v8 = vcombine.high %v1253_v1, %v1257_v2  ;;  %v1133_v9 = vld [vmem:[%s9106_s28 + $0x1b80] sm:$0xff]  ;;  %6669 = vmatprep.subr.bf16.mxu0 %v8732_v6  ;;  %v8859_v14 = vcombine.low %v1253_v1, %v1257_v2  ;;  %v278_v1 = vld [vmem:[%s9106_s28 + $0xc8] sm:$0xff]  ;;  %v7877_v6 = vcombine.low %v270_v55, %v274_v56 }
 0x136   : > { %v1137_v10 = vld [vmem:[%s9106_s28 + $0x1ba0] sm:$0xff]  ;;  %v282_v2 = vld [vmem:[%s9106_s28 + $0xe8] sm:$0xff] }
 0x137   : > { %v1261_v11 = vld [vmem:[%s9106_s28 + $0x1f80] sm:$0xff]  ;;  %v8740_v16 = vcombine.high %v1133_v9, %v1137_v10  ;;  %6710 = vmatprep.subr.bf16.mxu1 %v8860_v8  ;;  %v8739_v25 = vcombine.low %v1133_v9, %v1137_v10  ;;  %v410_v5 = vld [vmem:[%s9106_s28 + $0x4e8] sm:$0xff]  ;;  %v8005_v8 = vcombine.low %v398_v57, %v402_v58  ;;  %v7886_v9 = vcombine.high %v278_v1, %v282_v2 }
 0x138   : > { %v1265_v12 = vld [vmem:[%s9106_s28 + $0x1fa0] sm:$0xff]  ;;  %6670 = vmatpush1.bf16.msra.mxu0 %v8731_v13  ;;  %6711 = vmatpush1.bf16.msra.mxu1 %v8859_v14  ;;  %v8014_v10 = vcombine.high %v406_v4, %v410_v5  ;;  %v414_v13 = vld [vmem:[%s9106_s28 + $0x508] sm:$0xff] }
 0x139   : > { %v8868_v18 = vcombine.high %v1261_v11, %v1265_v12  ;;  %v1141_v20 = vld [vmem:[%s9106_s28 + $0x1bc0] sm:$0xff]  ;;  %6671 = vmatprep.subr.bf16.mxu0 %v8740_v16  ;;  %v8867_v26 = vcombine.low %v1261_v11, %v1265_v12  ;;  %v286_v11 = vld [vmem:[%s9106_s28 + $0x108] sm:$0xff]  ;;  %v7885_v16 = vcombine.low %v278_v1, %v282_v2 }
 0x13a   : > { %v1145_v22 = vld [vmem:[%s9106_s28 + $0x1be0] sm:$0xff]  ;;  %v290_v12 = vld [vmem:[%s9106_s28 + $0x128] sm:$0xff] }
 0x13b   : > { %v1269_v23 = vld [vmem:[%s9106_s28 + $0x1fc0] sm:$0xff]  ;;  %v8748_v27 = vcombine.high %v1141_v20, %v1145_v22  ;;  %6712 = vmatprep.subr.bf16.mxu1 %v8868_v18  ;;  %v8747_v35 = vcombine.low %v1141_v20, %v1145_v22  ;;  %v418_v14 = vld [vmem:[%s9106_s28 + $0x528] sm:$0xff]  ;;  %v8013_v18 = vcombine.low %v406_v4, %v410_v5  ;;  %v7894_v20 = vcombine.high %v286_v11, %v290_v12 }
 0x13c   : > { %v1273_v24 = vld [vmem:[%s9106_s28 + $0x1fe0] sm:$0xff]  ;;  %6672 = vmatpush1.bf16.msra.mxu0 %v8739_v25  ;;  %6713 = vmatpush1.bf16.msra.mxu1 %v8867_v26  ;;  %v8022_v22 = vcombine.high %v414_v13, %v418_v14  ;;  %v422_v25 = vld [vmem:[%s9106_s28 + $0x548] sm:$0xff] }
 0x13d   : > { %v8876_v28 = vcombine.high %v1269_v23, %v1273_v24  ;;  %v233_v36 = vld [vmem:[%s9116_s30 + $0x60] sm:$0xff]  ;;  %6673 = vmatprep.subr.bf16.mxu0 %v8748_v27  ;;  %v8875_v38 = vcombine.low %v1269_v23, %v1273_v24  ;;  %v294_v23 = vld [vmem:[%s9106_s28 + $0x148] sm:$0xff]  ;;  %v7893_v27 = vcombine.low %v286_v11, %v290_v12 }
 0x13e   : > { %v9439_v45 = vpack.c.bf16 %v233_v36, %v233_v36  ;;  %v298_v24 = vld [vmem:[%s9106_s28 + $0x168] sm:$0xff] }
 0x13f   : > { %6714 = vmatprep.subr.bf16.mxu1 %v8876_v28  ;;  %v426_v26 = vld [vmem:[%s9106_s28 + $0x568] sm:$0xff]  ;;  %v8021_v28 = vcombine.low %v414_v13, %v418_v14  ;;  %v7902_v30 = vcombine.high %v294_v23, %v298_v24 }
 0x140   : > { %6674 = vmatpush1.bf16.msra.mxu0 %v8747_v35  ;;  %6715 = vmatpush1.bf16.msra.mxu1 %v8875_v38  ;;  %v8030_v31 = vcombine.high %v422_v25, %v426_v26  ;;  %v306_v34 = vld [vmem:[%s9106_s28 + $0x1a8] sm:$0xff]  ;;  %v7901_v38 = vcombine.low %v294_v23, %v298_v24  ;;  %v8029_v39 = vcombine.low %v422_v25, %v426_v26 }
 0x141   : > { %6725 = vmatprep.subr.bf16.mxu0 %v7862_v40  ;;  %6766 = vmatprep.subr.bf16.mxu1 %v7990_v42  ;;  %v430_v35 = vld [vmem:[%s9106_s28 + $0x588] sm:$0xff]  ;;  %v7910_v40 = vcombine.high %v302_v33, %v306_v34  ;;  %v7909_v57 = vcombine.low %v302_v33, %v306_v34 }
 0x142   : > { %v434_v36 = vld [vmem:[%s9106_s28 + $0x5a8] sm:$0xff] }
 0x143   : > { %6676 = vmatmul.mubr.bf16.vlgmr.msra.gmra.mrb[12].mxu0 %v9439_v45  ;;  %6717 = vmatmul.mubr.bf16.vlgmr.msra.gmra.mrb[12].mxu1 %v9443_v48  ;;  %v8038_v43 = vcombine.high %v430_v35, %v434_v36  ;;  %v310_v44 = vld [vmem:[%s9106_s28 + $0x1c8] sm:$0xff] }
 0x144   : > { %6726 = vmatpush1.bf16.msra.mxu0 %v7861_v50  ;;  %6767 = vmatpush1.bf16.msra.mxu1 %v7989_v51  ;;  %v314_v46 = vld [vmem:[%s9106_s28 + $0x1e8] sm:$0xff] }
 0x145   : > { %6727 = vmatprep.subr.bf16.mxu0 %v7870_v53  ;;  %6768 = vmatprep.subr.bf16.mxu1 %v7998_v54  ;;  %v438_v51 = vld [vmem:[%s9106_s28 + $0x5c8] sm:$0xff] }
 0x146   : > { %6757 = vmatprep.mubr.bf16.mxu0 %v9151_v59  ;;  %6798 = vmatprep.mubr.bf16.mxu1 %v9153_v60  ;;  %v442_v53 = vld [vmem:[%s9106_s28 + $0x5e8] sm:$0xff] }
 0x147   : > { %v8046_v2 = vcombine.high %v438_v51, %v442_v53  ;;  %v318_v4 = vld [vmem:[%s9106_s28 + $0x208] sm:$0xff] }
 0x148   : > { %6728 = vmatpush1.bf16.msra.mxu0 %v7869_v61  ;;  %6769 = vmatpush1.bf16.msra.mxu1 %v7997_v62  ;;  %v322_v5 = vld [vmem:[%s9106_s28 + $0x228] sm:$0xff] }
 0x149   : > { %6729 = vmatprep.subr.bf16.mxu0 %v7878_v63  ;;  %6770 = vmatprep.subr.bf16.mxu1 %v8006_v0  ;;  %v8037_v63 = vcombine.low %v430_v35, %v434_v36  ;;  %v7918_v0 = vcombine.high %v310_v44, %v314_v46  ;;  %v7926_v11 = vcombine.high %v318_v4, %v322_v5  ;;  %v326_v13 = vld [vmem:[%s9106_s28 + $0x248] sm:$0xff] }
 0x14a   : > { %v330_v14 = vld [vmem:[%s9106_s28 + $0x268] sm:$0xff] }
 0x14b   : > { %v7934_v23 = vcombine.high %v326_v13, %v330_v14  ;;  %v334_v25 = vld [vmem:[%s9106_s28 + $0x288] sm:$0xff] }
 0x14c   : > { %6730 = vmatpush1.bf16.msra.mxu0 %v7877_v6  ;;  %6771 = vmatpush1.bf16.msra.mxu1 %v8005_v8  ;;  %v446_v6 = vld [vmem:[%s9106_s28 + $0x608] sm:$0xff] }
 0x14d   : > { %6731 = vmatprep.subr.bf16.mxu0 %v7886_v9  ;;  %6772 = vmatprep.subr.bf16.mxu1 %v8014_v10  ;;  %v450_v8 = vld [vmem:[%s9106_s28 + $0x628] sm:$0xff]  ;;  %v7917_v9 = vcombine.low %v310_v44, %v314_v46  ;;  %v8045_v10 = vcombine.low %v438_v51, %v442_v53 }
 0x14e   : > { %v8054_v12 = vcombine.high %v446_v6, %v450_v8  ;;  %v338_v26 = vld [vmem:[%s9106_s28 + $0x2a8] sm:$0xff] }
 0x14f   : > { %v7942_v33 = vcombine.high %v334_v25, %v338_v26  ;;  %v342_v35 = vld [vmem:[%s9106_s28 + $0x2c8] sm:$0xff] }
 0x150   : > { %6732 = vmatpush1.bf16.msra.mxu0 %v7885_v16  ;;  %6773 = vmatpush1.bf16.msra.mxu1 %v8013_v18  ;;  %v454_v16 = vld [vmem:[%s9106_s28 + $0x648] sm:$0xff] }
 0x151   : > { %6733 = vmatprep.subr.bf16.mxu0 %v7894_v20  ;;  %6774 = vmatprep.subr.bf16.mxu1 %v8022_v22  ;;  %v458_v18 = vld [vmem:[%s9106_s28 + $0x668] sm:$0xff]  ;;  %v7925_v20 = vcombine.low %v318_v4, %v322_v5  ;;  %v8053_v22 = vcombine.low %v446_v6, %v450_v8 }
 0x152   : > { %v8062_v24 = vcombine.high %v454_v16, %v458_v18  ;;  %v346_v36 = vld [vmem:[%s9106_s28 + $0x2e8] sm:$0xff] }
 0x153   : > { %v6472_v47 = vpop.f32.mrb[0].mxu1  ;;  %v350_v46 = vld [vmem:[%s9106_s28 + $0x308] sm:$0xff]  ;;  %v7949_v53 = vcombine.low %v342_v35, %v346_v36 }
 0x154   : > { %6734 = vmatpush1.bf16.msra.mxu0 %v7893_v27  ;;  %6775 = vmatpush1.bf16.msra.mxu1 %v8021_v28  ;;  %v6431_v42 = vpop.f32.mrb[0].mxu0  ;;  %v6474_v55 = vpop.f32.mrb[1].mxu1  ;;  %v462_v27 = vld [vmem:[%s9106_s28 + $0x688] sm:$0xff] }
 0x155   : > { %6735 = vmatprep.subr.bf16.mxu0 %v7902_v30  ;;  %6776 = vmatprep.subr.bf16.mxu1 %v8030_v31  ;;  %v6433_v50 = vpop.f32.mrb[1].mxu0  ;;  %v9473_v54 = vadd.f32 %v6472_v47, %v6431_v42  ;;  %v6476_v61 = vpop.f32.mrb[2].mxu1  ;;  %v466_v28 = vld [vmem:[%s9106_s28 + $0x6a8] sm:$0xff]  ;;  %v7933_v30 = vcombine.low %v326_v13, %v330_v14  ;;  %v8061_v31 = vcombine.low %v454_v16, %v458_v18 }
 0x156   : > { %v6435_v56 = vpop.f32.mrb[2].mxu0  ;;  %v9475_v58 = vadd.f32 %v6474_v55, %v6433_v50  ;;  %v6477_v1 = vpop.f32.mrb[3].mxu1  ;;  %v8070_v34 = vcombine.high %v462_v27, %v466_v28  ;;  %v8069_v42 = vcombine.low %v462_v27, %v466_v28  ;;  %v354_v47 = vld [vmem:[%s9106_s28 + $0x328] sm:$0xff] }
 0x157   : > { %v6436_v62 = vpop.f32.mrb[3].mxu0  ;;  %v478_v50 = vld [vmem:[%s9106_s28 + $0x708] sm:$0xff]  ;;  %v7958_v56 = vcombine.high %v350_v46, %v354_v47  ;;  %v7957_v1 = vcombine.low %v350_v46, %v354_v47 }
 0x158   : > { %6736 = vmatpush1.bf16.msra.mxu0 %v7901_v38  ;;  %6777 = vmatpush1.bf16.msra.mxu1 %v8029_v39  ;;  %v470_v38 = vld [vmem:[%s9106_s28 + $0x6c8] sm:$0xff] }
 0x159   : > { %6737 = vmatprep.subr.bf16.mxu0 %v7910_v40  ;;  %6778 = vmatprep.subr.bf16.mxu1 %v8038_v43  ;;  %v474_v39 = vld [vmem:[%s9106_s28 + $0x6e8] sm:$0xff]  ;;  %v7941_v40 = vcombine.low %v334_v25, %v338_v26  ;;  %v7950_v43 = vcombine.high %v342_v35, %v346_v36 }
 0x15a   : > { %v8078_v44 = vcombine.high %v470_v38, %v474_v39  ;;  %v482_v51 = vld [vmem:[%s9106_s28 + $0x728] sm:$0xff]  ;;  %v8077_v55 = vcombine.low %v470_v38, %v474_v39 }
 0x15b   : > { %v358_v61 = vld [vmem:[%s9106_s28 + $0x348] sm:$0xff] }
 0x15c   : > { %6738 = vmatpush1.bf16.msra.mxu0 %v7909_v57  ;;  %6779 = vmatpush1.bf16.msra.mxu1 %v8037_v63  ;;  %v8086_v57 = vcombine.high %v478_v50, %v482_v51  ;;  %v362_v62 = vld [vmem:[%s9106_s28 + $0x368] sm:$0xff] }
 0x15d   : > { %6739 = vmatprep.subr.bf16.mxu0 %v7918_v0  ;;  %6780 = vmatprep.subr.bf16.mxu1 %v8046_v2  ;;  %v486_v63 = vld [vmem:[%s9106_s28 + $0x748] sm:$0xff]  ;;  %v8085_v2 = vcombine.low %v478_v50, %v482_v51  ;;  %v7966_v4 = vcombine.high %v358_v61, %v362_v62 }
 0x15e   : > { %v490_v0 = vld [vmem:[%s9106_s28 + $0x768] sm:$0xff] }
 0x15f   : > { %v8094_v5 = vcombine.high %v486_v63, %v490_v0  ;;  %v366_v6 = vld [vmem:[%s9106_s28 + $0x388] sm:$0xff] }
 0x160   : > { %6740 = vmatpush1.bf16.msra.mxu0 %v7917_v9  ;;  %6781 = vmatpush1.bf16.msra.mxu1 %v8045_v10  ;;  %v370_v8 = vld [vmem:[%s9106_s28 + $0x3a8] sm:$0xff] }
 0x161   : > { %6741 = vmatprep.subr.bf16.mxu0 %v7926_v11  ;;  %6782 = vmatprep.subr.bf16.mxu1 %v8054_v12  ;;  %v494_v9 = vld [vmem:[%s9106_s28 + $0x788] sm:$0xff]  ;;  %v7965_v11 = vcombine.low %v358_v61, %v362_v62  ;;  %v8093_v12 = vcombine.low %v486_v63, %v490_v0  ;;  %v7974_v13 = vcombine.high %v366_v6, %v370_v8 }
 0x162   : > { %v498_v10 = vld [vmem:[%s9106_s28 + $0x7a8] sm:$0xff] }
 0x163   : > { %v8102_v14 = vcombine.high %v494_v9, %v498_v10  ;;  %v374_v16 = vld [vmem:[%s9106_s28 + $0x3c8] sm:$0xff] }
 0x164   : > { %6742 = vmatpush1.bf16.msra.mxu0 %v7925_v20  ;;  %6783 = vmatpush1.bf16.msra.mxu1 %v8053_v22  ;;  %v378_v18 = vld [vmem:[%s9106_s28 + $0x3e8] sm:$0xff] }
 0x165   : > { %6743 = vmatprep.subr.bf16.mxu0 %v7934_v23  ;;  %6784 = vmatprep.subr.bf16.mxu1 %v8062_v24  ;;  %v502_v20 = vld [vmem:[%s9106_s28 + $0x7c8] sm:$0xff]  ;;  %v7973_v23 = vcombine.low %v366_v6, %v370_v8  ;;  %v8101_v24 = vcombine.low %v494_v9, %v498_v10  ;;  %v7982_v25 = vcombine.high %v374_v16, %v378_v18 }
 0x166   : > { %v506_v22 = vld [vmem:[%s9106_s28 + $0x7e8] sm:$0xff] }
 0x167   : > { %v8110_v26 = vcombine.high %v502_v20, %v506_v22  ;;  %v510_v27 = vld [vmem:[%s9106_s28 + $0x808] sm:$0xff] }
 0x168   : > { %6744 = vmatpush1.bf16.msra.mxu0 %v7933_v30  ;;  %6785 = vmatpush1.bf16.msra.mxu1 %v8061_v31  ;;  %v514_v28 = vld [vmem:[%s9106_s28 + $0x828] sm:$0xff] }
 0x169   : > { %6745 = vmatprep.subr.bf16.mxu0 %v7942_v33  ;;  %6786 = vmatprep.subr.bf16.mxu1 %v8070_v34  ;;  %v638_v30 = vld [vmem:[%s9106_s28 + $0xc08] sm:$0xff]  ;;  %v7981_v33 = vcombine.low %v374_v16, %v378_v18  ;;  %v8109_v34 = vcombine.low %v502_v20, %v506_v22  ;;  %v8118_v35 = vcombine.high %v510_v27, %v514_v28 }
 0x16a   : > { %v642_v31 = vld [vmem:[%s9106_s28 + $0xc28] sm:$0xff] }
 0x16b   : > { %v8246_v36 = vcombine.high %v638_v30, %v642_v31  ;;  %v518_v38 = vld [vmem:[%s9106_s28 + $0x848] sm:$0xff] }
 0x16c   : > { %6746 = vmatpush1.bf16.msra.mxu0 %v7941_v40  ;;  %6787 = vmatpush1.bf16.msra.mxu1 %v8069_v42  ;;  %v522_v39 = vld [vmem:[%s9106_s28 + $0x868] sm:$0xff] }
 0x16d   : > { %6747 = vmatprep.subr.bf16.mxu0 %v7950_v43  ;;  %6788 = vmatprep.subr.bf16.mxu1 %v8078_v44  ;;  %v646_v40 = vld [vmem:[%s9106_s28 + $0xc48] sm:$0xff]  ;;  %v8117_v43 = vcombine.low %v510_v27, %v514_v28  ;;  %v8245_v44 = vcombine.low %v638_v30, %v642_v31  ;;  %v8126_v46 = vcombine.high %v518_v38, %v522_v39 }
 0x16e   : > { %v650_v42 = vld [vmem:[%s9106_s28 + $0xc68] sm:$0xff] }
 0x16f   : > { %v8254_v47 = vcombine.high %v646_v40, %v650_v42  ;;  %v526_v50 = vld [vmem:[%s9106_s28 + $0x888] sm:$0xff] }
 0x170   : > { %6748 = vmatpush1.bf16.msra.mxu0 %v7949_v53  ;;  %6789 = vmatpush1.bf16.msra.mxu1 %v8077_v55  ;;  %v530_v51 = vld [vmem:[%s9106_s28 + $0x8a8] sm:$0xff] }
 0x171   : > { %6749 = vmatprep.subr.bf16.mxu0 %v7958_v56  ;;  %6790 = vmatprep.subr.bf16.mxu1 %v8086_v57  ;;  %v654_v53 = vld [vmem:[%s9106_s28 + $0xc88] sm:$0xff]  ;;  %v8125_v56 = vcombine.low %v518_v38, %v522_v39  ;;  %v8253_v57 = vcombine.low %v646_v40, %v650_v42  ;;  %v8134_v61 = vcombine.high %v526_v50, %v530_v51 }
 0x172   : > { %v658_v55 = vld [vmem:[%s9106_s28 + $0xca8] sm:$0xff] }
 0x173   : > { %v8262_v62 = vcombine.high %v654_v53, %v658_v55  ;;  %v534_v63 = vld [vmem:[%s9106_s28 + $0x8c8] sm:$0xff] }
 0x174   : > { %6750 = vmatpush1.bf16.msra.mxu0 %v7957_v1  ;;  %6791 = vmatpush1.bf16.msra.mxu1 %v8085_v2  ;;  %v538_v0 = vld [vmem:[%s9106_s28 + $0x8e8] sm:$0xff] }
 0x175   : > { %6751 = vmatprep.subr.bf16.mxu0 %v7966_v4  ;;  %6792 = vmatprep.subr.bf16.mxu1 %v8094_v5  ;;  %v662_v1 = vld [vmem:[%s9106_s28 + $0xcc8] sm:$0xff]  ;;  %v8133_v4 = vcombine.low %v526_v50, %v530_v51  ;;  %v8261_v5 = vcombine.low %v654_v53, %v658_v55  ;;  %v8142_v6 = vcombine.high %v534_v63, %v538_v0 }
 0x176   : > { %v666_v2 = vld [vmem:[%s9106_s28 + $0xce8] sm:$0xff] }
 0x177   : > { %v8270_v8 = vcombine.high %v662_v1, %v666_v2  ;;  %v542_v9 = vld [vmem:[%s9106_s28 + $0x908] sm:$0xff] }
 0x178   : > { %6752 = vmatpush1.bf16.msra.mxu0 %v7965_v11  ;;  %6793 = vmatpush1.bf16.msra.mxu1 %v8093_v12  ;;  %v546_v10 = vld [vmem:[%s9106_s28 + $0x928] sm:$0xff] }
 0x179   : > { %6753 = vmatprep.subr.bf16.mxu0 %v7974_v13  ;;  %6794 = vmatprep.subr.bf16.mxu1 %v8102_v14  ;;  %v670_v11 = vld [vmem:[%s9106_s28 + $0xd08] sm:$0xff]  ;;  %v8141_v13 = vcombine.low %v534_v63, %v538_v0  ;;  %v8269_v14 = vcombine.low %v662_v1, %v666_v2  ;;  %v8150_v16 = vcombine.high %v542_v9, %v546_v10 }
 0x17a   : > { %v674_v12 = vld [vmem:[%s9106_s28 + $0xd28] sm:$0xff] }
 0x17b   : > { %v8278_v18 = vcombine.high %v670_v11, %v674_v12  ;;  %v550_v20 = vld [vmem:[%s9106_s28 + $0x948] sm:$0xff] }
 0x17c   : > { %6754 = vmatpush1.bf16.msra.mxu0 %v7973_v23  ;;  %6795 = vmatpush1.bf16.msra.mxu1 %v8101_v24  ;;  %v554_v22 = vld [vmem:[%s9106_s28 + $0x968] sm:$0xff] }
 0x17d   : > { %6755 = vmatprep.subr.bf16.mxu0 %v7982_v25  ;;  %6796 = vmatprep.subr.bf16.mxu1 %v8110_v26  ;;  %v678_v23 = vld [vmem:[%s9106_s28 + $0xd48] sm:$0xff]  ;;  %v8149_v25 = vcombine.low %v542_v9, %v546_v10  ;;  %v8277_v26 = vcombine.low %v670_v11, %v674_v12  ;;  %v8158_v27 = vcombine.high %v550_v20, %v554_v22 }
 0x17e   : > { %v682_v24 = vld [vmem:[%s9106_s28 + $0xd68] sm:$0xff] }
 0x17f   : > { %v8286_v28 = vcombine.high %v678_v23, %v682_v24  ;;  %v558_v30 = vld [vmem:[%s9106_s28 + $0x988] sm:$0xff] }
 0x180   : > { %6756 = vmatpush1.bf16.msra.mxu0 %v7981_v33  ;;  %6797 = vmatpush1.bf16.msra.mxu1 %v8109_v34  ;;  %v562_v31 = vld [vmem:[%s9106_s28 + $0x9a8] sm:$0xff] }
 0x181   : > { %6807 = vmatprep.subr.bf16.mxu0 %v8118_v35  ;;  %6848 = vmatprep.subr.bf16.mxu1 %v8246_v36  ;;  %v686_v33 = vld [vmem:[%s9106_s28 + $0xd88] sm:$0xff]  ;;  %v8157_v35 = vcombine.low %v550_v20, %v554_v22  ;;  %v8285_v36 = vcombine.low %v678_v23, %v682_v24  ;;  %v8166_v38 = vcombine.high %v558_v30, %v562_v31 }
 0x182   : > { %v690_v34 = vld [vmem:[%s9106_s28 + $0xda8] sm:$0xff] }
 0x183   : > { %6758 = vmatmul.mubr.bf16.vlgmr.msra.gmra.mrb[16].mxu0 %v9199_v17  ;;  %6799 = vmatmul.mubr.bf16.vlgmr.msra.gmra.mrb[16].mxu1 %v9204_v21  ;;  %v8294_v40 = vcombine.high %v686_v33, %v690_v34  ;;  %v566_v42 = vld [vmem:[%s9106_s28 + $0x9c8] sm:$0xff] }
 0x184   : > { %6808 = vmatpush1.bf16.msra.mxu0 %v8117_v43  ;;  %6849 = vmatpush1.bf16.msra.mxu1 %v8245_v44  ;;  %v570_v43 = vld [vmem:[%s9106_s28 + $0x9e8] sm:$0xff] }
 0x185   : > { %6809 = vmatprep.subr.bf16.mxu0 %v8126_v46  ;;  %6850 = vmatprep.subr.bf16.mxu1 %v8254_v47  ;;  %v694_v50 = vld [vmem:[%s9106_s28 + $0xdc8] sm:$0xff]  ;;  %v8174_v0 = vcombine.high %v566_v42, %v570_v43  ;;  %v8173_v9 = vcombine.low %v566_v42, %v570_v43 }
 0x186   : > { %6839 = vmatprep.mubr.bf16.mxu0 %v9209_v29  ;;  %6880 = vmatprep.mubr.bf16.mxu1 %v9214_v32  ;;  %v698_v51 = vld [vmem:[%s9106_s28 + $0xde8] sm:$0xff] }
 0x187   : > { %v8302_v2 = vcombine.high %v694_v50, %v698_v51  ;;  %v8301_v10 = vcombine.low %v694_v50, %v698_v51  ;;  %v734_v50 = vld [vmem:[%s9106_s28 + $0xf08] sm:$0xff] }
 0x188   : > { %6810 = vmatpush1.bf16.msra.mxu0 %v8125_v56  ;;  %6851 = vmatpush1.bf16.msra.mxu1 %v8253_v57  ;;  %v8165_v57 = vcombine.low %v558_v30, %v562_v31  ;;  %v738_v51 = vld [vmem:[%s9106_s28 + $0xf28] sm:$0xff] }
 0x189   : > { %6811 = vmatprep.subr.bf16.mxu0 %v8134_v61  ;;  %6852 = vmatprep.subr.bf16.mxu1 %v8262_v62 }
 0x18c   : > { %6812 = vmatpush1.bf16.msra.mxu0 %v8133_v4  ;;  %6853 = vmatpush1.bf16.msra.mxu1 %v8261_v5  ;;  %v574_v4 = vld [vmem:[%s9106_s28 + $0xa08] sm:$0xff] }
 0x18d   : > { %6813 = vmatprep.subr.bf16.mxu0 %v8142_v6  ;;  %6854 = vmatprep.subr.bf16.mxu1 %v8270_v8  ;;  %v578_v5 = vld [vmem:[%s9106_s28 + $0xa28] sm:$0xff] }
 0x18e   : > { %v702_v6 = vld [vmem:[%s9106_s28 + $0xe08] sm:$0xff]  ;;  %v8182_v11 = vcombine.high %v574_v4, %v578_v5  ;;  %v8181_v20 = vcombine.low %v574_v4, %v578_v5 }
 0x18f   : > { %v706_v8 = vld [vmem:[%s9106_s28 + $0xe28] sm:$0xff] }
 0x190   : > { %6814 = vmatpush1.bf16.msra.mxu0 %v8141_v13  ;;  %6855 = vmatpush1.bf16.msra.mxu1 %v8269_v14  ;;  %v8310_v12 = vcombine.high %v702_v6, %v706_v8  ;;  %v582_v13 = vld [vmem:[%s9106_s28 + $0xa48] sm:$0xff]  ;;  %v8309_v22 = vcombine.low %v702_v6, %v706_v8 }
 0x191   : > { %6815 = vmatprep.subr.bf16.mxu0 %v8150_v16  ;;  %6856 = vmatprep.subr.bf16.mxu1 %v8278_v18  ;;  %v586_v14 = vld [vmem:[%s9106_s28 + $0xa68] sm:$0xff] }
 0x192   : > { %v710_v16 = vld [vmem:[%s9106_s28 + $0xe48] sm:$0xff]  ;;  %v8190_v23 = vcombine.high %v582_v13, %v586_v14  ;;  %v8189_v30 = vcombine.low %v582_v13, %v586_v14 }
 0x193   : > { %v714_v18 = vld [vmem:[%s9106_s28 + $0xe68] sm:$0xff] }
 0x194   : > { %6816 = vmatpush1.bf16.msra.mxu0 %v8149_v25  ;;  %6857 = vmatpush1.bf16.msra.mxu1 %v8277_v26  ;;  %v6554_v46 = vpop.f32.mrb[4].mxu1  ;;  %v8318_v24 = vcombine.high %v710_v16, %v714_v18  ;;  %v590_v25 = vld [vmem:[%s9106_s28 + $0xa88] sm:$0xff]  ;;  %v8317_v31 = vcombine.low %v710_v16, %v714_v18 }
 0x195   : > { %6817 = vmatprep.subr.bf16.mxu0 %v8158_v27  ;;  %v6513_v39 = vpop.f32.mrb[4].mxu0  ;;  %6858 = vmatprep.subr.bf16.mxu1 %v8286_v28  ;;  %v6556_v55 = vpop.f32.mrb[5].mxu1  ;;  %v594_v26 = vld [vmem:[%s9106_s28 + $0xaa8] sm:$0xff] }
 0x196   : > { %v6514_v44 = vadd.f32 %v6513_v39, %v9473_v54  ;;  %v6515_v47 = vpop.f32.mrb[5].mxu0  ;;  %v6558_v62 = vpop.f32.mrb[6].mxu1  ;;  %v8293_v54 = vcombine.low %v686_v33, %v690_v34  ;;  %v718_v27 = vld [vmem:[%s9106_s28 + $0xe88] sm:$0xff]  ;;  %v8198_v33 = vcombine.high %v590_v25, %v594_v26 }
 0x197   : > { %v6516_v53 = vadd.f32 %v6515_v47, %v9475_v58  ;;  %v6517_v56 = vpop.f32.mrb[6].mxu0  ;;  %v6559_v58 = vpop.f32.mrb[7].mxu1  ;;  %v722_v28 = vld [vmem:[%s9106_s28 + $0xea8] sm:$0xff] }
 0x198   : > { %6818 = vmatpush1.bf16.msra.mxu0 %v8157_v35  ;;  %v9547_v61 = vadd.f32 %v6554_v46, %v6514_v44  ;;  %6859 = vmatpush1.bf16.msra.mxu1 %v8285_v36  ;;  %v6518_v63 = vpop.f32.mrb[7].mxu0  ;;  %v8326_v34 = vcombine.high %v718_v27, %v722_v28  ;;  %v598_v35 = vld [vmem:[%s9106_s28 + $0xac8] sm:$0xff]  ;;  %v8325_v42 = vcombine.low %v718_v27, %v722_v28 }
 0x199   : > { %6819 = vmatprep.subr.bf16.mxu0 %v8166_v38  ;;  %v9549_v1 = vadd.f32 %v6556_v55, %v6516_v53  ;;  %6860 = vmatprep.subr.bf16.mxu1 %v8294_v40  ;;  %v602_v36 = vld [vmem:[%s9106_s28 + $0xae8] sm:$0xff]  ;;  %v8197_v40 = vcombine.low %v590_v25, %v594_v26 }
 0x19a   : > { %v726_v38 = vld [vmem:[%s9106_s28 + $0xec8] sm:$0xff]  ;;  %v8206_v43 = vcombine.high %v598_v35, %v602_v36  ;;  %v8205_v53 = vcombine.low %v598_v35, %v602_v36 }
 0x19b   : > { %v730_v39 = vld [vmem:[%s9106_s28 + $0xee8] sm:$0xff] }
 0x19c   : > { %6820 = vmatpush1.bf16.msra.mxu0 %v8165_v57  ;;  %6861 = vmatpush1.bf16.msra.mxu1 %v8293_v54  ;;  %v8334_v44 = vcombine.high %v726_v38, %v730_v39  ;;  %v606_v46 = vld [vmem:[%s9106_s28 + $0xb08] sm:$0xff]  ;;  %v8333_v55 = vcombine.low %v726_v38, %v730_v39  ;;  %v8342_v57 = vcombine.high %v734_v50, %v738_v51 }
 0x19d   : > { %6821 = vmatprep.subr.bf16.mxu0 %v8174_v0  ;;  %6862 = vmatprep.subr.bf16.mxu1 %v8302_v2  ;;  %v610_v47 = vld [vmem:[%s9106_s28 + $0xb28] sm:$0xff]  ;;  %v8341_v2 = vcombine.low %v734_v50, %v738_v51 }
 0x19e   : > { %v8214_v56 = vcombine.high %v606_v46, %v610_v47  ;;  %v614_v62 = vld [vmem:[%s9106_s28 + $0xb48] sm:$0xff]  ;;  %v8213_v58 = vcombine.low %v606_v46, %v610_v47 }
 0x19f   : > { %v618_v63 = vld [vmem:[%s9106_s28 + $0xb68] sm:$0xff] }
 0x1a0   : > { %6822 = vmatpush1.bf16.msra.mxu0 %v8173_v9  ;;  %6863 = vmatpush1.bf16.msra.mxu1 %v8301_v10  ;;  %v742_v54 = vld [vmem:[%s9106_s28 + $0xf48] sm:$0xff]  ;;  %v8222_v4 = vcombine.high %v614_v62, %v618_v63 }
 0x1a1   : > { %6823 = vmatprep.subr.bf16.mxu0 %v8182_v11  ;;  %6864 = vmatprep.subr.bf16.mxu1 %v8310_v12  ;;  %v746_v0 = vld [vmem:[%s9106_s28 + $0xf68] sm:$0xff]  ;;  %v8221_v11 = vcombine.low %v614_v62, %v618_v63 }
 0x1a2   : > { %v8350_v5 = vcombine.high %v742_v54, %v746_v0  ;;  %v622_v6 = vld [vmem:[%s9106_s28 + $0xb88] sm:$0xff]  ;;  %v8349_v12 = vcombine.low %v742_v54, %v746_v0 }
 0x1a3   : > { %v626_v8 = vld [vmem:[%s9106_s28 + $0xba8] sm:$0xff] }
 0x1a4   : > { %6824 = vmatpush1.bf16.msra.mxu0 %v8181_v20  ;;  %6865 = vmatpush1.bf16.msra.mxu1 %v8309_v22  ;;  %v750_v9 = vld [vmem:[%s9106_s28 + $0xf88] sm:$0xff]  ;;  %v8230_v13 = vcombine.high %v622_v6, %v626_v8 }
 0x1a5   : > { %6825 = vmatprep.subr.bf16.mxu0 %v8190_v23  ;;  %6866 = vmatprep.subr.bf16.mxu1 %v8318_v24  ;;  %v754_v10 = vld [vmem:[%s9106_s28 + $0xfa8] sm:$0xff]  ;;  %v8229_v23 = vcombine.low %v622_v6, %v626_v8 }
 0x1a6   : > { %v8358_v14 = vcombine.high %v750_v9, %v754_v10  ;;  %v630_v16 = vld [vmem:[%s9106_s28 + $0xbc8] sm:$0xff]  ;;  %v8357_v24 = vcombine.low %v750_v9, %v754_v10 }
 0x1a7   : > { %v634_v18 = vld [vmem:[%s9106_s28 + $0xbe8] sm:$0xff] }
 0x1a8   : > { %6826 = vmatpush1.bf16.msra.mxu0 %v8189_v30  ;;  %6867 = vmatpush1.bf16.msra.mxu1 %v8317_v31  ;;  %v758_v20 = vld [vmem:[%s9106_s28 + $0xfc8] sm:$0xff]  ;;  %v8238_v25 = vcombine.high %v630_v16, %v634_v18 }
 0x1a9   : > { %6827 = vmatprep.subr.bf16.mxu0 %v8198_v33  ;;  %6868 = vmatprep.subr.bf16.mxu1 %v8326_v34  ;;  %v762_v22 = vld [vmem:[%s9106_s28 + $0xfe8] sm:$0xff]  ;;  %v8237_v33 = vcombine.low %v630_v16, %v634_v18 }
 0x1aa   : > { %v8366_v26 = vcombine.high %v758_v20, %v762_v22  ;;  %v766_v27 = vld [vmem:[%s9106_s28 + $0x1008] sm:$0xff]  ;;  %v8365_v34 = vcombine.low %v758_v20, %v762_v22 }
 0x1ab   : > { %v770_v28 = vld [vmem:[%s9106_s28 + $0x1028] sm:$0xff] }
 0x1ac   : > { %6828 = vmatpush1.bf16.msra.mxu0 %v8197_v40  ;;  %6869 = vmatpush1.bf16.msra.mxu1 %v8325_v42  ;;  %v894_v30 = vld [vmem:[%s9106_s28 + $0x1408] sm:$0xff]  ;;  %v8374_v35 = vcombine.high %v766_v27, %v770_v28 }
 0x1ad   : > { %6829 = vmatprep.subr.bf16.mxu0 %v8206_v43  ;;  %6870 = vmatprep.subr.bf16.mxu1 %v8334_v44  ;;  %v898_v31 = vld [vmem:[%s9106_s28 + $0x1428] sm:$0xff]  ;;  %v8373_v43 = vcombine.low %v766_v27, %v770_v28 }
 0x1ae   : > { %v8502_v36 = vcombine.high %v894_v30, %v898_v31  ;;  %v774_v38 = vld [vmem:[%s9106_s28 + $0x1048] sm:$0xff]  ;;  %v8501_v44 = vcombine.low %v894_v30, %v898_v31 }
 0x1af   : > { %v778_v39 = vld [vmem:[%s9106_s28 + $0x1068] sm:$0xff] }
 0x1b0   : > { %6830 = vmatpush1.bf16.msra.mxu0 %v8205_v53  ;;  %6871 = vmatpush1.bf16.msra.mxu1 %v8333_v55  ;;  %v902_v40 = vld [vmem:[%s9106_s28 + $0x1448] sm:$0xff]  ;;  %v8382_v46 = vcombine.high %v774_v38, %v778_v39 }
 0x1b1   : > { %6831 = vmatprep.subr.bf16.mxu0 %v8214_v56  ;;  %6872 = vmatprep.subr.bf16.mxu1 %v8342_v57  ;;  %v906_v42 = vld [vmem:[%s9106_s28 + $0x1468] sm:$0xff]  ;;  %v8381_v56 = vcombine.low %v774_v38, %v778_v39 }
 0x1b2   : > { %v8510_v47 = vcombine.high %v902_v40, %v906_v42  ;;  %v782_v50 = vld [vmem:[%s9106_s28 + $0x1088] sm:$0xff]  ;;  %v8509_v57 = vcombine.low %v902_v40, %v906_v42 }
 0x1b3   : > { %v786_v51 = vld [vmem:[%s9106_s28 + $0x10a8] sm:$0xff] }
 0x1b4   : > { %6832 = vmatpush1.bf16.msra.mxu0 %v8213_v58  ;;  %6873 = vmatpush1.bf16.msra.mxu1 %v8341_v2  ;;  %v910_v53 = vld [vmem:[%s9106_s28 + $0x1488] sm:$0xff]  ;;  %v8390_v62 = vcombine.high %v782_v50, %v786_v51 }
 0x1b5   : > { %6833 = vmatprep.subr.bf16.mxu0 %v8222_v4  ;;  %6874 = vmatprep.subr.bf16.mxu1 %v8350_v5  ;;  %v914_v55 = vld [vmem:[%s9106_s28 + $0x14a8] sm:$0xff]  ;;  %v8389_v4 = vcombine.low %v782_v50, %v786_v51 }
 0x1b6   : > { %v8518_v63 = vcombine.high %v910_v53, %v914_v55  ;;  %v790_v54 = vld [vmem:[%s9106_s28 + $0x10c8] sm:$0xff]  ;;  %v8517_v5 = vcombine.low %v910_v53, %v914_v55 }
 0x1b7   : > { %v794_v0 = vld [vmem:[%s9106_s28 + $0x10e8] sm:$0xff] }
 0x1b8   : > { %6834 = vmatpush1.bf16.msra.mxu0 %v8221_v11  ;;  %6875 = vmatpush1.bf16.msra.mxu1 %v8349_v12  ;;  %v918_v58 = vld [vmem:[%s9106_s28 + $0x14c8] sm:$0xff]  ;;  %v8398_v6 = vcombine.high %v790_v54, %v794_v0 }
 0x1b9   : > { %6835 = vmatprep.subr.bf16.mxu0 %v8230_v13  ;;  %6876 = vmatprep.subr.bf16.mxu1 %v8358_v14  ;;  %v922_v2 = vld [vmem:[%s9106_s28 + $0x14e8] sm:$0xff]  ;;  %v8397_v13 = vcombine.low %v790_v54, %v794_v0 }
 0x1ba   : > { %v8526_v8 = vcombine.high %v918_v58, %v922_v2  ;;  %v798_v9 = vld [vmem:[%s9106_s28 + $0x1108] sm:$0xff]  ;;  %v8525_v14 = vcombine.low %v918_v58, %v922_v2 }
 0x1bb   : > { %v802_v10 = vld [vmem:[%s9106_s28 + $0x1128] sm:$0xff] }
 0x1bc   : > { %6836 = vmatpush1.bf16.msra.mxu0 %v8229_v23  ;;  %6877 = vmatpush1.bf16.msra.mxu1 %v8357_v24  ;;  %v926_v11 = vld [vmem:[%s9106_s28 + $0x1508] sm:$0xff]  ;;  %v8406_v16 = vcombine.high %v798_v9, %v802_v10 }
 0x1bd   : > { %6837 = vmatprep.subr.bf16.mxu0 %v8238_v25  ;;  %6878 = vmatprep.subr.bf16.mxu1 %v8366_v26  ;;  %v930_v12 = vld [vmem:[%s9106_s28 + $0x1528] sm:$0xff]  ;;  %v8405_v25 = vcombine.low %v798_v9, %v802_v10 }
 0x1be   : > { %v8534_v18 = vcombine.high %v926_v11, %v930_v12  ;;  %v806_v20 = vld [vmem:[%s9106_s28 + $0x1148] sm:$0xff]  ;;  %v8533_v26 = vcombine.low %v926_v11, %v930_v12 }
 0x1bf   : > { %v810_v22 = vld [vmem:[%s9106_s28 + $0x1168] sm:$0xff] }
 0x1c0   : > { %6838 = vmatpush1.bf16.msra.mxu0 %v8237_v33  ;;  %6879 = vmatpush1.bf16.msra.mxu1 %v8365_v34  ;;  %v934_v23 = vld [vmem:[%s9106_s28 + $0x1548] sm:$0xff]  ;;  %v8414_v27 = vcombine.high %v806_v20, %v810_v22 }
 0x1c1   : > { %6889 = vmatprep.subr.bf16.mxu0 %v8374_v35  ;;  %6930 = vmatprep.subr.bf16.mxu1 %v8502_v36  ;;  %v938_v24 = vld [vmem:[%s9106_s28 + $0x1568] sm:$0xff]  ;;  %v8413_v35 = vcombine.low %v806_v20, %v810_v22 }
 0x1c2   : > { %v8542_v28 = vcombine.high %v934_v23, %v938_v24  ;;  %v814_v30 = vld [vmem:[%s9106_s28 + $0x1188] sm:$0xff]  ;;  %v8541_v36 = vcombine.low %v934_v23, %v938_v24 }
 0x1c3   : > { %6840 = vmatmul.mubr.bf16.vlgmr.msra.gmra.mrb[20].mxu0 %v9279_v37  ;;  %6881 = vmatmul.mubr.bf16.vlgmr.msra.gmra.mrb[20].mxu1 %v9284_v41  ;;  %v818_v31 = vld [vmem:[%s9106_s28 + $0x11a8] sm:$0xff] }
 0x1c4   : > { %6890 = vmatpush1.bf16.msra.mxu0 %v8373_v43  ;;  %6931 = vmatpush1.bf16.msra.mxu1 %v8501_v44  ;;  %v942_v33 = vld [vmem:[%s9106_s28 + $0x1588] sm:$0xff]  ;;  %v8422_v38 = vcombine.high %v814_v30, %v818_v31 }
 0x1c5   : > { %6891 = vmatprep.subr.bf16.mxu0 %v8382_v46  ;;  %6932 = vmatprep.subr.bf16.mxu1 %v8510_v47  ;;  %v946_v34 = vld [vmem:[%s9106_s28 + $0x15a8] sm:$0xff] }
 0x1c6   : > { %6921 = vmatprep.mubr.bf16.mxu0 %v9289_v49  ;;  %6962 = vmatprep.mubr.bf16.mxu1 %v9294_v52  ;;  %v8550_v40 = vcombine.high %v942_v33, %v946_v34  ;;  %v822_v42 = vld [vmem:[%s9106_s28 + $0x11c8] sm:$0xff] }
 0x1c7   : > { %v826_v43 = vld [vmem:[%s9106_s28 + $0x11e8] sm:$0xff] }
 0x1c8   : > { %6892 = vmatpush1.bf16.msra.mxu0 %v8381_v56  ;;  %6933 = vmatpush1.bf16.msra.mxu1 %v8509_v57  ;;  %v950_v50 = vld [vmem:[%s9106_s28 + $0x15c8] sm:$0xff]  ;;  %v8421_v57 = vcombine.low %v814_v30, %v818_v31  ;;  %v8430_v0 = vcombine.high %v822_v42, %v826_v43  ;;  %v8429_v9 = vcombine.low %v822_v42, %v826_v43 }
 0x1c9   : > { %6893 = vmatprep.subr.bf16.mxu0 %v8390_v62  ;;  %6934 = vmatprep.subr.bf16.mxu1 %v8518_v63  ;;  %v954_v51 = vld [vmem:[%s9106_s28 + $0x15e8] sm:$0xff] }
 0x1ca   : > { %v8558_v2 = vcombine.high %v950_v50, %v954_v51  ;;  %v8557_v10 = vcombine.low %v950_v50, %v954_v51  ;;  %v990_v50 = vld [vmem:[%s9106_s28 + $0x1708] sm:$0xff] }
 0x1cb   : > { %v994_v51 = vld [vmem:[%s9106_s28 + $0x1728] sm:$0xff] }
 0x1cc   : > { %6894 = vmatpush1.bf16.msra.mxu0 %v8389_v4  ;;  %6935 = vmatpush1.bf16.msra.mxu1 %v8517_v5  ;;  %v830_v4 = vld [vmem:[%s9106_s28 + $0x1208] sm:$0xff] }
 0x1cd   : > { %6895 = vmatprep.subr.bf16.mxu0 %v8398_v6  ;;  %6936 = vmatprep.subr.bf16.mxu1 %v8526_v8  ;;  %v834_v5 = vld [vmem:[%s9106_s28 + $0x1228] sm:$0xff] }
 0x1ce   : > { %v958_v6 = vld [vmem:[%s9106_s28 + $0x1608] sm:$0xff]  ;;  %v8438_v11 = vcombine.high %v830_v4, %v834_v5  ;;  %v8437_v20 = vcombine.low %v830_v4, %v834_v5 }
 0x1cf   : > { %v962_v8 = vld [vmem:[%s9106_s28 + $0x1628] sm:$0xff] }
 0x1d0   : > { %6896 = vmatpush1.bf16.msra.mxu0 %v8397_v13  ;;  %6937 = vmatpush1.bf16.msra.mxu1 %v8525_v14  ;;  %v8566_v12 = vcombine.high %v958_v6, %v962_v8  ;;  %v838_v13 = vld [vmem:[%s9106_s28 + $0x1248] sm:$0xff]  ;;  %v8565_v22 = vcombine.low %v958_v6, %v962_v8 }
 0x1d1   : > { %6897 = vmatprep.subr.bf16.mxu0 %v8406_v16  ;;  %6938 = vmatprep.subr.bf16.mxu1 %v8534_v18  ;;  %v842_v14 = vld [vmem:[%s9106_s28 + $0x1268] sm:$0xff] }
 0x1d2   : > { %v966_v16 = vld [vmem:[%s9106_s28 + $0x1648] sm:$0xff]  ;;  %v8446_v23 = vcombine.high %v838_v13, %v842_v14  ;;  %v8445_v30 = vcombine.low %v838_v13, %v842_v14 }
 0x1d3   : > { %v970_v18 = vld [vmem:[%s9106_s28 + $0x1668] sm:$0xff] }
 0x1d4   : > { %6898 = vmatpush1.bf16.msra.mxu0 %v8405_v25  ;;  %6939 = vmatpush1.bf16.msra.mxu1 %v8533_v26  ;;  %v8574_v24 = vcombine.high %v966_v16, %v970_v18  ;;  %v846_v25 = vld [vmem:[%s9106_s28 + $0x1288] sm:$0xff]  ;;  %v8573_v31 = vcombine.low %v966_v16, %v970_v18 }
 0x1d5   : > { %6899 = vmatprep.subr.bf16.mxu0 %v8414_v27  ;;  %6940 = vmatprep.subr.bf16.mxu1 %v8542_v28  ;;  %v6636_v46 = vpop.f32.mrb[8].mxu1  ;;  %v850_v26 = vld [vmem:[%s9106_s28 + $0x12a8] sm:$0xff] }
 0x1d6   : > { %v6595_v39 = vpop.f32.mrb[8].mxu0  ;;  %v6638_v55 = vpop.f32.mrb[9].mxu1  ;;  %v974_v27 = vld [vmem:[%s9106_s28 + $0x1688] sm:$0xff] }
 0x1d7   : > { %v6596_v44 = vadd.f32 %v6595_v39, %v9547_v61  ;;  %v6597_v47 = vpop.f32.mrb[9].mxu0  ;;  %v6640_v63 = vpop.f32.mrb[10].mxu1  ;;  %v8549_v61 = vcombine.low %v942_v33, %v946_v34  ;;  %v978_v28 = vld [vmem:[%s9106_s28 + $0x16a8] sm:$0xff]  ;;  %v8454_v33 = vcombine.high %v846_v25, %v850_v26 }
 0x1d8   : > { %v6598_v53 = vadd.f32 %v6597_v47, %v9549_v1  ;;  %v6599_v56 = vpop.f32.mrb[10].mxu0  ;;  %6900 = vmatpush1.bf16.msra.mxu0 %v8413_v35  ;;  %6941 = vmatpush1.bf16.msra.mxu1 %v8541_v36  ;;  %v6641_v1 = vpop.f32.mrb[11].mxu1  ;;  %v8582_v34 = vcombine.high %v974_v27, %v978_v28  ;;  %v854_v35 = vld [vmem:[%s9106_s28 + $0x12c8] sm:$0xff]  ;;  %v8581_v42 = vcombine.low %v974_v27, %v978_v28 }
 0x1d9   : > { %v9621_v62 = vadd.f32 %v6636_v46, %v6596_v44  ;;  %v6600_v54 = vpop.f32.mrb[11].mxu0  ;;  %6901 = vmatprep.subr.bf16.mxu0 %v8422_v38  ;;  %6942 = vmatprep.subr.bf16.mxu1 %v8550_v40  ;;  %v858_v36 = vld [vmem:[%s9106_s28 + $0x12e8] sm:$0xff]  ;;  %v8453_v40 = vcombine.low %v846_v25, %v850_v26 }
 0x1da   : > { %v9623_v58 = vadd.f32 %v6638_v55, %v6598_v53  ;;  %v982_v38 = vld [vmem:[%s9106_s28 + $0x16c8] sm:$0xff]  ;;  %v8462_v43 = vcombine.high %v854_v35, %v858_v36  ;;  %v8461_v53 = vcombine.low %v854_v35, %v858_v36 }
 0x1db   : > { %v986_v39 = vld [vmem:[%s9106_s28 + $0x16e8] sm:$0xff] }
 0x1dc   : > { %6902 = vmatpush1.bf16.msra.mxu0 %v8421_v57  ;;  %6943 = vmatpush1.bf16.msra.mxu1 %v8549_v61  ;;  %v8590_v44 = vcombine.high %v982_v38, %v986_v39  ;;  %v862_v46 = vld [vmem:[%s9106_s28 + $0x1308] sm:$0xff]  ;;  %v8589_v55 = vcombine.low %v982_v38, %v986_v39  ;;  %v8598_v57 = vcombine.high %v990_v50, %v994_v51 }
 0x1dd   : > { %6903 = vmatprep.subr.bf16.mxu0 %v8430_v0  ;;  %6944 = vmatprep.subr.bf16.mxu1 %v8558_v2  ;;  %v866_v47 = vld [vmem:[%s9106_s28 + $0x1328] sm:$0xff]  ;;  %v8597_v2 = vcombine.low %v990_v50, %v994_v51 }
 0x1de   : > { %v8470_v56 = vcombine.high %v862_v46, %v866_v47  ;;  %v870_v63 = vld [vmem:[%s9106_s28 + $0x1348] sm:$0xff]  ;;  %v8469_v1 = vcombine.low %v862_v46, %v866_v47 }
 0x1df   : > { %v874_v54 = vld [vmem:[%s9106_s28 + $0x1368] sm:$0xff] }
 0x1e0   : > { %6904 = vmatpush1.bf16.msra.mxu0 %v8429_v9  ;;  %6945 = vmatpush1.bf16.msra.mxu1 %v8557_v10  ;;  %v998_v61 = vld [vmem:[%s9106_s28 + $0x1748] sm:$0xff]  ;;  %v8478_v4 = vcombine.high %v870_v63, %v874_v54 }
 0x1e1   : > { %6905 = vmatprep.subr.bf16.mxu0 %v8438_v11  ;;  %6946 = vmatprep.subr.bf16.mxu1 %v8566_v12  ;;  %v1002_v0 = vld [vmem:[%s9106_s28 + $0x1768] sm:$0xff]  ;;  %v8477_v11 = vcombine.low %v870_v63, %v874_v54 }
 0x1e2   : > { %v8606_v5 = vcombine.high %v998_v61, %v1002_v0  ;;  %v878_v6 = vld [vmem:[%s9106_s28 + $0x1388] sm:$0xff]  ;;  %v8605_v12 = vcombine.low %v998_v61, %v1002_v0 }
 0x1e3   : > { %v882_v8 = vld [vmem:[%s9106_s28 + $0x13a8] sm:$0xff] }
 0x1e4   : > { %6906 = vmatpush1.bf16.msra.mxu0 %v8437_v20  ;;  %6947 = vmatpush1.bf16.msra.mxu1 %v8565_v22  ;;  %v1006_v9 = vld [vmem:[%s9106_s28 + $0x1788] sm:$0xff]  ;;  %v8486_v13 = vcombine.high %v878_v6, %v882_v8 }
 0x1e5   : > { %6907 = vmatprep.subr.bf16.mxu0 %v8446_v23  ;;  %6948 = vmatprep.subr.bf16.mxu1 %v8574_v24  ;;  %v1010_v10 = vld [vmem:[%s9106_s28 + $0x17a8] sm:$0xff]  ;;  %v8485_v23 = vcombine.low %v878_v6, %v882_v8 }
 0x1e6   : > { %v8614_v14 = vcombine.high %v1006_v9, %v1010_v10  ;;  %v886_v16 = vld [vmem:[%s9106_s28 + $0x13c8] sm:$0xff]  ;;  %v8613_v24 = vcombine.low %v1006_v9, %v1010_v10 }
 0x1e7   : > { %v890_v18 = vld [vmem:[%s9106_s28 + $0x13e8] sm:$0xff] }
 0x1e8   : > { %6908 = vmatpush1.bf16.msra.mxu0 %v8445_v30  ;;  %6949 = vmatpush1.bf16.msra.mxu1 %v8573_v31  ;;  %v1014_v20 = vld [vmem:[%s9106_s28 + $0x17c8] sm:$0xff]  ;;  %v8494_v25 = vcombine.high %v886_v16, %v890_v18 }
 0x1e9   : > { %6909 = vmatprep.subr.bf16.mxu0 %v8454_v33  ;;  %6950 = vmatprep.subr.bf16.mxu1 %v8582_v34  ;;  %v1018_v22 = vld [vmem:[%s9106_s28 + $0x17e8] sm:$0xff]  ;;  %v8493_v33 = vcombine.low %v886_v16, %v890_v18 }
 0x1ea   : > { %v8622_v26 = vcombine.high %v1014_v20, %v1018_v22  ;;  %v1022_v27 = vld [vmem:[%s9106_s28 + $0x1808] sm:$0xff]  ;;  %v8621_v34 = vcombine.low %v1014_v20, %v1018_v22 }
 0x1eb   : > { %v1026_v28 = vld [vmem:[%s9106_s28 + $0x1828] sm:$0xff] }
 0x1ec   : > { %6910 = vmatpush1.bf16.msra.mxu0 %v8453_v40  ;;  %6951 = vmatpush1.bf16.msra.mxu1 %v8581_v42  ;;  %v1150_v30 = vld [vmem:[%s9106_s28 + $0x1c08] sm:$0xff]  ;;  %v8630_v35 = vcombine.high %v1022_v27, %v1026_v28 }
 0x1ed   : > { %6911 = vmatprep.subr.bf16.mxu0 %v8462_v43  ;;  %6952 = vmatprep.subr.bf16.mxu1 %v8590_v44  ;;  %v1154_v31 = vld [vmem:[%s9106_s28 + $0x1c28] sm:$0xff]  ;;  %v8629_v43 = vcombine.low %v1022_v27, %v1026_v28 }
 0x1ee   : > { %v8758_v36 = vcombine.high %v1150_v30, %v1154_v31  ;;  %v1030_v38 = vld [vmem:[%s9106_s28 + $0x1848] sm:$0xff]  ;;  %v8757_v44 = vcombine.low %v1150_v30, %v1154_v31 }
 0x1ef   : > { %v1034_v39 = vld [vmem:[%s9106_s28 + $0x1868] sm:$0xff] }
 0x1f0   : > { %6912 = vmatpush1.bf16.msra.mxu0 %v8461_v53  ;;  %6953 = vmatpush1.bf16.msra.mxu1 %v8589_v55  ;;  %v1158_v40 = vld [vmem:[%s9106_s28 + $0x1c48] sm:$0xff]  ;;  %v8638_v46 = vcombine.high %v1030_v38, %v1034_v39 }
 0x1f1   : > { %6913 = vmatprep.subr.bf16.mxu0 %v8470_v56  ;;  %6954 = vmatprep.subr.bf16.mxu1 %v8598_v57  ;;  %v1162_v42 = vld [vmem:[%s9106_s28 + $0x1c68] sm:$0xff]  ;;  %v8637_v56 = vcombine.low %v1030_v38, %v1034_v39 }
 0x1f2   : > { %v8766_v47 = vcombine.high %v1158_v40, %v1162_v42  ;;  %v1038_v50 = vld [vmem:[%s9106_s28 + $0x1888] sm:$0xff]  ;;  %v8765_v57 = vcombine.low %v1158_v40, %v1162_v42 }
 0x1f3   : > { %v1042_v51 = vld [vmem:[%s9106_s28 + $0x18a8] sm:$0xff] }
 0x1f4   : > { %6914 = vmatpush1.bf16.msra.mxu0 %v8469_v1  ;;  %6955 = vmatpush1.bf16.msra.mxu1 %v8597_v2  ;;  %v1166_v53 = vld [vmem:[%s9106_s28 + $0x1c88] sm:$0xff]  ;;  %v8646_v63 = vcombine.high %v1038_v50, %v1042_v51 }
 0x1f5   : > { %6915 = vmatprep.subr.bf16.mxu0 %v8478_v4  ;;  %6956 = vmatprep.subr.bf16.mxu1 %v8606_v5  ;;  %v1170_v55 = vld [vmem:[%s9106_s28 + $0x1ca8] sm:$0xff]  ;;  %v8645_v4 = vcombine.low %v1038_v50, %v1042_v51 }
 0x1f6   : > { %v8774_v54 = vcombine.high %v1166_v53, %v1170_v55  ;;  %v1046_v61 = vld [vmem:[%s9106_s28 + $0x18c8] sm:$0xff]  ;;  %v8773_v5 = vcombine.low %v1166_v53, %v1170_v55  ;;  %v213_v53 = vld [vmem:[#allocation2] sm:$0xff] }
 0x1f7   : > { %v1050_v0 = vld [vmem:[%s9106_s28 + $0x18e8] sm:$0xff] }
 0x1f8   : > { %6916 = vmatpush1.bf16.msra.mxu0 %v8477_v11  ;;  %6957 = vmatpush1.bf16.msra.mxu1 %v8605_v12  ;;  %v1174_v1 = vld [vmem:[%s9106_s28 + $0x1cc8] sm:$0xff]  ;;  %v8654_v6 = vcombine.high %v1046_v61, %v1050_v0 }
 0x1f9   : > { %6917 = vmatprep.subr.bf16.mxu0 %v8486_v13  ;;  %6958 = vmatprep.subr.bf16.mxu1 %v8614_v14  ;;  %v1178_v2 = vld [vmem:[%s9106_s28 + $0x1ce8] sm:$0xff]  ;;  %v8653_v13 = vcombine.low %v1046_v61, %v1050_v0 }
 0x1fa   : > { %v8782_v8 = vcombine.high %v1174_v1, %v1178_v2  ;;  %v1054_v9 = vld [vmem:[%s9106_s28 + $0x1908] sm:$0xff]  ;;  %v8781_v14 = vcombine.low %v1174_v1, %v1178_v2 }
 0x1fb   : > { %v1058_v10 = vld [vmem:[%s9106_s28 + $0x1928] sm:$0xff] }
 0x1fc   : > { %6918 = vmatpush1.bf16.msra.mxu0 %v8485_v23  ;;  %6959 = vmatpush1.bf16.msra.mxu1 %v8613_v24  ;;  %v1182_v11 = vld [vmem:[%s9106_s28 + $0x1d08] sm:$0xff]  ;;  %v8662_v16 = vcombine.high %v1054_v9, %v1058_v10 }
 0x1fd   : > { %6919 = vmatprep.subr.bf16.mxu0 %v8494_v25  ;;  %6960 = vmatprep.subr.bf16.mxu1 %v8622_v26  ;;  %v1186_v12 = vld [vmem:[%s9106_s28 + $0x1d28] sm:$0xff]  ;;  %v8661_v25 = vcombine.low %v1054_v9, %v1058_v10 }
 0x1fe   : > { %v8790_v18 = vcombine.high %v1182_v11, %v1186_v12  ;;  %v1062_v20 = vld [vmem:[%s9106_s28 + $0x1948] sm:$0xff]  ;;  %v8789_v26 = vcombine.low %v1182_v11, %v1186_v12 }
 0x1ff   : > { %v1066_v22 = vld [vmem:[%s9106_s28 + $0x1968] sm:$0xff] }
 0x200   : > { %6920 = vmatpush1.bf16.msra.mxu0 %v8493_v33  ;;  %6961 = vmatpush1.bf16.msra.mxu1 %v8621_v34  ;;  %v1190_v23 = vld [vmem:[%s9106_s28 + $0x1d48] sm:$0xff]  ;;  %v8670_v27 = vcombine.high %v1062_v20, %v1066_v22 }
 0x201   : > { %6971 = vmatprep.subr.bf16.mxu0 %v8630_v35  ;;  %7012 = vmatprep.subr.bf16.mxu1 %v8758_v36  ;;  %v1194_v24 = vld [vmem:[%s9106_s28 + $0x1d68] sm:$0xff]  ;;  %v8669_v35 = vcombine.low %v1062_v20, %v1066_v22 }
 0x202   : > { %v8798_v28 = vcombine.high %v1190_v23, %v1194_v24  ;;  %v1070_v30 = vld [vmem:[%s9106_s28 + $0x1988] sm:$0xff]  ;;  %v8797_v36 = vcombine.low %v1190_v23, %v1194_v24 }
 0x203   : > { %6922 = vmatmul.mubr.bf16.vlgmr.msra.gmra.mrb[24].mxu0 %v9359_v3  ;;  %6963 = vmatmul.mubr.bf16.vlgmr.msra.gmra.mrb[24].mxu1 %v9364_v7  ;;  %v1074_v31 = vld [vmem:[%s9106_s28 + $0x19a8] sm:$0xff] }
 0x204   : > { %6972 = vmatpush1.bf16.msra.mxu0 %v8629_v43  ;;  %7013 = vmatpush1.bf16.msra.mxu1 %v8757_v44  ;;  %v1198_v33 = vld [vmem:[%s9106_s28 + $0x1d88] sm:$0xff]  ;;  %v8678_v38 = vcombine.high %v1070_v30, %v1074_v31 }
 0x205   : > { %6973 = vmatprep.subr.bf16.mxu0 %v8638_v46  ;;  %7014 = vmatprep.subr.bf16.mxu1 %v8766_v47  ;;  %v1202_v34 = vld [vmem:[%s9106_s28 + $0x1da8] sm:$0xff] }
 0x206   : > { %7003 = vmatprep.mubr.bf16.mxu0 %v9369_v15  ;;  %7044 = vmatprep.mubr.bf16.mxu1 %v9374_v19  ;;  %v8806_v40 = vcombine.high %v1198_v33, %v1202_v34  ;;  %v1078_v42 = vld [vmem:[%s9106_s28 + $0x19c8] sm:$0xff]  ;;  %v8805_v1 = vcombine.low %v1198_v33, %v1202_v34 }
 0x207   : > { %v1082_v43 = vld [vmem:[%s9106_s28 + $0x19e8] sm:$0xff] }
 0x208   : > { %6974 = vmatpush1.bf16.msra.mxu0 %v8637_v56  ;;  %7015 = vmatpush1.bf16.msra.mxu1 %v8765_v57  ;;  %v1206_v50 = vld [vmem:[%s9106_s28 + $0x1dc8] sm:$0xff]  ;;  %v8686_v2 = vcombine.high %v1078_v42, %v1082_v43 }
 0x209   : > { %6975 = vmatprep.subr.bf16.mxu0 %v8646_v63  ;;  %7016 = vmatprep.subr.bf16.mxu1 %v8774_v54  ;;  %v1210_v51 = vld [vmem:[%s9106_s28 + $0x1de8] sm:$0xff]  ;;  %v8677_v63 = vcombine.low %v1070_v30, %v1074_v31 }
 0x20a   : > { %v214_v61 = vld [vmem:[#allocation2 + $0x8] sm:$0xff] }
 0x20b   : > { %v1214_v10 = vld [vmem:[%s9106_s28 + $0x1e08] sm:$0xff] }
 0x20c   : > { %6976 = vmatpush1.bf16.msra.mxu0 %v8645_v4  ;;  %7017 = vmatpush1.bf16.msra.mxu1 %v8773_v5  ;;  %v1218_v11 = vld [vmem:[%s9106_s28 + $0x1e28] sm:$0xff] }
 0x20d   : > { %6977 = vmatprep.subr.bf16.mxu0 %v8654_v6  ;;  %7018 = vmatprep.subr.bf16.mxu1 %v8782_v8  ;;  %v1086_v6 = vld [vmem:[%s9106_s28 + $0x1a08] sm:$0xff] }
 0x20e   : > { %v1090_v8 = vld [vmem:[%s9106_s28 + $0x1a28] sm:$0xff] }
 0x20f   : > { %v1094_v20 = vld [vmem:[%s9106_s28 + $0x1a48] sm:$0xff] }
 0x210   : > { %6978 = vmatpush1.bf16.msra.mxu0 %v8653_v13  ;;  %7019 = vmatpush1.bf16.msra.mxu1 %v8781_v14  ;;  %v8685_v13 = vcombine.low %v1078_v42, %v1082_v43  ;;  %v8813_v14 = vcombine.low %v1206_v50, %v1210_v51  ;;  %v1098_v22 = vld [vmem:[%s9106_s28 + $0x1a68] sm:$0xff] }
 0x211   : > { %6979 = vmatprep.subr.bf16.mxu0 %v8662_v16  ;;  %7020 = vmatprep.subr.bf16.mxu1 %v8790_v18  ;;  %v8694_v16 = vcombine.high %v1086_v6, %v1090_v8  ;;  %v8822_v18 = vcombine.high %v1214_v10, %v1218_v11  ;;  %v1222_v23 = vld [vmem:[%s9106_s28 + $0x1e48] sm:$0xff] }
 0x212   : > { %v1226_v24 = vld [vmem:[%s9106_s28 + $0x1e68] sm:$0xff] }
 0x213   : > { %v1102_v30 = vld [vmem:[%s9106_s28 + $0x1a88] sm:$0xff] }
 0x214   : > { %6980 = vmatpush1.bf16.msra.mxu0 %v8661_v25  ;;  %7021 = vmatpush1.bf16.msra.mxu1 %v8789_v26  ;;  %v8693_v25 = vcombine.low %v1086_v6, %v1090_v8  ;;  %v8821_v26 = vcombine.low %v1214_v10, %v1218_v11  ;;  %v1106_v31 = vld [vmem:[%s9106_s28 + $0x1aa8] sm:$0xff] }
 0x215   : > { %6981 = vmatprep.subr.bf16.mxu0 %v8670_v27  ;;  %7022 = vmatprep.subr.bf16.mxu1 %v8798_v28  ;;  %v8702_v27 = vcombine.high %v1094_v20, %v1098_v22  ;;  %v8830_v28 = vcombine.high %v1222_v23, %v1226_v24  ;;  %v1230_v33 = vld [vmem:[%s9106_s28 + $0x1e88] sm:$0xff] }
 0x216   : > { %v6677_v39 = vpop.f32.mrb[12].mxu0  ;;  %v6718_v46 = vpop.f32.mrb[12].mxu1  ;;  %v1234_v34 = vld [vmem:[%s9106_s28 + $0x1ea8] sm:$0xff] }
 0x217   : > { %v6678_v44 = vadd.f32 %v6677_v39, %v9621_v62  ;;  %v6679_v47 = vpop.f32.mrb[13].mxu0  ;;  %v6720_v56 = vpop.f32.mrb[13].mxu1  ;;  %v8838_v39 = vcombine.high %v1230_v33, %v1234_v34  ;;  %v1114_v42 = vld [vmem:[%s9106_s28 + $0x1ae8] sm:$0xff] }
 0x218   : > { %v6680_v55 = vadd.f32 %v6679_v47, %v9623_v58  ;;  %v6681_v57 = vpop.f32.mrb[14].mxu0  ;;  %6982 = vmatpush1.bf16.msra.mxu0 %v8669_v35  ;;  %v6722_v0 = vpop.f32.mrb[14].mxu1  ;;  %7023 = vmatpush1.bf16.msra.mxu1 %v8797_v36  ;;  %v8814_v58 = vcombine.high %v1206_v50, %v1210_v51  ;;  %v8701_v35 = vcombine.low %v1094_v20, %v1098_v22  ;;  %v1238_v43 = vld [vmem:[%s9106_s28 + $0x1ec8] sm:$0xff] }
 0x219   : > { %v6719_v54 = vadd.f32 %v6718_v46, %v6678_v44  ;;  %v6682_v62 = vpop.f32.mrb[15].mxu0  ;;  %6983 = vmatprep.subr.bf16.mxu0 %v8678_v38  ;;  %v6723_v5 = vpop.f32.mrb[15].mxu1  ;;  %7024 = vmatprep.subr.bf16.mxu1 %v8806_v40  ;;  %v8829_v36 = vcombine.low %v1222_v23, %v1226_v24  ;;  %v8710_v38 = vcombine.high %v1102_v30, %v1106_v31  ;;  %v1110_v40 = vld [vmem:[%s9106_s28 + $0x1ac8] sm:$0xff] }
 0x21a   : > { %v6721_v4 = vadd.f32 %v6720_v56, %v6680_v55  ;;  %v1242_v44 = vld [vmem:[%s9106_s28 + $0x1ee8] sm:$0xff]  ;;  %v8709_v46 = vcombine.low %v1102_v30, %v1106_v31  ;;  %v8837_v47 = vcombine.low %v1230_v33, %v1234_v34  ;;  %v8718_v50 = vcombine.high %v1110_v40, %v1114_v42  ;;  %v255_v30 = vld [vmem:[%s9106_s28 + $0x10] sm:$0xff] }
 0x21b   : > { %v7709_v9 = vadd.f32 %v6719_v54, %v213_v53  ;;  %v8846_v51 = vcombine.high %v1238_v43, %v1242_v44  ;;  %v1118_v53 = vld [vmem:[%s9106_s28 + $0x1b08] sm:$0xff]  ;;  %v8845_v54 = vcombine.low %v1238_v43, %v1242_v44  ;;  %v259_v31 = vld [vmem:[%s9106_s28 + $0x30] sm:$0xff] }
 0x21c   : > { %v7710_v12 = vadd.f32 %v6721_v4, %v214_v61  ;;  %6984 = vmatpush1.bf16.msra.mxu0 %v8677_v63  ;;  %7025 = vmatpush1.bf16.msra.mxu1 %v8805_v1  ;;  %v1122_v55 = vld [vmem:[%s9106_s28 + $0x1b28] sm:$0xff]  ;;  %v8717_v63 = vcombine.low %v1110_v40, %v1114_v42  ;;  %v383_v33 = vld [vmem:[%s9106_s28 + $0x410] sm:$0xff] }
 0x21d   : > { %7717 = vst [vmem:[#allocation2] sm:$0xff] %v7709_v9  ;;  %6985 = vmatprep.subr.bf16.mxu0 %v8686_v2  ;;  %7026 = vmatprep.subr.bf16.mxu1 %v8814_v58  ;;  %v1246_v56 = vld [vmem:[%s9106_s28 + $0x1f08] sm:$0xff]  ;;  %v8726_v61 = vcombine.high %v1118_v53, %v1122_v55  ;;  %v8725_v5 = vcombine.low %v1118_v53, %v1122_v55  ;;  %v387_v34 = vld [vmem:[%s9106_s28 + $0x430] sm:$0xff] }
 0x21e   : > { %7718 = vst [vmem:[#allocation2 + $0x8] sm:$0xff] %v7710_v12  ;;  %v1250_v57 = vld [vmem:[%s9106_s28 + $0x1f28] sm:$0xff]  ;;  %v263_v40 = vld [vmem:[%s9106_s28 + $0x50] sm:$0xff] }
 0x21f   : > { %v8854_v0 = vcombine.high %v1246_v56, %v1250_v57  ;;  %v1126_v62 = vld [vmem:[%s9106_s28 + $0x1b48] sm:$0xff]  ;;  %v8853_v58 = vcombine.low %v1246_v56, %v1250_v57  ;;  %v267_v42 = vld [vmem:[%s9106_s28 + $0x70] sm:$0xff] }
 0x220   : > { %6986 = vmatpush1.bf16.msra.mxu0 %v8685_v13  ;;  %7027 = vmatpush1.bf16.msra.mxu1 %v8813_v14  ;;  %v1130_v1 = vld [vmem:[%s9106_s28 + $0x1b68] sm:$0xff]  ;;  %v391_v43 = vld [vmem:[%s9106_s28 + $0x450] sm:$0xff] }
 0x221   : > { %6987 = vmatprep.subr.bf16.mxu0 %v8694_v16  ;;  %7028 = vmatprep.subr.bf16.mxu1 %v8822_v18  ;;  %v1254_v2 = vld [vmem:[%s9106_s28 + $0x1f48] sm:$0xff]  ;;  %v8734_v6 = vcombine.high %v1126_v62, %v1130_v1  ;;  %v8733_v13 = vcombine.low %v1126_v62, %v1130_v1  ;;  %v395_v44 = vld [vmem:[%s9106_s28 + $0x470] sm:$0xff] }
 0x222   : > { %v1258_v4 = vld [vmem:[%s9106_s28 + $0x1f68] sm:$0xff]  ;;  %v271_v53 = vld [vmem:[%s9106_s28 + $0x90] sm:$0xff] }
 0x223   : > { %v8862_v8 = vcombine.high %v1254_v2, %v1258_v4  ;;  %v1134_v9 = vld [vmem:[%s9106_s28 + $0x1b88] sm:$0xff]  ;;  %v8861_v14 = vcombine.low %v1254_v2, %v1258_v4  ;;  %v275_v55 = vld [vmem:[%s9106_s28 + $0xb0] sm:$0xff] }
 0x224   : > { %6988 = vmatpush1.bf16.msra.mxu0 %v8693_v25  ;;  %7029 = vmatpush1.bf16.msra.mxu1 %v8821_v26  ;;  %v1138_v10 = vld [vmem:[%s9106_s28 + $0x1ba8] sm:$0xff]  ;;  %v399_v56 = vld [vmem:[%s9106_s28 + $0x490] sm:$0xff] }
 0x225   : > { %6989 = vmatprep.subr.bf16.mxu0 %v8702_v27  ;;  %7030 = vmatprep.subr.bf16.mxu1 %v8830_v28  ;;  %v1262_v11 = vld [vmem:[%s9106_s28 + $0x1f88] sm:$0xff]  ;;  %v8742_v16 = vcombine.high %v1134_v9, %v1138_v10  ;;  %v8741_v25 = vcombine.low %v1134_v9, %v1138_v10  ;;  %v403_v57 = vld [vmem:[%s9106_s28 + $0x4b0] sm:$0xff] }
 0x226   : > { %v1266_v12 = vld [vmem:[%s9106_s28 + $0x1fa8] sm:$0xff]  ;;  %v279_v62 = vld [vmem:[%s9106_s28 + $0xd0] sm:$0xff] }
 0x227   : > { %v8870_v18 = vcombine.high %v1262_v11, %v1266_v12  ;;  %v1142_v20 = vld [vmem:[%s9106_s28 + $0x1bc8] sm:$0xff]  ;;  %v8869_v26 = vcombine.low %v1262_v11, %v1266_v12  ;;  %v283_v1 = vld [vmem:[%s9106_s28 + $0xf0] sm:$0xff] }
 0x228   : > { %6990 = vmatpush1.bf16.msra.mxu0 %v8701_v35  ;;  %7031 = vmatpush1.bf16.msra.mxu1 %v8829_v36  ;;  %v1146_v22 = vld [vmem:[%s9106_s28 + $0x1be8] sm:$0xff]  ;;  %v407_v2 = vld [vmem:[%s9106_s28 + $0x4d0] sm:$0xff] }
 0x229   : > { %6991 = vmatprep.subr.bf16.mxu0 %v8710_v38  ;;  %7032 = vmatprep.subr.bf16.mxu1 %v8838_v39  ;;  %v1270_v23 = vld [vmem:[%s9106_s28 + $0x1fc8] sm:$0xff]  ;;  %v8750_v27 = vcombine.high %v1142_v20, %v1146_v22  ;;  %v8749_v35 = vcombine.low %v1142_v20, %v1146_v22  ;;  %v7864_v38 = vcombine.high %v255_v30, %v259_v31  ;;  %v411_v4 = vld [vmem:[%s9106_s28 + $0x4f0] sm:$0xff] }
 0x22a   : > { %v1274_v24 = vld [vmem:[%s9106_s28 + $0x1fe8] sm:$0xff]  ;;  %v7992_v39 = vcombine.high %v383_v33, %v387_v34  ;;  %v287_v9 = vld [vmem:[%s9106_s28 + $0x110] sm:$0xff] }
 0x22b   : > { %v8878_v28 = vcombine.high %v1270_v23, %v1274_v24  ;;  %v8877_v36 = vcombine.low %v1270_v23, %v1274_v24  ;;  %v291_v10 = vld [vmem:[%s9106_s28 + $0x130] sm:$0xff] }
 0x22c   : > { %6992 = vmatpush1.bf16.msra.mxu0 %v8709_v46  ;;  %7033 = vmatpush1.bf16.msra.mxu1 %v8837_v47  ;;  %v7863_v46 = vcombine.low %v255_v30, %v259_v31  ;;  %v7991_v47 = vcombine.low %v383_v33, %v387_v34  ;;  %v415_v11 = vld [vmem:[%s9106_s28 + $0x510] sm:$0xff] }
 0x22d   : > { %6993 = vmatprep.subr.bf16.mxu0 %v8718_v50  ;;  %7034 = vmatprep.subr.bf16.mxu1 %v8846_v51  ;;  %v7872_v50 = vcombine.high %v263_v40, %v267_v42  ;;  %v8000_v51 = vcombine.high %v391_v43, %v395_v44  ;;  %v419_v12 = vld [vmem:[%s9106_s28 + $0x530] sm:$0xff] }
 0x22e   : > { %v295_v20 = vld [vmem:[%s9106_s28 + $0x150] sm:$0xff] }
 0x22f   : > { %v299_v22 = vld [vmem:[%s9106_s28 + $0x170] sm:$0xff] }
 0x230   : > { %6994 = vmatpush1.bf16.msra.mxu0 %v8717_v63  ;;  %7035 = vmatpush1.bf16.msra.mxu1 %v8845_v54  ;;  %v7871_v63 = vcombine.low %v263_v40, %v267_v42  ;;  %v7999_v54 = vcombine.low %v391_v43, %v395_v44  ;;  %v423_v23 = vld [vmem:[%s9106_s28 + $0x550] sm:$0xff] }
 0x231   : > { %6995 = vmatprep.subr.bf16.mxu0 %v8726_v61  ;;  %7036 = vmatprep.subr.bf16.mxu1 %v8854_v0  ;;  %v7880_v61 = vcombine.high %v271_v53, %v275_v55  ;;  %v8008_v0 = vcombine.high %v399_v56, %v403_v57  ;;  %v427_v24 = vld [vmem:[%s9106_s28 + $0x570] sm:$0xff] }
 0x232   : > { %v303_v30 = vld [vmem:[%s9106_s28 + $0x190] sm:$0xff] }
 0x233   : > { %v307_v31 = vld [vmem:[%s9106_s28 + $0x1b0] sm:$0xff] }
 0x234   : > { %6996 = vmatpush1.bf16.msra.mxu0 %v8725_v5  ;;  %7037 = vmatpush1.bf16.msra.mxu1 %v8853_v58  ;;  %v7879_v5 = vcombine.low %v271_v53, %v275_v55  ;;  %v8007_v58 = vcombine.low %v399_v56, %v403_v57  ;;  %v431_v33 = vld [vmem:[%s9106_s28 + $0x590] sm:$0xff]  ;;  %v7911_v56 = vcombine.low %v303_v30, %v307_v31 }
 0x235   : > { %6997 = vmatprep.subr.bf16.mxu0 %v8734_v6  ;;  %7038 = vmatprep.subr.bf16.mxu1 %v8862_v8  ;;  %v7888_v6 = vcombine.high %v279_v62, %v283_v1  ;;  %v8016_v8 = vcombine.high %v407_v2, %v411_v4  ;;  %v435_v34 = vld [vmem:[%s9106_s28 + $0x5b0] sm:$0xff] }
 0x236   : > { %v8040_v40 = vcombine.high %v431_v33, %v435_v34  ;;  %v311_v42 = vld [vmem:[%s9106_s28 + $0x1d0] sm:$0xff] }
 0x237   : > { %v315_v43 = vld [vmem:[%s9106_s28 + $0x1f0] sm:$0xff] }
 0x238   : > { %6998 = vmatpush1.bf16.msra.mxu0 %v8733_v13  ;;  %7039 = vmatpush1.bf16.msra.mxu1 %v8861_v14  ;;  %v7887_v13 = vcombine.low %v279_v62, %v283_v1  ;;  %v8015_v14 = vcombine.low %v407_v2, %v411_v4  ;;  %v319_v2 = vld [vmem:[%s9106_s28 + $0x210] sm:$0xff] }
 0x239   : > { %6999 = vmatprep.subr.bf16.mxu0 %v8742_v16  ;;  %7040 = vmatprep.subr.bf16.mxu1 %v8870_v18  ;;  %v7896_v16 = vcombine.high %v287_v9, %v291_v10  ;;  %v8024_v18 = vcombine.high %v415_v11, %v419_v12  ;;  %v323_v4 = vld [vmem:[%s9106_s28 + $0x230] sm:$0xff] }
 0x23c   : > { %7000 = vmatpush1.bf16.msra.mxu0 %v8741_v25  ;;  %7041 = vmatpush1.bf16.msra.mxu1 %v8869_v26  ;;  %v7895_v25 = vcombine.low %v287_v9, %v291_v10  ;;  %v8023_v26 = vcombine.low %v415_v11, %v419_v12  ;;  %v7928_v9 = vcombine.high %v319_v2, %v323_v4  ;;  %v327_v11 = vld [vmem:[%s9106_s28 + $0x250] sm:$0xff] }
 0x23d   : > { %7001 = vmatprep.subr.bf16.mxu0 %v8750_v27  ;;  %7042 = vmatprep.subr.bf16.mxu1 %v8878_v28  ;;  %v7904_v27 = vcombine.high %v295_v20, %v299_v22  ;;  %v8032_v28 = vcombine.high %v423_v23, %v427_v24  ;;  %v331_v12 = vld [vmem:[%s9106_s28 + $0x270] sm:$0xff] }
 0x240   : > { %7002 = vmatpush1.bf16.msra.mxu0 %v8749_v35  ;;  %7043 = vmatpush1.bf16.msra.mxu1 %v8877_v36  ;;  %v7903_v35 = vcombine.low %v295_v20, %v299_v22  ;;  %v8031_v36 = vcombine.low %v423_v23, %v427_v24  ;;  %v7936_v20 = vcombine.high %v327_v11, %v331_v12  ;;  %v335_v23 = vld [vmem:[%s9106_s28 + $0x290] sm:$0xff] }
 0x241   : > { %7053 = vmatprep.subr.bf16.mxu0 %v7864_v38  ;;  %7094 = vmatprep.subr.bf16.mxu1 %v7992_v39  ;;  %v7912_v38 = vcombine.high %v303_v30, %v307_v31  ;;  %v339_v24 = vld [vmem:[%s9106_s28 + $0x2b0] sm:$0xff] }
 0x242   : > { %v7944_v30 = vcombine.high %v335_v23, %v339_v24 }
 0x243   : > { %7004 = vmatmul.mubr.bf16.vlgmr.msra.gmra.mrb[28].mxu0 %v9439_v45  ;;  %7045 = vmatmul.mubr.bf16.vlgmr.msra.gmra.mrb[28].mxu1 %v9443_v48 }
 0x244   : > { %7054 = vmatpush1.bf16.msra.mxu0 %v7863_v46  ;;  %7095 = vmatpush1.bf16.msra.mxu1 %v7991_v47  ;;  %v439_v47 = vld [vmem:[%s9106_s28 + $0x5d0] sm:$0xff] }
 0x245   : > { %7055 = vmatprep.subr.bf16.mxu0 %v7872_v50  ;;  %7096 = vmatprep.subr.bf16.mxu1 %v8000_v51  ;;  %v443_v50 = vld [vmem:[%s9106_s28 + $0x5f0] sm:$0xff] }
 0x246   : > { %7085 = vmatprep.mubr.bf16.mxu0 %v9151_v59  ;;  %7126 = vmatprep.mubr.bf16.mxu1 %v9153_v60  ;;  %v8048_v1 = vcombine.high %v439_v47, %v443_v50 }
 0x248   : > { %7056 = vmatpush1.bf16.msra.mxu0 %v7871_v63  ;;  %7097 = vmatpush1.bf16.msra.mxu1 %v7999_v54 }
 0x249   : > { %7057 = vmatprep.subr.bf16.mxu0 %v7880_v61  ;;  %7098 = vmatprep.subr.bf16.mxu1 %v8008_v0  ;;  %v8039_v61 = vcombine.low %v431_v33, %v435_v34  ;;  %v7920_v0 = vcombine.high %v311_v42, %v315_v43  ;;  %v343_v33 = vld [vmem:[%s9106_s28 + $0x2d0] sm:$0xff] }
 0x24a   : > { %v347_v34 = vld [vmem:[%s9106_s28 + $0x2f0] sm:$0xff] }
 0x24c   : > { %7058 = vmatpush1.bf16.msra.mxu0 %v7879_v5  ;;  %7099 = vmatpush1.bf16.msra.mxu1 %v8007_v58  ;;  %v447_v5 = vld [vmem:[%s9106_s28 + $0x610] sm:$0xff] }
 0x24d   : > { %7059 = vmatprep.subr.bf16.mxu0 %v7888_v6  ;;  %7100 = vmatprep.subr.bf16.mxu1 %v8016_v8  ;;  %v451_v58 = vld [vmem:[%s9106_s28 + $0x630] sm:$0xff]  ;;  %v7919_v6 = vcombine.low %v311_v42, %v315_v43  ;;  %v8047_v8 = vcombine.low %v439_v47, %v443_v50  ;;  %v7951_v50 = vcombine.low %v343_v33, %v347_v34 }
 0x24e   : > { %v8056_v10 = vcombine.high %v447_v5, %v451_v58  ;;  %v351_v43 = vld [vmem:[%s9106_s28 + $0x310] sm:$0xff] }
 0x24f   : > { %v483_v47 = vld [vmem:[%s9106_s28 + $0x730] sm:$0xff] }
 0x250   : > { %7060 = vmatpush1.bf16.msra.mxu0 %v7887_v13  ;;  %7101 = vmatpush1.bf16.msra.mxu1 %v8015_v14  ;;  %v455_v13 = vld [vmem:[%s9106_s28 + $0x650] sm:$0xff] }
 0x251   : > { %7061 = vmatprep.subr.bf16.mxu0 %v7896_v16  ;;  %7102 = vmatprep.subr.bf16.mxu1 %v8024_v18  ;;  %v459_v14 = vld [vmem:[%s9106_s28 + $0x670] sm:$0xff]  ;;  %v7927_v16 = vcombine.low %v319_v2, %v323_v4  ;;  %v8055_v18 = vcombine.low %v447_v5, %v451_v58 }
 0x252   : > { %v8064_v22 = vcombine.high %v455_v13, %v459_v14  ;;  %v367_v5 = vld [vmem:[%s9106_s28 + $0x390] sm:$0xff] }
 0x253   : > { %v371_v58 = vld [vmem:[%s9106_s28 + $0x3b0] sm:$0xff] }
 0x254   : > { %7062 = vmatpush1.bf16.msra.mxu0 %v7895_v25  ;;  %7103 = vmatpush1.bf16.msra.mxu1 %v8023_v26  ;;  %v463_v25 = vld [vmem:[%s9106_s28 + $0x690] sm:$0xff] }
 0x255   : > { %7063 = vmatprep.subr.bf16.mxu0 %v7904_v27  ;;  %7104 = vmatprep.subr.bf16.mxu1 %v8032_v28  ;;  %v467_v26 = vld [vmem:[%s9106_s28 + $0x6b0] sm:$0xff]  ;;  %v7935_v27 = vcombine.low %v327_v11, %v331_v12  ;;  %v8063_v28 = vcombine.low %v455_v13, %v459_v14  ;;  %v7976_v11 = vcombine.high %v367_v5, %v371_v58 }
 0x256   : > { %v6759_v39 = vpop.f32.mrb[16].mxu0  ;;  %v6800_v44 = vpop.f32.mrb[16].mxu1  ;;  %v8072_v31 = vcombine.high %v463_v25, %v467_v26  ;;  %v375_v13 = vld [vmem:[%s9106_s28 + $0x3d0] sm:$0xff] }
 0x257   : > { %v6761_v46 = vpop.f32.mrb[17].mxu0  ;;  %v9763_v51 = vadd.f32 %v6800_v44, %v6759_v39  ;;  %v6802_v53 = vpop.f32.mrb[17].mxu1  ;;  %v8071_v39 = vcombine.low %v463_v25, %v467_v26  ;;  %v355_v44 = vld [vmem:[%s9106_s28 + $0x330] sm:$0xff] }
 0x258   : > { %v6763_v55 = vpop.f32.mrb[18].mxu0  ;;  %7064 = vmatpush1.bf16.msra.mxu0 %v7903_v35  ;;  %v9765_v57 = vadd.f32 %v6802_v53, %v6761_v46  ;;  %v6804_v63 = vpop.f32.mrb[18].mxu1  ;;  %7105 = vmatpush1.bf16.msra.mxu1 %v8031_v36  ;;  %v471_v35 = vld [vmem:[%s9106_s28 + $0x6d0] sm:$0xff] }
 0x259   : > { %v6764_v54 = vpop.f32.mrb[19].mxu0  ;;  %7065 = vmatprep.subr.bf16.mxu0 %v7912_v38  ;;  %v6805_v62 = vpop.f32.mrb[19].mxu1  ;;  %7106 = vmatprep.subr.bf16.mxu1 %v8040_v40  ;;  %v475_v36 = vld [vmem:[%s9106_s28 + $0x6f0] sm:$0xff]  ;;  %v7943_v38 = vcombine.low %v335_v23, %v339_v24  ;;  %v7952_v40 = vcombine.high %v343_v33, %v347_v34  ;;  %v7960_v55 = vcombine.high %v351_v43, %v355_v44 }
 0x25a   : > { %v8080_v42 = vcombine.high %v471_v35, %v475_v36  ;;  %v479_v46 = vld [vmem:[%s9106_s28 + $0x710] sm:$0xff]  ;;  %v8079_v53 = vcombine.low %v471_v35, %v475_v36  ;;  %v7959_v62 = vcombine.low %v351_v43, %v355_v44 }
 0x25b   : > { %v359_v63 = vld [vmem:[%s9106_s28 + $0x350] sm:$0xff] }
 0x25c   : > { %7066 = vmatpush1.bf16.msra.mxu0 %v7911_v56  ;;  %7107 = vmatpush1.bf16.msra.mxu1 %v8039_v61  ;;  %v8088_v56 = vcombine.high %v479_v46, %v483_v47  ;;  %v363_v54 = vld [vmem:[%s9106_s28 + $0x370] sm:$0xff] }
 0x25d   : > { %7067 = vmatprep.subr.bf16.mxu0 %v7920_v0  ;;  %7108 = vmatprep.subr.bf16.mxu1 %v8048_v1  ;;  %v487_v61 = vld [vmem:[%s9106_s28 + $0x750] sm:$0xff]  ;;  %v8087_v1 = vcombine.low %v479_v46, %v483_v47  ;;  %v7968_v2 = vcombine.high %v359_v63, %v363_v54 }
 0x25e   : > { %v491_v0 = vld [vmem:[%s9106_s28 + $0x770] sm:$0xff] }
 0x25f   : > { %v8096_v4 = vcombine.high %v487_v61, %v491_v0  ;;  %v379_v14 = vld [vmem:[%s9106_s28 + $0x3f0] sm:$0xff] }
 0x260   : > { %7068 = vmatpush1.bf16.msra.mxu0 %v7919_v6  ;;  %7109 = vmatpush1.bf16.msra.mxu1 %v8047_v8  ;;  %v495_v6 = vld [vmem:[%s9106_s28 + $0x790] sm:$0xff]  ;;  %v7984_v23 = vcombine.high %v375_v13, %v379_v14 }
 0x261   : > { %7069 = vmatprep.subr.bf16.mxu0 %v7928_v9  ;;  %7110 = vmatprep.subr.bf16.mxu1 %v8056_v10  ;;  %v499_v8 = vld [vmem:[%s9106_s28 + $0x7b0] sm:$0xff]  ;;  %v7967_v9 = vcombine.low %v359_v63, %v363_v54  ;;  %v8095_v10 = vcombine.low %v487_v61, %v491_v0 }
 0x262   : > { %v8104_v12 = vcombine.high %v495_v6, %v499_v8  ;;  %v511_v25 = vld [vmem:[%s9106_s28 + $0x810] sm:$0xff] }
 0x263   : > { %v515_v26 = vld [vmem:[%s9106_s28 + $0x830] sm:$0xff] }
 0x264   : > { %7070 = vmatpush1.bf16.msra.mxu0 %v7927_v16  ;;  %7111 = vmatpush1.bf16.msra.mxu1 %v8055_v18  ;;  %v503_v16 = vld [vmem:[%s9106_s28 + $0x7d0] sm:$0xff]  ;;  %v8120_v33 = vcombine.high %v511_v25, %v515_v26 }
 0x265   : > { %7071 = vmatprep.subr.bf16.mxu0 %v7936_v20  ;;  %7112 = vmatprep.subr.bf16.mxu1 %v8064_v22  ;;  %v507_v18 = vld [vmem:[%s9106_s28 + $0x7f0] sm:$0xff]  ;;  %v7975_v20 = vcombine.low %v367_v5, %v371_v58  ;;  %v8103_v22 = vcombine.low %v495_v6, %v499_v8 }
 0x266   : > { %v8112_v24 = vcombine.high %v503_v16, %v507_v18  ;;  %v519_v35 = vld [vmem:[%s9106_s28 + $0x850] sm:$0xff] }
 0x267   : > { %v523_v36 = vld [vmem:[%s9106_s28 + $0x870] sm:$0xff] }
 0x268   : > { %7072 = vmatpush1.bf16.msra.mxu0 %v7935_v27  ;;  %7113 = vmatpush1.bf16.msra.mxu1 %v8063_v28  ;;  %v639_v27 = vld [vmem:[%s9106_s28 + $0xc10] sm:$0xff]  ;;  %v8128_v43 = vcombine.high %v519_v35, %v523_v36 }
 0x269   : > { %7073 = vmatprep.subr.bf16.mxu0 %v7944_v30  ;;  %7114 = vmatprep.subr.bf16.mxu1 %v8072_v31  ;;  %v643_v28 = vld [vmem:[%s9106_s28 + $0xc30] sm:$0xff]  ;;  %v7983_v30 = vcombine.low %v375_v13, %v379_v14  ;;  %v8111_v31 = vcombine.low %v503_v16, %v507_v18 }
 0x26a   : > { %v8248_v34 = vcombine.high %v639_v27, %v643_v28  ;;  %v527_v46 = vld [vmem:[%s9106_s28 + $0x890] sm:$0xff] }
 0x26b   : > { %v531_v47 = vld [vmem:[%s9106_s28 + $0x8b0] sm:$0xff] }
 0x26c   : > { %7074 = vmatpush1.bf16.msra.mxu0 %v7943_v38  ;;  %7115 = vmatpush1.bf16.msra.mxu1 %v8071_v39  ;;  %v647_v38 = vld [vmem:[%s9106_s28 + $0xc50] sm:$0xff]  ;;  %v8136_v63 = vcombine.high %v527_v46, %v531_v47 }
 0x26d   : > { %7075 = vmatprep.subr.bf16.mxu0 %v7952_v40  ;;  %7116 = vmatprep.subr.bf16.mxu1 %v8080_v42  ;;  %v651_v39 = vld [vmem:[%s9106_s28 + $0xc70] sm:$0xff]  ;;  %v8119_v40 = vcombine.low %v511_v25, %v515_v26  ;;  %v8247_v42 = vcombine.low %v639_v27, %v643_v28 }
 0x26e   : > { %v8256_v44 = vcombine.high %v647_v38, %v651_v39  ;;  %v535_v61 = vld [vmem:[%s9106_s28 + $0x8d0] sm:$0xff] }
 0x26f   : > { %v539_v0 = vld [vmem:[%s9106_s28 + $0x8f0] sm:$0xff] }
 0x270   : > { %7076 = vmatpush1.bf16.msra.mxu0 %v7951_v50  ;;  %7117 = vmatpush1.bf16.msra.mxu1 %v8079_v53  ;;  %v655_v50 = vld [vmem:[%s9106_s28 + $0xc90] sm:$0xff]  ;;  %v8144_v5 = vcombine.high %v535_v61, %v539_v0 }
 0x271   : > { %7077 = vmatprep.subr.bf16.mxu0 %v7960_v55  ;;  %7118 = vmatprep.subr.bf16.mxu1 %v8088_v56  ;;  %v659_v53 = vld [vmem:[%s9106_s28 + $0xcb0] sm:$0xff]  ;;  %v8127_v55 = vcombine.low %v519_v35, %v523_v36  ;;  %v8255_v56 = vcombine.low %v647_v38, %v651_v39 }
 0x272   : > { %v8264_v54 = vcombine.high %v655_v50, %v659_v53  ;;  %v543_v6 = vld [vmem:[%s9106_s28 + $0x910] sm:$0xff] }
 0x273   : > { %v547_v8 = vld [vmem:[%s9106_s28 + $0x930] sm:$0xff] }
 0x274   : > { %7078 = vmatpush1.bf16.msra.mxu0 %v7959_v62  ;;  %7119 = vmatpush1.bf16.msra.mxu1 %v8087_v1  ;;  %v663_v62 = vld [vmem:[%s9106_s28 + $0xcd0] sm:$0xff]  ;;  %v8152_v13 = vcombine.high %v543_v6, %v547_v8 }
 0x275   : > { %7079 = vmatprep.subr.bf16.mxu0 %v7968_v2  ;;  %7120 = vmatprep.subr.bf16.mxu1 %v8096_v4  ;;  %v667_v1 = vld [vmem:[%s9106_s28 + $0xcf0] sm:$0xff]  ;;  %v8135_v2 = vcombine.low %v527_v46, %v531_v47  ;;  %v8263_v4 = vcombine.low %v655_v50, %v659_v53 }
 0x276   : > { %v8272_v58 = vcombine.high %v663_v62, %v667_v1  ;;  %v551_v16 = vld [vmem:[%s9106_s28 + $0x950] sm:$0xff] }
 0x277   : > { %v555_v18 = vld [vmem:[%s9106_s28 + $0x970] sm:$0xff] }
 0x278   : > { %7080 = vmatpush1.bf16.msra.mxu0 %v7967_v9  ;;  %7121 = vmatpush1.bf16.msra.mxu1 %v8095_v10  ;;  %v671_v9 = vld [vmem:[%s9106_s28 + $0xd10] sm:$0xff]  ;;  %v8160_v25 = vcombine.high %v551_v16, %v555_v18 }
 0x279   : > { %7081 = vmatprep.subr.bf16.mxu0 %v7976_v11  ;;  %7122 = vmatprep.subr.bf16.mxu1 %v8104_v12  ;;  %v675_v10 = vld [vmem:[%s9106_s28 + $0xd30] sm:$0xff]  ;;  %v8143_v11 = vcombine.low %v535_v61, %v539_v0  ;;  %v8271_v12 = vcombine.low %v663_v62, %v667_v1 }
 0x27a   : > { %v8280_v14 = vcombine.high %v671_v9, %v675_v10  ;;  %v559_v27 = vld [vmem:[%s9106_s28 + $0x990] sm:$0xff] }
 0x27b   : > { %v563_v28 = vld [vmem:[%s9106_s28 + $0x9b0] sm:$0xff] }
 0x27c   : > { %7082 = vmatpush1.bf16.msra.mxu0 %v7975_v20  ;;  %7123 = vmatpush1.bf16.msra.mxu1 %v8103_v22  ;;  %v679_v20 = vld [vmem:[%s9106_s28 + $0xd50] sm:$0xff]  ;;  %v8168_v35 = vcombine.high %v559_v27, %v563_v28 }
 0x27d   : > { %7083 = vmatprep.subr.bf16.mxu0 %v7984_v23  ;;  %7124 = vmatprep.subr.bf16.mxu1 %v8112_v24  ;;  %v683_v22 = vld [vmem:[%s9106_s28 + $0xd70] sm:$0xff]  ;;  %v8151_v23 = vcombine.low %v543_v6, %v547_v8  ;;  %v8279_v24 = vcombine.low %v671_v9, %v675_v10 }
 0x27e   : > { %v8288_v26 = vcombine.high %v679_v20, %v683_v22  ;;  %v567_v39 = vld [vmem:[%s9106_s28 + $0x9d0] sm:$0xff] }
 0x27f   : > { %v695_v46 = vld [vmem:[%s9106_s28 + $0xdd0] sm:$0xff] }
 0x280   : > { %7084 = vmatpush1.bf16.msra.mxu0 %v7983_v30  ;;  %7125 = vmatpush1.bf16.msra.mxu1 %v8111_v31  ;;  %v687_v30 = vld [vmem:[%s9106_s28 + $0xd90] sm:$0xff] }
 0x281   : > { %7135 = vmatprep.subr.bf16.mxu0 %v8120_v33  ;;  %7176 = vmatprep.subr.bf16.mxu1 %v8248_v34  ;;  %v691_v31 = vld [vmem:[%s9106_s28 + $0xdb0] sm:$0xff]  ;;  %v8159_v33 = vcombine.low %v551_v16, %v555_v18  ;;  %v8287_v34 = vcombine.low %v679_v20, %v683_v22 }
 0x282   : > { %v8296_v38 = vcombine.high %v687_v30, %v691_v31  ;;  %v699_v47 = vld [vmem:[%s9106_s28 + $0xdf0] sm:$0xff] }
 0x283   : > { %7086 = vmatmul.mubr.bf16.vlgmr.msra.gmra.mrb[32].mxu0 %v9199_v17  ;;  %7127 = vmatmul.mubr.bf16.vlgmr.msra.gmra.mrb[32].mxu1 %v9204_v21  ;;  %v8304_v1 = vcombine.high %v695_v46, %v699_v47  ;;  %v8303_v8 = vcombine.low %v695_v46, %v699_v47  ;;  %v735_v46 = vld [vmem:[%s9106_s28 + $0xf10] sm:$0xff] }
 0x284   : > { %7136 = vmatpush1.bf16.msra.mxu0 %v8119_v40  ;;  %7177 = vmatpush1.bf16.msra.mxu1 %v8247_v42  ;;  %v571_v40 = vld [vmem:[%s9106_s28 + $0x9f0] sm:$0xff] }
 0x285   : > { %7137 = vmatprep.subr.bf16.mxu0 %v8128_v43  ;;  %7178 = vmatprep.subr.bf16.mxu1 %v8256_v44  ;;  %v8176_v0 = vcombine.high %v567_v39, %v571_v40  ;;  %v8175_v6 = vcombine.low %v567_v39, %v571_v40  ;;  %v739_v47 = vld [vmem:[%s9106_s28 + $0xf30] sm:$0xff] }
 0x286   : > { %7167 = vmatprep.mubr.bf16.mxu0 %v9209_v29  ;;  %7208 = vmatprep.mubr.bf16.mxu1 %v9214_v32 }
 0x288   : > { %7138 = vmatpush1.bf16.msra.mxu0 %v8127_v55  ;;  %7179 = vmatpush1.bf16.msra.mxu1 %v8255_v56  ;;  %v8167_v56 = vcombine.low %v559_v27, %v563_v28 }
 0x289   : > { %7139 = vmatprep.subr.bf16.mxu0 %v8136_v63  ;;  %7180 = vmatprep.subr.bf16.mxu1 %v8264_v54 }
 0x28c   : > { %7140 = vmatpush1.bf16.msra.mxu0 %v8135_v2  ;;  %7181 = vmatpush1.bf16.msra.mxu1 %v8263_v4  ;;  %v575_v2 = vld [vmem:[%s9106_s28 + $0xa10] sm:$0xff] }
 0x28d   : > { %7141 = vmatprep.subr.bf16.mxu0 %v8144_v5  ;;  %7182 = vmatprep.subr.bf16.mxu1 %v8272_v58  ;;  %v579_v4 = vld [vmem:[%s9106_s28 + $0xa30] sm:$0xff] }
 0x28e   : > { %v703_v5 = vld [vmem:[%s9106_s28 + $0xe10] sm:$0xff]  ;;  %v8184_v9 = vcombine.high %v575_v2, %v579_v4  ;;  %v8183_v16 = vcombine.low %v575_v2, %v579_v4 }
 0x28f   : > { %v707_v58 = vld [vmem:[%s9106_s28 + $0xe30] sm:$0xff] }
 0x290   : > { %7142 = vmatpush1.bf16.msra.mxu0 %v8143_v11  ;;  %7183 = vmatpush1.bf16.msra.mxu1 %v8271_v12  ;;  %v8312_v10 = vcombine.high %v703_v5, %v707_v58  ;;  %v583_v11 = vld [vmem:[%s9106_s28 + $0xa50] sm:$0xff]  ;;  %v8311_v18 = vcombine.low %v703_v5, %v707_v58 }
 0x291   : > { %7143 = vmatprep.subr.bf16.mxu0 %v8152_v13  ;;  %7184 = vmatprep.subr.bf16.mxu1 %v8280_v14  ;;  %v587_v12 = vld [vmem:[%s9106_s28 + $0xa70] sm:$0xff] }
 0x292   : > { %v711_v13 = vld [vmem:[%s9106_s28 + $0xe50] sm:$0xff]  ;;  %v8192_v20 = vcombine.high %v583_v11, %v587_v12  ;;  %v8191_v27 = vcombine.low %v583_v11, %v587_v12 }
 0x293   : > { %v715_v14 = vld [vmem:[%s9106_s28 + $0xe70] sm:$0xff] }
 0x294   : > { %7144 = vmatpush1.bf16.msra.mxu0 %v8151_v23  ;;  %7185 = vmatpush1.bf16.msra.mxu1 %v8279_v24  ;;  %v8320_v22 = vcombine.high %v711_v13, %v715_v14  ;;  %v591_v23 = vld [vmem:[%s9106_s28 + $0xa90] sm:$0xff]  ;;  %v8319_v28 = vcombine.low %v711_v13, %v715_v14 }
 0x295   : > { %7145 = vmatprep.subr.bf16.mxu0 %v8160_v25  ;;  %7186 = vmatprep.subr.bf16.mxu1 %v8288_v26  ;;  %v595_v24 = vld [vmem:[%s9106_s28 + $0xab0] sm:$0xff] }
 0x296   : > { %v6841_v36 = vpop.f32.mrb[20].mxu0  ;;  %v6882_v43 = vpop.f32.mrb[20].mxu1  ;;  %v719_v25 = vld [vmem:[%s9106_s28 + $0xe90] sm:$0xff] }
 0x297   : > { %v6842_v42 = vadd.f32 %v6841_v36, %v9763_v51  ;;  %v6843_v44 = vpop.f32.mrb[21].mxu0  ;;  %v6884_v53 = vpop.f32.mrb[21].mxu1  ;;  %v8295_v51 = vcombine.low %v687_v30, %v691_v31  ;;  %v723_v26 = vld [vmem:[%s9106_s28 + $0xeb0] sm:$0xff]  ;;  %v8200_v30 = vcombine.high %v591_v23, %v595_v24 }
 0x298   : > { %v6844_v50 = vadd.f32 %v6843_v44, %v9765_v57  ;;  %v6845_v55 = vpop.f32.mrb[22].mxu0  ;;  %7146 = vmatpush1.bf16.msra.mxu0 %v8159_v33  ;;  %v6886_v54 = vpop.f32.mrb[22].mxu1  ;;  %7187 = vmatpush1.bf16.msra.mxu1 %v8287_v34  ;;  %v8328_v31 = vcombine.high %v719_v25, %v723_v26  ;;  %v599_v33 = vld [vmem:[%s9106_s28 + $0xad0] sm:$0xff]  ;;  %v8327_v39 = vcombine.low %v719_v25, %v723_v26 }
 0x299   : > { %v9837_v63 = vadd.f32 %v6882_v43, %v6842_v42  ;;  %v6846_v61 = vpop.f32.mrb[23].mxu0  ;;  %7147 = vmatprep.subr.bf16.mxu0 %v8168_v35  ;;  %v6887_v57 = vpop.f32.mrb[23].mxu1  ;;  %7188 = vmatprep.subr.bf16.mxu1 %v8296_v38  ;;  %v603_v34 = vld [vmem:[%s9106_s28 + $0xaf0] sm:$0xff]  ;;  %v8199_v38 = vcombine.low %v591_v23, %v595_v24 }
 0x29a   : > { %v9839_v62 = vadd.f32 %v6884_v53, %v6844_v50  ;;  %v727_v35 = vld [vmem:[%s9106_s28 + $0xed0] sm:$0xff]  ;;  %v8208_v40 = vcombine.high %v599_v33, %v603_v34  ;;  %v8207_v50 = vcombine.low %v599_v33, %v603_v34 }
 0x29b   : > { %v731_v36 = vld [vmem:[%s9106_s28 + $0xef0] sm:$0xff] }
 0x29c   : > { %7148 = vmatpush1.bf16.msra.mxu0 %v8167_v56  ;;  %7189 = vmatpush1.bf16.msra.mxu1 %v8295_v51  ;;  %v8336_v42 = vcombine.high %v727_v35, %v731_v36  ;;  %v607_v43 = vld [vmem:[%s9106_s28 + $0xb10] sm:$0xff]  ;;  %v8335_v53 = vcombine.low %v727_v35, %v731_v36  ;;  %v8344_v56 = vcombine.high %v735_v46, %v739_v47 }
 0x29d   : > { %7149 = vmatprep.subr.bf16.mxu0 %v8176_v0  ;;  %7190 = vmatprep.subr.bf16.mxu1 %v8304_v1  ;;  %v611_v44 = vld [vmem:[%s9106_s28 + $0xb30] sm:$0xff]  ;;  %v8343_v1 = vcombine.low %v735_v46, %v739_v47 }
 0x29e   : > { %v8216_v55 = vcombine.high %v607_v43, %v611_v44  ;;  %v615_v54 = vld [vmem:[%s9106_s28 + $0xb50] sm:$0xff]  ;;  %v8215_v57 = vcombine.low %v607_v43, %v611_v44 }
 0x29f   : > { %v619_v61 = vld [vmem:[%s9106_s28 + $0xb70] sm:$0xff] }
 0x2a0   : > { %7150 = vmatpush1.bf16.msra.mxu0 %v8175_v6  ;;  %7191 = vmatpush1.bf16.msra.mxu1 %v8303_v8  ;;  %v743_v51 = vld [vmem:[%s9106_s28 + $0xf50] sm:$0xff]  ;;  %v8224_v2 = vcombine.high %v615_v54, %v619_v61 }
 0x2a1   : > { %7151 = vmatprep.subr.bf16.mxu0 %v8184_v9  ;;  %7192 = vmatprep.subr.bf16.mxu1 %v8312_v10  ;;  %v747_v0 = vld [vmem:[%s9106_s28 + $0xf70] sm:$0xff]  ;;  %v8223_v9 = vcombine.low %v615_v54, %v619_v61 }
 0x2a2   : > { %v8352_v4 = vcombine.high %v743_v51, %v747_v0  ;;  %v623_v5 = vld [vmem:[%s9106_s28 + $0xb90] sm:$0xff]  ;;  %v8351_v10 = vcombine.low %v743_v51, %v747_v0 }
 0x2a3   : > { %v627_v58 = vld [vmem:[%s9106_s28 + $0xbb0] sm:$0xff] }
 0x2a4   : > { %7152 = vmatpush1.bf16.msra.mxu0 %v8183_v16  ;;  %7193 = vmatpush1.bf16.msra.mxu1 %v8311_v18  ;;  %v751_v6 = vld [vmem:[%s9106_s28 + $0xf90] sm:$0xff]  ;;  %v8232_v11 = vcombine.high %v623_v5, %v627_v58 }
 0x2a5   : > { %7153 = vmatprep.subr.bf16.mxu0 %v8192_v20  ;;  %7194 = vmatprep.subr.bf16.mxu1 %v8320_v22  ;;  %v755_v8 = vld [vmem:[%s9106_s28 + $0xfb0] sm:$0xff]  ;;  %v8231_v20 = vcombine.low %v623_v5, %v627_v58 }
 0x2a6   : > { %v8360_v12 = vcombine.high %v751_v6, %v755_v8  ;;  %v631_v13 = vld [vmem:[%s9106_s28 + $0xbd0] sm:$0xff]  ;;  %v8359_v22 = vcombine.low %v751_v6, %v755_v8 }
 0x2a7   : > { %v635_v14 = vld [vmem:[%s9106_s28 + $0xbf0] sm:$0xff] }
 0x2a8   : > { %7154 = vmatpush1.bf16.msra.mxu0 %v8191_v27  ;;  %7195 = vmatpush1.bf16.msra.mxu1 %v8319_v28  ;;  %v759_v16 = vld [vmem:[%s9106_s28 + $0xfd0] sm:$0xff]  ;;  %v8240_v23 = vcombine.high %v631_v13, %v635_v14 }
 0x2a9   : > { %7155 = vmatprep.subr.bf16.mxu0 %v8200_v30  ;;  %7196 = vmatprep.subr.bf16.mxu1 %v8328_v31  ;;  %v763_v18 = vld [vmem:[%s9106_s28 + $0xff0] sm:$0xff]  ;;  %v8239_v30 = vcombine.low %v631_v13, %v635_v14 }
 0x2aa   : > { %v8368_v24 = vcombine.high %v759_v16, %v763_v18  ;;  %v767_v25 = vld [vmem:[%s9106_s28 + $0x1010] sm:$0xff]  ;;  %v8367_v31 = vcombine.low %v759_v16, %v763_v18 }
 0x2ab   : > { %v771_v26 = vld [vmem:[%s9106_s28 + $0x1030] sm:$0xff] }
 0x2ac   : > { %7156 = vmatpush1.bf16.msra.mxu0 %v8199_v38  ;;  %7197 = vmatpush1.bf16.msra.mxu1 %v8327_v39  ;;  %v895_v27 = vld [vmem:[%s9106_s28 + $0x1410] sm:$0xff]  ;;  %v8376_v33 = vcombine.high %v767_v25, %v771_v26 }
 0x2ad   : > { %7157 = vmatprep.subr.bf16.mxu0 %v8208_v40  ;;  %7198 = vmatprep.subr.bf16.mxu1 %v8336_v42  ;;  %v899_v28 = vld [vmem:[%s9106_s28 + $0x1430] sm:$0xff]  ;;  %v8375_v40 = vcombine.low %v767_v25, %v771_v26 }
 0x2ae   : > { %v8504_v34 = vcombine.high %v895_v27, %v899_v28  ;;  %v775_v35 = vld [vmem:[%s9106_s28 + $0x1050] sm:$0xff]  ;;  %v8503_v42 = vcombine.low %v895_v27, %v899_v28 }
 0x2af   : > { %v779_v36 = vld [vmem:[%s9106_s28 + $0x1070] sm:$0xff] }
 0x2b0   : > { %7158 = vmatpush1.bf16.msra.mxu0 %v8207_v50  ;;  %7199 = vmatpush1.bf16.msra.mxu1 %v8335_v53  ;;  %v903_v38 = vld [vmem:[%s9106_s28 + $0x1450] sm:$0xff]  ;;  %v8384_v43 = vcombine.high %v775_v35, %v779_v36 }
 0x2b1   : > { %7159 = vmatprep.subr.bf16.mxu0 %v8216_v55  ;;  %7200 = vmatprep.subr.bf16.mxu1 %v8344_v56  ;;  %v907_v39 = vld [vmem:[%s9106_s28 + $0x1470] sm:$0xff]  ;;  %v8383_v55 = vcombine.low %v775_v35, %v779_v36 }
 0x2b2   : > { %v8512_v44 = vcombine.high %v903_v38, %v907_v39  ;;  %v783_v46 = vld [vmem:[%s9106_s28 + $0x1090] sm:$0xff]  ;;  %v8511_v56 = vcombine.low %v903_v38, %v907_v39 }
 0x2b3   : > { %v787_v47 = vld [vmem:[%s9106_s28 + $0x10b0] sm:$0xff] }
 0x2b4   : > { %7160 = vmatpush1.bf16.msra.mxu0 %v8215_v57  ;;  %7201 = vmatpush1.bf16.msra.mxu1 %v8343_v1  ;;  %v911_v50 = vld [vmem:[%s9106_s28 + $0x1490] sm:$0xff]  ;;  %v8392_v54 = vcombine.high %v783_v46, %v787_v47 }
 0x2b5   : > { %7161 = vmatprep.subr.bf16.mxu0 %v8224_v2  ;;  %7202 = vmatprep.subr.bf16.mxu1 %v8352_v4  ;;  %v915_v53 = vld [vmem:[%s9106_s28 + $0x14b0] sm:$0xff]  ;;  %v8391_v2 = vcombine.low %v783_v46, %v787_v47 }
 0x2b6   : > { %v8520_v61 = vcombine.high %v911_v50, %v915_v53  ;;  %v791_v51 = vld [vmem:[%s9106_s28 + $0x10d0] sm:$0xff]  ;;  %v8519_v4 = vcombine.low %v911_v50, %v915_v53 }
 0x2b7   : > { %v795_v0 = vld [vmem:[%s9106_s28 + $0x10f0] sm:$0xff] }
 0x2b8   : > { %7162 = vmatpush1.bf16.msra.mxu0 %v8223_v9  ;;  %7203 = vmatpush1.bf16.msra.mxu1 %v8351_v10  ;;  %v919_v57 = vld [vmem:[%s9106_s28 + $0x14d0] sm:$0xff]  ;;  %v8400_v5 = vcombine.high %v791_v51, %v795_v0 }
 0x2b9   : > { %7163 = vmatprep.subr.bf16.mxu0 %v8232_v11  ;;  %7204 = vmatprep.subr.bf16.mxu1 %v8360_v12  ;;  %v923_v1 = vld [vmem:[%s9106_s28 + $0x14f0] sm:$0xff]  ;;  %v8399_v11 = vcombine.low %v791_v51, %v795_v0 }
 0x2ba   : > { %v8528_v58 = vcombine.high %v919_v57, %v923_v1  ;;  %v799_v6 = vld [vmem:[%s9106_s28 + $0x1110] sm:$0xff]  ;;  %v8527_v12 = vcombine.low %v919_v57, %v923_v1 }
 0x2bb   : > { %v803_v8 = vld [vmem:[%s9106_s28 + $0x1130] sm:$0xff] }
 0x2bc   : > { %7164 = vmatpush1.bf16.msra.mxu0 %v8231_v20  ;;  %7205 = vmatpush1.bf16.msra.mxu1 %v8359_v22  ;;  %v927_v9 = vld [vmem:[%s9106_s28 + $0x1510] sm:$0xff]  ;;  %v8408_v13 = vcombine.high %v799_v6, %v803_v8 }
 0x2bd   : > { %7165 = vmatprep.subr.bf16.mxu0 %v8240_v23  ;;  %7206 = vmatprep.subr.bf16.mxu1 %v8368_v24  ;;  %v931_v10 = vld [vmem:[%s9106_s28 + $0x1530] sm:$0xff]  ;;  %v8407_v23 = vcombine.low %v799_v6, %v803_v8 }
 0x2be   : > { %v8536_v14 = vcombine.high %v927_v9, %v931_v10  ;;  %v807_v16 = vld [vmem:[%s9106_s28 + $0x1150] sm:$0xff]  ;;  %v8535_v24 = vcombine.low %v927_v9, %v931_v10 }
 0x2bf   : > { %v811_v18 = vld [vmem:[%s9106_s28 + $0x1170] sm:$0xff] }
 0x2c0   : > { %7166 = vmatpush1.bf16.msra.mxu0 %v8239_v30  ;;  %7207 = vmatpush1.bf16.msra.mxu1 %v8367_v31  ;;  %v935_v20 = vld [vmem:[%s9106_s28 + $0x1550] sm:$0xff]  ;;  %v8416_v25 = vcombine.high %v807_v16, %v811_v18 }
 0x2c1   : > { %7217 = vmatprep.subr.bf16.mxu0 %v8376_v33  ;;  %7258 = vmatprep.subr.bf16.mxu1 %v8504_v34  ;;  %v939_v22 = vld [vmem:[%s9106_s28 + $0x1570] sm:$0xff]  ;;  %v8415_v33 = vcombine.low %v807_v16, %v811_v18 }
 0x2c2   : > { %v8544_v26 = vcombine.high %v935_v20, %v939_v22  ;;  %v815_v27 = vld [vmem:[%s9106_s28 + $0x1190] sm:$0xff]  ;;  %v8543_v34 = vcombine.low %v935_v20, %v939_v22 }
 0x2c3   : > { %7168 = vmatmul.mubr.bf16.vlgmr.msra.gmra.mrb[36].mxu0 %v9279_v37  ;;  %7209 = vmatmul.mubr.bf16.vlgmr.msra.gmra.mrb[36].mxu1 %v9284_v41  ;;  %v819_v28 = vld [vmem:[%s9106_s28 + $0x11b0] sm:$0xff] }
 0x2c4   : > { %7218 = vmatpush1.bf16.msra.mxu0 %v8375_v40  ;;  %7259 = vmatpush1.bf16.msra.mxu1 %v8503_v42  ;;  %v943_v30 = vld [vmem:[%s9106_s28 + $0x1590] sm:$0xff]  ;;  %v8424_v35 = vcombine.high %v815_v27, %v819_v28 }
 0x2c5   : > { %7219 = vmatprep.subr.bf16.mxu0 %v8384_v43  ;;  %7260 = vmatprep.subr.bf16.mxu1 %v8512_v44  ;;  %v947_v31 = vld [vmem:[%s9106_s28 + $0x15b0] sm:$0xff] }
 0x2c6   : > { %7249 = vmatprep.mubr.bf16.mxu0 %v9289_v49  ;;  %7290 = vmatprep.mubr.bf16.mxu1 %v9294_v52  ;;  %v8552_v38 = vcombine.high %v943_v30, %v947_v31  ;;  %v823_v39 = vld [vmem:[%s9106_s28 + $0x11d0] sm:$0xff] }
 0x2c7   : > { %v827_v40 = vld [vmem:[%s9106_s28 + $0x11f0] sm:$0xff] }
 0x2c8   : > { %7220 = vmatpush1.bf16.msra.mxu0 %v8383_v55  ;;  %7261 = vmatpush1.bf16.msra.mxu1 %v8511_v56  ;;  %v951_v46 = vld [vmem:[%s9106_s28 + $0x15d0] sm:$0xff]  ;;  %v8423_v56 = vcombine.low %v815_v27, %v819_v28  ;;  %v8432_v0 = vcombine.high %v823_v39, %v827_v40  ;;  %v8431_v6 = vcombine.low %v823_v39, %v827_v40 }
 0x2c9   : > { %7221 = vmatprep.subr.bf16.mxu0 %v8392_v54  ;;  %7262 = vmatprep.subr.bf16.mxu1 %v8520_v61  ;;  %v955_v47 = vld [vmem:[%s9106_s28 + $0x15f0] sm:$0xff] }
 0x2ca   : > { %v8560_v1 = vcombine.high %v951_v46, %v955_v47  ;;  %v8559_v8 = vcombine.low %v951_v46, %v955_v47  ;;  %v991_v46 = vld [vmem:[%s9106_s28 + $0x1710] sm:$0xff] }
 0x2cb   : > { %v995_v47 = vld [vmem:[%s9106_s28 + $0x1730] sm:$0xff] }
 0x2cc   : > { %7222 = vmatpush1.bf16.msra.mxu0 %v8391_v2  ;;  %7263 = vmatpush1.bf16.msra.mxu1 %v8519_v4  ;;  %v831_v2 = vld [vmem:[%s9106_s28 + $0x1210] sm:$0xff] }
 0x2cd   : > { %7223 = vmatprep.subr.bf16.mxu0 %v8400_v5  ;;  %7264 = vmatprep.subr.bf16.mxu1 %v8528_v58  ;;  %v835_v4 = vld [vmem:[%s9106_s28 + $0x1230] sm:$0xff] }
 0x2ce   : > { %v959_v5 = vld [vmem:[%s9106_s28 + $0x1610] sm:$0xff]  ;;  %v8440_v9 = vcombine.high %v831_v2, %v835_v4  ;;  %v8439_v16 = vcombine.low %v831_v2, %v835_v4 }
 0x2cf   : > { %v963_v58 = vld [vmem:[%s9106_s28 + $0x1630] sm:$0xff] }
 0x2d0   : > { %7224 = vmatpush1.bf16.msra.mxu0 %v8399_v11  ;;  %7265 = vmatpush1.bf16.msra.mxu1 %v8527_v12  ;;  %v8568_v10 = vcombine.high %v959_v5, %v963_v58  ;;  %v839_v11 = vld [vmem:[%s9106_s28 + $0x1250] sm:$0xff]  ;;  %v8567_v18 = vcombine.low %v959_v5, %v963_v58 }
 0x2d1   : > { %7225 = vmatprep.subr.bf16.mxu0 %v8408_v13  ;;  %7266 = vmatprep.subr.bf16.mxu1 %v8536_v14  ;;  %v843_v12 = vld [vmem:[%s9106_s28 + $0x1270] sm:$0xff] }
 0x2d2   : > { %v967_v13 = vld [vmem:[%s9106_s28 + $0x1650] sm:$0xff]  ;;  %v8448_v20 = vcombine.high %v839_v11, %v843_v12  ;;  %v8447_v27 = vcombine.low %v839_v11, %v843_v12 }
 0x2d3   : > { %v971_v14 = vld [vmem:[%s9106_s28 + $0x1670] sm:$0xff] }
 0x2d4   : > { %7226 = vmatpush1.bf16.msra.mxu0 %v8407_v23  ;;  %7267 = vmatpush1.bf16.msra.mxu1 %v8535_v24  ;;  %v8576_v22 = vcombine.high %v967_v13, %v971_v14  ;;  %v847_v23 = vld [vmem:[%s9106_s28 + $0x1290] sm:$0xff]  ;;  %v8575_v28 = vcombine.low %v967_v13, %v971_v14 }
 0x2d5   : > { %7227 = vmatprep.subr.bf16.mxu0 %v8416_v25  ;;  %7268 = vmatprep.subr.bf16.mxu1 %v8544_v26  ;;  %v851_v24 = vld [vmem:[%s9106_s28 + $0x12b0] sm:$0xff] }
 0x2d6   : > { %v6923_v36 = vpop.f32.mrb[24].mxu0  ;;  %v6964_v43 = vpop.f32.mrb[24].mxu1  ;;  %v975_v25 = vld [vmem:[%s9106_s28 + $0x1690] sm:$0xff] }
 0x2d7   : > { %v6924_v42 = vadd.f32 %v6923_v36, %v9837_v63  ;;  %v6925_v44 = vpop.f32.mrb[25].mxu0  ;;  %v6966_v53 = vpop.f32.mrb[25].mxu1  ;;  %v8551_v63 = vcombine.low %v943_v30, %v947_v31  ;;  %v979_v26 = vld [vmem:[%s9106_s28 + $0x16b0] sm:$0xff]  ;;  %v8456_v30 = vcombine.high %v847_v23, %v851_v24 }
 0x2d8   : > { %v6926_v50 = vadd.f32 %v6925_v44, %v9839_v62  ;;  %v6927_v55 = vpop.f32.mrb[26].mxu0  ;;  %7228 = vmatpush1.bf16.msra.mxu0 %v8415_v33  ;;  %v6968_v61 = vpop.f32.mrb[26].mxu1  ;;  %7269 = vmatpush1.bf16.msra.mxu1 %v8543_v34  ;;  %v8584_v31 = vcombine.high %v975_v25, %v979_v26  ;;  %v855_v33 = vld [vmem:[%s9106_s28 + $0x12d0] sm:$0xff]  ;;  %v8583_v39 = vcombine.low %v975_v25, %v979_v26 }
 0x2d9   : > { %v9911_v54 = vadd.f32 %v6964_v43, %v6924_v42  ;;  %v6928_v51 = vpop.f32.mrb[27].mxu0  ;;  %7229 = vmatprep.subr.bf16.mxu0 %v8424_v35  ;;  %v6969_v62 = vpop.f32.mrb[27].mxu1  ;;  %7270 = vmatprep.subr.bf16.mxu1 %v8552_v38  ;;  %v859_v34 = vld [vmem:[%s9106_s28 + $0x12f0] sm:$0xff]  ;;  %v8455_v38 = vcombine.low %v847_v23, %v851_v24 }
 0x2da   : > { %v9913_v57 = vadd.f32 %v6966_v53, %v6926_v50  ;;  %v983_v35 = vld [vmem:[%s9106_s28 + $0x16d0] sm:$0xff]  ;;  %v8464_v40 = vcombine.high %v855_v33, %v859_v34  ;;  %v8463_v50 = vcombine.low %v855_v33, %v859_v34 }
 0x2db   : > { %v987_v36 = vld [vmem:[%s9106_s28 + $0x16f0] sm:$0xff] }
 0x2dc   : > { %7230 = vmatpush1.bf16.msra.mxu0 %v8423_v56  ;;  %7271 = vmatpush1.bf16.msra.mxu1 %v8551_v63  ;;  %v8592_v42 = vcombine.high %v983_v35, %v987_v36  ;;  %v863_v43 = vld [vmem:[%s9106_s28 + $0x1310] sm:$0xff]  ;;  %v8591_v53 = vcombine.low %v983_v35, %v987_v36  ;;  %v8600_v56 = vcombine.high %v991_v46, %v995_v47 }
 0x2dd   : > { %7231 = vmatprep.subr.bf16.mxu0 %v8432_v0  ;;  %7272 = vmatprep.subr.bf16.mxu1 %v8560_v1  ;;  %v867_v44 = vld [vmem:[%s9106_s28 + $0x1330] sm:$0xff]  ;;  %v8599_v1 = vcombine.low %v991_v46, %v995_v47 }
 0x2de   : > { %v8472_v55 = vcombine.high %v863_v43, %v867_v44  ;;  %v871_v61 = vld [vmem:[%s9106_s28 + $0x1350] sm:$0xff]  ;;  %v8471_v62 = vcombine.low %v863_v43, %v867_v44 }
 0x2df   : > { %v875_v51 = vld [vmem:[%s9106_s28 + $0x1370] sm:$0xff] }
 0x2e0   : > { %7232 = vmatpush1.bf16.msra.mxu0 %v8431_v6  ;;  %7273 = vmatpush1.bf16.msra.mxu1 %v8559_v8  ;;  %v999_v63 = vld [vmem:[%s9106_s28 + $0x1750] sm:$0xff]  ;;  %v8480_v2 = vcombine.high %v871_v61, %v875_v51 }
 0x2e1   : > { %7233 = vmatprep.subr.bf16.mxu0 %v8440_v9  ;;  %7274 = vmatprep.subr.bf16.mxu1 %v8568_v10  ;;  %v1003_v0 = vld [vmem:[%s9106_s28 + $0x1770] sm:$0xff]  ;;  %v8479_v9 = vcombine.low %v871_v61, %v875_v51 }
 0x2e2   : > { %v8608_v4 = vcombine.high %v999_v63, %v1003_v0  ;;  %v879_v5 = vld [vmem:[%s9106_s28 + $0x1390] sm:$0xff]  ;;  %v8607_v10 = vcombine.low %v999_v63, %v1003_v0 }
 0x2e3   : > { %v883_v58 = vld [vmem:[%s9106_s28 + $0x13b0] sm:$0xff] }
 0x2e4   : > { %7234 = vmatpush1.bf16.msra.mxu0 %v8439_v16  ;;  %7275 = vmatpush1.bf16.msra.mxu1 %v8567_v18  ;;  %v1007_v6 = vld [vmem:[%s9106_s28 + $0x1790] sm:$0xff]  ;;  %v8488_v11 = vcombine.high %v879_v5, %v883_v58 }
 0x2e5   : > { %7235 = vmatprep.subr.bf16.mxu0 %v8448_v20  ;;  %7276 = vmatprep.subr.bf16.mxu1 %v8576_v22  ;;  %v1011_v8 = vld [vmem:[%s9106_s28 + $0x17b0] sm:$0xff]  ;;  %v8487_v20 = vcombine.low %v879_v5, %v883_v58 }
 0x2e6   : > { %v8616_v12 = vcombine.high %v1007_v6, %v1011_v8  ;;  %v887_v13 = vld [vmem:[%s9106_s28 + $0x13d0] sm:$0xff]  ;;  %v8615_v22 = vcombine.low %v1007_v6, %v1011_v8 }
 0x2e7   : > { %v891_v14 = vld [vmem:[%s9106_s28 + $0x13f0] sm:$0xff] }
 0x2e8   : > { %7236 = vmatpush1.bf16.msra.mxu0 %v8447_v27  ;;  %7277 = vmatpush1.bf16.msra.mxu1 %v8575_v28  ;;  %v1015_v16 = vld [vmem:[%s9106_s28 + $0x17d0] sm:$0xff]  ;;  %v8496_v23 = vcombine.high %v887_v13, %v891_v14 }
 0x2e9   : > { %7237 = vmatprep.subr.bf16.mxu0 %v8456_v30  ;;  %7278 = vmatprep.subr.bf16.mxu1 %v8584_v31  ;;  %v1019_v18 = vld [vmem:[%s9106_s28 + $0x17f0] sm:$0xff]  ;;  %v8495_v30 = vcombine.low %v887_v13, %v891_v14 }
 0x2ea   : > { %v8624_v24 = vcombine.high %v1015_v16, %v1019_v18  ;;  %v1023_v25 = vld [vmem:[%s9106_s28 + $0x1810] sm:$0xff]  ;;  %v8623_v31 = vcombine.low %v1015_v16, %v1019_v18 }
 0x2eb   : > { %v1027_v26 = vld [vmem:[%s9106_s28 + $0x1830] sm:$0xff] }
 0x2ec   : > { %7238 = vmatpush1.bf16.msra.mxu0 %v8455_v38  ;;  %7279 = vmatpush1.bf16.msra.mxu1 %v8583_v39  ;;  %v1151_v27 = vld [vmem:[%s9106_s28 + $0x1c10] sm:$0xff]  ;;  %v8632_v33 = vcombine.high %v1023_v25, %v1027_v26 }
 0x2ed   : > { %7239 = vmatprep.subr.bf16.mxu0 %v8464_v40  ;;  %7280 = vmatprep.subr.bf16.mxu1 %v8592_v42  ;;  %v1155_v28 = vld [vmem:[%s9106_s28 + $0x1c30] sm:$0xff]  ;;  %v8631_v40 = vcombine.low %v1023_v25, %v1027_v26 }
 0x2ee   : > { %v8760_v34 = vcombine.high %v1151_v27, %v1155_v28  ;;  %v1031_v35 = vld [vmem:[%s9106_s28 + $0x1850] sm:$0xff]  ;;  %v8759_v42 = vcombine.low %v1151_v27, %v1155_v28 }
 0x2ef   : > { %v1035_v36 = vld [vmem:[%s9106_s28 + $0x1870] sm:$0xff] }
 0x2f0   : > { %7240 = vmatpush1.bf16.msra.mxu0 %v8463_v50  ;;  %7281 = vmatpush1.bf16.msra.mxu1 %v8591_v53  ;;  %v1159_v38 = vld [vmem:[%s9106_s28 + $0x1c50] sm:$0xff]  ;;  %v8640_v43 = vcombine.high %v1031_v35, %v1035_v36 }
 0x2f1   : > { %7241 = vmatprep.subr.bf16.mxu0 %v8472_v55  ;;  %7282 = vmatprep.subr.bf16.mxu1 %v8600_v56  ;;  %v1163_v39 = vld [vmem:[%s9106_s28 + $0x1c70] sm:$0xff]  ;;  %v8639_v55 = vcombine.low %v1031_v35, %v1035_v36 }
 0x2f2   : > { %v8768_v44 = vcombine.high %v1159_v38, %v1163_v39  ;;  %v1039_v46 = vld [vmem:[%s9106_s28 + $0x1890] sm:$0xff]  ;;  %v8767_v56 = vcombine.low %v1159_v38, %v1163_v39 }
 0x2f3   : > { %v1043_v47 = vld [vmem:[%s9106_s28 + $0x18b0] sm:$0xff] }
 0x2f4   : > { %7242 = vmatpush1.bf16.msra.mxu0 %v8471_v62  ;;  %7283 = vmatpush1.bf16.msra.mxu1 %v8599_v1  ;;  %v1167_v50 = vld [vmem:[%s9106_s28 + $0x1c90] sm:$0xff]  ;;  %v8648_v61 = vcombine.high %v1039_v46, %v1043_v47 }
 0x2f5   : > { %7243 = vmatprep.subr.bf16.mxu0 %v8480_v2  ;;  %7284 = vmatprep.subr.bf16.mxu1 %v8608_v4  ;;  %v1171_v53 = vld [vmem:[%s9106_s28 + $0x1cb0] sm:$0xff]  ;;  %v8647_v2 = vcombine.low %v1039_v46, %v1043_v47 }
 0x2f6   : > { %v8776_v51 = vcombine.high %v1167_v50, %v1171_v53  ;;  %v1047_v63 = vld [vmem:[%s9106_s28 + $0x18d0] sm:$0xff]  ;;  %v8775_v4 = vcombine.low %v1167_v50, %v1171_v53 }
 0x2f7   : > { %v1051_v0 = vld [vmem:[%s9106_s28 + $0x18f0] sm:$0xff] }
 0x2f8   : > { %7244 = vmatpush1.bf16.msra.mxu0 %v8479_v9  ;;  %7285 = vmatpush1.bf16.msra.mxu1 %v8607_v10  ;;  %v1175_v62 = vld [vmem:[%s9106_s28 + $0x1cd0] sm:$0xff]  ;;  %v8656_v5 = vcombine.high %v1047_v63, %v1051_v0 }
 0x2f9   : > { %7245 = vmatprep.subr.bf16.mxu0 %v8488_v11  ;;  %7286 = vmatprep.subr.bf16.mxu1 %v8616_v12  ;;  %v1179_v1 = vld [vmem:[%s9106_s28 + $0x1cf0] sm:$0xff]  ;;  %v8655_v11 = vcombine.low %v1047_v63, %v1051_v0  ;;  %v216_v63 = vld [vmem:[#allocation2 + $0x18] sm:$0xff] }
 0x2fa   : > { %v8784_v58 = vcombine.high %v1175_v62, %v1179_v1  ;;  %v1055_v6 = vld [vmem:[%s9106_s28 + $0x1910] sm:$0xff]  ;;  %v8783_v12 = vcombine.low %v1175_v62, %v1179_v1 }
 0x2fb   : > { %v1059_v8 = vld [vmem:[%s9106_s28 + $0x1930] sm:$0xff] }
 0x2fc   : > { %7246 = vmatpush1.bf16.msra.mxu0 %v8487_v20  ;;  %7287 = vmatpush1.bf16.msra.mxu1 %v8615_v22  ;;  %v1183_v9 = vld [vmem:[%s9106_s28 + $0x1d10] sm:$0xff]  ;;  %v8664_v13 = vcombine.high %v1055_v6, %v1059_v8 }
 0x2fd   : > { %7247 = vmatprep.subr.bf16.mxu0 %v8496_v23  ;;  %7288 = vmatprep.subr.bf16.mxu1 %v8624_v24  ;;  %v1187_v10 = vld [vmem:[%s9106_s28 + $0x1d30] sm:$0xff]  ;;  %v8663_v23 = vcombine.low %v1055_v6, %v1059_v8 }
 0x2fe   : > { %v8792_v14 = vcombine.high %v1183_v9, %v1187_v10  ;;  %v1063_v16 = vld [vmem:[%s9106_s28 + $0x1950] sm:$0xff]  ;;  %v8791_v24 = vcombine.low %v1183_v9, %v1187_v10 }
 0x2ff   : > { %v1067_v18 = vld [vmem:[%s9106_s28 + $0x1970] sm:$0xff] }
 0x300   : > { %7248 = vmatpush1.bf16.msra.mxu0 %v8495_v30  ;;  %7289 = vmatpush1.bf16.msra.mxu1 %v8623_v31  ;;  %v1191_v20 = vld [vmem:[%s9106_s28 + $0x1d50] sm:$0xff]  ;;  %v8672_v25 = vcombine.high %v1063_v16, %v1067_v18 }
 0x301   : > { %7299 = vmatprep.subr.bf16.mxu0 %v8632_v33  ;;  %7340 = vmatprep.subr.bf16.mxu1 %v8760_v34  ;;  %v1195_v22 = vld [vmem:[%s9106_s28 + $0x1d70] sm:$0xff]  ;;  %v8671_v33 = vcombine.low %v1063_v16, %v1067_v18 }
 0x302   : > { %v8800_v26 = vcombine.high %v1191_v20, %v1195_v22  ;;  %v1071_v27 = vld [vmem:[%s9106_s28 + $0x1990] sm:$0xff]  ;;  %v8799_v34 = vcombine.low %v1191_v20, %v1195_v22 }
 0x303   : > { %7250 = vmatmul.mubr.bf16.vlgmr.msra.gmra.mrb[40].mxu0 %v9359_v3  ;;  %7291 = vmatmul.mubr.bf16.vlgmr.msra.gmra.mrb[40].mxu1 %v9364_v7  ;;  %v1075_v28 = vld [vmem:[%s9106_s28 + $0x19b0] sm:$0xff] }
 0x304   : > { %7300 = vmatpush1.bf16.msra.mxu0 %v8631_v40  ;;  %7341 = vmatpush1.bf16.msra.mxu1 %v8759_v42  ;;  %v1199_v30 = vld [vmem:[%s9106_s28 + $0x1d90] sm:$0xff]  ;;  %v8680_v35 = vcombine.high %v1071_v27, %v1075_v28 }
 0x305   : > { %7301 = vmatprep.subr.bf16.mxu0 %v8640_v43  ;;  %7342 = vmatprep.subr.bf16.mxu1 %v8768_v44  ;;  %v1203_v31 = vld [vmem:[%s9106_s28 + $0x1db0] sm:$0xff] }
 0x306   : > { %7331 = vmatprep.mubr.bf16.mxu0 %v9369_v15  ;;  %7372 = vmatprep.mubr.bf16.mxu1 %v9374_v19  ;;  %v8808_v38 = vcombine.high %v1199_v30, %v1203_v31  ;;  %v1079_v39 = vld [vmem:[%s9106_s28 + $0x19d0] sm:$0xff]  ;;  %v8807_v62 = vcombine.low %v1199_v30, %v1203_v31 }
 0x307   : > { %v1083_v40 = vld [vmem:[%s9106_s28 + $0x19f0] sm:$0xff] }
 0x308   : > { %7302 = vmatpush1.bf16.msra.mxu0 %v8639_v55  ;;  %7343 = vmatpush1.bf16.msra.mxu1 %v8767_v56  ;;  %v1207_v46 = vld [vmem:[%s9106_s28 + $0x1dd0] sm:$0xff]  ;;  %v8688_v1 = vcombine.high %v1079_v39, %v1083_v40 }
 0x309   : > { %7303 = vmatprep.subr.bf16.mxu0 %v8648_v61  ;;  %7344 = vmatprep.subr.bf16.mxu1 %v8776_v51  ;;  %v1211_v47 = vld [vmem:[%s9106_s28 + $0x1df0] sm:$0xff]  ;;  %v8679_v61 = vcombine.low %v1071_v27, %v1075_v28 }
 0x30a   : > { %v215_v50 = vld [vmem:[#allocation2 + $0x10] sm:$0xff] }
 0x30b   : > { %v1215_v8 = vld [vmem:[%s9106_s28 + $0x1e10] sm:$0xff] }
 0x30c   : > { %7304 = vmatpush1.bf16.msra.mxu0 %v8647_v2  ;;  %7345 = vmatpush1.bf16.msra.mxu1 %v8775_v4  ;;  %v1219_v9 = vld [vmem:[%s9106_s28 + $0x1e30] sm:$0xff] }
 0x30d   : > { %7305 = vmatprep.subr.bf16.mxu0 %v8656_v5  ;;  %7346 = vmatprep.subr.bf16.mxu1 %v8784_v58  ;;  %v1087_v5 = vld [vmem:[%s9106_s28 + $0x1a10] sm:$0xff] }
 0x30e   : > { %v1091_v58 = vld [vmem:[%s9106_s28 + $0x1a30] sm:$0xff] }
 0x30f   : > { %v1095_v16 = vld [vmem:[%s9106_s28 + $0x1a50] sm:$0xff] }
 0x310   : > { %7306 = vmatpush1.bf16.msra.mxu0 %v8655_v11  ;;  %7347 = vmatpush1.bf16.msra.mxu1 %v8783_v12  ;;  %v8687_v11 = vcombine.low %v1079_v39, %v1083_v40  ;;  %v8815_v12 = vcombine.low %v1207_v46, %v1211_v47  ;;  %v1099_v18 = vld [vmem:[%s9106_s28 + $0x1a70] sm:$0xff] }
 0x311   : > { %7307 = vmatprep.subr.bf16.mxu0 %v8664_v13  ;;  %7348 = vmatprep.subr.bf16.mxu1 %v8792_v14  ;;  %v8696_v13 = vcombine.high %v1087_v5, %v1091_v58  ;;  %v8824_v14 = vcombine.high %v1215_v8, %v1219_v9  ;;  %v1223_v20 = vld [vmem:[%s9106_s28 + $0x1e50] sm:$0xff] }
 0x312   : > { %v1227_v22 = vld [vmem:[%s9106_s28 + $0x1e70] sm:$0xff] }
 0x313   : > { %v1103_v27 = vld [vmem:[%s9106_s28 + $0x1a90] sm:$0xff] }
 0x314   : > { %7308 = vmatpush1.bf16.msra.mxu0 %v8663_v23  ;;  %7349 = vmatpush1.bf16.msra.mxu1 %v8791_v24  ;;  %v8695_v23 = vcombine.low %v1087_v5, %v1091_v58  ;;  %v8823_v24 = vcombine.low %v1215_v8, %v1219_v9  ;;  %v1107_v28 = vld [vmem:[%s9106_s28 + $0x1ab0] sm:$0xff] }
 0x315   : > { %7309 = vmatprep.subr.bf16.mxu0 %v8672_v25  ;;  %7350 = vmatprep.subr.bf16.mxu1 %v8800_v26  ;;  %v8704_v25 = vcombine.high %v1095_v16, %v1099_v18  ;;  %v8832_v26 = vcombine.high %v1223_v20, %v1227_v22  ;;  %v1231_v30 = vld [vmem:[%s9106_s28 + $0x1e90] sm:$0xff] }
 0x316   : > { %v7005_v36 = vpop.f32.mrb[28].mxu0  ;;  %v7046_v43 = vpop.f32.mrb[28].mxu1  ;;  %v1235_v31 = vld [vmem:[%s9106_s28 + $0x1eb0] sm:$0xff] }
 0x317   : > { %v7006_v42 = vadd.f32 %v7005_v36, %v9911_v54  ;;  %v7007_v44 = vpop.f32.mrb[29].mxu0  ;;  %v7048_v55 = vpop.f32.mrb[29].mxu1  ;;  %v8840_v36 = vcombine.high %v1231_v30, %v1235_v31  ;;  %v1115_v39 = vld [vmem:[%s9106_s28 + $0x1af0] sm:$0xff] }
 0x318   : > { %v7008_v53 = vadd.f32 %v7007_v44, %v9913_v57  ;;  %v7009_v56 = vpop.f32.mrb[30].mxu0  ;;  %7310 = vmatpush1.bf16.msra.mxu0 %v8671_v33  ;;  %v7050_v0 = vpop.f32.mrb[30].mxu1  ;;  %7351 = vmatpush1.bf16.msra.mxu1 %v8799_v34  ;;  %v8816_v57 = vcombine.high %v1207_v46, %v1211_v47  ;;  %v8703_v33 = vcombine.low %v1095_v16, %v1099_v18  ;;  %v1239_v40 = vld [vmem:[%s9106_s28 + $0x1ed0] sm:$0xff] }
 0x319   : > { %v7047_v51 = vadd.f32 %v7046_v43, %v7006_v42  ;;  %v7010_v54 = vpop.f32.mrb[31].mxu0  ;;  %7311 = vmatprep.subr.bf16.mxu0 %v8680_v35  ;;  %v7051_v4 = vpop.f32.mrb[31].mxu1  ;;  %7352 = vmatprep.subr.bf16.mxu1 %v8808_v38  ;;  %v8831_v34 = vcombine.low %v1223_v20, %v1227_v22  ;;  %v8712_v35 = vcombine.high %v1103_v27, %v1107_v28  ;;  %v1111_v38 = vld [vmem:[%s9106_s28 + $0x1ad0] sm:$0xff] }
 0x31a   : > { %v7049_v2 = vadd.f32 %v7048_v55, %v7008_v53  ;;  %v1243_v42 = vld [vmem:[%s9106_s28 + $0x1ef0] sm:$0xff]  ;;  %v8711_v43 = vcombine.low %v1103_v27, %v1107_v28  ;;  %v8839_v44 = vcombine.low %v1231_v30, %v1235_v31  ;;  %v8720_v46 = vcombine.high %v1111_v38, %v1115_v39  ;;  %v256_v27 = vld [vmem:[%s9106_s28 + $0x18] sm:$0xff] }
 0x31b   : > { %v7711_v6 = vadd.f32 %v7047_v51, %v215_v50  ;;  %v8848_v47 = vcombine.high %v1239_v40, %v1243_v42  ;;  %v1119_v50 = vld [vmem:[%s9106_s28 + $0x1b10] sm:$0xff]  ;;  %v8847_v51 = vcombine.low %v1239_v40, %v1243_v42  ;;  %v260_v28 = vld [vmem:[%s9106_s28 + $0x38] sm:$0xff] }
 0x31c   : > { %v7712_v10 = vadd.f32 %v7049_v2, %v216_v63  ;;  %7312 = vmatpush1.bf16.msra.mxu0 %v8679_v61  ;;  %7353 = vmatpush1.bf16.msra.mxu1 %v8807_v62  ;;  %v1123_v53 = vld [vmem:[%s9106_s28 + $0x1b30] sm:$0xff]  ;;  %v8719_v61 = vcombine.low %v1111_v38, %v1115_v39  ;;  %v384_v30 = vld [vmem:[%s9106_s28 + $0x418] sm:$0xff] }
 0x31d   : > { %7719 = vst [vmem:[#allocation2 + $0x10] sm:$0xff] %v7711_v6  ;;  %7313 = vmatprep.subr.bf16.mxu0 %v8688_v1  ;;  %7354 = vmatprep.subr.bf16.mxu1 %v8816_v57  ;;  %v1247_v55 = vld [vmem:[%s9106_s28 + $0x1f10] sm:$0xff]  ;;  %v8728_v63 = vcombine.high %v1119_v50, %v1123_v53  ;;  %v8727_v4 = vcombine.low %v1119_v50, %v1123_v53  ;;  %v388_v31 = vld [vmem:[%s9106_s28 + $0x438] sm:$0xff] }
 0x31e   : > { %7720 = vst [vmem:[#allocation2 + $0x18] sm:$0xff] %v7712_v10  ;;  %v1251_v56 = vld [vmem:[%s9106_s28 + $0x1f30] sm:$0xff]  ;;  %v264_v38 = vld [vmem:[%s9106_s28 + $0x58] sm:$0xff] }
 0x31f   : > { %v8856_v0 = vcombine.high %v1247_v55, %v1251_v56  ;;  %v1127_v54 = vld [vmem:[%s9106_s28 + $0x1b50] sm:$0xff]  ;;  %v8855_v57 = vcombine.low %v1247_v55, %v1251_v56  ;;  %v268_v39 = vld [vmem:[%s9106_s28 + $0x78] sm:$0xff] }
 0x320   : > { %7314 = vmatpush1.bf16.msra.mxu0 %v8687_v11  ;;  %7355 = vmatpush1.bf16.msra.mxu1 %v8815_v12  ;;  %v1131_v62 = vld [vmem:[%s9106_s28 + $0x1b70] sm:$0xff]  ;;  %v392_v40 = vld [vmem:[%s9106_s28 + $0x458] sm:$0xff] }
 0x321   : > { %7315 = vmatprep.subr.bf16.mxu0 %v8696_v13  ;;  %7356 = vmatprep.subr.bf16.mxu1 %v8824_v14  ;;  %v1255_v1 = vld [vmem:[%s9106_s28 + $0x1f50] sm:$0xff]  ;;  %v8736_v5 = vcombine.high %v1127_v54, %v1131_v62  ;;  %v8735_v11 = vcombine.low %v1127_v54, %v1131_v62  ;;  %v396_v42 = vld [vmem:[%s9106_s28 + $0x478] sm:$0xff] }
 0x322   : > { %v1259_v2 = vld [vmem:[%s9106_s28 + $0x1f70] sm:$0xff]  ;;  %v272_v50 = vld [vmem:[%s9106_s28 + $0x98] sm:$0xff] }
 0x323   : > { %v8864_v58 = vcombine.high %v1255_v1, %v1259_v2  ;;  %v1135_v6 = vld [vmem:[%s9106_s28 + $0x1b90] sm:$0xff]  ;;  %v8863_v12 = vcombine.low %v1255_v1, %v1259_v2  ;;  %v276_v53 = vld [vmem:[%s9106_s28 + $0xb8] sm:$0xff] }
 0x324   : > { %7316 = vmatpush1.bf16.msra.mxu0 %v8695_v23  ;;  %7357 = vmatpush1.bf16.msra.mxu1 %v8823_v24  ;;  %v1139_v8 = vld [vmem:[%s9106_s28 + $0x1bb0] sm:$0xff]  ;;  %v400_v55 = vld [vmem:[%s9106_s28 + $0x498] sm:$0xff] }
 0x325   : > { %7317 = vmatprep.subr.bf16.mxu0 %v8704_v25  ;;  %7358 = vmatprep.subr.bf16.mxu1 %v8832_v26  ;;  %v1263_v9 = vld [vmem:[%s9106_s28 + $0x1f90] sm:$0xff]  ;;  %v8744_v13 = vcombine.high %v1135_v6, %v1139_v8  ;;  %v8743_v23 = vcombine.low %v1135_v6, %v1139_v8  ;;  %v404_v56 = vld [vmem:[%s9106_s28 + $0x4b8] sm:$0xff] }
 0x326   : > { %v1267_v10 = vld [vmem:[%s9106_s28 + $0x1fb0] sm:$0xff]  ;;  %v280_v54 = vld [vmem:[%s9106_s28 + $0xd8] sm:$0xff] }
 0x327   : > { %v8872_v14 = vcombine.high %v1263_v9, %v1267_v10  ;;  %v1143_v16 = vld [vmem:[%s9106_s28 + $0x1bd0] sm:$0xff]  ;;  %v8871_v24 = vcombine.low %v1263_v9, %v1267_v10  ;;  %v284_v62 = vld [vmem:[%s9106_s28 + $0xf8] sm:$0xff] }
 0x328   : > { %7318 = vmatpush1.bf16.msra.mxu0 %v8703_v33  ;;  %7359 = vmatpush1.bf16.msra.mxu1 %v8831_v34  ;;  %v1147_v18 = vld [vmem:[%s9106_s28 + $0x1bf0] sm:$0xff]  ;;  %v408_v1 = vld [vmem:[%s9106_s28 + $0x4d8] sm:$0xff]  ;;  %v7889_v10 = vcombine.low %v280_v54, %v284_v62 }
 0x329   : > { %7319 = vmatprep.subr.bf16.mxu0 %v8712_v35  ;;  %7360 = vmatprep.subr.bf16.mxu1 %v8840_v36  ;;  %v1271_v20 = vld [vmem:[%s9106_s28 + $0x1fd0] sm:$0xff]  ;;  %v8752_v25 = vcombine.high %v1143_v16, %v1147_v18  ;;  %v8751_v33 = vcombine.low %v1143_v16, %v1147_v18  ;;  %v7866_v35 = vcombine.high %v256_v27, %v260_v28  ;;  %v412_v2 = vld [vmem:[%s9106_s28 + $0x4f8] sm:$0xff] }
 0x32a   : > { %v1275_v22 = vld [vmem:[%s9106_s28 + $0x1ff0] sm:$0xff]  ;;  %v7994_v36 = vcombine.high %v384_v30, %v388_v31  ;;  %v288_v6 = vld [vmem:[%s9106_s28 + $0x118] sm:$0xff] }
 0x32b   : > { %v8880_v26 = vcombine.high %v1271_v20, %v1275_v22  ;;  %v8879_v34 = vcombine.low %v1271_v20, %v1275_v22  ;;  %v292_v8 = vld [vmem:[%s9106_s28 + $0x138] sm:$0xff] }
 0x32c   : > { %7320 = vmatpush1.bf16.msra.mxu0 %v8711_v43  ;;  %7361 = vmatpush1.bf16.msra.mxu1 %v8839_v44  ;;  %v7865_v43 = vcombine.low %v256_v27, %v260_v28  ;;  %v7993_v44 = vcombine.low %v384_v30, %v388_v31  ;;  %v416_v9 = vld [vmem:[%s9106_s28 + $0x518] sm:$0xff]  ;;  %v7897_v20 = vcombine.low %v288_v6, %v292_v8 }
 0x32d   : > { %7321 = vmatprep.subr.bf16.mxu0 %v8720_v46  ;;  %7362 = vmatprep.subr.bf16.mxu1 %v8848_v47  ;;  %v7874_v46 = vcombine.high %v264_v38, %v268_v39  ;;  %v8002_v47 = vcombine.high %v392_v40, %v396_v42  ;;  %v424_v16 = vld [vmem:[%s9106_s28 + $0x558] sm:$0xff] }
 0x32e   : > { %v428_v18 = vld [vmem:[%s9106_s28 + $0x578] sm:$0xff] }
 0x32f   : > { %v432_v27 = vld [vmem:[%s9106_s28 + $0x598] sm:$0xff]  ;;  %v8033_v31 = vcombine.low %v424_v16, %v428_v18 }
 0x330   : > { %7322 = vmatpush1.bf16.msra.mxu0 %v8719_v61  ;;  %7363 = vmatpush1.bf16.msra.mxu1 %v8847_v51  ;;  %v7873_v61 = vcombine.low %v264_v38, %v268_v39  ;;  %v8001_v51 = vcombine.low %v392_v40, %v396_v42  ;;  %v436_v28 = vld [vmem:[%s9106_s28 + $0x5b8] sm:$0xff] }
 0x331   : > { %7323 = vmatprep.subr.bf16.mxu0 %v8728_v63  ;;  %7364 = vmatprep.subr.bf16.mxu1 %v8856_v0  ;;  %v7882_v63 = vcombine.high %v272_v50, %v276_v53  ;;  %v8010_v0 = vcombine.high %v400_v55, %v404_v56  ;;  %v316_v38 = vld [vmem:[%s9106_s28 + $0x1f8] sm:$0xff] }
 0x332   : > { %v440_v42 = vld [vmem:[%s9106_s28 + $0x5d8] sm:$0xff] }
 0x334   : > { %7324 = vmatpush1.bf16.msra.mxu0 %v8727_v4  ;;  %7365 = vmatpush1.bf16.msra.mxu1 %v8855_v57  ;;  %v7881_v4 = vcombine.low %v272_v50, %v276_v53  ;;  %v8009_v57 = vcombine.low %v400_v55, %v404_v56 }
 0x335   : > { %7325 = vmatprep.subr.bf16.mxu0 %v8736_v5  ;;  %7366 = vmatprep.subr.bf16.mxu1 %v8864_v58  ;;  %v7890_v5 = vcombine.high %v280_v54, %v284_v62  ;;  %v8018_v58 = vcombine.high %v408_v1, %v412_v2  ;;  %v320_v54 = vld [vmem:[%s9106_s28 + $0x218] sm:$0xff] }
 0x336   : > { %v324_v62 = vld [vmem:[%s9106_s28 + $0x238] sm:$0xff] }
 0x338   : > { %7326 = vmatpush1.bf16.msra.mxu0 %v8735_v11  ;;  %7367 = vmatpush1.bf16.msra.mxu1 %v8863_v12  ;;  %v7898_v11 = vcombine.high %v288_v6, %v292_v8  ;;  %v328_v6 = vld [vmem:[%s9106_s28 + $0x258] sm:$0xff] }
 0x339   : > { %7327 = vmatprep.subr.bf16.mxu0 %v8744_v13  ;;  %7368 = vmatprep.subr.bf16.mxu1 %v8872_v14  ;;  %v296_v13 = vld [vmem:[%s9106_s28 + $0x158] sm:$0xff] }
 0x33a   : > { %v300_v14 = vld [vmem:[%s9106_s28 + $0x178] sm:$0xff] }
 0x33b   : > { %v7905_v30 = vcombine.low %v296_v13, %v300_v14  ;;  %v332_v8 = vld [vmem:[%s9106_s28 + $0x278] sm:$0xff] }
 0x33c   : > { %7328 = vmatpush1.bf16.msra.mxu0 %v8743_v23  ;;  %7369 = vmatpush1.bf16.msra.mxu1 %v8871_v24  ;;  %v7906_v23 = vcombine.high %v296_v13, %v300_v14  ;;  %v8034_v24 = vcombine.high %v424_v16, %v428_v18  ;;  %v336_v13 = vld [vmem:[%s9106_s28 + $0x298] sm:$0xff] }
 0x33d   : > { %7329 = vmatprep.subr.bf16.mxu0 %v8752_v25  ;;  %7370 = vmatprep.subr.bf16.mxu1 %v8880_v26  ;;  %v304_v25 = vld [vmem:[%s9106_s28 + $0x198] sm:$0xff] }
 0x33e   : > { %v308_v26 = vld [vmem:[%s9106_s28 + $0x1b8] sm:$0xff] }
 0x33f   : > { %v7913_v50 = vcombine.low %v304_v25, %v308_v26  ;;  %v340_v14 = vld [vmem:[%s9106_s28 + $0x2b8] sm:$0xff] }
 0x340   : > { %7330 = vmatpush1.bf16.msra.mxu0 %v8751_v33  ;;  %7371 = vmatpush1.bf16.msra.mxu1 %v8879_v34  ;;  %v7914_v33 = vcombine.high %v304_v25, %v308_v26  ;;  %v464_v16 = vld [vmem:[%s9106_s28 + $0x698] sm:$0xff] }
 0x341   : > { %7381 = vmatprep.subr.bf16.mxu0 %v7866_v35  ;;  %7422 = vmatprep.subr.bf16.mxu1 %v7994_v36  ;;  %v8042_v35 = vcombine.high %v432_v27, %v436_v28  ;;  %v312_v36 = vld [vmem:[%s9106_s28 + $0x1d8] sm:$0xff] }
 0x342   : > { %v468_v18 = vld [vmem:[%s9106_s28 + $0x6b8] sm:$0xff] }
 0x343   : > { %7332 = vmatmul.mubr.bf16.vlgmr.msra.gmra.mrb[44].mxu0 %v9439_v45  ;;  %7373 = vmatmul.mubr.bf16.vlgmr.msra.gmra.mrb[44].mxu1 %v9443_v48  ;;  %v344_v25 = vld [vmem:[%s9106_s28 + $0x2d8] sm:$0xff] }
 0x344   : > { %7382 = vmatpush1.bf16.msra.mxu0 %v7865_v43  ;;  %7423 = vmatpush1.bf16.msra.mxu1 %v7993_v44  ;;  %v444_v43 = vld [vmem:[%s9106_s28 + $0x5f8] sm:$0xff] }
 0x345   : > { %7383 = vmatprep.subr.bf16.mxu0 %v7874_v46  ;;  %7424 = vmatprep.subr.bf16.mxu1 %v8002_v47  ;;  %v348_v26 = vld [vmem:[%s9106_s28 + $0x2f8] sm:$0xff] }
 0x346   : > { %7413 = vmatprep.mubr.bf16.mxu0 %v9151_v59  ;;  %7454 = vmatprep.mubr.bf16.mxu1 %v9153_v60  ;;  %v420_v59 = vld [vmem:[%s9106_s28 + $0x538] sm:$0xff]  ;;  %v8017_v60 = vcombine.low %v408_v1, %v412_v2 }
 0x347   : > { %v8026_v12 = vcombine.high %v416_v9, %v420_v59  ;;  %v8025_v22 = vcombine.low %v416_v9, %v420_v59  ;;  %v448_v1 = vld [vmem:[%s9106_s28 + $0x618] sm:$0xff] }
 0x348   : > { %7384 = vmatpush1.bf16.msra.mxu0 %v7873_v61  ;;  %7425 = vmatpush1.bf16.msra.mxu1 %v8001_v51  ;;  %v8041_v61 = vcombine.low %v432_v27, %v436_v28  ;;  %v7922_v51 = vcombine.high %v312_v36, %v316_v38  ;;  %v452_v2 = vld [vmem:[%s9106_s28 + $0x638] sm:$0xff] }
 0x349   : > { %7385 = vmatprep.subr.bf16.mxu0 %v7882_v63  ;;  %7426 = vmatprep.subr.bf16.mxu1 %v8010_v0  ;;  %v8050_v0 = vcombine.high %v440_v42, %v444_v43  ;;  %v456_v9 = vld [vmem:[%s9106_s28 + $0x658] sm:$0xff] }
 0x34a   : > { %v460_v59 = vld [vmem:[%s9106_s28 + $0x678] sm:$0xff] }
 0x34b   : > { %v472_v27 = vld [vmem:[%s9106_s28 + $0x6d8] sm:$0xff] }
 0x34c   : > { %7386 = vmatpush1.bf16.msra.mxu0 %v7881_v4  ;;  %7427 = vmatpush1.bf16.msra.mxu1 %v8009_v57  ;;  %v7921_v4 = vcombine.low %v312_v36, %v316_v38  ;;  %v8049_v57 = vcombine.low %v440_v42, %v444_v43  ;;  %v476_v28 = vld [vmem:[%s9106_s28 + $0x6f8] sm:$0xff] }
 0x34d   : > { %7387 = vmatprep.subr.bf16.mxu0 %v7890_v5  ;;  %7428 = vmatprep.subr.bf16.mxu1 %v8018_v58  ;;  %v7930_v5 = vcombine.high %v320_v54, %v324_v62  ;;  %v8058_v58 = vcombine.high %v448_v1, %v452_v2  ;;  %v356_v36 = vld [vmem:[%s9106_s28 + $0x338] sm:$0xff]  ;;  %v8081_v42 = vcombine.low %v472_v27, %v476_v28 }
 0x34e   : > { %v480_v38 = vld [vmem:[%s9106_s28 + $0x718] sm:$0xff] }
 0x350   : > { %7388 = vmatpush1.bf16.msra.mxu0 %v7889_v10  ;;  %7429 = vmatpush1.bf16.msra.mxu1 %v8017_v60  ;;  %v7929_v10 = vcombine.low %v320_v54, %v324_v62  ;;  %v8057_v60 = vcombine.low %v448_v1, %v452_v2  ;;  %v368_v54 = vld [vmem:[%s9106_s28 + $0x398] sm:$0xff] }
 0x351   : > { %7389 = vmatprep.subr.bf16.mxu0 %v7898_v11  ;;  %7430 = vmatprep.subr.bf16.mxu1 %v8026_v12  ;;  %v7938_v11 = vcombine.high %v328_v6, %v332_v8  ;;  %v8066_v12 = vcombine.high %v456_v9, %v460_v59  ;;  %v372_v62 = vld [vmem:[%s9106_s28 + $0x3b8] sm:$0xff] }
 0x352   : > { %v496_v1 = vld [vmem:[%s9106_s28 + $0x798] sm:$0xff] }
 0x353   : > { %v500_v2 = vld [vmem:[%s9106_s28 + $0x7b8] sm:$0xff] }
 0x354   : > { %7390 = vmatpush1.bf16.msra.mxu0 %v7897_v20  ;;  %7431 = vmatpush1.bf16.msra.mxu1 %v8025_v22  ;;  %v7937_v20 = vcombine.low %v328_v6, %v332_v8  ;;  %v8065_v22 = vcombine.low %v456_v9, %v460_v59  ;;  %v376_v6 = vld [vmem:[%s9106_s28 + $0x3d8] sm:$0xff] }
 0x355   : > { %7391 = vmatprep.subr.bf16.mxu0 %v7906_v23  ;;  %7432 = vmatprep.subr.bf16.mxu1 %v8034_v24  ;;  %v7946_v23 = vcombine.high %v336_v13, %v340_v14  ;;  %v8074_v24 = vcombine.high %v464_v16, %v468_v18  ;;  %v380_v8 = vld [vmem:[%s9106_s28 + $0x3f8] sm:$0xff] }
 0x356   : > { %v7087_v34 = vpop.f32.mrb[32].mxu0  ;;  %v7128_v39 = vpop.f32.mrb[32].mxu1  ;;  %v504_v9 = vld [vmem:[%s9106_s28 + $0x7d8] sm:$0xff] }
 0x357   : > { %v7089_v40 = vpop.f32.mrb[33].mxu0  ;;  %v10053_v44 = vadd.f32 %v7128_v39, %v7087_v34  ;;  %v7130_v46 = vpop.f32.mrb[33].mxu1  ;;  %v8082_v34 = vcombine.high %v472_v27, %v476_v28  ;;  %v484_v39 = vld [vmem:[%s9106_s28 + $0x738] sm:$0xff] }
 0x358   : > { %v7091_v47 = vpop.f32.mrb[34].mxu0  ;;  %7392 = vmatpush1.bf16.msra.mxu0 %v7905_v30  ;;  %v10055_v53 = vadd.f32 %v7130_v46, %v7089_v40  ;;  %v7132_v55 = vpop.f32.mrb[34].mxu1  ;;  %7433 = vmatpush1.bf16.msra.mxu1 %v8033_v31  ;;  %v7945_v30 = vcombine.low %v336_v13, %v340_v14  ;;  %v8073_v31 = vcombine.low %v464_v16, %v468_v18  ;;  %v508_v59 = vld [vmem:[%s9106_s28 + $0x7f8] sm:$0xff] }
 0x359   : > { %v7092_v56 = vpop.f32.mrb[35].mxu0  ;;  %7393 = vmatprep.subr.bf16.mxu0 %v7914_v33  ;;  %v7133_v63 = vpop.f32.mrb[35].mxu1  ;;  %7434 = vmatprep.subr.bf16.mxu1 %v8042_v35  ;;  %v7954_v33 = vcombine.high %v344_v25, %v348_v26  ;;  %v352_v35 = vld [vmem:[%s9106_s28 + $0x318] sm:$0xff]  ;;  %v7953_v40 = vcombine.low %v344_v25, %v348_v26  ;;  %v8090_v46 = vcombine.high %v480_v38, %v484_v39 }
 0x35a   : > { %v7962_v43 = vcombine.high %v352_v35, %v356_v36  ;;  %v360_v47 = vld [vmem:[%s9106_s28 + $0x358] sm:$0xff] }
 0x35b   : > { %v488_v55 = vld [vmem:[%s9106_s28 + $0x758] sm:$0xff] }
 0x35c   : > { %7394 = vmatpush1.bf16.msra.mxu0 %v7913_v50  ;;  %7435 = vmatpush1.bf16.msra.mxu1 %v8041_v61  ;;  %v364_v50 = vld [vmem:[%s9106_s28 + $0x378] sm:$0xff]  ;;  %v7961_v61 = vcombine.low %v352_v35, %v356_v36 }
 0x35d   : > { %7395 = vmatprep.subr.bf16.mxu0 %v7922_v51  ;;  %7436 = vmatprep.subr.bf16.mxu1 %v8050_v0  ;;  %v492_v56 = vld [vmem:[%s9106_s28 + $0x778] sm:$0xff]  ;;  %v8089_v51 = vcombine.low %v480_v38, %v484_v39  ;;  %v7970_v63 = vcombine.high %v360_v47, %v364_v50 }
 0x35e   : > { %v8098_v0 = vcombine.high %v488_v55, %v492_v56  ;;  %v512_v13 = vld [vmem:[%s9106_s28 + $0x818] sm:$0xff] }
 0x35f   : > { %v516_v14 = vld [vmem:[%s9106_s28 + $0x838] sm:$0xff] }
 0x360   : > { %7396 = vmatpush1.bf16.msra.mxu0 %v7921_v4  ;;  %7437 = vmatpush1.bf16.msra.mxu1 %v8049_v57  ;;  %v7969_v4 = vcombine.low %v360_v47, %v364_v50  ;;  %v8097_v57 = vcombine.low %v488_v55, %v492_v56  ;;  %v640_v16 = vld [vmem:[%s9106_s28 + $0xc18] sm:$0xff] }
 0x361   : > { %7397 = vmatprep.subr.bf16.mxu0 %v7930_v5  ;;  %7438 = vmatprep.subr.bf16.mxu1 %v8058_v58  ;;  %v7978_v5 = vcombine.high %v368_v54, %v372_v62  ;;  %v8106_v58 = vcombine.high %v496_v1, %v500_v2  ;;  %v644_v18 = vld [vmem:[%s9106_s28 + $0xc38] sm:$0xff] }
 0x362   : > { %v520_v25 = vld [vmem:[%s9106_s28 + $0x858] sm:$0xff] }
 0x363   : > { %v524_v26 = vld [vmem:[%s9106_s28 + $0x878] sm:$0xff] }
 0x364   : > { %7398 = vmatpush1.bf16.msra.mxu0 %v7929_v10  ;;  %7439 = vmatpush1.bf16.msra.mxu1 %v8057_v60  ;;  %v7977_v10 = vcombine.low %v368_v54, %v372_v62  ;;  %v8105_v60 = vcombine.low %v496_v1, %v500_v2  ;;  %v648_v27 = vld [vmem:[%s9106_s28 + $0xc58] sm:$0xff] }
 0x365   : > { %7399 = vmatprep.subr.bf16.mxu0 %v7938_v11  ;;  %7440 = vmatprep.subr.bf16.mxu1 %v8066_v12  ;;  %v7986_v11 = vcombine.high %v376_v6, %v380_v8  ;;  %v8114_v12 = vcombine.high %v504_v9, %v508_v59  ;;  %v652_v28 = vld [vmem:[%s9106_s28 + $0xc78] sm:$0xff] }
 0x366   : > { %v528_v35 = vld [vmem:[%s9106_s28 + $0x898] sm:$0xff] }
 0x367   : > { %v532_v36 = vld [vmem:[%s9106_s28 + $0x8b8] sm:$0xff] }
 0x368   : > { %7400 = vmatpush1.bf16.msra.mxu0 %v7937_v20  ;;  %7441 = vmatpush1.bf16.msra.mxu1 %v8065_v22  ;;  %v7985_v20 = vcombine.low %v376_v6, %v380_v8  ;;  %v8113_v22 = vcombine.low %v504_v9, %v508_v59  ;;  %v656_v38 = vld [vmem:[%s9106_s28 + $0xc98] sm:$0xff] }
 0x369   : > { %7401 = vmatprep.subr.bf16.mxu0 %v7946_v23  ;;  %7442 = vmatprep.subr.bf16.mxu1 %v8074_v24  ;;  %v8122_v23 = vcombine.high %v512_v13, %v516_v14  ;;  %v8250_v24 = vcombine.high %v640_v16, %v644_v18  ;;  %v660_v39 = vld [vmem:[%s9106_s28 + $0xcb8] sm:$0xff] }
 0x36a   : > { %v536_v47 = vld [vmem:[%s9106_s28 + $0x8d8] sm:$0xff]  ;;  %v8265_v56 = vcombine.low %v656_v38, %v660_v39 }
 0x36b   : > { %v540_v50 = vld [vmem:[%s9106_s28 + $0x8f8] sm:$0xff] }
 0x36c   : > { %7402 = vmatpush1.bf16.msra.mxu0 %v7945_v30  ;;  %7443 = vmatpush1.bf16.msra.mxu1 %v8073_v31  ;;  %v8121_v30 = vcombine.low %v512_v13, %v516_v14  ;;  %v8249_v31 = vcombine.low %v640_v16, %v644_v18  ;;  %v668_v55 = vld [vmem:[%s9106_s28 + $0xcf8] sm:$0xff]  ;;  %v8145_v62 = vcombine.low %v536_v47, %v540_v50 }
 0x36d   : > { %7403 = vmatprep.subr.bf16.mxu0 %v7954_v33  ;;  %7444 = vmatprep.subr.bf16.mxu1 %v8082_v34  ;;  %v8130_v33 = vcombine.high %v520_v25, %v524_v26  ;;  %v8258_v34 = vcombine.high %v648_v27, %v652_v28  ;;  %v672_v54 = vld [vmem:[%s9106_s28 + $0xd18] sm:$0xff] }
 0x370   : > { %7404 = vmatpush1.bf16.msra.mxu0 %v7953_v40  ;;  %7445 = vmatpush1.bf16.msra.mxu1 %v8081_v42  ;;  %v8129_v40 = vcombine.low %v520_v25, %v524_v26  ;;  %v8257_v42 = vcombine.low %v648_v27, %v652_v28  ;;  %v696_v27 = vld [vmem:[%s9106_s28 + $0xdd8] sm:$0xff] }
 0x371   : > { %7405 = vmatprep.subr.bf16.mxu0 %v7962_v43  ;;  %7446 = vmatprep.subr.bf16.mxu1 %v8090_v46  ;;  %v8138_v43 = vcombine.high %v528_v35, %v532_v36  ;;  %v8266_v46 = vcombine.high %v656_v38, %v660_v39  ;;  %v700_v28 = vld [vmem:[%s9106_s28 + $0xdf8] sm:$0xff] }
 0x374   : > { %7406 = vmatpush1.bf16.msra.mxu0 %v7961_v61  ;;  %7447 = vmatpush1.bf16.msra.mxu1 %v8089_v51  ;;  %v8146_v61 = vcombine.high %v536_v47, %v540_v50  ;;  %v704_v47 = vld [vmem:[%s9106_s28 + $0xe18] sm:$0xff] }
 0x375   : > { %7407 = vmatprep.subr.bf16.mxu0 %v7970_v63  ;;  %7448 = vmatprep.subr.bf16.mxu1 %v8098_v0  ;;  %v544_v63 = vld [vmem:[%s9106_s28 + $0x918] sm:$0xff] }
 0x376   : > { %v548_v0 = vld [vmem:[%s9106_s28 + $0x938] sm:$0xff] }
 0x377   : > { %v8154_v1 = vcombine.high %v544_v63, %v548_v0  ;;  %v8153_v6 = vcombine.low %v544_v63, %v548_v0  ;;  %v708_v50 = vld [vmem:[%s9106_s28 + $0xe38] sm:$0xff] }
 0x378   : > { %7408 = vmatpush1.bf16.msra.mxu0 %v7969_v4  ;;  %7449 = vmatpush1.bf16.msra.mxu1 %v8097_v57  ;;  %v552_v4 = vld [vmem:[%s9106_s28 + $0x958] sm:$0xff] }
 0x379   : > { %7409 = vmatprep.subr.bf16.mxu0 %v7978_v5  ;;  %7450 = vmatprep.subr.bf16.mxu1 %v8106_v58  ;;  %v556_v57 = vld [vmem:[%s9106_s28 + $0x978] sm:$0xff] }
 0x37a   : > { %v680_v5 = vld [vmem:[%s9106_s28 + $0xd58] sm:$0xff]  ;;  %v8162_v9 = vcombine.high %v552_v4, %v556_v57  ;;  %v8161_v13 = vcombine.low %v552_v4, %v556_v57 }
 0x37b   : > { %v684_v58 = vld [vmem:[%s9106_s28 + $0xd78] sm:$0xff] }
 0x37c   : > { %7410 = vmatpush1.bf16.msra.mxu0 %v7977_v10  ;;  %7451 = vmatpush1.bf16.msra.mxu1 %v8105_v60  ;;  %v8290_v59 = vcombine.high %v680_v5, %v684_v58  ;;  %v560_v10 = vld [vmem:[%s9106_s28 + $0x998] sm:$0xff]  ;;  %v8289_v14 = vcombine.low %v680_v5, %v684_v58 }
 0x37d   : > { %7411 = vmatprep.subr.bf16.mxu0 %v7986_v11  ;;  %7452 = vmatprep.subr.bf16.mxu1 %v8114_v12  ;;  %v564_v60 = vld [vmem:[%s9106_s28 + $0x9b8] sm:$0xff] }
 0x37e   : > { %v688_v11 = vld [vmem:[%s9106_s28 + $0xd98] sm:$0xff]  ;;  %v8170_v16 = vcombine.high %v560_v10, %v564_v60 }
 0x37f   : > { %v692_v12 = vld [vmem:[%s9106_s28 + $0xdb8] sm:$0xff] }
 0x380   : > { %7412 = vmatpush1.bf16.msra.mxu0 %v7985_v20  ;;  %7453 = vmatpush1.bf16.msra.mxu1 %v8113_v22  ;;  %v8298_v20 = vcombine.high %v688_v11, %v692_v12  ;;  %v568_v22 = vld [vmem:[%s9106_s28 + $0x9d8] sm:$0xff] }
 0x381   : > { %7463 = vmatprep.subr.bf16.mxu0 %v8122_v23  ;;  %7504 = vmatprep.subr.bf16.mxu1 %v8250_v24  ;;  %v572_v23 = vld [vmem:[%s9106_s28 + $0x9f8] sm:$0xff] }
 0x382   : > { %v8178_v39 = vcombine.high %v568_v22, %v572_v23  ;;  %v712_v63 = vld [vmem:[%s9106_s28 + $0xe58] sm:$0xff] }
 0x383   : > { %7414 = vmatmul.mubr.bf16.vlgmr.msra.gmra.mrb[48].mxu0 %v9199_v17  ;;  %7455 = vmatmul.mubr.bf16.vlgmr.msra.gmra.mrb[48].mxu1 %v9204_v21  ;;  %v664_v17 = vld [vmem:[%s9106_s28 + $0xcd8] sm:$0xff]  ;;  %v8137_v21 = vcombine.low %v528_v35, %v532_v36 }
 0x384   : > { %7464 = vmatpush1.bf16.msra.mxu0 %v8121_v30  ;;  %7505 = vmatpush1.bf16.msra.mxu1 %v8249_v31  ;;  %v8274_v51 = vcombine.high %v664_v17, %v668_v55  ;;  %v716_v0 = vld [vmem:[%s9106_s28 + $0xe78] sm:$0xff] }
 0x385   : > { %7465 = vmatprep.subr.bf16.mxu0 %v8130_v33  ;;  %7506 = vmatprep.subr.bf16.mxu1 %v8258_v34  ;;  %v8169_v34 = vcombine.low %v560_v10, %v564_v60  ;;  %v720_v4 = vld [vmem:[%s9106_s28 + $0xe98] sm:$0xff]  ;;  %v8321_v58 = vcombine.low %v712_v63, %v716_v0 }
 0x386   : > { %7495 = vmatprep.mubr.bf16.mxu0 %v9209_v29  ;;  %7536 = vmatprep.mubr.bf16.mxu1 %v9214_v32  ;;  %v676_v29 = vld [vmem:[%s9106_s28 + $0xd38] sm:$0xff]  ;;  %v8273_v32 = vcombine.low %v664_v17, %v668_v55  ;;  %v8177_v17 = vcombine.low %v568_v22, %v572_v23  ;;  %v8305_v55 = vcombine.low %v696_v27, %v700_v28 }
 0x387   : > { %v8282_v2 = vcombine.high %v672_v54, %v676_v29  ;;  %v8281_v8 = vcombine.low %v672_v54, %v676_v29  ;;  %v8313_v29 = vcombine.low %v704_v47, %v708_v50  ;;  %v724_v57 = vld [vmem:[%s9106_s28 + $0xeb8] sm:$0xff] }
 0x388   : > { %7466 = vmatpush1.bf16.msra.mxu0 %v8129_v40  ;;  %7507 = vmatpush1.bf16.msra.mxu1 %v8257_v42  ;;  %v8306_v42 = vcombine.high %v696_v27, %v700_v28  ;;  %v728_v10 = vld [vmem:[%s9106_s28 + $0xed8] sm:$0xff] }
 0x389   : > { %7467 = vmatprep.subr.bf16.mxu0 %v8138_v43  ;;  %7508 = vmatprep.subr.bf16.mxu1 %v8266_v46  ;;  %v576_v43 = vld [vmem:[%s9106_s28 + $0xa18] sm:$0xff] }
 0x38a   : > { %v580_v46 = vld [vmem:[%s9106_s28 + $0xa38] sm:$0xff] }
 0x38b   : > { %v8185_v54 = vcombine.low %v576_v43, %v580_v46  ;;  %v732_v60 = vld [vmem:[%s9106_s28 + $0xef8] sm:$0xff] }
 0x38c   : > { %7468 = vmatpush1.bf16.msra.mxu0 %v8137_v21  ;;  %7509 = vmatpush1.bf16.msra.mxu1 %v8265_v56  ;;  %v8186_v21 = vcombine.high %v576_v43, %v580_v46  ;;  %v8314_v56 = vcombine.high %v704_v47, %v708_v50  ;;  %v740_v22 = vld [vmem:[%s9106_s28 + $0xf38] sm:$0xff] }
 0x38d   : > { %7469 = vmatprep.subr.bf16.mxu0 %v8146_v61  ;;  %7510 = vmatprep.subr.bf16.mxu1 %v8274_v51  ;;  %v584_v61 = vld [vmem:[%s9106_s28 + $0xa58] sm:$0xff] }
 0x38e   : > { %v588_v51 = vld [vmem:[%s9106_s28 + $0xa78] sm:$0xff] }
 0x38f   : > { %v8193_v5 = vcombine.low %v584_v61, %v588_v51  ;;  %v616_v27 = vld [vmem:[%s9106_s28 + $0xb58] sm:$0xff] }
 0x390   : > { %7470 = vmatpush1.bf16.msra.mxu0 %v8145_v62  ;;  %7511 = vmatpush1.bf16.msra.mxu1 %v8273_v32  ;;  %v8194_v62 = vcombine.high %v584_v61, %v588_v51  ;;  %v8322_v32 = vcombine.high %v712_v63, %v716_v0  ;;  %v620_v28 = vld [vmem:[%s9106_s28 + $0xb78] sm:$0xff] }
 0x391   : > { %7471 = vmatprep.subr.bf16.mxu0 %v8154_v1  ;;  %7512 = vmatprep.subr.bf16.mxu1 %v8282_v2  ;;  %v592_v1 = vld [vmem:[%s9106_s28 + $0xa98] sm:$0xff]  ;;  %v8225_v43 = vcombine.low %v616_v27, %v620_v28 }
 0x392   : > { %v596_v2 = vld [vmem:[%s9106_s28 + $0xab8] sm:$0xff] }
 0x394   : > { %7472 = vmatpush1.bf16.msra.mxu0 %v8153_v6  ;;  %7513 = vmatpush1.bf16.msra.mxu1 %v8281_v8  ;;  %v8202_v6 = vcombine.high %v592_v1, %v596_v2  ;;  %v8330_v8 = vcombine.high %v720_v4, %v724_v57 }
 0x395   : > { %7473 = vmatprep.subr.bf16.mxu0 %v8162_v9  ;;  %7514 = vmatprep.subr.bf16.mxu1 %v8290_v59  ;;  %v600_v9 = vld [vmem:[%s9106_s28 + $0xad8] sm:$0xff] }
 0x396   : > { %v7169_v18 = vpop.f32.mrb[36].mxu0  ;;  %v7210_v25 = vpop.f32.mrb[36].mxu1  ;;  %v604_v59 = vld [vmem:[%s9106_s28 + $0xaf8] sm:$0xff] }
 0x397   : > { %v7170_v24 = vadd.f32 %v7169_v18, %v10053_v44  ;;  %v7171_v26 = vpop.f32.mrb[37].mxu0  ;;  %v7212_v31 = vpop.f32.mrb[37].mxu1  ;;  %v8297_v44 = vcombine.low %v688_v11, %v692_v12  ;;  %v8201_v11 = vcombine.low %v592_v1, %v596_v2  ;;  %v8329_v12 = vcombine.low %v720_v4, %v724_v57  ;;  %v612_v18 = vld [vmem:[%s9106_s28 + $0xb38] sm:$0xff] }
 0x398   : > { %v7172_v30 = vadd.f32 %v7171_v26, %v10055_v53  ;;  %v7173_v33 = vpop.f32.mrb[38].mxu0  ;;  %7474 = vmatpush1.bf16.msra.mxu0 %v8161_v13  ;;  %v7214_v36 = vpop.f32.mrb[38].mxu1  ;;  %7515 = vmatpush1.bf16.msra.mxu1 %v8289_v14  ;;  %v8210_v13 = vcombine.high %v600_v9, %v604_v59  ;;  %v8338_v14 = vcombine.high %v728_v10, %v732_v60 }
 0x399   : > { %v10127_v35 = vadd.f32 %v7210_v25, %v7170_v24  ;;  %v7174_v38 = vpop.f32.mrb[39].mxu0  ;;  %7475 = vmatprep.subr.bf16.mxu0 %v8170_v16  ;;  %v7215_v53 = vpop.f32.mrb[39].mxu1  ;;  %7516 = vmatprep.subr.bf16.mxu1 %v8298_v20  ;;  %v608_v16 = vld [vmem:[%s9106_s28 + $0xb18] sm:$0xff]  ;;  %v8209_v23 = vcombine.low %v600_v9, %v604_v59  ;;  %v8337_v24 = vcombine.low %v728_v10, %v732_v60 }
 0x39a   : > { %v10129_v40 = vadd.f32 %v7212_v31, %v7172_v30  ;;  %v736_v20 = vld [vmem:[%s9106_s28 + $0xf18] sm:$0xff]  ;;  %v8218_v25 = vcombine.high %v608_v16, %v612_v18  ;;  %v8217_v33 = vcombine.low %v608_v16, %v612_v18  ;;  %v8226_v36 = vcombine.high %v616_v27, %v620_v28 }
 0x39b   : > { %v8346_v26 = vcombine.high %v736_v20, %v740_v22  ;;  %v744_v30 = vld [vmem:[%s9106_s28 + $0xf58] sm:$0xff] }
 0x39c   : > { %7476 = vmatpush1.bf16.msra.mxu0 %v8169_v34  ;;  %7517 = vmatpush1.bf16.msra.mxu1 %v8297_v44  ;;  %v748_v31 = vld [vmem:[%s9106_s28 + $0xf78] sm:$0xff]  ;;  %v8345_v34 = vcombine.low %v736_v20, %v740_v22 }
 0x39d   : > { %7477 = vmatprep.subr.bf16.mxu0 %v8178_v39  ;;  %7518 = vmatprep.subr.bf16.mxu1 %v8306_v42  ;;  %v8354_v38 = vcombine.high %v744_v30, %v748_v31  ;;  %v624_v44 = vld [vmem:[%s9106_s28 + $0xb98] sm:$0xff]  ;;  %v8353_v46 = vcombine.low %v744_v30, %v748_v31 }
 0x39e   : > { %v628_v39 = vld [vmem:[%s9106_s28 + $0xbb8] sm:$0xff] }
 0x39f   : > { %v752_v53 = vld [vmem:[%s9106_s28 + $0xf98] sm:$0xff]  ;;  %v8234_v47 = vcombine.high %v624_v44, %v628_v39  ;;  %v8233_v61 = vcombine.low %v624_v44, %v628_v39 }
 0x3a0   : > { %7478 = vmatpush1.bf16.msra.mxu0 %v8177_v17  ;;  %7519 = vmatpush1.bf16.msra.mxu1 %v8305_v55  ;;  %v756_v42 = vld [vmem:[%s9106_s28 + $0xfb8] sm:$0xff] }
 0x3a1   : > { %7479 = vmatprep.subr.bf16.mxu0 %v8186_v21  ;;  %7520 = vmatprep.subr.bf16.mxu1 %v8314_v56  ;;  %v8362_v50 = vcombine.high %v752_v53, %v756_v42  ;;  %v632_v17 = vld [vmem:[%s9106_s28 + $0xbd8] sm:$0xff]  ;;  %v8361_v51 = vcombine.low %v752_v53, %v756_v42 }
 0x3a2   : > { %v636_v55 = vld [vmem:[%s9106_s28 + $0xbf8] sm:$0xff] }
 0x3a3   : > { %v760_v21 = vld [vmem:[%s9106_s28 + $0xfd8] sm:$0xff]  ;;  %v8242_v63 = vcombine.high %v632_v17, %v636_v55  ;;  %v8241_v1 = vcombine.low %v632_v17, %v636_v55 }
 0x3a4   : > { %7480 = vmatpush1.bf16.msra.mxu0 %v8185_v54  ;;  %7521 = vmatpush1.bf16.msra.mxu1 %v8313_v29  ;;  %v764_v56 = vld [vmem:[%s9106_s28 + $0xff8] sm:$0xff] }
 0x3a5   : > { %7481 = vmatprep.subr.bf16.mxu0 %v8194_v62  ;;  %7522 = vmatprep.subr.bf16.mxu1 %v8322_v32  ;;  %v8370_v0 = vcombine.high %v760_v21, %v764_v56  ;;  %v768_v54 = vld [vmem:[%s9106_s28 + $0x1018] sm:$0xff]  ;;  %v8369_v2 = vcombine.low %v760_v21, %v764_v56 }
 0x3a6   : > { %v772_v29 = vld [vmem:[%s9106_s28 + $0x1038] sm:$0xff] }
 0x3a7   : > { %v896_v62 = vld [vmem:[%s9106_s28 + $0x1418] sm:$0xff]  ;;  %v8378_v4 = vcombine.high %v768_v54, %v772_v29  ;;  %v8377_v9 = vcombine.low %v768_v54, %v772_v29 }
 0x3a8   : > { %7482 = vmatpush1.bf16.msra.mxu0 %v8193_v5  ;;  %7523 = vmatpush1.bf16.msra.mxu1 %v8321_v58  ;;  %v900_v32 = vld [vmem:[%s9106_s28 + $0x1438] sm:$0xff] }
 0x3a9   : > { %7483 = vmatprep.subr.bf16.mxu0 %v8202_v6  ;;  %7524 = vmatprep.subr.bf16.mxu1 %v8330_v8  ;;  %v8506_v57 = vcombine.high %v896_v62, %v900_v32  ;;  %v776_v5 = vld [vmem:[%s9106_s28 + $0x1058] sm:$0xff]  ;;  %v8505_v59 = vcombine.low %v896_v62, %v900_v32 }
 0x3aa   : > { %v780_v58 = vld [vmem:[%s9106_s28 + $0x1078] sm:$0xff] }
 0x3ab   : > { %v904_v6 = vld [vmem:[%s9106_s28 + $0x1458] sm:$0xff]  ;;  %v8386_v10 = vcombine.high %v776_v5, %v780_v58  ;;  %v8385_v16 = vcombine.low %v776_v5, %v780_v58 }
 0x3ac   : > { %7484 = vmatpush1.bf16.msra.mxu0 %v8201_v11  ;;  %7525 = vmatpush1.bf16.msra.mxu1 %v8329_v12  ;;  %v908_v8 = vld [vmem:[%s9106_s28 + $0x1478] sm:$0xff] }
 0x3ad   : > { %7485 = vmatprep.subr.bf16.mxu0 %v8210_v13  ;;  %7526 = vmatprep.subr.bf16.mxu1 %v8338_v14  ;;  %v8514_v60 = vcombine.high %v904_v6, %v908_v8  ;;  %v784_v11 = vld [vmem:[%s9106_s28 + $0x1098] sm:$0xff]  ;;  %v8513_v18 = vcombine.low %v904_v6, %v908_v8 }
 0x3ae   : > { %v788_v12 = vld [vmem:[%s9106_s28 + $0x10b8] sm:$0xff] }
 0x3af   : > { %v912_v13 = vld [vmem:[%s9106_s28 + $0x1498] sm:$0xff]  ;;  %v8394_v20 = vcombine.high %v784_v11, %v788_v12 }
 0x3b0   : > { %7486 = vmatpush1.bf16.msra.mxu0 %v8209_v23  ;;  %7527 = vmatpush1.bf16.msra.mxu1 %v8337_v24  ;;  %v916_v14 = vld [vmem:[%s9106_s28 + $0x14b8] sm:$0xff] }
 0x3b1   : > { %7487 = vmatprep.subr.bf16.mxu0 %v8218_v25  ;;  %7528 = vmatprep.subr.bf16.mxu1 %v8346_v26  ;;  %v8522_v22 = vcombine.high %v912_v13, %v916_v14  ;;  %v792_v23 = vld [vmem:[%s9106_s28 + $0x10d8] sm:$0xff]  ;;  %v8521_v26 = vcombine.low %v912_v13, %v916_v14 }
 0x3b2   : > { %v796_v24 = vld [vmem:[%s9106_s28 + $0x10f8] sm:$0xff] }
 0x3b3   : > { %v924_v25 = vld [vmem:[%s9106_s28 + $0x14f8] sm:$0xff]  ;;  %v8402_v27 = vcombine.high %v792_v23, %v796_v24 }
 0x3b4   : > { %7488 = vmatpush1.bf16.msra.mxu0 %v8217_v33  ;;  %7529 = vmatpush1.bf16.msra.mxu1 %v8345_v34  ;;  %v800_v30 = vld [vmem:[%s9106_s28 + $0x1118] sm:$0xff]  ;;  %v8401_v34 = vcombine.low %v792_v23, %v796_v24 }
 0x3b5   : > { %7489 = vmatprep.subr.bf16.mxu0 %v8226_v36  ;;  %7530 = vmatprep.subr.bf16.mxu1 %v8354_v38  ;;  %v804_v31 = vld [vmem:[%s9106_s28 + $0x1138] sm:$0xff] }
 0x3b6   : > { %v928_v33 = vld [vmem:[%s9106_s28 + $0x1518] sm:$0xff]  ;;  %v8410_v36 = vcombine.high %v800_v30, %v804_v31 }
 0x3b7   : > { %v808_v44 = vld [vmem:[%s9106_s28 + $0x1158] sm:$0xff] }
 0x3b8   : > { %7490 = vmatpush1.bf16.msra.mxu0 %v8225_v43  ;;  %7531 = vmatpush1.bf16.msra.mxu1 %v8353_v46  ;;  %v812_v39 = vld [vmem:[%s9106_s28 + $0x1178] sm:$0xff]  ;;  %v8409_v43 = vcombine.low %v800_v30, %v804_v31 }
 0x3b9   : > { %7491 = vmatprep.subr.bf16.mxu0 %v8234_v47  ;;  %7532 = vmatprep.subr.bf16.mxu1 %v8362_v50  ;;  %v936_v53 = vld [vmem:[%s9106_s28 + $0x1558] sm:$0xff]  ;;  %v8418_v47 = vcombine.high %v808_v44, %v812_v39 }
 0x3ba   : > { %v940_v42 = vld [vmem:[%s9106_s28 + $0x1578] sm:$0xff] }
 0x3bb   : > { %v8546_v50 = vcombine.high %v936_v53, %v940_v42  ;;  %v816_v17 = vld [vmem:[%s9106_s28 + $0x1198] sm:$0xff] }
 0x3bc   : > { %7492 = vmatpush1.bf16.msra.mxu0 %v8233_v61  ;;  %7533 = vmatpush1.bf16.msra.mxu1 %v8361_v51  ;;  %v820_v55 = vld [vmem:[%s9106_s28 + $0x11b8] sm:$0xff]  ;;  %v8417_v61 = vcombine.low %v808_v44, %v812_v39  ;;  %v8545_v51 = vcombine.low %v936_v53, %v940_v42 }
 0x3bd   : > { %7493 = vmatprep.subr.bf16.mxu0 %v8242_v63  ;;  %7534 = vmatprep.subr.bf16.mxu1 %v8370_v0  ;;  %v944_v21 = vld [vmem:[%s9106_s28 + $0x1598] sm:$0xff]  ;;  %v8426_v63 = vcombine.high %v816_v17, %v820_v55  ;;  %v8425_v8 = vcombine.low %v816_v17, %v820_v55 }
 0x3be   : > { %v948_v56 = vld [vmem:[%s9106_s28 + $0x15b8] sm:$0xff] }
 0x3bf   : > { %v8554_v54 = vcombine.high %v944_v21, %v948_v56  ;;  %v824_v29 = vld [vmem:[%s9106_s28 + $0x11d8] sm:$0xff] }
 0x3c0   : > { %7494 = vmatpush1.bf16.msra.mxu0 %v8241_v1  ;;  %7535 = vmatpush1.bf16.msra.mxu1 %v8369_v2  ;;  %v828_v62 = vld [vmem:[%s9106_s28 + $0x11f8] sm:$0xff] }
 0x3c1   : > { %7545 = vmatprep.subr.bf16.mxu0 %v8378_v4  ;;  %7586 = vmatprep.subr.bf16.mxu1 %v8506_v57  ;;  %v952_v4 = vld [vmem:[%s9106_s28 + $0x15d8] sm:$0xff] }
 0x3c2   : > { %v956_v57 = vld [vmem:[%s9106_s28 + $0x15f8] sm:$0xff] }
 0x3c3   : > { %7496 = vmatmul.mubr.bf16.vlgmr.msra.gmra.mrb[52].mxu0 %v9279_v37  ;;  %7537 = vmatmul.mubr.bf16.vlgmr.msra.gmra.mrb[52].mxu1 %v9284_v41  ;;  %v920_v37 = vld [vmem:[%s9106_s28 + $0x14d8] sm:$0xff]  ;;  %v8393_v41 = vcombine.low %v784_v11, %v788_v12  ;;  %v8562_v12 = vcombine.high %v952_v4, %v956_v57 }
 0x3c4   : > { %7546 = vmatpush1.bf16.msra.mxu0 %v8377_v9  ;;  %7587 = vmatpush1.bf16.msra.mxu1 %v8505_v59  ;;  %v8530_v28 = vcombine.high %v920_v37, %v924_v25  ;;  %v832_v13 = vld [vmem:[%s9106_s28 + $0x1218] sm:$0xff] }
 0x3c5   : > { %7547 = vmatprep.subr.bf16.mxu0 %v8386_v10  ;;  %7588 = vmatprep.subr.bf16.mxu1 %v8514_v60  ;;  %v8434_v60 = vcombine.high %v824_v29, %v828_v62  ;;  %v836_v14 = vld [vmem:[%s9106_s28 + $0x1238] sm:$0xff] }
 0x3c6   : > { %7577 = vmatprep.mubr.bf16.mxu0 %v9289_v49  ;;  %7618 = vmatprep.mubr.bf16.mxu1 %v9294_v52  ;;  %v932_v49 = vld [vmem:[%s9106_s28 + $0x1538] sm:$0xff]  ;;  %v8529_v52 = vcombine.low %v920_v37, %v924_v25  ;;  %v8442_v23 = vcombine.high %v832_v13, %v836_v14 }
 0x3c7   : > { %v8538_v38 = vcombine.high %v928_v33, %v932_v49  ;;  %v8537_v46 = vcombine.low %v928_v33, %v932_v49  ;;  %v840_v37 = vld [vmem:[%s9106_s28 + $0x1258] sm:$0xff] }
 0x3c8   : > { %7548 = vmatpush1.bf16.msra.mxu0 %v8385_v16  ;;  %7589 = vmatpush1.bf16.msra.mxu1 %v8513_v18  ;;  %v960_v16 = vld [vmem:[%s9106_s28 + $0x1618] sm:$0xff] }
 0x3c9   : > { %7549 = vmatprep.subr.bf16.mxu0 %v8394_v20  ;;  %7590 = vmatprep.subr.bf16.mxu1 %v8522_v22  ;;  %v964_v18 = vld [vmem:[%s9106_s28 + $0x1638] sm:$0xff]  ;;  %v8433_v20 = vcombine.low %v824_v29, %v828_v62  ;;  %v8561_v22 = vcombine.low %v952_v4, %v956_v57 }
 0x3ca   : > { %v8570_v24 = vcombine.high %v960_v16, %v964_v18  ;;  %v844_v25 = vld [vmem:[%s9106_s28 + $0x1278] sm:$0xff] }
 0x3cb   : > { %v8450_v30 = vcombine.high %v840_v37, %v844_v25  ;;  %v848_v33 = vld [vmem:[%s9106_s28 + $0x1298] sm:$0xff] }
 0x3cc   : > { %7550 = vmatpush1.bf16.msra.mxu0 %v8393_v41  ;;  %7591 = vmatpush1.bf16.msra.mxu1 %v8521_v26  ;;  %v968_v41 = vld [vmem:[%s9106_s28 + $0x1658] sm:$0xff] }
 0x3cd   : > { %7551 = vmatprep.subr.bf16.mxu0 %v8402_v27  ;;  %7592 = vmatprep.subr.bf16.mxu1 %v8530_v28  ;;  %v972_v26 = vld [vmem:[%s9106_s28 + $0x1678] sm:$0xff]  ;;  %v8441_v27 = vcombine.low %v832_v13, %v836_v14  ;;  %v8569_v28 = vcombine.low %v960_v16, %v964_v18 }
 0x3ce   : > { %v8578_v31 = vcombine.high %v968_v41, %v972_v26  ;;  %v852_v49 = vld [vmem:[%s9106_s28 + $0x12b8] sm:$0xff] }
 0x3cf   : > { %v8458_v44 = vcombine.high %v848_v33, %v852_v49  ;;  %v856_v53 = vld [vmem:[%s9106_s28 + $0x12d8] sm:$0xff] }
 0x3d0   : > { %7552 = vmatpush1.bf16.msra.mxu0 %v8401_v34  ;;  %7593 = vmatpush1.bf16.msra.mxu1 %v8529_v52  ;;  %v976_v34 = vld [vmem:[%s9106_s28 + $0x1698] sm:$0xff] }
 0x3d1   : > { %7553 = vmatprep.subr.bf16.mxu0 %v8410_v36  ;;  %7594 = vmatprep.subr.bf16.mxu1 %v8538_v38  ;;  %v980_v52 = vld [vmem:[%s9106_s28 + $0x16b8] sm:$0xff]  ;;  %v8449_v36 = vcombine.low %v840_v37, %v844_v25  ;;  %v8577_v38 = vcombine.low %v968_v41, %v972_v26 }
 0x3d2   : > { %v8586_v39 = vcombine.high %v976_v34, %v980_v52  ;;  %v860_v42 = vld [vmem:[%s9106_s28 + $0x12f8] sm:$0xff] }
 0x3d3   : > { %v8466_v17 = vcombine.high %v856_v53, %v860_v42  ;;  %v872_v62 = vld [vmem:[%s9106_s28 + $0x1358] sm:$0xff] }
 0x3d4   : > { %7554 = vmatpush1.bf16.msra.mxu0 %v8409_v43  ;;  %7595 = vmatpush1.bf16.msra.mxu1 %v8537_v46  ;;  %v984_v43 = vld [vmem:[%s9106_s28 + $0x16d8] sm:$0xff] }
 0x3d5   : > { %7555 = vmatprep.subr.bf16.mxu0 %v8418_v47  ;;  %7596 = vmatprep.subr.bf16.mxu1 %v8546_v50  ;;  %v988_v46 = vld [vmem:[%s9106_s28 + $0x16f8] sm:$0xff]  ;;  %v8457_v47 = vcombine.low %v848_v33, %v852_v49  ;;  %v8585_v50 = vcombine.low %v976_v34, %v980_v52 }
 0x3d6   : > { %v7251_v0 = vpop.f32.mrb[40].mxu0  ;;  %v7292_v1 = vpop.f32.mrb[40].mxu1  ;;  %v8594_v55 = vcombine.high %v984_v43, %v988_v46  ;;  %v888_v13 = vld [vmem:[%s9106_s28 + $0x13d8] sm:$0xff] }
 0x3d7   : > { %v7252_v32 = vadd.f32 %v7251_v0, %v10127_v35  ;;  %v7253_v2 = vpop.f32.mrb[41].mxu0  ;;  %v7294_v58 = vpop.f32.mrb[41].mxu1  ;;  %v8553_v35 = vcombine.low %v944_v21, %v948_v56  ;;  %v864_v21 = vld [vmem:[%s9106_s28 + $0x1318] sm:$0xff]  ;;  %v8593_v0 = vcombine.low %v984_v43, %v988_v46 }
 0x3d8   : > { %v7254_v5 = vadd.f32 %v7253_v2, %v10129_v40  ;;  %v7255_v6 = vpop.f32.mrb[42].mxu0  ;;  %7556 = vmatpush1.bf16.msra.mxu0 %v8417_v61  ;;  %v7296_v59 = vpop.f32.mrb[42].mxu1  ;;  %7597 = vmatpush1.bf16.msra.mxu1 %v8545_v51  ;;  %v868_v56 = vld [vmem:[%s9106_s28 + $0x1338] sm:$0xff] }
 0x3d9   : > { %v10201_v9 = vadd.f32 %v7292_v1, %v7252_v32  ;;  %v7256_v10 = vpop.f32.mrb[43].mxu0  ;;  %7557 = vmatprep.subr.bf16.mxu0 %v8426_v63  ;;  %v7297_v40 = vpop.f32.mrb[43].mxu1  ;;  %7598 = vmatprep.subr.bf16.mxu1 %v8554_v54  ;;  %v992_v61 = vld [vmem:[%s9106_s28 + $0x1718] sm:$0xff]  ;;  %v8465_v63 = vcombine.low %v856_v53, %v860_v42  ;;  %v8474_v54 = vcombine.high %v864_v21, %v868_v56 }
 0x3da   : > { %v10203_v11 = vadd.f32 %v7294_v58, %v7254_v5  ;;  %v996_v51 = vld [vmem:[%s9106_s28 + $0x1738] sm:$0xff]  ;;  %v8473_v4 = vcombine.low %v864_v21, %v868_v56 }
 0x3db   : > { %v8602_v29 = vcombine.high %v992_v61, %v996_v51  ;;  %v876_v32 = vld [vmem:[%s9106_s28 + $0x1378] sm:$0xff]  ;;  %v8601_v57 = vcombine.low %v992_v61, %v996_v51 }
 0x3dc   : > { %7558 = vmatpush1.bf16.msra.mxu0 %v8425_v8  ;;  %7599 = vmatpush1.bf16.msra.mxu1 %v8553_v35  ;;  %v1000_v1 = vld [vmem:[%s9106_s28 + $0x1758] sm:$0xff]  ;;  %v8482_v5 = vcombine.high %v872_v62, %v876_v32  ;;  %v8481_v35 = vcombine.low %v872_v62, %v876_v32 }
 0x3dd   : > { %7559 = vmatprep.subr.bf16.mxu0 %v8434_v60  ;;  %7600 = vmatprep.subr.bf16.mxu1 %v8562_v12  ;;  %v1004_v2 = vld [vmem:[%s9106_s28 + $0x1778] sm:$0xff] }
 0x3de   : > { %v8610_v58 = vcombine.high %v1000_v1, %v1004_v2  ;;  %v880_v6 = vld [vmem:[%s9106_s28 + $0x1398] sm:$0xff]  ;;  %v8609_v60 = vcombine.low %v1000_v1, %v1004_v2 }
 0x3df   : > { %v884_v8 = vld [vmem:[%s9106_s28 + $0x13b8] sm:$0xff] }
 0x3e0   : > { %7560 = vmatpush1.bf16.msra.mxu0 %v8433_v20  ;;  %7601 = vmatpush1.bf16.msra.mxu1 %v8561_v22  ;;  %v1008_v59 = vld [vmem:[%s9106_s28 + $0x1798] sm:$0xff]  ;;  %v8490_v40 = vcombine.high %v880_v6, %v884_v8  ;;  %v8489_v20 = vcombine.low %v880_v6, %v884_v8 }
 0x3e1   : > { %7561 = vmatprep.subr.bf16.mxu0 %v8442_v23  ;;  %7602 = vmatprep.subr.bf16.mxu1 %v8570_v24  ;;  %v1012_v10 = vld [vmem:[%s9106_s28 + $0x17b8] sm:$0xff] }
 0x3e2   : > { %v8618_v12 = vcombine.high %v1008_v59, %v1012_v10  ;;  %v892_v14 = vld [vmem:[%s9106_s28 + $0x13f8] sm:$0xff]  ;;  %v8617_v22 = vcombine.low %v1008_v59, %v1012_v10 }
 0x3e3   : > { %v1016_v16 = vld [vmem:[%s9106_s28 + $0x17d8] sm:$0xff]  ;;  %v8498_v23 = vcombine.high %v888_v13, %v892_v14 }
 0x3e4   : > { %7562 = vmatpush1.bf16.msra.mxu0 %v8441_v27  ;;  %7603 = vmatpush1.bf16.msra.mxu1 %v8569_v28  ;;  %v1020_v18 = vld [vmem:[%s9106_s28 + $0x17f8] sm:$0xff]  ;;  %v8497_v27 = vcombine.low %v888_v13, %v892_v14 }
 0x3e5   : > { %7563 = vmatprep.subr.bf16.mxu0 %v8450_v30  ;;  %7604 = vmatprep.subr.bf16.mxu1 %v8578_v31  ;;  %v8626_v24 = vcombine.high %v1016_v16, %v1020_v18  ;;  %v1024_v37 = vld [vmem:[%s9106_s28 + $0x1818] sm:$0xff]  ;;  %v8625_v28 = vcombine.low %v1016_v16, %v1020_v18 }
 0x3e6   : > { %v1028_v25 = vld [vmem:[%s9106_s28 + $0x1838] sm:$0xff] }
 0x3e7   : > { %v1152_v41 = vld [vmem:[%s9106_s28 + $0x1c18] sm:$0xff]  ;;  %v8634_v30 = vcombine.high %v1024_v37, %v1028_v25 }
 0x3e8   : > { %7564 = vmatpush1.bf16.msra.mxu0 %v8449_v36  ;;  %7605 = vmatpush1.bf16.msra.mxu1 %v8577_v38  ;;  %v1156_v26 = vld [vmem:[%s9106_s28 + $0x1c38] sm:$0xff]  ;;  %v8633_v36 = vcombine.low %v1024_v37, %v1028_v25 }
 0x3e9   : > { %7565 = vmatprep.subr.bf16.mxu0 %v8458_v44  ;;  %7606 = vmatprep.subr.bf16.mxu1 %v8586_v39  ;;  %v8762_v31 = vcombine.high %v1152_v41, %v1156_v26  ;;  %v1032_v33 = vld [vmem:[%s9106_s28 + $0x1858] sm:$0xff]  ;;  %v8761_v38 = vcombine.low %v1152_v41, %v1156_v26 }
 0x3ea   : > { %v1036_v49 = vld [vmem:[%s9106_s28 + $0x1878] sm:$0xff] }
 0x3eb   : > { %v1160_v34 = vld [vmem:[%s9106_s28 + $0x1c58] sm:$0xff]  ;;  %v8642_v44 = vcombine.high %v1032_v33, %v1036_v49 }
 0x3ec   : > { %7566 = vmatpush1.bf16.msra.mxu0 %v8457_v47  ;;  %7607 = vmatpush1.bf16.msra.mxu1 %v8585_v50  ;;  %v1164_v52 = vld [vmem:[%s9106_s28 + $0x1c78] sm:$0xff]  ;;  %v8641_v47 = vcombine.low %v1032_v33, %v1036_v49 }
 0x3ed   : > { %7567 = vmatprep.subr.bf16.mxu0 %v8466_v17  ;;  %7608 = vmatprep.subr.bf16.mxu1 %v8594_v55  ;;  %v8770_v39 = vcombine.high %v1160_v34, %v1164_v52  ;;  %v1040_v53 = vld [vmem:[%s9106_s28 + $0x1898] sm:$0xff]  ;;  %v8769_v50 = vcombine.low %v1160_v34, %v1164_v52  ;;  %v218_v34 = vld [vmem:[#allocation2 + $0x28] sm:$0xff] }
 0x3ee   : > { %v1044_v42 = vld [vmem:[%s9106_s28 + $0x18b8] sm:$0xff] }
 0x3ef   : > { %v1168_v43 = vld [vmem:[%s9106_s28 + $0x1c98] sm:$0xff]  ;;  %v8650_v17 = vcombine.high %v1040_v53, %v1044_v42 }
 0x3f0   : > { %7568 = vmatpush1.bf16.msra.mxu0 %v8465_v63  ;;  %7609 = vmatpush1.bf16.msra.mxu1 %v8593_v0  ;;  %v1172_v46 = vld [vmem:[%s9106_s28 + $0x1cb8] sm:$0xff] }
 0x3f1   : > { %7569 = vmatprep.subr.bf16.mxu0 %v8474_v54  ;;  %7610 = vmatprep.subr.bf16.mxu1 %v8602_v29  ;;  %v8778_v55 = vcombine.high %v1168_v43, %v1172_v46  ;;  %v1048_v21 = vld [vmem:[%s9106_s28 + $0x18d8] sm:$0xff]  ;;  %v8777_v51 = vcombine.low %v1168_v43, %v1172_v46 }
 0x3f2   : > { %v1052_v56 = vld [vmem:[%s9106_s28 + $0x18f8] sm:$0xff] }
 0x3f3   : > { %v1180_v61 = vld [vmem:[%s9106_s28 + $0x1cf8] sm:$0xff]  ;;  %v8658_v63 = vcombine.high %v1048_v21, %v1052_v56  ;;  %v8657_v32 = vcombine.low %v1048_v21, %v1052_v56 }
 0x3f4   : > { %7570 = vmatpush1.bf16.msra.mxu0 %v8473_v4  ;;  %7611 = vmatpush1.bf16.msra.mxu1 %v8601_v57  ;;  %v1056_v54 = vld [vmem:[%s9106_s28 + $0x1918] sm:$0xff] }
 0x3f5   : > { %7571 = vmatprep.subr.bf16.mxu0 %v8482_v5  ;;  %7612 = vmatprep.subr.bf16.mxu1 %v8610_v58  ;;  %v1060_v29 = vld [vmem:[%s9106_s28 + $0x1938] sm:$0xff] }
 0x3f6   : > { %v1184_v62 = vld [vmem:[%s9106_s28 + $0x1d18] sm:$0xff]  ;;  %v8666_v1 = vcombine.high %v1056_v54, %v1060_v29  ;;  %v8665_v6 = vcombine.low %v1056_v54, %v1060_v29 }
 0x3f7   : > { %v1064_v4 = vld [vmem:[%s9106_s28 + $0x1958] sm:$0xff] }
 0x3f8   : > { %7572 = vmatpush1.bf16.msra.mxu0 %v8481_v35  ;;  %7613 = vmatpush1.bf16.msra.mxu1 %v8609_v60  ;;  %v1068_v57 = vld [vmem:[%s9106_s28 + $0x1978] sm:$0xff] }
 0x3f9   : > { %7573 = vmatprep.subr.bf16.mxu0 %v8490_v40  ;;  %7614 = vmatprep.subr.bf16.mxu1 %v8618_v12  ;;  %v1192_v5 = vld [vmem:[%s9106_s28 + $0x1d58] sm:$0xff]  ;;  %v8674_v59 = vcombine.high %v1064_v4, %v1068_v57  ;;  %v8673_v13 = vcombine.low %v1064_v4, %v1068_v57 }
 0x3fa   : > { %v1196_v58 = vld [vmem:[%s9106_s28 + $0x1d78] sm:$0xff] }
 0x3fb   : > { %v8802_v10 = vcombine.high %v1192_v5, %v1196_v58  ;;  %v1072_v35 = vld [vmem:[%s9106_s28 + $0x1998] sm:$0xff]  ;;  %v8801_v14 = vcombine.low %v1192_v5, %v1196_v58 }
 0x3fc   : > { %7574 = vmatpush1.bf16.msra.mxu0 %v8489_v20  ;;  %7615 = vmatpush1.bf16.msra.mxu1 %v8617_v22  ;;  %v1076_v60 = vld [vmem:[%s9106_s28 + $0x19b8] sm:$0xff] }
 0x3fd   : > { %7575 = vmatprep.subr.bf16.mxu0 %v8498_v23  ;;  %7616 = vmatprep.subr.bf16.mxu1 %v8626_v24  ;;  %v1200_v40 = vld [vmem:[%s9106_s28 + $0x1d98] sm:$0xff]  ;;  %v8682_v16 = vcombine.high %v1072_v35, %v1076_v60  ;;  %v8681_v33 = vcombine.low %v1072_v35, %v1076_v60 }
 0x3fe   : > { %v1204_v12 = vld [vmem:[%s9106_s28 + $0x1db8] sm:$0xff] }
 0x3ff   : > { %v8810_v20 = vcombine.high %v1200_v40, %v1204_v12  ;;  %v1080_v22 = vld [vmem:[%s9106_s28 + $0x19d8] sm:$0xff] }
 0x400   : > { %7576 = vmatpush1.bf16.msra.mxu0 %v8497_v27  ;;  %7617 = vmatpush1.bf16.msra.mxu1 %v8625_v28  ;;  %v1084_v23 = vld [vmem:[%s9106_s28 + $0x19f8] sm:$0xff]  ;;  %v217_v27 = vld [vmem:[#allocation2 + $0x20] sm:$0xff] }
 0x401   : > { %7627 = vmatprep.subr.bf16.mxu0 %v8634_v30  ;;  %7668 = vmatprep.subr.bf16.mxu1 %v8762_v31  ;;  %v1208_v41 = vld [vmem:[%s9106_s28 + $0x1dd8] sm:$0xff] }
 0x402   : > { %v1212_v26 = vld [vmem:[%s9106_s28 + $0x1df8] sm:$0xff] }
 0x403   : > { %7578 = vmatmul.mubr.bf16.vlgmr.msra.gmra.mrb[56].mxu0 %v9359_v3  ;;  %7619 = vmatmul.mubr.bf16.vlgmr.msra.gmra.mrb[56].mxu1 %v9364_v7  ;;  %v1176_v3 = vld [vmem:[%s9106_s28 + $0x1cd8] sm:$0xff]  ;;  %v8649_v7 = vcombine.low %v1040_v53, %v1044_v42 }
 0x404   : > { %7628 = vmatpush1.bf16.msra.mxu0 %v8633_v36  ;;  %7669 = vmatpush1.bf16.msra.mxu1 %v8761_v38  ;;  %v8786_v0 = vcombine.high %v1176_v3, %v1180_v61  ;;  %v8809_v36 = vcombine.low %v1200_v40, %v1204_v12  ;;  %v8690_v38 = vcombine.high %v1080_v22, %v1084_v23  ;;  %v1088_v53 = vld [vmem:[%s9106_s28 + $0x1a18] sm:$0xff] }
 0x405   : > { %7629 = vmatprep.subr.bf16.mxu0 %v8642_v44  ;;  %7670 = vmatprep.subr.bf16.mxu1 %v8770_v39  ;;  %v1092_v42 = vld [vmem:[%s9106_s28 + $0x1a38] sm:$0xff] }
 0x406   : > { %7659 = vmatprep.mubr.bf16.mxu0 %v9369_v15  ;;  %7700 = vmatprep.mubr.bf16.mxu1 %v9374_v19  ;;  %v1188_v15 = vld [vmem:[%s9106_s28 + $0x1d38] sm:$0xff]  ;;  %v8785_v19 = vcombine.low %v1176_v3, %v1180_v61  ;;  %v8698_v21 = vcombine.high %v1088_v53, %v1092_v42 }
 0x407   : > { %v8794_v2 = vcombine.high %v1184_v62, %v1188_v15  ;;  %v8793_v8 = vcombine.low %v1184_v62, %v1188_v15  ;;  %v1216_v46 = vld [vmem:[%s9106_s28 + $0x1e18] sm:$0xff] }
 0x408   : > { %7630 = vmatpush1.bf16.msra.mxu0 %v8641_v47  ;;  %7671 = vmatpush1.bf16.msra.mxu1 %v8769_v50  ;;  %v1220_v47 = vld [vmem:[%s9106_s28 + $0x1e38] sm:$0xff] }
 0x409   : > { %7631 = vmatprep.subr.bf16.mxu0 %v8650_v17  ;;  %7672 = vmatprep.subr.bf16.mxu1 %v8778_v55  ;;  %v8689_v17 = vcombine.low %v1080_v22, %v1084_v23  ;;  %v8817_v55 = vcombine.low %v1208_v41, %v1212_v26  ;;  %v8826_v56 = vcombine.high %v1216_v46, %v1220_v47  ;;  %v1096_v3 = vld [vmem:[%s9106_s28 + $0x1a58] sm:$0xff] }
 0x40a   : > { %v1100_v61 = vld [vmem:[%s9106_s28 + $0x1a78] sm:$0xff] }
 0x40b   : > { %v8706_v54 = vcombine.high %v1096_v3, %v1100_v61  ;;  %v1104_v62 = vld [vmem:[%s9106_s28 + $0x1a98] sm:$0xff] }
 0x40c   : > { %7632 = vmatpush1.bf16.msra.mxu0 %v8649_v7  ;;  %7673 = vmatpush1.bf16.msra.mxu1 %v8777_v51  ;;  %v1224_v7 = vld [vmem:[%s9106_s28 + $0x1e58] sm:$0xff] }
 0x40d   : > { %7633 = vmatprep.subr.bf16.mxu0 %v8658_v63  ;;  %7674 = vmatprep.subr.bf16.mxu1 %v8786_v0  ;;  %v1228_v51 = vld [vmem:[%s9106_s28 + $0x1e78] sm:$0xff]  ;;  %v8697_v63 = vcombine.low %v1088_v53, %v1092_v42  ;;  %v8825_v0 = vcombine.low %v1216_v46, %v1220_v47 }
 0x40e   : > { %v8834_v29 = vcombine.high %v1224_v7, %v1228_v51  ;;  %v1108_v15 = vld [vmem:[%s9106_s28 + $0x1ab8] sm:$0xff] }
 0x40f   : > { %v8714_v4 = vcombine.high %v1104_v62, %v1108_v15  ;;  %v1112_v5 = vld [vmem:[%s9106_s28 + $0x1ad8] sm:$0xff] }
 0x410   : > { %7634 = vmatpush1.bf16.msra.mxu0 %v8657_v32  ;;  %7675 = vmatpush1.bf16.msra.mxu1 %v8785_v19  ;;  %v1232_v32 = vld [vmem:[%s9106_s28 + $0x1e98] sm:$0xff] }
 0x411   : > { %7635 = vmatprep.subr.bf16.mxu0 %v8666_v1  ;;  %7676 = vmatprep.subr.bf16.mxu1 %v8794_v2  ;;  %v1236_v19 = vld [vmem:[%s9106_s28 + $0x1eb8] sm:$0xff]  ;;  %v8705_v1 = vcombine.low %v1096_v3, %v1100_v61  ;;  %v8833_v2 = vcombine.low %v1224_v7, %v1228_v51 }
 0x412   : > { %v8842_v57 = vcombine.high %v1232_v32, %v1236_v19  ;;  %v1116_v58 = vld [vmem:[%s9106_s28 + $0x1af8] sm:$0xff] }
 0x413   : > { %v8722_v35 = vcombine.high %v1112_v5, %v1116_v58  ;;  %v1120_v40 = vld [vmem:[%s9106_s28 + $0x1b18] sm:$0xff] }
 0x414   : > { %7636 = vmatpush1.bf16.msra.mxu0 %v8665_v6  ;;  %7677 = vmatpush1.bf16.msra.mxu1 %v8793_v8  ;;  %v1240_v6 = vld [vmem:[%s9106_s28 + $0x1ed8] sm:$0xff] }
 0x415   : > { %7637 = vmatprep.subr.bf16.mxu0 %v8674_v59  ;;  %7678 = vmatprep.subr.bf16.mxu1 %v8802_v10  ;;  %v1244_v8 = vld [vmem:[%s9106_s28 + $0x1ef8] sm:$0xff]  ;;  %v8713_v59 = vcombine.low %v1104_v62, %v1108_v15  ;;  %v8841_v10 = vcombine.low %v1232_v32, %v1236_v19 }
 0x416   : > { %v7333_v18 = vpop.f32.mrb[44].mxu0  ;;  %v7374_v37 = vpop.f32.mrb[44].mxu1  ;;  %v8850_v60 = vcombine.high %v1240_v6, %v1244_v8  ;;  %v1124_v12 = vld [vmem:[%s9106_s28 + $0x1b38] sm:$0xff] }
 0x417   : > { %v7334_v24 = vadd.f32 %v7333_v18, %v10201_v9  ;;  %v7335_v25 = vpop.f32.mrb[45].mxu0  ;;  %v7376_v30 = vpop.f32.mrb[45].mxu1  ;;  %v8849_v18 = vcombine.low %v1240_v6, %v1244_v8  ;;  %v1128_v23 = vld [vmem:[%s9106_s28 + $0x1b58] sm:$0xff] }
 0x418   : > { %v7336_v28 = vadd.f32 %v7335_v25, %v10203_v11  ;;  %v7337_v31 = vpop.f32.mrb[46].mxu0  ;;  %7638 = vmatpush1.bf16.msra.mxu0 %v8673_v13  ;;  %v7378_v52 = vpop.f32.mrb[46].mxu1  ;;  %7679 = vmatpush1.bf16.msra.mxu1 %v8801_v14  ;;  %v8818_v11 = vcombine.high %v1208_v41, %v1212_v26  ;;  %v1248_v13 = vld [vmem:[%s9106_s28 + $0x1f18] sm:$0xff]  ;;  %v8729_v41 = vcombine.low %v1120_v40, %v1124_v12 }
 0x419   : > { %v7375_v49 = vadd.f32 %v7374_v37, %v7334_v24  ;;  %v7338_v9 = vpop.f32.mrb[47].mxu0  ;;  %7639 = vmatprep.subr.bf16.mxu0 %v8682_v16  ;;  %v7379_v39 = vpop.f32.mrb[47].mxu1  ;;  %7680 = vmatprep.subr.bf16.mxu1 %v8810_v20  ;;  %v1252_v14 = vld [vmem:[%s9106_s28 + $0x1f38] sm:$0xff]  ;;  %v8721_v16 = vcombine.low %v1112_v5, %v1116_v58  ;;  %v8730_v20 = vcombine.high %v1120_v40, %v1124_v12 }
 0x41a   : > { %v7377_v44 = vadd.f32 %v7376_v30, %v7336_v28  ;;  %v8858_v22 = vcombine.high %v1248_v13, %v1252_v14  ;;  %v1132_v24 = vld [vmem:[%s9106_s28 + $0x1b78] sm:$0xff]  ;;  %v8857_v26 = vcombine.low %v1248_v13, %v1252_v14 }
 0x41b   : > { %v7713_v43 = vadd.f32 %v7375_v49, %v217_v27  ;;  %v1256_v37 = vld [vmem:[%s9106_s28 + $0x1f58] sm:$0xff]  ;;  %v8738_v27 = vcombine.high %v1128_v23, %v1132_v24 }
 0x41c   : > { %v7714_v50 = vadd.f32 %v7377_v44, %v218_v34  ;;  %7640 = vmatpush1.bf16.msra.mxu0 %v8681_v33  ;;  %7681 = vmatpush1.bf16.msra.mxu1 %v8809_v36  ;;  %v1260_v25 = vld [vmem:[%s9106_s28 + $0x1f78] sm:$0xff]  ;;  %v8737_v34 = vcombine.low %v1128_v23, %v1132_v24  ;;  %v219_v23 = vld [vmem:[#allocation2 + $0x30] sm:$0xff] }
 0x41d   : > { %7721 = vst [vmem:[#allocation2 + $0x20] sm:$0xff] %v7713_v43  ;;  %7641 = vmatprep.subr.bf16.mxu0 %v8690_v38  ;;  %7682 = vmatprep.subr.bf16.mxu1 %v8818_v11  ;;  %v8866_v28 = vcombine.high %v1256_v37, %v1260_v25  ;;  %v1136_v30 = vld [vmem:[%s9106_s28 + $0x1b98] sm:$0xff]  ;;  %v8865_v52 = vcombine.low %v1256_v37, %v1260_v25 }
 0x41e   : > { %7722 = vst [vmem:[#allocation2 + $0x28] sm:$0xff] %v7714_v50  ;;  %v1140_v31 = vld [vmem:[%s9106_s28 + $0x1bb8] sm:$0xff] }
 0x41f   : > { %v1264_v33 = vld [vmem:[%s9106_s28 + $0x1f98] sm:$0xff]  ;;  %v8746_v9 = vcombine.high %v1136_v30, %v1140_v31  ;;  %v8745_v53 = vcombine.low %v1136_v30, %v1140_v31 }
 0x420   : > { %7642 = vmatpush1.bf16.msra.mxu0 %v8689_v17  ;;  %7683 = vmatpush1.bf16.msra.mxu1 %v8817_v55  ;;  %v1268_v49 = vld [vmem:[%s9106_s28 + $0x1fb8] sm:$0xff] }
 0x421   : > { %7643 = vmatprep.subr.bf16.mxu0 %v8698_v21  ;;  %7684 = vmatprep.subr.bf16.mxu1 %v8826_v56  ;;  %v8874_v36 = vcombine.high %v1264_v33, %v1268_v49  ;;  %v1144_v38 = vld [vmem:[%s9106_s28 + $0x1bd8] sm:$0xff]  ;;  %v8873_v42 = vcombine.low %v1264_v33, %v1268_v49 }
 0x422   : > { %v1148_v44 = vld [vmem:[%s9106_s28 + $0x1bf8] sm:$0xff] }
 0x423   : > { %v1272_v39 = vld [vmem:[%s9106_s28 + $0x1fd8] sm:$0xff]  ;;  %v8754_v43 = vcombine.high %v1144_v38, %v1148_v44  ;;  %v8753_v47 = vcombine.low %v1144_v38, %v1148_v44  ;;  %v7731_v44 = vld [vmem:[#allocation2 + $0x8] sm:$0xff] (!%p8883_p7) }
 0x424   : > { %7644 = vmatpush1.bf16.msra.mxu0 %v8697_v63  ;;  %7685 = vmatpush1.bf16.msra.mxu1 %v8825_v0  ;;  %v1276_v11 = vld [vmem:[%s9106_s28 + $0x1ff8] sm:$0xff] }
 0x425   : > { %7645 = vmatprep.subr.bf16.mxu0 %v8706_v54  ;;  %7686 = vmatprep.subr.bf16.mxu1 %v8834_v29  ;;  %v8882_v46 = vcombine.high %v1272_v39, %v1276_v11  ;;  %v8881_v50 = vcombine.low %v1272_v39, %v1276_v11  ;;  %v7732_v11 = vld [vmem:[#allocation2 + $0x10] sm:$0xff] (!%p8883_p7) }
 0x428   : > { %7646 = vmatpush1.bf16.msra.mxu0 %v8705_v1  ;;  %7687 = vmatpush1.bf16.msra.mxu1 %v8833_v2 }
 0x429   : > { %7647 = vmatprep.subr.bf16.mxu0 %v8714_v4  ;;  %7688 = vmatprep.subr.bf16.mxu1 %v8842_v57 }
 0x42c   : > { %7648 = vmatpush1.bf16.msra.mxu0 %v8713_v59  ;;  %7689 = vmatpush1.bf16.msra.mxu1 %v8841_v10 }
 0x42d   : > { %7649 = vmatprep.subr.bf16.mxu0 %v8722_v35  ;;  %7690 = vmatprep.subr.bf16.mxu1 %v8850_v60 }
 0x430   : > { %7650 = vmatpush1.bf16.msra.mxu0 %v8721_v16  ;;  %7691 = vmatpush1.bf16.msra.mxu1 %v8849_v18 }
 0x431   : > { %7651 = vmatprep.subr.bf16.mxu0 %v8730_v20  ;;  %7692 = vmatprep.subr.bf16.mxu1 %v8858_v22 }
 0x434   : > { %7652 = vmatpush1.bf16.msra.mxu0 %v8729_v41  ;;  %7693 = vmatpush1.bf16.msra.mxu1 %v8857_v26  ;;  %v220_v26 = vld [vmem:[#allocation2 + $0x38] sm:$0xff] }
 0x435   : > { %7653 = vmatprep.subr.bf16.mxu0 %v8738_v27  ;;  %7694 = vmatprep.subr.bf16.mxu1 %v8866_v28 }
 0x438   : > { %7654 = vmatpush1.bf16.msra.mxu0 %v8737_v34  ;;  %7695 = vmatpush1.bf16.msra.mxu1 %v8865_v52  ;;  %v7740_v34 = vlaneseq (!%p8883_p7) }
 0x439   : > { %7655 = vmatprep.subr.bf16.mxu0 %v8746_v9  ;;  %7696 = vmatprep.subr.bf16.mxu1 %v8874_v36  ;;  %v7730_v9 = vld [vmem:[#allocation2] sm:$0xff] (!%p8883_p7) }
 0x43a   : > { %v7741_v52 = vshrl.u32 (!%p8883_p7), %v7740_v34, 7  ;;  %v7738_v36 = vld [vmem:[%s10354_s2] sm:$0xff] (!%p8883_p7) }
 0x43c   : > { %7656 = vmatpush1.bf16.msra.mxu0 %v8745_v53  ;;  %7697 = vmatpush1.bf16.msra.mxu1 %v8873_v42  ;;  %v7742_v38 = vsub.s32 (!%p8883_p7), 0, %v7741_v52  ;;  %v7746_v39 = vsub.s32 (!%p8883_p7), 1, %v7741_v52  ;;  %v7750_v53 = vsub.s32 (!%p8883_p7), 2, %v7741_v52  ;;  %v7754_v42 = vsub.s32 (!%p8883_p7), 3, %v7741_v52 }
 0x43d   : > { %7657 = vmatprep.subr.bf16.mxu0 %v8754_v43  ;;  %7698 = vmatprep.subr.bf16.mxu1 %v8882_v46  ;;  %v7733_v43 = vld [vmem:[#allocation2 + $0x18] sm:$0xff] (!%p8883_p7)  ;;  %v7734_v46 = vld [vmem:[#allocation2 + $0x20] sm:$0xff] (!%p8883_p7) }
 0x440   : > { %7658 = vmatpush1.bf16.msra.mxu0 %v8753_v47  ;;  %7699 = vmatpush1.bf16.msra.mxu1 %v8881_v50  ;;  %v7758_v47 = vsub.s32 (!%p8883_p7), 4, %v7741_v52  ;;  %v7762_v50 = vsub.s32 (!%p8883_p7), 5, %v7741_v52 }
 0x443   : > { %7660 = vmatmul.mubr.bf16.vlgmr.msra.gmra.mrb[60].mxu0 %v9439_v45  ;;  %7701 = vmatmul.mubr.bf16.vlgmr.msra.gmra.mrb[60].mxu1 %v9443_v48 }
 0x456   : > { %v7415_v17 = vpop.f32.mrb[48].mxu0  ;;  %v7456_v55 = vpop.f32.mrb[48].mxu1 }
 0x457   : > { %v7417_v21 = vpop.f32.mrb[49].mxu0  ;;  %v7457_v56 = vadd.f32 %v7456_v55, %v7415_v17  ;;  %v7458_v3 = vpop.f32.mrb[49].mxu1  ;;  %v7766_v17 = vsub.s32 (!%p8883_p7), 6, %v7741_v52  ;;  %v7770_v55 = vsub.s32 (!%p8883_p7), 7, %v7741_v52 }
 0x458   : > { %v7419_v61 = vpop.f32.mrb[50].mxu0  ;;  %v7459_v7 = vadd.f32 %v7458_v3, %v7417_v21  ;;  %v7460_v51 = vpop.f32.mrb[50].mxu1  ;;  %v7743_v21 = vrot.slane (!%p8883_p7), %v7738_v36, %v7742_v38  ;;  %v7751_v3 = vrot.slane (!%p8883_p7), %v7738_v36, %v7750_v53 }
 0x459   : > { %v7420_v63 = vpop.f32.mrb[51].mxu0  ;;  %v7461_v0 = vpop.f32.mrb[51].mxu1  ;;  %v7755_v61 = vrot.slane (!%p8883_p7), %v7738_v36, %v7754_v42 }
 0x45a   : > { %v7759_v0 = vrot.slane (!%p8883_p7), %v7738_v36, %v7758_v47 }
 0x496   : > { %v7497_v54 = vpop.f32.mrb[52].mxu0  ;;  %v7538_v62 = vpop.f32.mrb[52].mxu1 }
 0x497   : > { %v7498_v29 = vadd.f32 %v7497_v54, %v7457_v56  ;;  %v7499_v15 = vpop.f32.mrb[53].mxu0  ;;  %v7540_v19 = vpop.f32.mrb[53].mxu1  ;;  %v7747_v56 = vrot.slane (!%p8883_p7), %v7738_v36, %v7746_v39  ;;  %v7763_v54 = vrot.slane (!%p8883_p7), %v7738_v36, %v7762_v50 }
 0x498   : > { %v7500_v32 = vadd.f32 %v7499_v15, %v7459_v7  ;;  %v7501_v1 = vpop.f32.mrb[54].mxu0  ;;  %v7542_v2 = vpop.f32.mrb[54].mxu1  ;;  %v7735_v7 = vld [vmem:[#allocation2 + $0x28] sm:$0xff] (!%p8883_p7)  ;;  %v7780_v15 = vadd.f32 (!%p8883_p7), %v7743_v21, %v7730_v9 }
 0x499   : > { %v7539_v45 = vadd.f32 %v7538_v62, %v7498_v29  ;;  %v7502_v48 = vpop.f32.mrb[55].mxu0  ;;  %v7543_v57 = vpop.f32.mrb[55].mxu1  ;;  %v7767_v29 = vrot.slane (!%p8883_p7), %v7738_v36, %v7766_v17  ;;  %v7771_v62 = vrot.slane (!%p8883_p7), %v7738_v36, %v7770_v55  ;;  %v7783_v1 = vadd.f32 (!%p8883_p7), %v7755_v61, %v7733_v43 }
 0x49a   : > { %v7541_v4 = vadd.f32 %v7540_v19, %v7500_v32  ;;  %v7781_v32 = vadd.f32 (!%p8883_p7), %v7747_v56, %v7731_v44  ;;  %v7782_v19 = vadd.f32 (!%p8883_p7), %v7751_v3, %v7732_v11  ;;  %v7785_v2 = vadd.f32 (!%p8883_p7), %v7763_v54, %v7735_v7  ;;  %7788 = vst [vmem:[%s10355_s3] sm:$0xff] (!%p8883_p7), %v7780_v15 }
 0x49b   : > { %7791 = vst [vmem:[%s10355_s3 + $0x18] sm:$0xff] (!%p8883_p7), %v7783_v1 }
 0x49c   : > { %7789 = vst [vmem:[%s10355_s3 + $0x8] sm:$0xff] (!%p8883_p7), %v7781_v32  ;;  %7790 = vst [vmem:[%s10355_s3 + $0x10] sm:$0xff] (!%p8883_p7), %v7782_v19 }
 0x49d   : > { %7793 = vst [vmem:[%s10355_s3 + $0x28] sm:$0xff] (!%p8883_p7), %v7785_v2 }
 0x4d6   : > { %v7579_v5 = vpop.f32.mrb[56].mxu0  ;;  %v7620_v6 = vpop.f32.mrb[56].mxu1 }
 0x4d7   : > { %v7580_v58 = vadd.f32 %v7579_v5, %v7539_v45  ;;  %v7581_v8 = vpop.f32.mrb[57].mxu0  ;;  %v7622_v10 = vpop.f32.mrb[57].mxu1  ;;  %v7784_v45 = vadd.f32 (!%p8883_p7), %v7759_v0, %v7734_v46 }
 0x4d8   : > { %v7582_v59 = vadd.f32 %v7581_v8, %v7541_v4  ;;  %v7583_v35 = vpop.f32.mrb[58].mxu0  ;;  %v7624_v40 = vpop.f32.mrb[58].mxu1 }
 0x4d9   : > { %v7621_v60 = vadd.f32 %v7620_v6, %v7580_v58  ;;  %v7584_v12 = vpop.f32.mrb[59].mxu0  ;;  %v7625_v14 = vpop.f32.mrb[59].mxu1  ;;  %7792 = vst [vmem:[%s10355_s3 + $0x20] sm:$0xff] (!%p8883_p7), %v7784_v45 }
 0x4da   : > { %v7623_v13 = vadd.f32 %v7622_v10, %v7582_v59 }
 0x516   : > { %v7661_v16 = vpop.f32.mrb[60].mxu0  ;;  %v7702_v20 = vpop.f32.mrb[60].mxu1 }
 0x517   : > { %v7662_v18 = vadd.f32 %v7661_v16, %v7621_v60  ;;  %v7663_v22 = vpop.f32.mrb[61].mxu0  ;;  %v7704_v37 = vpop.f32.mrb[61].mxu1 }
 0x518   : > { %v7664_v24 = vadd.f32 %v7663_v22, %v7623_v13  ;;  %v7665_v25 = vpop.f32.mrb[62].mxu0  ;;  %v7706_v27 = vpop.f32.mrb[62].mxu1  ;;  %7729 = sbr.rel (%p8883_p7) target bundleno = 1321 (0x529), region = 44 }
 0x519   : > { %v7703_v41 = vadd.f32 %v7702_v20, %v7662_v18  ;;  %v7666_v28 = vpop.f32.mrb[63].mxu0  ;;  %v7707_v31 = vpop.f32.mrb[63].mxu1 }
 0x51a   : > { %v7705_v30 = vadd.f32 %v7704_v37, %v7664_v24 }
 0x51b   : > { %v7715_v33 = vadd.f32 %v7703_v41, %v219_v23 }
 0x51c   : > { %v7716_v49 = vadd.f32 %v7705_v30, %v220_v26 }
 0x51d   : > { %7723 = vst [vmem:[#allocation2 + $0x30] sm:$0xff] %v7715_v33 }
 0x51e   : > { %7725 = vst.msk [vmem:[#allocation2 + $0x38] sm:$0xff] %vm7724_vm1, %v7716_v49 }
 0x524   : > { %v7736_v51 = vld [vmem:[#allocation2 + $0x30] sm:$0xff] }
 0x525   : > { %v7737_v63 = vld [vmem:[#allocation2 + $0x38] sm:$0xff]  ;;  %v7786_v48 = vadd.f32 %v7767_v29, %v7736_v51 }
 0x526   : > { %v7787_v4 = vadd.f32 %v7771_v62, %v7737_v63 }
 0x527   : > { %7794 = vst [vmem:[%s10355_s3 + $0x30] sm:$0xff] %v7786_v48 }
 0x528   : > { %7795 = vst.msk [vmem:[%s10355_s3 + $0x38] sm:$0xff] %vm7724_vm1, %v7787_v4 }
 0x529 PF: > { %p13_p4 = scmp.ge.s32.totalorder %s9042_s17, 25   ;;  %s10359_s12 = smov %s8986_s13 }
 0x52a   : > { %s10360_s13 = smov %s8990_s14  ;;  %s10361_s14 = smov %s9052_s20 }
 0x52b   : > { %s10362_s15 = smov %s9042_s17  ;;  %15 = sbr.rel (!%p13_p4) target bundleno = 3 (0x3), region = 79 }
 0x532   :  { %7807 = vsyncpa [#allocation4], 1 }
 0x533   :  { %7809 = vsyncpa [#allocation4 + $0x1], 1 }

</bundles_post_ra>
